<compile_context>
chip_gen: v7x
topology: tpu7x:2x2x1
jax: 0.10.0
libtpu: 0.0.40
codegen_flags: <defaults>
</compile_context>

<pallas_src>
import functools

import jax
import jax.numpy as jnp
from jax.experimental import pallas as pl
from jax.experimental.pallas import tpu as pltpu

F32 = jnp.float32
BF16 = jnp.bfloat16


# --------------------------------------------------------------------------
# In-kernel helpers
# --------------------------------------------------------------------------
def _layernorm(x, gamma, beta, eps):
    mu = jnp.mean(x, axis=-1, keepdims=True)
    xc = x - mu
    var = jnp.mean(xc * xc, axis=-1, keepdims=True)      # biased var (torch LN)
    return xc * jax.lax.rsqrt(var + eps) * gamma + beta


def _gelu_tanh(x):
    # tanh-form GELU (tanh runs on the EUP slot).
    # TODO(synk): nn.GELU() defaults to the exact erf form (~1e-3 per-element
    # difference); switch to erf if strict PyTorch parity is required.
    return 0.5 * x * (1.0 + jnp.tanh(0.7978845608028654 * (x + 0.044715 * x * x * x)))


# --------------------------------------------------------------------------
# Fused kernel: LN1 -> GlobalPerceptron -> token mixing -> gate -> +x
#               -> LN2 -> fc1 -> GELU -> fc2 -> +x2
# --------------------------------------------------------------------------
def _repmlp_block_kernel(x_ref, ln1g_ref, ln1b_ref,
                         gw1_ref, gb1_ref, gw2_ref, gb2_ref,
                         w_ref, mask_ref, bvec_ref,
                         ln2g_ref, ln2b_ref,
                         w1_ref, b1_ref, w2_ref, b2_ref,
                         o_ref, *, eps, num_sharesets, t_hw, e_chunk):
    hw = x_ref.shape[1]

    # ---------------- repmlp_block ----------------
    x_full = x_ref[0]                                        # (HW, C) f32
    x_ln = _layernorm(x_full, ln1g_ref[...], ln1b_ref[...], eps)

    # GlobalPerceptron: token mean -> fc1 -> ReLU -> fc2 -> sigmoid.
    # (Recomputed per token tile; negligible next to the matmuls.)
    pooled = jnp.mean(x_ln, axis=0, keepdims=True)           # (1, C)
    h = jnp.dot(pooled, gw1_ref[...], preferred_element_type=F32) + gb1_ref[...]
    h = jnp.maximum(h, 0.0)
    gate = jax.nn.sigmoid(
        jnp.dot(h, gw2_ref[...], preferred_element_type=F32) + gb2_ref[...])  # (1, C)

    x_bf = x_ln.astype(BF16)                                 # MXU input (all tokens)
    if t_hw == hw:
        x_tile = x_full
    else:
        row0 = pl.multiple_of(pl.program_id(1) * t_hw, 8)
        x_tile = x_ref[0, pl.ds(row0, t_hw), :]              # residual rows, this tile

    # Reparameterized token mixing in the lane-dense (tokens, channels) layout;
    # shareset membership (c % S == s) is a per-channel mask folded into the
    # gate, so no channel regroup transposes are needed.
    # TODO(synk): for C // S >= 128, permute channels so each shareset is lane-
    # contiguous and do S matmuls of (t_hw,HW)@(HW,C//S) (S x fewer MXU FLOPs).
    gmask = gate * mask_ref[...]                             # (S, C)
    acc = x_tile + bvec_ref[...] * gate                      # residual + gated BN bias
    for s in range(num_sharesets):                           # unrolled, S matmuls
        z = jnp.dot(w_ref[s], x_bf, preferred_element_type=F32)   # (t_hw, C)
        acc = acc + z * gmask[s:s + 1, :]
    # acc == x2 tile  (= unit(LN1(x)) + x)

    # ---------------- ffn_block ----------------
    y = _layernorm(acc, ln2g_ref[...], ln2b_ref[...], eps).astype(BF16)
    e_total = w1_ref.shape[1]
    out = acc + b2_ref[...]
    for e0 in range(0, e_total, e_chunk):                    # chunk the hidden dim E
        hch = jnp.dot(y, w1_ref[:, e0:e0 + e_chunk],
                      preferred_element_type=F32) + b1_ref[:, e0:e0 + e_chunk]
        hch = _gelu_tanh(hch)
        out = out + jnp.dot(hch.astype(BF16), w2_ref[e0:e0 + e_chunk, :],
                            preferred_element_type=F32)
    o_ref[0] = out                                           # ffn(x2) + x2


# --------------------------------------------------------------------------
# Tiling / VMEM helpers (all trace-time Python)
# --------------------------------------------------------------------------
def _pick_token_tile(hw):
    """Output-token tile rows: a multiple of 8 dividing HW, targeting ~128."""
    if hw % 8 != 0 or hw <= 128:
        return hw
    for t in (128, 64, 32, 16, 8):
        if hw % t == 0:
            return t
    return hw


def _pick_e_chunk(e):
    """FFN hidden-dim chunk so the (rows, E) f32 hidden never lives whole."""
    if e <= 512:
        return e
    for c in (512, 256, 128, 64):
        if e % c == 0:
            return c
    return e


def _vmem_limit_bytes():
    """Generation-aware scoped-VMEM limit: ~3/4 of physical, capped at 100 MiB
    (≈96 MiB on v5e/v6e's 128 MiB, ≈48 MiB on v7x's 64 MiB)."""
    try:
        cap = int(pltpu.get_tpu_info().vmem_capacity_bytes)
    except Exception:                          # conservative (v7x-sized) fallback
        cap = 64 * 1024 * 1024
    return min(cap * 3 // 4, 100 * 1024 * 1024)


def _spec(shape, index_map, *, single_buffer=False):
    """BlockSpec; constant-index resident operands are single-buffered so the
    default double-buffering does not double their VMEM footprint."""
    if single_buffer:
        try:
            return pl.BlockSpec(shape, index_map, pipeline_mode=pl.Buffered(1))
        except TypeError:                      # jax build without pipeline_mode
            pass
    return pl.BlockSpec(shape, index_map)


def _resident(shape, single_buffer=True):
    zeros = (0,) * len(shape)
    return _spec(shape, lambda *_: zeros, single_buffer=single_buffer)


# --------------------------------------------------------------------------
# One-time "deploy" reparameterization (hoisted out of the forward path)
# --------------------------------------------------------------------------
def _bn_fold(gamma, beta, mean, var, eps=1e-5):
    a = gamma / jnp.sqrt(var + eps)
    return a, beta - a * mean


def build_unit_weights(params, S, h, w):
    """Fold ChannelPerceptron fc3 + LocalPerceptron 1x1/3x3 convs + their BNs
    into one (hw, hw) matrix and one scalar bias per shareset."""
    hw = h * w
    a_fc, c_fc = _bn_fold(*params["fc3_bn"])   # per-shareset (BatchNorm2d(S))
    a_1, c_1 = _bn_fold(*params["bn1"])
    a_3, c_3 = _bn_fold(*params["bn3"])

    w_fc = params["fc3_w"]                        # (S, hw, hw) grouped 1x1 FC
    w1 = params["conv1_w"]                        # (S,)  depthwise 1x1 conv
    k3 = params["conv3_w"] * a_3[:, None, None]   # (S, 3, 3), BN scale folded

    # Toeplitz matrix of the 3x3 depthwise conv with padding=1:
    # T3[s, i*w+j, p*w+q] = k3[s, p-i+1, q-j+1] when |p-i|<=1, |q-j|<=1.
    i = jnp.arange(h)[:, None, None, None]
    j = jnp.arange(w)[None, :, None, None]
    p = jnp.arange(h)[None, None, :, None]
    q = jnp.arange(w)[None, None, None, :]
    di = p - i + 1
    dj = q - j + 1
    valid = (di >= 0) & (di < 3) & (dj >= 0) & (dj < 3)
    t3 = jnp.where(valid[None], k3[:, jnp.clip(di, 0, 2), jnp.clip(dj, 0, 2)], 0.0)
    t3 = t3.reshape(S, hw, hw)

    w_eff = (a_fc[:, None, None] * w_fc
             + (a_1 * w1)[:, None, None] * jnp.eye(hw, dtype=F32)[None]
             + t3)                                # out_tokens = w_eff[s] @ in_tokens
    b_eff = c_fc + c_1 + c_3                      # per-shareset scalar bias
    return w_eff, b_eff


def prepare_deploy_params(params, *, S, h, w):
    """BN folding, Toeplitz construction, weight transposes, bf16 casts, and
    shareset mask / per-channel bias, computed ONCE (not per forward call)."""
    c = params["ln1_g"].shape[0]
    c4 = params["gp_w1"].shape[0]
    e = params["mlp_w1"].shape[0]
    w_eff, b_eff = build_unit_weights(params, S, h, w)            # (S,hw,hw), (S,)
    ch = jnp.arange(c)
    return dict(
        ln1_g=params["ln1_g"].reshape(1, c).astype(F32),
        ln1_b=params["ln1_b"].reshape(1, c).astype(F32),
        gp_w1=params["gp_w1"].T.astype(F32),                      # (C, C/4)
        gp_b1=params["gp_b1"].reshape(1, c4).astype(F32),
        gp_w2=params["gp_w2"].T.astype(F32),                      # (C/4, C)
        gp_b2=params["gp_b2"].reshape(1, c).astype(F32),
        w_eff=w_eff.astype(BF16),                                 # (S, hw, hw)
        mask=(ch[None, :] % S == jnp.arange(S)[:, None]).astype(F32),   # (S, C)
        b_vec=b_eff[ch % S].reshape(1, c).astype(F32),            # per-channel bias
        ln2_g=params["ln2_g"].reshape(1, c).astype(F32),
        ln2_b=params["ln2_b"].reshape(1, c).astype(F32),
        mlp_w1=params["mlp_w1"].T.astype(BF16),                   # (C, E)
        mlp_b1=params["mlp_b1"].reshape(1, e).astype(F32),
        mlp_w2=params["mlp_w2"].T.astype(BF16),                   # (E, C)
        mlp_b2=params["mlp_b2"].reshape(1, c).astype(F32),
    )


# --------------------------------------------------------------------------
# Pallas-call wrapper (the whole RepMLPBlock forward)
# --------------------------------------------------------------------------
def repmlp_block_forward(x, dp, *, eps=1e-5, single_buffer_weights=True):
    n, h, w, c = x.shape
    hw = h * w
    S = dp["mask"].shape[0]
    c4 = dp["gp_w1"].shape[1]
    e = dp["mlp_w1"].shape[1]
    assert c % S == 0, "hidden_dim must be divisible by num_sharesets"
    assert dp["w_eff"].shape == (S, hw, hw)

    t_hw = _pick_token_tile(hw)
    n_t = hw // t_hw
    e_chunk = _pick_e_chunk(e)
    sb = single_buffer_weights

    # TODO(synk): when HW*C*4 is tiny (< ~256 KB/sample) batch several samples
    # per grid step to amortize the ~0.35 us per-step overhead.
    flops = int(n * (2 * S * hw * hw * c + 4 * c * c4 + 4 * hw * c * e + 30 * hw * c))
    transcendentals = int(n * (hw * e + hw * c + n_t * (c + c4)))
    bytes_accessed = int(2 * n * hw * c * 4 + S * hw * hw * 2 + 2 * c * e * 2
                         + 2 * c * c4 * 4 + (S + 10) * c * 4)

    out = pl.pallas_call(
        functools.partial(_repmlp_block_kernel, eps=eps, num_sharesets=S,
                          t_hw=t_hw, e_chunk=e_chunk),
        out_shape=jax.ShapeDtypeStruct((n, hw, c), F32),
        grid=(n, n_t),
        in_specs=[
            pl.BlockSpec((1, hw, c), lambda i, t: (i, 0, 0)),     # x (1 DMA / sample)
            _resident((1, c), sb), _resident((1, c), sb),         # LN1 gamma / beta
            _resident((c, c4), sb), _resident((1, c4), sb),       # GP fc1 (pre-T)
            _resident((c4, c), sb), _resident((1, c), sb),        # GP fc2 (pre-T)
            _spec((S, t_hw, hw), lambda i, t: (0, t, 0),          # W_eff bf16
                  single_buffer=sb and n_t == 1),
            _resident((S, c), sb), _resident((1, c), sb),         # mask, BN bias
            _resident((1, c), sb), _resident((1, c), sb),         # LN2 gamma / beta
            _resident((c, e), sb), _resident((1, e), sb),         # MLP fc1 bf16
            _resident((e, c), sb), _resident((1, c), sb),         # MLP fc2 bf16
        ],
        out_specs=pl.BlockSpec((1, t_hw, c), lambda i, t: (i, t, 0)),
        compiler_params=pltpu.CompilerParams(
            dimension_semantics=("parallel", "parallel"),
            vmem_limit_bytes=_vmem_limit_bytes()),
        cost_estimate=pl.CostEstimate(flops=flops,
                                      transcendentals=transcendentals,
                                      bytes_accessed=bytes_accessed),
    )(
        x.reshape(n, hw, c),
        dp["ln1_g"], dp["ln1_b"],
        dp["gp_w1"], dp["gp_b1"], dp["gp_w2"], dp["gp_b2"],
        dp["w_eff"], dp["mask"], dp["b_vec"],
        dp["ln2_g"], dp["ln2_b"],
        dp["mlp_w1"], dp["mlp_b1"], dp["mlp_w2"], dp["mlp_b2"],
    )
    return out.reshape(n, h, w, c)


# --------------------------------------------------------------------------
# Deterministic parameter init (synthetic; matches the module's shapes)
# --------------------------------------------------------------------------
def init_params(key, c, h, w, S, expansion):
    hw, c4, e = h * w, c // 4, expansion
    keys = iter(jax.random.split(key, 32))

    def nrm(shape, scale=0.1):
        return (scale * jax.random.normal(next(keys), shape)).astype(F32)

    def uni(shape, lo, hi):
        return jax.random.uniform(next(keys), shape, F32, lo, hi)

    def bn(nfeat):  # (gamma, beta, running_mean, running_var)
        return (uni((nfeat,), 0.5, 1.5), nrm((nfeat,)),
                nrm((nfeat,)), uni((nfeat,), 0.5, 1.5))

    return dict(
        ln1_g=1.0 + nrm((c,)), ln1_b=nrm((c,)),
        gp_w1=nrm((c4, c)), gp_b1=nrm((c4,)),            # GlobalPerceptron fc1
        gp_w2=nrm((c, c4)), gp_b2=nrm((c,)),             # GlobalPerceptron fc2
        conv1_w=nrm((S,)),  bn1=bn(S),                   # LocalPerceptron repconv1
        conv3_w=nrm((S, 3, 3)), bn3=bn(S),               # LocalPerceptron repconv3
        fc3_w=nrm((S, hw, hw)), fc3_bn=bn(S),            # ChannelPerceptron
        ln2_g=1.0 + nrm((c,)), ln2_b=nrm((c,)),
        mlp_w1=nrm((e * c, c)), mlp_b1=nrm((e * c,)),    # MLP fc1
        mlp_w2=nrm((c, e * c)), mlp_b2=nrm((c,)),        # MLP fc2
    )


if __name__ == "__main__":
    N, H, W = 2, 16, 16      # HW = 256 -> two 128-row token tiles per sample
    C = 32                   # hidden_dim (divisible by 4 and by S)
    S = 4                    # num_sharesets (RepMLPNetUnit default)
    EXP = 2                  # expansion_factor

    key = jax.random.PRNGKey(0)
    kx, kp = jax.random.split(key)
    x = jax.random.normal(kx, (N, H, W, C), dtype=F32)
    params = init_params(kp, C, H, W, S, EXP)

    # One-time deploy-style reparameterization (hoisted out of the forward).
    deploy = prepare_deploy_params(params, S=S, h=H, w=W)

    fwd = jax.jit(repmlp_block_forward)
    try:
        out = jax.block_until_ready(fwd(x, deploy))
    except Exception:
        # Fallback: disable single-buffering of resident weights if this jax
        # build rejects pipeline_mode=pl.Buffered(1).
        fwd = jax.jit(functools.partial(repmlp_block_forward,
                                        single_buffer_weights=False))
        out = jax.block_until_ready(fwd(x, deploy))

    assert out.shape == (N, H, W, C)
    assert bool(jnp.all(jnp.isfinite(out)))
    print("KERNEL_OK")
</pallas_src>

<mosaic_0001>
module attributes {stable_mosaic.version = 11 : i64} {
  func.func @_repmlp_block_kernel(%arg0: i32, %arg1: i32, %arg2: memref<1x256x32xf32, #tpu.memory_space<vmem>>, %arg3: memref<1x32xf32, #tpu.memory_space<vmem>>, %arg4: memref<1x32xf32, #tpu.memory_space<vmem>>, %arg5: memref<32x8xf32, #tpu.memory_space<vmem>>, %arg6: memref<1x8xf32, #tpu.memory_space<vmem>>, %arg7: memref<8x32xf32, #tpu.memory_space<vmem>>, %arg8: memref<1x32xf32, #tpu.memory_space<vmem>>, %arg9: memref<4x128x256xbf16, #tpu.memory_space<vmem>>, %arg10: memref<4x32xf32, #tpu.memory_space<vmem>>, %arg11: memref<1x32xf32, #tpu.memory_space<vmem>>, %arg12: memref<1x32xf32, #tpu.memory_space<vmem>>, %arg13: memref<1x32xf32, #tpu.memory_space<vmem>>, %arg14: memref<32x64xbf16, #tpu.memory_space<vmem>>, %arg15: memref<1x64xf32, #tpu.memory_space<vmem>>, %arg16: memref<64x32xbf16, #tpu.memory_space<vmem>>, %arg17: memref<1x32xf32, #tpu.memory_space<vmem>>, %arg18: memref<1x128x32xf32, #tpu.memory_space<vmem>>) attributes {dimension_semantics = [#tpu.dimension_semantics<parallel>, #tpu.dimension_semantics<parallel>], iteration_bounds = array<i64: 2, 2>, scalar_prefetch = 0 : i64, scratch_operands = 0 : i64, tpu.core_type = #tpu.core_type<tc>, window_params = [{transform_indices = @transform_0, window_bounds = array<i64: 1, 256, 32>}, {pipeline_mode = #tpu.pipeline_mode<synchronous>, transform_indices = @transform_1, window_bounds = array<i64: 1, 32>}, {pipeline_mode = #tpu.pipeline_mode<synchronous>, transform_indices = @transform_2, window_bounds = array<i64: 1, 32>}, {pipeline_mode = #tpu.pipeline_mode<synchronous>, transform_indices = @transform_3, window_bounds = array<i64: 32, 8>}, {pipeline_mode = #tpu.pipeline_mode<synchronous>, transform_indices = @transform_4, window_bounds = array<i64: 1, 8>}, {pipeline_mode = #tpu.pipeline_mode<synchronous>, transform_indices = @transform_5, window_bounds = array<i64: 8, 32>}, {pipeline_mode = #tpu.pipeline_mode<synchronous>, transform_indices = @transform_6, window_bounds = array<i64: 1, 32>}, {transform_indices = @transform_7, window_bounds = array<i64: 4, 128, 256>}, {pipeline_mode = #tpu.pipeline_mode<synchronous>, transform_indices = @transform_8, window_bounds = array<i64: 4, 32>}, {pipeline_mode = #tpu.pipeline_mode<synchronous>, transform_indices = @transform_9, window_bounds = array<i64: 1, 32>}, {pipeline_mode = #tpu.pipeline_mode<synchronous>, transform_indices = @transform_10, window_bounds = array<i64: 1, 32>}, {pipeline_mode = #tpu.pipeline_mode<synchronous>, transform_indices = @transform_11, window_bounds = array<i64: 1, 32>}, {pipeline_mode = #tpu.pipeline_mode<synchronous>, transform_indices = @transform_12, window_bounds = array<i64: 32, 64>}, {pipeline_mode = #tpu.pipeline_mode<synchronous>, transform_indices = @transform_13, window_bounds = array<i64: 1, 64>}, {pipeline_mode = #tpu.pipeline_mode<synchronous>, transform_indices = @transform_14, window_bounds = array<i64: 64, 32>}, {pipeline_mode = #tpu.pipeline_mode<synchronous>, transform_indices = @transform_15, window_bounds = array<i64: 1, 32>}, {transform_indices = @transform_16, window_bounds = array<i64: 1, 128, 32>}]} {
    %c0 = arith.constant 0 : index
    %c0_0 = arith.constant 0 : index
    %c0_1 = arith.constant 0 : index
    %0 = vector.load %arg2[%c0, %c0_0, %c0_1] : memref<1x256x32xf32, #tpu.memory_space<vmem>>, vector<1x256x32xf32>
    %1 = vector.shape_cast %0 : vector<1x256x32xf32> to vector<256x32xf32>
    %c0_2 = arith.constant 0 : index
    %c0_3 = arith.constant 0 : index
    %2 = vector.load %arg3[%c0_2, %c0_3] : memref<1x32xf32, #tpu.memory_space<vmem>>, vector<1x32xf32>
    %c0_4 = arith.constant 0 : index
    %c0_5 = arith.constant 0 : index
    %3 = vector.load %arg4[%c0_4, %c0_5] : memref<1x32xf32, #tpu.memory_space<vmem>>, vector<1x32xf32>
    %cst = arith.constant dense<0.000000e+00> : vector<256xf32>
    %4 = vector.multi_reduction <add>, %1, %cst [1] : vector<256x32xf32> to vector<256xf32>
    %5 = vector.shape_cast %4 : vector<256xf32> to vector<256x1xf32>
    %cst_6 = arith.constant 3.200000e+01 : f32
    %6 = vector.broadcast %cst_6 : f32 to vector<256x1xf32>
    %7 = arith.divf %5, %6 : vector<256x1xf32>
    %8 = vector.broadcast %7 : vector<256x1xf32> to vector<256x32xf32>
    %9 = arith.subf %1, %8 : vector<256x32xf32>
    %10 = arith.mulf %9, %9 : vector<256x32xf32>
    %cst_7 = arith.constant dense<0.000000e+00> : vector<256xf32>
    %11 = vector.multi_reduction <add>, %10, %cst_7 [1] : vector<256x32xf32> to vector<256xf32>
    %12 = vector.shape_cast %11 : vector<256xf32> to vector<256x1xf32>
    %cst_8 = arith.constant 3.200000e+01 : f32
    %13 = vector.broadcast %cst_8 : f32 to vector<256x1xf32>
    %14 = arith.divf %12, %13 : vector<256x1xf32>
    %cst_9 = arith.constant 9.99999974E-6 : f32
    %15 = vector.broadcast %cst_9 : f32 to vector<256x1xf32>
    %16 = arith.addf %14, %15 : vector<256x1xf32>
    %17 = math.rsqrt %16 : vector<256x1xf32>
    %18 = vector.broadcast %17 : vector<256x1xf32> to vector<256x32xf32>
    %19 = arith.mulf %9, %18 : vector<256x32xf32>
    %20 = vector.broadcast %2 : vector<1x32xf32> to vector<256x32xf32>
    %21 = arith.mulf %19, %20 : vector<256x32xf32>
    %22 = vector.broadcast %3 : vector<1x32xf32> to vector<256x32xf32>
    %23 = arith.addf %21, %22 : vector<256x32xf32>
    %cst_10 = arith.constant dense<0.000000e+00> : vector<32xf32>
    %24 = vector.multi_reduction <add>, %23, %cst_10 [0] : vector<256x32xf32> to vector<32xf32>
    %25 = vector.shape_cast %24 : vector<32xf32> to vector<1x32xf32>
    %cst_11 = arith.constant 2.560000e+02 : f32
    %26 = vector.broadcast %cst_11 : f32 to vector<1x32xf32>
    %27 = arith.divf %25, %26 : vector<1x32xf32>
    %c0_12 = arith.constant 0 : index
    %c0_13 = arith.constant 0 : index
    %28 = vector.load %arg5[%c0_12, %c0_13] : memref<32x8xf32, #tpu.memory_space<vmem>>, vector<32x8xf32>
    %cst_14 = arith.constant dense<0.000000e+00> : vector<1x8xf32>
    %29 = tpu.matmul %27, %28, %cst_14 {dimension_numbers = #tpu.dot_dimension_numbers<[1], [0], [0], [1], [0, 0, 1, 1], [], []>} : vector<1x32xf32>, vector<32x8xf32>, vector<1x8xf32> -> vector<1x8xf32>
    %c0_15 = arith.constant 0 : index
    %c0_16 = arith.constant 0 : index
    %30 = vector.load %arg6[%c0_15, %c0_16] : memref<1x8xf32, #tpu.memory_space<vmem>>, vector<1x8xf32>
    %31 = arith.addf %29, %30 : vector<1x8xf32>
    %cst_17 = arith.constant 0.000000e+00 : f32
    %32 = vector.broadcast %cst_17 : f32 to vector<1x8xf32>
    %33 = arith.maximumf %31, %32 : vector<1x8xf32>
    %c0_18 = arith.constant 0 : index
    %c0_19 = arith.constant 0 : index
    %34 = vector.load %arg7[%c0_18, %c0_19] : memref<8x32xf32, #tpu.memory_space<vmem>>, vector<8x32xf32>
    %cst_20 = arith.constant dense<0.000000e+00> : vector<1x32xf32>
    %35 = tpu.matmul %33, %34, %cst_20 {dimension_numbers = #tpu.dot_dimension_numbers<[1], [0], [0], [1], [0, 0, 1, 1], [], []>} : vector<1x8xf32>, vector<8x32xf32>, vector<1x32xf32> -> vector<1x32xf32>
    %c0_21 = arith.constant 0 : index
    %c0_22 = arith.constant 0 : index
    %36 = vector.load %arg8[%c0_21, %c0_22] : memref<1x32xf32, #tpu.memory_space<vmem>>, vector<1x32xf32>
    %37 = arith.addf %35, %36 : vector<1x32xf32>
    %38 = arith.negf %37 : vector<1x32xf32>
    %39 = math.exp %38 : vector<1x32xf32>
    %cst_23 = arith.constant 1.000000e+00 : f32
    %40 = vector.broadcast %cst_23 : f32 to vector<1x32xf32>
    %41 = arith.addf %40, %39 : vector<1x32xf32>
    %42 = arith.divf %40, %41 : vector<1x32xf32>
    %43 = arith.truncf %23 : vector<256x32xf32> to vector<256x32xbf16>
    %c128_i32 = arith.constant 128 : i32
    %44 = arith.muli %arg1, %c128_i32 : i32
    %45 = tpu.assume_multiple %44, 8 : i32
    %c0_24 = arith.constant 0 : index
    %46 = arith.index_cast %45 : i32 to index
    %c0_25 = arith.constant 0 : index
    %47 = vector.load %arg2[%c0_24, %46, %c0_25] : memref<1x256x32xf32, #tpu.memory_space<vmem>>, vector<1x128x32xf32>
    %48 = vector.shape_cast %47 : vector<1x128x32xf32> to vector<128x32xf32>
    %c0_26 = arith.constant 0 : index
    %c0_27 = arith.constant 0 : index
    %49 = vector.load %arg10[%c0_26, %c0_27] : memref<4x32xf32, #tpu.memory_space<vmem>>, vector<4x32xf32>
    %50 = vector.broadcast %42 : vector<1x32xf32> to vector<4x32xf32>
    %51 = arith.mulf %50, %49 : vector<4x32xf32>
    %c0_28 = arith.constant 0 : index
    %c0_29 = arith.constant 0 : index
    %52 = vector.load %arg11[%c0_28, %c0_29] : memref<1x32xf32, #tpu.memory_space<vmem>>, vector<1x32xf32>
    %53 = arith.mulf %52, %42 : vector<1x32xf32>
    %54 = vector.broadcast %53 : vector<1x32xf32> to vector<128x32xf32>
    %55 = arith.addf %48, %54 : vector<128x32xf32>
    %c0_30 = arith.constant 0 : index
    %c0_31 = arith.constant 0 : index
    %c0_32 = arith.constant 0 : index
    %56 = vector.load %arg9[%c0_30, %c0_31, %c0_32] : memref<4x128x256xbf16, #tpu.memory_space<vmem>>, vector<1x128x256xbf16>
    %57 = vector.shape_cast %56 : vector<1x128x256xbf16> to vector<128x256xbf16>
    %cst_33 = arith.constant dense<0.000000e+00> : vector<128x32xf32>
    %58 = tpu.matmul %57, %43, %cst_33 {dimension_numbers = #tpu.dot_dimension_numbers<[1], [0], [0], [1], [0, 0, 1, 1], [], []>} : vector<128x256xbf16>, vector<256x32xbf16>, vector<128x32xf32> -> vector<128x32xf32>
    %59 = vector.extract_strided_slice %51 {offsets = [0, 0], sizes = [1, 32], strides = [1, 1]} : vector<4x32xf32> to vector<1x32xf32>
    %60 = vector.broadcast %59 : vector<1x32xf32> to vector<128x32xf32>
    %61 = arith.mulf %58, %60 : vector<128x32xf32>
    %62 = arith.addf %55, %61 : vector<128x32xf32>
    %c1 = arith.constant 1 : index
    %c0_34 = arith.constant 0 : index
    %c0_35 = arith.constant 0 : index
    %63 = vector.load %arg9[%c1, %c0_34, %c0_35] : memref<4x128x256xbf16, #tpu.memory_space<vmem>>, vector<1x128x256xbf16>
    %64 = vector.shape_cast %63 : vector<1x128x256xbf16> to vector<128x256xbf16>
    %cst_36 = arith.constant dense<0.000000e+00> : vector<128x32xf32>
    %65 = tpu.matmul %64, %43, %cst_36 {dimension_numbers = #tpu.dot_dimension_numbers<[1], [0], [0], [1], [0, 0, 1, 1], [], []>} : vector<128x256xbf16>, vector<256x32xbf16>, vector<128x32xf32> -> vector<128x32xf32>
    %66 = vector.extract_strided_slice %51 {offsets = [1, 0], sizes = [1, 32], strides = [1, 1]} : vector<4x32xf32> to vector<1x32xf32>
    %67 = vector.broadcast %66 : vector<1x32xf32> to vector<128x32xf32>
    %68 = arith.mulf %65, %67 : vector<128x32xf32>
    %69 = arith.addf %62, %68 : vector<128x32xf32>
    %c2 = arith.constant 2 : index
    %c0_37 = arith.constant 0 : index
    %c0_38 = arith.constant 0 : index
    %70 = vector.load %arg9[%c2, %c0_37, %c0_38] : memref<4x128x256xbf16, #tpu.memory_space<vmem>>, vector<1x128x256xbf16>
    %71 = vector.shape_cast %70 : vector<1x128x256xbf16> to vector<128x256xbf16>
    %cst_39 = arith.constant dense<0.000000e+00> : vector<128x32xf32>
    %72 = tpu.matmul %71, %43, %cst_39 {dimension_numbers = #tpu.dot_dimension_numbers<[1], [0], [0], [1], [0, 0, 1, 1], [], []>} : vector<128x256xbf16>, vector<256x32xbf16>, vector<128x32xf32> -> vector<128x32xf32>
    %73 = vector.extract_strided_slice %51 {offsets = [2, 0], sizes = [1, 32], strides = [1, 1]} : vector<4x32xf32> to vector<1x32xf32>
    %74 = vector.broadcast %73 : vector<1x32xf32> to vector<128x32xf32>
    %75 = arith.mulf %72, %74 : vector<128x32xf32>
    %76 = arith.addf %69, %75 : vector<128x32xf32>
    %c3 = arith.constant 3 : index
    %c0_40 = arith.constant 0 : index
    %c0_41 = arith.constant 0 : index
    %77 = vector.load %arg9[%c3, %c0_40, %c0_41] : memref<4x128x256xbf16, #tpu.memory_space<vmem>>, vector<1x128x256xbf16>
    %78 = vector.shape_cast %77 : vector<1x128x256xbf16> to vector<128x256xbf16>
    %cst_42 = arith.constant dense<0.000000e+00> : vector<128x32xf32>
    %79 = tpu.matmul %78, %43, %cst_42 {dimension_numbers = #tpu.dot_dimension_numbers<[1], [0], [0], [1], [0, 0, 1, 1], [], []>} : vector<128x256xbf16>, vector<256x32xbf16>, vector<128x32xf32> -> vector<128x32xf32>
    %80 = vector.extract_strided_slice %51 {offsets = [3, 0], sizes = [1, 32], strides = [1, 1]} : vector<4x32xf32> to vector<1x32xf32>
    %81 = vector.broadcast %80 : vector<1x32xf32> to vector<128x32xf32>
    %82 = arith.mulf %79, %81 : vector<128x32xf32>
    %83 = arith.addf %76, %82 : vector<128x32xf32>
    %c0_43 = arith.constant 0 : index
    %c0_44 = arith.constant 0 : index
    %84 = vector.load %arg12[%c0_43, %c0_44] : memref<1x32xf32, #tpu.memory_space<vmem>>, vector<1x32xf32>
    %c0_45 = arith.constant 0 : index
    %c0_46 = arith.constant 0 : index
    %85 = vector.load %arg13[%c0_45, %c0_46] : memref<1x32xf32, #tpu.memory_space<vmem>>, vector<1x32xf32>
    %cst_47 = arith.constant dense<0.000000e+00> : vector<128xf32>
    %86 = vector.multi_reduction <add>, %83, %cst_47 [1] : vector<128x32xf32> to vector<128xf32>
    %87 = vector.shape_cast %86 : vector<128xf32> to vector<128x1xf32>
    %cst_48 = arith.constant 3.200000e+01 : f32
    %88 = vector.broadcast %cst_48 : f32 to vector<128x1xf32>
    %89 = arith.divf %87, %88 : vector<128x1xf32>
    %90 = vector.broadcast %89 : vector<128x1xf32> to vector<128x32xf32>
    %91 = arith.subf %83, %90 : vector<128x32xf32>
    %92 = arith.mulf %91, %91 : vector<128x32xf32>
    %cst_49 = arith.constant dense<0.000000e+00> : vector<128xf32>
    %93 = vector.multi_reduction <add>, %92, %cst_49 [1] : vector<128x32xf32> to vector<128xf32>
    %94 = vector.shape_cast %93 : vector<128xf32> to vector<128x1xf32>
    %cst_50 = arith.constant 3.200000e+01 : f32
    %95 = vector.broadcast %cst_50 : f32 to vector<128x1xf32>
    %96 = arith.divf %94, %95 : vector<128x1xf32>
    %cst_51 = arith.constant 9.99999974E-6 : f32
    %97 = vector.broadcast %cst_51 : f32 to vector<128x1xf32>
    %98 = arith.addf %96, %97 : vector<128x1xf32>
    %99 = math.rsqrt %98 : vector<128x1xf32>
    %100 = vector.broadcast %99 : vector<128x1xf32> to vector<128x32xf32>
    %101 = arith.mulf %91, %100 : vector<128x32xf32>
    %102 = vector.broadcast %84 : vector<1x32xf32> to vector<128x32xf32>
    %103 = arith.mulf %101, %102 : vector<128x32xf32>
    %104 = vector.broadcast %85 : vector<1x32xf32> to vector<128x32xf32>
    %105 = arith.addf %103, %104 : vector<128x32xf32>
    %106 = arith.truncf %105 : vector<128x32xf32> to vector<128x32xbf16>
    %c0_52 = arith.constant 0 : index
    %c0_53 = arith.constant 0 : index
    %107 = vector.load %arg17[%c0_52, %c0_53] : memref<1x32xf32, #tpu.memory_space<vmem>>, vector<1x32xf32>
    %108 = vector.broadcast %107 : vector<1x32xf32> to vector<128x32xf32>
    %109 = arith.addf %83, %108 : vector<128x32xf32>
    %c0_54 = arith.constant 0 : index
    %c0_55 = arith.constant 0 : index
    %110 = vector.load %arg14[%c0_54, %c0_55] : memref<32x64xbf16, #tpu.memory_space<vmem>>, vector<32x64xbf16>
    %cst_56 = arith.constant dense<0.000000e+00> : vector<128x64xf32>
    %111 = tpu.matmul %106, %110, %cst_56 {dimension_numbers = #tpu.dot_dimension_numbers<[1], [0], [0], [1], [0, 0, 1, 1], [], []>} : vector<128x32xbf16>, vector<32x64xbf16>, vector<128x64xf32> -> vector<128x64xf32>
    %c0_57 = arith.constant 0 : index
    %c0_58 = arith.constant 0 : index
    %112 = vector.load %arg15[%c0_57, %c0_58] : memref<1x64xf32, #tpu.memory_space<vmem>>, vector<1x64xf32>
    %113 = vector.broadcast %112 : vector<1x64xf32> to vector<128x64xf32>
    %114 = arith.addf %111, %113 : vector<128x64xf32>
    %cst_59 = arith.constant 5.000000e-01 : f32
    %115 = vector.broadcast %cst_59 : f32 to vector<128x64xf32>
    %116 = arith.mulf %115, %114 : vector<128x64xf32>
    %cst_60 = arith.constant 4.471500e-02 : f32
    %117 = vector.broadcast %cst_60 : f32 to vector<128x64xf32>
    %118 = arith.mulf %117, %114 : vector<128x64xf32>
    %119 = arith.mulf %118, %114 : vector<128x64xf32>
    %120 = arith.mulf %119, %114 : vector<128x64xf32>
    %121 = arith.addf %114, %120 : vector<128x64xf32>
    %cst_61 = arith.constant 0.797884583 : f32
    %122 = vector.broadcast %cst_61 : f32 to vector<128x64xf32>
    %123 = arith.mulf %122, %121 : vector<128x64xf32>
    %124 = math.tanh %123 : vector<128x64xf32>
    %cst_62 = arith.constant 1.000000e+00 : f32
    %125 = vector.broadcast %cst_62 : f32 to vector<128x64xf32>
    %126 = arith.addf %125, %124 : vector<128x64xf32>
    %127 = arith.mulf %116, %126 : vector<128x64xf32>
    %128 = arith.truncf %127 : vector<128x64xf32> to vector<128x64xbf16>
    %c0_63 = arith.constant 0 : index
    %c0_64 = arith.constant 0 : index
    %129 = vector.load %arg16[%c0_63, %c0_64] : memref<64x32xbf16, #tpu.memory_space<vmem>>, vector<64x32xbf16>
    %cst_65 = arith.constant dense<0.000000e+00> : vector<128x32xf32>
    %130 = tpu.matmul %128, %129, %cst_65 {dimension_numbers = #tpu.dot_dimension_numbers<[1], [0], [0], [1], [0, 0, 1, 1], [], []>} : vector<128x64xbf16>, vector<64x32xbf16>, vector<128x32xf32> -> vector<128x32xf32>
    %131 = arith.addf %109, %130 : vector<128x32xf32>
    %c0_66 = arith.constant 0 : index
    %c0_67 = arith.constant 0 : index
    %c0_68 = arith.constant 0 : index
    %132 = vector.load %arg18[%c0_66, %c0_67, %c0_68] : memref<1x128x32xf32, #tpu.memory_space<vmem>>, vector<1x128x32xf32>
    %133 = vector.shape_cast %132 : vector<1x128x32xf32> to vector<128x32xf32>
    %134 = vector.shape_cast %131 : vector<128x32xf32> to vector<1x128x32xf32>
    tpu.vector_store %arg18[%c0_66, %c0_67, %c0_68], %134 {strides = array<i32>} : memref<1x128x32xf32, #tpu.memory_space<vmem>>, vector<1x128x32xf32>,
    return
  }
  func.func @transform_0(%arg0: i32, %arg1: i32) -> (i32, i32, i32) {
    %c0_i32 = arith.constant 0 : i32
    %c0_i32_0 = arith.constant 0 : i32
    %c0_i32_1 = arith.constant 0 : i32
    return %arg0, %c0_i32, %c0_i32_0 : i32, i32, i32
  }
  func.func @transform_1(%arg0: i32, %arg1: i32) -> (i32, i32) {
    %c0_i32 = arith.constant 0 : i32
    %c0_i32_0 = arith.constant 0 : i32
    %c0_i32_1 = arith.constant 0 : i32
    return %c0_i32, %c0_i32_0 : i32, i32
  }
  func.func @transform_2(%arg0: i32, %arg1: i32) -> (i32, i32) {
    %c0_i32 = arith.constant 0 : i32
    %c0_i32_0 = arith.constant 0 : i32
    %c0_i32_1 = arith.constant 0 : i32
    return %c0_i32, %c0_i32_0 : i32, i32
  }
  func.func @transform_3(%arg0: i32, %arg1: i32) -> (i32, i32) {
    %c0_i32 = arith.constant 0 : i32
    %c0_i32_0 = arith.constant 0 : i32
    %c0_i32_1 = arith.constant 0 : i32
    return %c0_i32, %c0_i32_0 : i32, i32
  }
  func.func @transform_4(%arg0: i32, %arg1: i32) -> (i32, i32) {
    %c0_i32 = arith.constant 0 : i32
    %c0_i32_0 = arith.constant 0 : i32
    %c0_i32_1 = arith.constant 0 : i32
    return %c0_i32, %c0_i32_0 : i32, i32
  }
  func.func @transform_5(%arg0: i32, %arg1: i32) -> (i32, i32) {
    %c0_i32 = arith.constant 0 : i32
    %c0_i32_0 = arith.constant 0 : i32
    %c0_i32_1 = arith.constant 0 : i32
    return %c0_i32, %c0_i32_0 : i32, i32
  }
  func.func @transform_6(%arg0: i32, %arg1: i32) -> (i32, i32) {
    %c0_i32 = arith.constant 0 : i32
    %c0_i32_0 = arith.constant 0 : i32
    %c0_i32_1 = arith.constant 0 : i32
    return %c0_i32, %c0_i32_0 : i32, i32
  }
  func.func @transform_7(%arg0: i32, %arg1: i32) -> (i32, i32, i32) {
    %c0_i32 = arith.constant 0 : i32
    %c0_i32_0 = arith.constant 0 : i32
    %c0_i32_1 = arith.constant 0 : i32
    return %c0_i32, %arg1, %c0_i32_0 : i32, i32, i32
  }
  func.func @transform_8(%arg0: i32, %arg1: i32) -> (i32, i32) {
    %c0_i32 = arith.constant 0 : i32
    %c0_i32_0 = arith.constant 0 : i32
    %c0_i32_1 = arith.constant 0 : i32
    return %c0_i32, %c0_i32_0 : i32, i32
  }
  func.func @transform_9(%arg0: i32, %arg1: i32) -> (i32, i32) {
    %c0_i32 = arith.constant 0 : i32
    %c0_i32_0 = arith.constant 0 : i32
    %c0_i32_1 = arith.constant 0 : i32
    return %c0_i32, %c0_i32_0 : i32, i32
  }
  func.func @transform_10(%arg0: i32, %arg1: i32) -> (i32, i32) {
    %c0_i32 = arith.constant 0 : i32
    %c0_i32_0 = arith.constant 0 : i32
    %c0_i32_1 = arith.constant 0 : i32
    return %c0_i32, %c0_i32_0 : i32, i32
  }
  func.func @transform_11(%arg0: i32, %arg1: i32) -> (i32, i32) {
    %c0_i32 = arith.constant 0 : i32
    %c0_i32_0 = arith.constant 0 : i32
    %c0_i32_1 = arith.constant 0 : i32
    return %c0_i32, %c0_i32_0 : i32, i32
  }
  func.func @transform_12(%arg0: i32, %arg1: i32) -> (i32, i32) {
    %c0_i32 = arith.constant 0 : i32
    %c0_i32_0 = arith.constant 0 : i32
    %c0_i32_1 = arith.constant 0 : i32
    return %c0_i32, %c0_i32_0 : i32, i32
  }
  func.func @transform_13(%arg0: i32, %arg1: i32) -> (i32, i32) {
    %c0_i32 = arith.constant 0 : i32
    %c0_i32_0 = arith.constant 0 : i32
    %c0_i32_1 = arith.constant 0 : i32
    return %c0_i32, %c0_i32_0 : i32, i32
  }
  func.func @transform_14(%arg0: i32, %arg1: i32) -> (i32, i32) {
    %c0_i32 = arith.constant 0 : i32
    %c0_i32_0 = arith.constant 0 : i32
    %c0_i32_1 = arith.constant 0 : i32
    return %c0_i32, %c0_i32_0 : i32, i32
  }
  func.func @transform_15(%arg0: i32, %arg1: i32) -> (i32, i32) {
    %c0_i32 = arith.constant 0 : i32
    %c0_i32_0 = arith.constant 0 : i32
    %c0_i32_1 = arith.constant 0 : i32
    return %c0_i32, %c0_i32_0 : i32, i32
  }
  func.func @transform_16(%arg0: i32, %arg1: i32) -> (i32, i32, i32) {
    %c0_i32 = arith.constant 0 : i32
    %c0_i32_0 = arith.constant 0 : i32
    return %arg0, %arg1, %c0_i32 : i32, i32, i32
  }
}

module attributes {stable_mosaic.version = 11 : i64} {
  func.func @_repmlp_block_kernel(%arg0: i32, %arg1: i32, %arg2: memref<1x256x32xf32, #tpu.memory_space<vmem>>, %arg3: memref<1x32xf32, #tpu.memory_space<vmem>>, %arg4: memref<1x32xf32, #tpu.memory_space<vmem>>, %arg5: memref<32x8xf32, #tpu.memory_space<vmem>>, %arg6: memref<1x8xf32, #tpu.memory_space<vmem>>, %arg7: memref<8x32xf32, #tpu.memory_space<vmem>>, %arg8: memref<1x32xf32, #tpu.memory_space<vmem>>, %arg9: memref<4x128x256xbf16, #tpu.memory_space<vmem>>, %arg10: memref<4x32xf32, #tpu.memory_space<vmem>>, %arg11: memref<1x32xf32, #tpu.memory_space<vmem>>, %arg12: memref<1x32xf32, #tpu.memory_space<vmem>>, %arg13: memref<1x32xf32, #tpu.memory_space<vmem>>, %arg14: memref<32x64xbf16, #tpu.memory_space<vmem>>, %arg15: memref<1x64xf32, #tpu.memory_space<vmem>>, %arg16: memref<64x32xbf16, #tpu.memory_space<vmem>>, %arg17: memref<1x32xf32, #tpu.memory_space<vmem>>, %arg18: memref<1x128x32xf32, #tpu.memory_space<vmem>>) attributes {dimension_semantics = [#tpu.dimension_semantics<parallel>, #tpu.dimension_semantics<parallel>], iteration_bounds = array<i64: 2, 2>, scalar_prefetch = 0 : i64, scratch_operands = 0 : i64, tpu.core_type = #tpu.core_type<tc>, window_params = [{transform_indices = @transform_0, window_bounds = array<i64: 1, 256, 32>}, {pipeline_mode = #tpu.pipeline_mode<synchronous>, transform_indices = @transform_1, window_bounds = array<i64: 1, 32>}, {pipeline_mode = #tpu.pipeline_mode<synchronous>, transform_indices = @transform_2, window_bounds = array<i64: 1, 32>}, {pipeline_mode = #tpu.pipeline_mode<synchronous>, transform_indices = @transform_3, window_bounds = array<i64: 32, 8>}, {pipeline_mode = #tpu.pipeline_mode<synchronous>, transform_indices = @transform_4, window_bounds = array<i64: 1, 8>}, {pipeline_mode = #tpu.pipeline_mode<synchronous>, transform_indices = @transform_5, window_bounds = array<i64: 8, 32>}, {pipeline_mode = #tpu.pipeline_mode<synchronous>, transform_indices = @transform_6, window_bounds = array<i64: 1, 32>}, {transform_indices = @transform_7, window_bounds = array<i64: 4, 128, 256>}, {pipeline_mode = #tpu.pipeline_mode<synchronous>, transform_indices = @transform_8, window_bounds = array<i64: 4, 32>}, {pipeline_mode = #tpu.pipeline_mode<synchronous>, transform_indices = @transform_9, window_bounds = array<i64: 1, 32>}, {pipeline_mode = #tpu.pipeline_mode<synchronous>, transform_indices = @transform_10, window_bounds = array<i64: 1, 32>}, {pipeline_mode = #tpu.pipeline_mode<synchronous>, transform_indices = @transform_11, window_bounds = array<i64: 1, 32>}, {pipeline_mode = #tpu.pipeline_mode<synchronous>, transform_indices = @transform_12, window_bounds = array<i64: 32, 64>}, {pipeline_mode = #tpu.pipeline_mode<synchronous>, transform_indices = @transform_13, window_bounds = array<i64: 1, 64>}, {pipeline_mode = #tpu.pipeline_mode<synchronous>, transform_indices = @transform_14, window_bounds = array<i64: 64, 32>}, {pipeline_mode = #tpu.pipeline_mode<synchronous>, transform_indices = @transform_15, window_bounds = array<i64: 1, 32>}, {transform_indices = @transform_16, window_bounds = array<i64: 1, 128, 32>}]} {
    %c0 = arith.constant 0 : index
    %c0_0 = arith.constant 0 : index
    %c0_1 = arith.constant 0 : index
    %0 = vector.load %arg2[%c0, %c0_0, %c0_1] : memref<1x256x32xf32, #tpu.memory_space<vmem>>, vector<1x256x32xf32>
    %1 = vector.shape_cast %0 : vector<1x256x32xf32> to vector<256x32xf32>
    %c0_2 = arith.constant 0 : index
    %c0_3 = arith.constant 0 : index
    %2 = vector.load %arg3[%c0_2, %c0_3] : memref<1x32xf32, #tpu.memory_space<vmem>>, vector<1x32xf32>
    %c0_4 = arith.constant 0 : index
    %c0_5 = arith.constant 0 : index
    %3 = vector.load %arg4[%c0_4, %c0_5] : memref<1x32xf32, #tpu.memory_space<vmem>>, vector<1x32xf32>
    %cst = arith.constant dense<0.000000e+00> : vector<256xf32>
    %4 = vector.multi_reduction <add>, %1, %cst [1] : vector<256x32xf32> to vector<256xf32>
    %5 = vector.shape_cast %4 : vector<256xf32> to vector<256x1xf32>
    %cst_6 = arith.constant 3.200000e+01 : f32
    %6 = vector.broadcast %cst_6 : f32 to vector<256x1xf32>
    %7 = arith.divf %5, %6 : vector<256x1xf32>
    %8 = vector.broadcast %7 : vector<256x1xf32> to vector<256x32xf32>
    %9 = arith.subf %1, %8 : vector<256x32xf32>
    %10 = arith.mulf %9, %9 : vector<256x32xf32>
    %cst_7 = arith.constant dense<0.000000e+00> : vector<256xf32>
    %11 = vector.multi_reduction <add>, %10, %cst_7 [1] : vector<256x32xf32> to vector<256xf32>
    %12 = vector.shape_cast %11 : vector<256xf32> to vector<256x1xf32>
    %cst_8 = arith.constant 3.200000e+01 : f32
    %13 = vector.broadcast %cst_8 : f32 to vector<256x1xf32>
    %14 = arith.divf %12, %13 : vector<256x1xf32>
    %cst_9 = arith.constant 9.99999974E-6 : f32
    %15 = vector.broadcast %cst_9 : f32 to vector<256x1xf32>
    %16 = arith.addf %14, %15 : vector<256x1xf32>
    %17 = math.rsqrt %16 : vector<256x1xf32>
    %18 = vector.broadcast %17 : vector<256x1xf32> to vector<256x32xf32>
    %19 = arith.mulf %9, %18 : vector<256x32xf32>
    %20 = vector.broadcast %2 : vector<1x32xf32> to vector<256x32xf32>
    %21 = arith.mulf %19, %20 : vector<256x32xf32>
    %22 = vector.broadcast %3 : vector<1x32xf32> to vector<256x32xf32>
    %23 = arith.addf %21, %22 : vector<256x32xf32>
    %cst_10 = arith.constant dense<0.000000e+00> : vector<32xf32>
    %24 = vector.multi_reduction <add>, %23, %cst_10 [0] : vector<256x32xf32> to vector<32xf32>
    %25 = vector.shape_cast %24 : vector<32xf32> to vector<1x32xf32>
    %cst_11 = arith.constant 2.560000e+02 : f32
    %26 = vector.broadcast %cst_11 : f32 to vector<1x32xf32>
    %27 = arith.divf %25, %26 : vector<1x32xf32>
    %c0_12 = arith.constant 0 : index
    %c0_13 = arith.constant 0 : index
    %28 = vector.load %arg5[%c0_12, %c0_13] : memref<32x8xf32, #tpu.memory_space<vmem>>, vector<32x8xf32>
    %cst_14 = arith.constant dense<0.000000e+00> : vector<1x8xf32>
    %29 = tpu.matmul %27, %28, %cst_14 {dimension_numbers = #tpu.dot_dimension_numbers<[1], [0], [0], [1], [0, 0, 1, 1], [], []>} : vector<1x32xf32>, vector<32x8xf32>, vector<1x8xf32> -> vector<1x8xf32>
    %c0_15 = arith.constant 0 : index
    %c0_16 = arith.constant 0 : index
    %30 = vector.load %arg6[%c0_15, %c0_16] : memref<1x8xf32, #tpu.memory_space<vmem>>, vector<1x8xf32>
    %31 = arith.addf %29, %30 : vector<1x8xf32>
    %cst_17 = arith.constant 0.000000e+00 : f32
    %32 = vector.broadcast %cst_17 : f32 to vector<1x8xf32>
    %33 = arith.maximumf %31, %32 : vector<1x8xf32>
    %c0_18 = arith.constant 0 : index
    %c0_19 = arith.constant 0 : index
    %34 = vector.load %arg7[%c0_18, %c0_19] : memref<8x32xf32, #tpu.memory_space<vmem>>, vector<8x32xf32>
    %cst_20 = arith.constant dense<0.000000e+00> : vector<1x32xf32>
    %35 = tpu.matmul %33, %34, %cst_20 {dimension_numbers = #tpu.dot_dimension_numbers<[1], [0], [0], [1], [0, 0, 1, 1], [], []>} : vector<1x8xf32>, vector<8x32xf32>, vector<1x32xf32> -> vector<1x32xf32>
    %c0_21 = arith.constant 0 : index
    %c0_22 = arith.constant 0 : index
    %36 = vector.load %arg8[%c0_21, %c0_22] : memref<1x32xf32, #tpu.memory_space<vmem>>, vector<1x32xf32>
    %37 = arith.addf %35, %36 : vector<1x32xf32>
    %38 = arith.negf %37 : vector<1x32xf32>
    %39 = math.exp %38 : vector<1x32xf32>
    %cst_23 = arith.constant 1.000000e+00 : f32
    %40 = vector.broadcast %cst_23 : f32 to vector<1x32xf32>
    %41 = arith.addf %40, %39 : vector<1x32xf32>
    %42 = arith.divf %40, %41 : vector<1x32xf32>
    %43 = arith.truncf %23 : vector<256x32xf32> to vector<256x32xbf16>
    %c128_i32 = arith.constant 128 : i32
    %44 = arith.muli %arg1, %c128_i32 : i32
    %45 = tpu.assume_multiple %44, 8 : i32
    %c0_24 = arith.constant 0 : index
    %46 = arith.index_cast %45 : i32 to index
    %c0_25 = arith.constant 0 : index
    %47 = vector.load %arg2[%c0_24, %46, %c0_25] : memref<1x256x32xf32, #tpu.memory_space<vmem>>, vector<1x128x32xf32>
    %48 = vector.shape_cast %47 : vector<1x128x32xf32> to vector<128x32xf32>
    %c0_26 = arith.constant 0 : index
    %c0_27 = arith.constant 0 : index
    %49 = vector.load %arg10[%c0_26, %c0_27] : memref<4x32xf32, #tpu.memory_space<vmem>>, vector<4x32xf32>
    %50 = vector.broadcast %42 : vector<1x32xf32> to vector<4x32xf32>
    %51 = arith.mulf %50, %49 : vector<4x32xf32>
    %c0_28 = arith.constant 0 : index
    %c0_29 = arith.constant 0 : index
    %52 = vector.load %arg11[%c0_28, %c0_29] : memref<1x32xf32, #tpu.memory_space<vmem>>, vector<1x32xf32>
    %53 = arith.mulf %52, %42 : vector<1x32xf32>
    %54 = vector.broadcast %53 : vector<1x32xf32> to vector<128x32xf32>
    %55 = arith.addf %48, %54 : vector<128x32xf32>
    %c0_30 = arith.constant 0 : index
    %c0_31 = arith.constant 0 : index
    %c0_32 = arith.constant 0 : index
    %56 = vector.load %arg9[%c0_30, %c0_31, %c0_32] : memref<4x128x256xbf16, #tpu.memory_space<vmem>>, vector<1x128x256xbf16>
    %57 = vector.shape_cast %56 : vector<1x128x256xbf16> to vector<128x256xbf16>
    %cst_33 = arith.constant dense<0.000000e+00> : vector<128x32xf32>
    %58 = tpu.matmul %57, %43, %cst_33 {dimension_numbers = #tpu.dot_dimension_numbers<[1], [0], [0], [1], [0, 0, 1, 1], [], []>} : vector<128x256xbf16>, vector<256x32xbf16>, vector<128x32xf32> -> vector<128x32xf32>
    %59 = vector.extract_strided_slice %51 {offsets = [0, 0], sizes = [1, 32], strides = [1, 1]} : vector<4x32xf32> to vector<1x32xf32>
    %60 = vector.broadcast %59 : vector<1x32xf32> to vector<128x32xf32>
    %61 = arith.mulf %58, %60 : vector<128x32xf32>
    %62 = arith.addf %55, %61 : vector<128x32xf32>
    %c1 = arith.constant 1 : index
    %c0_34 = arith.constant 0 : index
    %c0_35 = arith.constant 0 : index
    %63 = vector.load %arg9[%c1, %c0_34, %c0_35] : memref<4x128x256xbf16, #tpu.memory_space<vmem>>, vector<1x128x256xbf16>
    %64 = vector.shape_cast %63 : vector<1x128x256xbf16> to vector<128x256xbf16>
    %cst_36 = arith.constant dense<0.000000e+00> : vector<128x32xf32>
    %65 = tpu.matmul %64, %43, %cst_36 {dimension_numbers = #tpu.dot_dimension_numbers<[1], [0], [0], [1], [0, 0, 1, 1], [], []>} : vector<128x256xbf16>, vector<256x32xbf16>, vector<128x32xf32> -> vector<128x32xf32>
    %66 = vector.extract_strided_slice %51 {offsets = [1, 0], sizes = [1, 32], strides = [1, 1]} : vector<4x32xf32> to vector<1x32xf32>
    %67 = vector.broadcast %66 : vector<1x32xf32> to vector<128x32xf32>
    %68 = arith.mulf %65, %67 : vector<128x32xf32>
    %69 = arith.addf %62, %68 : vector<128x32xf32>
    %c2 = arith.constant 2 : index
    %c0_37 = arith.constant 0 : index
    %c0_38 = arith.constant 0 : index
    %70 = vector.load %arg9[%c2, %c0_37, %c0_38] : memref<4x128x256xbf16, #tpu.memory_space<vmem>>, vector<1x128x256xbf16>
    %71 = vector.shape_cast %70 : vector<1x128x256xbf16> to vector<128x256xbf16>
    %cst_39 = arith.constant dense<0.000000e+00> : vector<128x32xf32>
    %72 = tpu.matmul %71, %43, %cst_39 {dimension_numbers = #tpu.dot_dimension_numbers<[1], [0], [0], [1], [0, 0, 1, 1], [], []>} : vector<128x256xbf16>, vector<256x32xbf16>, vector<128x32xf32> -> vector<128x32xf32>
    %73 = vector.extract_strided_slice %51 {offsets = [2, 0], sizes = [1, 32], strides = [1, 1]} : vector<4x32xf32> to vector<1x32xf32>
    %74 = vector.broadcast %73 : vector<1x32xf32> to vector<128x32xf32>
    %75 = arith.mulf %72, %74 : vector<128x32xf32>
    %76 = arith.addf %69, %75 : vector<128x32xf32>
    %c3 = arith.constant 3 : index
    %c0_40 = arith.constant 0 : index
    %c0_41 = arith.constant 0 : index
    %77 = vector.load %arg9[%c3, %c0_40, %c0_41] : memref<4x128x256xbf16, #tpu.memory_space<vmem>>, vector<1x128x256xbf16>
    %78 = vector.shape_cast %77 : vector<1x128x256xbf16> to vector<128x256xbf16>
    %cst_42 = arith.constant dense<0.000000e+00> : vector<128x32xf32>
    %79 = tpu.matmul %78, %43, %cst_42 {dimension_numbers = #tpu.dot_dimension_numbers<[1], [0], [0], [1], [0, 0, 1, 1], [], []>} : vector<128x256xbf16>, vector<256x32xbf16>, vector<128x32xf32> -> vector<128x32xf32>
    %80 = vector.extract_strided_slice %51 {offsets = [3, 0], sizes = [1, 32], strides = [1, 1]} : vector<4x32xf32> to vector<1x32xf32>
    %81 = vector.broadcast %80 : vector<1x32xf32> to vector<128x32xf32>
    %82 = arith.mulf %79, %81 : vector<128x32xf32>
    %83 = arith.addf %76, %82 : vector<128x32xf32>
    %c0_43 = arith.constant 0 : index
    %c0_44 = arith.constant 0 : index
    %84 = vector.load %arg12[%c0_43, %c0_44] : memref<1x32xf32, #tpu.memory_space<vmem>>, vector<1x32xf32>
    %c0_45 = arith.constant 0 : index
    %c0_46 = arith.constant 0 : index
    %85 = vector.load %arg13[%c0_45, %c0_46] : memref<1x32xf32, #tpu.memory_space<vmem>>, vector<1x32xf32>
    %cst_47 = arith.constant dense<0.000000e+00> : vector<128xf32>
    %86 = vector.multi_reduction <add>, %83, %cst_47 [1] : vector<128x32xf32> to vector<128xf32>
    %87 = vector.shape_cast %86 : vector<128xf32> to vector<128x1xf32>
    %cst_48 = arith.constant 3.200000e+01 : f32
    %88 = vector.broadcast %cst_48 : f32 to vector<128x1xf32>
    %89 = arith.divf %87, %88 : vector<128x1xf32>
    %90 = vector.broadcast %89 : vector<128x1xf32> to vector<128x32xf32>
    %91 = arith.subf %83, %90 : vector<128x32xf32>
    %92 = arith.mulf %91, %91 : vector<128x32xf32>
    %cst_49 = arith.constant dense<0.000000e+00> : vector<128xf32>
    %93 = vector.multi_reduction <add>, %92, %cst_49 [1] : vector<128x32xf32> to vector<128xf32>
    %94 = vector.shape_cast %93 : vector<128xf32> to vector<128x1xf32>
    %cst_50 = arith.constant 3.200000e+01 : f32
    %95 = vector.broadcast %cst_50 : f32 to vector<128x1xf32>
    %96 = arith.divf %94, %95 : vector<128x1xf32>
    %cst_51 = arith.constant 9.99999974E-6 : f32
    %97 = vector.broadcast %cst_51 : f32 to vector<128x1xf32>
    %98 = arith.addf %96, %97 : vector<128x1xf32>
    %99 = math.rsqrt %98 : vector<128x1xf32>
    %100 = vector.broadcast %99 : vector<128x1xf32> to vector<128x32xf32>
    %101 = arith.mulf %91, %100 : vector<128x32xf32>
    %102 = vector.broadcast %84 : vector<1x32xf32> to vector<128x32xf32>
    %103 = arith.mulf %101, %102 : vector<128x32xf32>
    %104 = vector.broadcast %85 : vector<1x32xf32> to vector<128x32xf32>
    %105 = arith.addf %103, %104 : vector<128x32xf32>
    %106 = arith.truncf %105 : vector<128x32xf32> to vector<128x32xbf16>
    %c0_52 = arith.constant 0 : index
    %c0_53 = arith.constant 0 : index
    %107 = vector.load %arg17[%c0_52, %c0_53] : memref<1x32xf32, #tpu.memory_space<vmem>>, vector<1x32xf32>
    %108 = vector.broadcast %107 : vector<1x32xf32> to vector<128x32xf32>
    %109 = arith.addf %83, %108 : vector<128x32xf32>
    %c0_54 = arith.constant 0 : index
    %c0_55 = arith.constant 0 : index
    %110 = vector.load %arg14[%c0_54, %c0_55] : memref<32x64xbf16, #tpu.memory_space<vmem>>, vector<32x64xbf16>
    %cst_56 = arith.constant dense<0.000000e+00> : vector<128x64xf32>
    %111 = tpu.matmul %106, %110, %cst_56 {dimension_numbers = #tpu.dot_dimension_numbers<[1], [0], [0], [1], [0, 0, 1, 1], [], []>} : vector<128x32xbf16>, vector<32x64xbf16>, vector<128x64xf32> -> vector<128x64xf32>
    %c0_57 = arith.constant 0 : index
    %c0_58 = arith.constant 0 : index
    %112 = vector.load %arg15[%c0_57, %c0_58] : memref<1x64xf32, #tpu.memory_space<vmem>>, vector<1x64xf32>
    %113 = vector.broadcast %112 : vector<1x64xf32> to vector<128x64xf32>
    %114 = arith.addf %111, %113 : vector<128x64xf32>
    %cst_59 = arith.constant 5.000000e-01 : f32
    %115 = vector.broadcast %cst_59 : f32 to vector<128x64xf32>
    %116 = arith.mulf %115, %114 : vector<128x64xf32>
    %cst_60 = arith.constant 4.471500e-02 : f32
    %117 = vector.broadcast %cst_60 : f32 to vector<128x64xf32>
    %118 = arith.mulf %117, %114 : vector<128x64xf32>
    %119 = arith.mulf %118, %114 : vector<128x64xf32>
    %120 = arith.mulf %119, %114 : vector<128x64xf32>
    %121 = arith.addf %114, %120 : vector<128x64xf32>
    %cst_61 = arith.constant 0.797884583 : f32
    %122 = vector.broadcast %cst_61 : f32 to vector<128x64xf32>
    %123 = arith.mulf %122, %121 : vector<128x64xf32>
    %124 = math.tanh %123 : vector<128x64xf32>
    %cst_62 = arith.constant 1.000000e+00 : f32
    %125 = vector.broadcast %cst_62 : f32 to vector<128x64xf32>
    %126 = arith.addf %125, %124 : vector<128x64xf32>
    %127 = arith.mulf %116, %126 : vector<128x64xf32>
    %128 = arith.truncf %127 : vector<128x64xf32> to vector<128x64xbf16>
    %c0_63 = arith.constant 0 : index
    %c0_64 = arith.constant 0 : index
    %129 = vector.load %arg16[%c0_63, %c0_64] : memref<64x32xbf16, #tpu.memory_space<vmem>>, vector<64x32xbf16>
    %cst_65 = arith.constant dense<0.000000e+00> : vector<128x32xf32>
    %130 = tpu.matmul %128, %129, %cst_65 {dimension_numbers = #tpu.dot_dimension_numbers<[1], [0], [0], [1], [0, 0, 1, 1], [], []>} : vector<128x64xbf16>, vector<64x32xbf16>, vector<128x32xf32> -> vector<128x32xf32>
    %131 = arith.addf %109, %130 : vector<128x32xf32>
    %c0_66 = arith.constant 0 : index
    %c0_67 = arith.constant 0 : index
    %c0_68 = arith.constant 0 : index
    %132 = vector.load %arg18[%c0_66, %c0_67, %c0_68] : memref<1x128x32xf32, #tpu.memory_space<vmem>>, vector<1x128x32xf32>
    %133 = vector.shape_cast %132 : vector<1x128x32xf32> to vector<128x32xf32>
    %134 = vector.shape_cast %131 : vector<128x32xf32> to vector<1x128x32xf32>
    tpu.vector_store %arg18[%c0_66, %c0_67, %c0_68], %134 {strides = array<i32>} : memref<1x128x32xf32, #tpu.memory_space<vmem>>, vector<1x128x32xf32>,
    return
  }
  func.func @transform_0(%arg0: i32, %arg1: i32) -> (i32, i32, i32) {
    %c0_i32 = arith.constant 0 : i32
    %c0_i32_0 = arith.constant 0 : i32
    %c0_i32_1 = arith.constant 0 : i32
    return %arg0, %c0_i32, %c0_i32_0 : i32, i32, i32
  }
  func.func @transform_1(%arg0: i32, %arg1: i32) -> (i32, i32) {
    %c0_i32 = arith.constant 0 : i32
    %c0_i32_0 = arith.constant 0 : i32
    %c0_i32_1 = arith.constant 0 : i32
    return %c0_i32, %c0_i32_0 : i32, i32
  }
  func.func @transform_2(%arg0: i32, %arg1: i32) -> (i32, i32) {
    %c0_i32 = arith.constant 0 : i32
    %c0_i32_0 = arith.constant 0 : i32
    %c0_i32_1 = arith.constant 0 : i32
    return %c0_i32, %c0_i32_0 : i32, i32
  }
  func.func @transform_3(%arg0: i32, %arg1: i32) -> (i32, i32) {
    %c0_i32 = arith.constant 0 : i32
    %c0_i32_0 = arith.constant 0 : i32
    %c0_i32_1 = arith.constant 0 : i32
    return %c0_i32, %c0_i32_0 : i32, i32
  }
  func.func @transform_4(%arg0: i32, %arg1: i32) -> (i32, i32) {
    %c0_i32 = arith.constant 0 : i32
    %c0_i32_0 = arith.constant 0 : i32
    %c0_i32_1 = arith.constant 0 : i32
    return %c0_i32, %c0_i32_0 : i32, i32
  }
  func.func @transform_5(%arg0: i32, %arg1: i32) -> (i32, i32) {
    %c0_i32 = arith.constant 0 : i32
    %c0_i32_0 = arith.constant 0 : i32
    %c0_i32_1 = arith.constant 0 : i32
    return %c0_i32, %c0_i32_0 : i32, i32
  }
  func.func @transform_6(%arg0: i32, %arg1: i32) -> (i32, i32) {
    %c0_i32 = arith.constant 0 : i32
    %c0_i32_0 = arith.constant 0 : i32
    %c0_i32_1 = arith.constant 0 : i32
    return %c0_i32, %c0_i32_0 : i32, i32
  }
  func.func @transform_7(%arg0: i32, %arg1: i32) -> (i32, i32, i32) {
    %c0_i32 = arith.constant 0 : i32
    %c0_i32_0 = arith.constant 0 : i32
    %c0_i32_1 = arith.constant 0 : i32
    return %c0_i32, %arg1, %c0_i32_0 : i32, i32, i32
  }
  func.func @transform_8(%arg0: i32, %arg1: i32) -> (i32, i32) {
    %c0_i32 = arith.constant 0 : i32
    %c0_i32_0 = arith.constant 0 : i32
    %c0_i32_1 = arith.constant 0 : i32
    return %c0_i32, %c0_i32_0 : i32, i32
  }
  func.func @transform_9(%arg0: i32, %arg1: i32) -> (i32, i32) {
    %c0_i32 = arith.constant 0 : i32
    %c0_i32_0 = arith.constant 0 : i32
    %c0_i32_1 = arith.constant 0 : i32
    return %c0_i32, %c0_i32_0 : i32, i32
  }
  func.func @transform_10(%arg0: i32, %arg1: i32) -> (i32, i32) {
    %c0_i32 = arith.constant 0 : i32
    %c0_i32_0 = arith.constant 0 : i32
    %c0_i32_1 = arith.constant 0 : i32
    return %c0_i32, %c0_i32_0 : i32, i32
  }
  func.func @transform_11(%arg0: i32, %arg1: i32) -> (i32, i32) {
    %c0_i32 = arith.constant 0 : i32
    %c0_i32_0 = arith.constant 0 : i32
    %c0_i32_1 = arith.constant 0 : i32
    return %c0_i32, %c0_i32_0 : i32, i32
  }
  func.func @transform_12(%arg0: i32, %arg1: i32) -> (i32, i32) {
    %c0_i32 = arith.constant 0 : i32
    %c0_i32_0 = arith.constant 0 : i32
    %c0_i32_1 = arith.constant 0 : i32
    return %c0_i32, %c0_i32_0 : i32, i32
  }
  func.func @transform_13(%arg0: i32, %arg1: i32) -> (i32, i32) {
    %c0_i32 = arith.constant 0 : i32
    %c0_i32_0 = arith.constant 0 : i32
    %c0_i32_1 = arith.constant 0 : i32
    return %c0_i32, %c0_i32_0 : i32, i32
  }
  func.func @transform_14(%arg0: i32, %arg1: i32) -> (i32, i32) {
    %c0_i32 = arith.constant 0 : i32
    %c0_i32_0 = arith.constant 0 : i32
    %c0_i32_1 = arith.constant 0 : i32
    return %c0_i32, %c0_i32_0 : i32, i32
  }
  func.func @transform_15(%arg0: i32, %arg1: i32) -> (i32, i32) {
    %c0_i32 = arith.constant 0 : i32
    %c0_i32_0 = arith.constant 0 : i32
    %c0_i32_1 = arith.constant 0 : i32
    return %c0_i32, %c0_i32_0 : i32, i32
  }
  func.func @transform_16(%arg0: i32, %arg1: i32) -> (i32, i32, i32) {
    %c0_i32 = arith.constant 0 : i32
    %c0_i32_0 = arith.constant 0 : i32
    return %arg0, %arg1, %c0_i32 : i32, i32, i32
  }
}

</mosaic_0001>

<bundles_post_ra>
// kernel: repmlp_block_forward.1
= control target key start
LH: loop header
LB: loop body
LE: loop exit
PB: predicated region body
PF: predicated region fallthrough
CT: control target
= control target key end

     0   :  { %s6204_s0 = inlined_call_operand.hbm [shape: f32[2,256,32], index: 0, kind: input, shape index: {}]   ;;  %s6205_s1 = inlined_call_operand.vmem [shape: f32[1,32], index: 1, kind: input, shape index: {}]   ;;  %s6206_s2 = inlined_call_operand.vmem [shape: f32[1,32], index: 2, kind: input, shape index: {}]   ;;  %s6207_s3 = inlined_call_operand.vmem [shape: f32[32,8], index: 3, kind: input, shape index: {}]   ;;  %s6208_s4 = inlined_call_operand.vmem [shape: f32[1,8], index: 4, kind: input, shape index: {}]   ;;  %s6209_s5 = inlined_call_operand.vmem [shape: f32[8,32], index: 5, kind: input, shape index: {}]   ;;  %s6210_s6 = inlined_call_operand.vmem [shape: f32[1,32], index: 6, kind: input, shape index: {}]   ;;  %s6211_s7 = inlined_call_operand.hbm [shape: bf16[4,256,256], index: 7, kind: input, shape index: {}]   ;;  %s6212_s8 = inlined_call_operand.vmem [shape: f32[4,32], index: 8, kind: input, shape index: {}]   ;;  %s6213_s9 = inlined_call_operand.vmem [shape: f32[1,32], index: 9, kind: input, shape index: {}]   ;;  %s6214_s10 = inlined_call_operand.vmem [shape: f32[1,32], index: 10, kind: input, shape index: {}]   ;;  %s6215_s11 = inlined_call_operand.vmem [shape: f32[1,32], index: 11, kind: input, shape index: {}]   ;;  %s6216_s12 = inlined_call_operand.vmem [shape: bf16[32,64], index: 12, kind: input, shape index: {}]   ;;  %s6217_s13 = inlined_call_operand.vmem [shape: f32[1,64], index: 13, kind: input, shape index: {}]   ;;  %s6218_s14 = inlined_call_operand.vmem [shape: bf16[64,32], index: 14, kind: input, shape index: {}]   ;;  %s6219_s15 = inlined_call_operand.vmem [shape: f32[1,32], index: 15, kind: input, shape index: {}]   ;;  %s6220_s16 = inlined_call_operand.hbm [shape: f32[2,256,32], index: 16, kind: output, shape index: {}]  }
   0x1   :  { %6237 = sst [smem:[#allocation25_spill]] %s6204_s0 }
   0x2   :  { %6238 = sst [smem:[#allocation26_spill]] %s6210_s6 }
   0x3   :  { %6239 = sst [smem:[#allocation27_spill]] %s6212_s8 }
   0x4   :  { %6240 = sst [smem:[#allocation28_spill]] %s6213_s9 }
   0x5   :  { %6241 = sst [smem:[#allocation29_spill]] %s6214_s10 }
   0x6   :  { %6242 = sst [smem:[#allocation30_spill]] %s6215_s11 }
   0x7   :  { %6243 = sst [smem:[#allocation31_spill]] %s6216_s12 }
   0x8   :  { %6244 = sst [smem:[#allocation32_spill]] %s6217_s13 }
   0x9   :  { %6245 = sst [smem:[#allocation33_spill]] %s6218_s14 }
   0xa   :  { %6246 = sst [smem:[#allocation34_spill]] %s6219_s15 }
   0xb   :  { %6247 = sst [smem:[#allocation35_spill]] %s6220_s16 }
   0xc   :  { %21 = vsyncpa [#allocation3], 0 }
   0xd   :  { %23 = vsyncpa [#allocation3 + $0x1], 0 }
   0xe   :  { %24 = vsyncpa [#allocation6], 0 }
   0xf   :  { %26 = vsyncpa [#allocation6 + $0x1], 0 }
  0x10   :  { %27 = vsyncpa [#allocation4], 0 }
  0x11   :  { %29 = vsyncpa [#allocation4 + $0x1], 0  ;;  %s4439_s21 = smov 0   ;;  %s4441_s22 = smov 0  }
  0x12   :  { %s4443_s23 = smov 0   ;;  %s4445_s24 = smov 0  }
  0x13   :  { %s4447_s25 = smov 0   ;;  %s4449_s26 = smov 0  }
  0x14   :  { %s4451_s27 = smov 0   ;;  %s4453_s28 = smov 0  }
  0x15   :  { %s4455_s29 = smov 0   ;;  %s4457_s30 = smov 0  }
  0x16   :  { %s4459_s0 = smov 0   ;;  %s4461_s17 = smov 0  }
  0x17   :  { %s4463_s18 = smov 0   ;;  %s4465_s19 = smov 0  }
  0x18 LB: > { %6248 = sst [smem:[#allocation14_spill]] %s4293_s23  ;;  %s6224_s20 = sadd.s32 4294967295, %s4337_s19   ;;  %s4337_s19 = sphi %s4465_s19, %s35_s19   ;;  %s4333_s18 = sphi %s4463_s18, %s6306_s18   ;;  %s4329_s17 = sphi %s4461_s17, %s6305_s17   ;;  %s4325_s0 = sphi %s4459_s0, %s6293_s0   ;;  %s4321_s30 = sphi %s4457_s30, %s6304_s30   ;;  %s4317_s29 = sphi %s4455_s29, %s6303_s29   ;;  %s4313_s28 = sphi %s4453_s28, %s6302_s28   ;;  %s4309_s27 = sphi %s4451_s27, %s6301_s27   ;;  %s4305_s26 = sphi %s4449_s26, %s6300_s26   ;;  %s4301_s25 = sphi %s4447_s25, %s6299_s25   ;;  %s4297_s24 = sphi %s4445_s24, %s6298_s24   ;;  %s4293_s23 = sphi %s4443_s23, %s6289_s23   ;;  %s4289_s22 = sphi %s4441_s22, %s6297_s22   ;;  %s4285_s21 = sphi %s4439_s21, %s6296_s21  }
  0x19   : > { %6249 = sst [smem:[#allocation15_spill]] %s4317_s29  ;;  %s44_s15 = sadd.s32 1, %s4329_s17 }
  0x1a   : > { %6250 = sst [smem:[#allocation16_spill]] %s4321_s30  ;;  %p45_p0 = scmp.ge.s32.totalorder %s44_s15, 2 }
  0x1b   : > { %6251 = sst [smem:[#allocation17_spill]] %s4325_s0  ;;  %s47_s0 = sadd.s32 1, %s4333_s18 }
  0x1c   : > { %6252 = sst [smem:[#allocation18_spill]] %s4333_s18  ;;  %s54_s13 = sadd.s32 1, %s4317_s29 }
  0x1d   : > { %p61_p1 = scmp.ne.s32.totalorder %s4317_s29, %s4313_s28  ;;  %p62_p2 = scmp.eq.s32.totalorder %s4337_s19, 0 }
  0x1e   : > { %s6308_s15 = smov (%p45_p0, %s44_s15), 0  ;;  %s6310_s0 = smov (!%p45_p0, %s47_s0), %s4333_s18 }
  0x1f   : > { %6253 = sst [smem:[#allocation19_spill]] %s6308_s15  ;;  %p4520_p3 = por %p62_p2, %p61_p1 }
  0x20   : > { %p67_p4 = scmp.ne.s32.totalorder %s4313_s28, %s4309_s27  ;;  %p49_p5 = scmp.ge.s32.totalorder %s6310_s0, 2 }
  0x21   : > { %p4527_p6 = scmp.eq.s32.totalorder %s6224_s20, 0  ;;  %s203_s10 = ssub.s32 %s4329_s17, %s6308_s15 }
  0x22   : > { %s206_s14 = sadd.s32 1, %s4305_s26  ;;  %s6312_s0 = smov (%p49_p5, %s6310_s0), 0 }
  0x23   : > { %6256 = sst [smem:[#allocation20_spill]] %s6312_s0  ;;  %p4538_p7 = por %p4527_p6, %p67_p4 }
  0x24   : > { %p204_p8 = scmp.eq.s32.totalorder %s203_s10, 0  ;;  %s51_s20 = ssub.s32 %s4333_s18, %s6312_s0 }
  0x25   : > { %s6257_s27 = scalar_select %p4538_p7, 1, 0 }
  0x26   : > { %p213_p9 = scmp.ne.s32.totalorder %s4305_s26, %s4301_s25  ;;  %p52_p10 = scmp.eq.s32.totalorder %s51_s20, 0 }
  0x27   : > { %p219_p11 = scmp.ne.s32.totalorder %s4301_s25, %s4297_s24  ;;  %s399_s30 = sor.u32 %s203_s10, %s51_s20 }
  0x28   : > { %s4549_s15 = scalar_select %p204_p8, %s4305_s26, %s206_s14  }
  0x29   : > { %s4552_s12 = scalar_select %p52_p10, %s4317_s29, %s54_s13  }
  0x2a   : > { %6258 = sst [smem:[#allocation21_spill]] %s4549_s15  ;;  %p4556_p12 = por %p213_p9, %p62_p2 }
  0x2b   : > { %6259 = sst [smem:[#allocation22_spill]] %s4552_s12  ;;  %p4562_p13 = por %p219_p11, %p4527_p6 }
  0x2c   : > { %s402_s0 = sadd.s32 1, %s4293_s23  ;;  %p400_p0 = scmp.eq.s32.totalorder %s399_s30, 0 }
  0x2d   : > { %s6261_s9 = scalar_select %p4562_p13, 1, 0 }
  0x2e   : > { %p412_p1 = scmp.ne.s32.totalorder %s4293_s23, %s4289_s22  ;;  %s6262_s6 = sadd.s32 4294967295, %s4337_s19  }
  0x2f   : > { %p413_p4 = scmp.eq.s32.totalorder %s6262_s6, 3  ;;  %p418_p5 = scmp.ne.s32.totalorder %s4289_s22, %s4285_s21 }
  0x30   : > { %s4574_s14 = scalar_select %p400_p0, %s4293_s23, %s402_s0  }
  0x31   : > { %p4576_p8 = por %p413_p4, %p412_p1  ;;  %s6265_s24 = sadd.s32 4294967294, %s4337_s19  }
  0x32   : > { %6263 = sst [smem:[#allocation23_spill]] %s4574_s14  ;;  %p419_p2 = scmp.eq.s32.totalorder %s6265_s24, 3 }
  0x33   : > { %s6264_s13 = scalar_select %p4576_p8, 1, 0 }
  0x34   : > { %p4582_p9 = por %p419_p2, %p418_p5  ;;  %p3264_p6 = scmp.ge.s32.totalorder %s4337_s19, 4 }
  0x35   : > { %s481_s6 = sand.u32 (!%p3264_p6), 1, %s4317_s29   ;;  %s3428_s10 = sshll.u32 (!%p3264_p6), %s4333_s18, 12 }
  0x36   : > { %s6266_s11 = scalar_select %p4582_p9, 1, 0 }
  0x37   : > { %477 = sbr.rel (%p3264_p6) target bundleno = 98 (0x62), region = 72  ;;  %s3265_s30 = sshll.u32 (!%p3264_p6), %s481_s6, 8 }
  0x38   : > { %6267 = sst [smem:[#allocation24_spill]] %s6266_s11  ;;  %s6268_s12 = sld [smem:[#allocation25_spill]] (!%p3264_p6) }
  0x39   : > { %s485_s24 = scalar_lea.vmem (!%p3264_p6), [#allocation2], %s3265_s30  ;;  %s4596_s23 = scalar_lea.sflag (!%p3264_p6), [#allocation3], %s481_s6 }
  0x3a   : > { %s492_s14 = sshll.u32 (!%p3264_p6), %s485_s24, 4  ;;  %s4594_s14 = int_to_ptr.vmem [resolvable:$true] %s492_s14 }
  0x3e   : > { %s4592_s15 = scalar_lea.hbm %s6268_s12, %s3428_s10  ;;  %s4163_s10 = scalar_lea.hbm %s6268_s12, 8192 }
  0x3f   : > { %s4159_s11 = scalar_lea.hbm %s4592_s15, 4096  ;;  %p4164_p1 = scmp.lt.u32.totalorder %s4592_s15, %s6268_s12 }
  0x40   : > { %p4160_p10 = scmp.ne.s32.totalorder %s4592_s15, %s4159_s11  ;;  %p4165_p4 = scmp.lt.u32.totalorder %s4163_s10, %s4159_s11 }
  0x41   : > { %p4167_p2 = scmp.lt.u32.totalorder %s4159_s11, %s4592_s15 }
  0x42   : > { %p4161_p11 = pnand %p4160_p10, %p4520_p3  ;;  %p4166_p5 = por %p4165_p4, %p4164_p1 }
  0x44   : > { %p4162_p0 = pneg %p4161_p11  ;;  %p4168_p6 = por %p4167_p2, %p4166_p5 }
  0x46   : > { %p4169_p9 = pnand %p4168_p6, %p4162_p0 }
  0x48   : > { %4172 = shalt.err (!%p4169_p9)
}
  0x49   : > { %s4173_s6 = scalar_lea.vmem %s4594_s14, 4096  ;;  %s4339_s29 = smov [#allocation2]  }
  0x4a   : > { %p4174_p10 = scmp.ne.s32.totalorder %s4594_s14, %s4173_s6  ;;  %s4177_s18 = sshll.u32 %s4339_s29, 4  ;;  %s4178_s18 = int_to_ptr.vmem [resolvable:$false] %s4177_s18 }
  0x4b   : > { %s4179_s30 = scalar_lea.vmem %s4178_s18, 8192  ;;  %p4180_p13 = scmp.lt.s32.totalorder %s4594_s14, %s4178_s18 }
  0x4c   : > { %p4175_p11 = pnand %p4174_p10, %p4520_p3  ;;  %p4181_p7 = scmp.lt.s32.totalorder %s4179_s30, %s4173_s6 }
  0x4e   : > { %p4176_p8 = pneg %p4175_p11  ;;  %p4182_p1 = por %p4181_p7, %p4180_p13 }
  0x50   : > { %p4183_p4 = pnand %p4182_p1, %p4176_p8 }
  0x52   : > { %4186 = shalt.err (!%p4183_p4)
}
  0x53   : > { %s4340_s11 = smov 128   ;;  %s4341_s24 = smov 8  }
  0x54   : > { %3782 = dma.hbm_to_vmem [thread:$0]  (%p4520_p3), %s4592_s15, 4096, %s4594_s14, %s4596_s23, %s4340_s11, %s4340_s11, %s4341_s24  }
  0x55   : > { %s502_s10 = sand.u32 1, %s4305_s26   ;;  %s3430_s0 = sshll.u32 %s4329_s17, 11 }
  0x56   : > { %s3268_s20 = sshll.u32 %s502_s10, 9  ;;  %s513_s18 = scalar_lea.hbm %s6211_s7, %s3430_s0 }
  0x57   : > { %s3783_s30 = scalar_select %p4556_p12, [#allocation0], [#allocation10] }
  0x58   : > { %s506_s16 = scalar_lea.vmem [#allocation5], %s3268_s20  ;;  %s4342_s14 = smov 4096  }
  0x59   : > { %s526_s15 = sshll.u32 %s506_s16, 4  ;;  %s518_s23 = sld [smem:[%s3783_s30]]   ;;  %s527_s15 = int_to_ptr.vmem [resolvable:$true] %s526_s15 }
  0x5a   : > { %3784 = sst [smem:[#allocation9]] (%p4556_p12), %s4342_s14  ;;  %s4343_s11 = smov 2048  }
  0x5b   : > { %3785 = sst [smem:[#allocation9 + $0x1]] (%p4556_p12), %s4343_s11  ;;  %s4344_s24 = smov 16  }
  0x5c   : > { %3786 = sst [smem:[#allocation9 + $0x2]] (%p4556_p12), %s4344_s24  ;;  %s4345_s12 = smov 128  }
  0x5d   : > { %3787 = sst [smem:[#allocation9 + $0x3]] (%p4556_p12), %s4345_s12  ;;  %s4346_s20 = smov 8  }
  0x5e   : > { %3788 = sst [smem:[#allocation9 + $0x4]] (%p4556_p12), %s4345_s12  ;;  %s503_s29 = scalar_lea.sflag [#allocation6], %s502_s10 }
  0x5f   : > { %s3272_s0 = sshll.u32 %s518_s23, 26  ;;  %3789 = sst [smem:[#allocation9 + $0x5]] (%p4556_p12), %s4346_s20 }
  0x60   : > { %s3273_s6 = sadd.s32 134217728, %s3272_s0  ;;  %s4347_s30 = smov [#allocation8]  }
  0x61   : > { %3790 = dma.general (%p4556_p12), %s513_s18, 8192, %s527_s15, %s503_s29, %s4347_s30, [#allocation9], %s3273_s6, 0  }
  0x62 PF: > { %p3274_p3 = scmp.ge.s32.totalorder %s4337_s19, 1  ;;  %p547_p7 = scmp.lt.s32.totalorder %s4337_s19, 5 }
  0x64   : > { %p548_p13 = pnand %p3274_p3, %p547_p7 }
  0x65   : > { %s553_s16 = sand.u32 (!%p548_p13), 1, %s4313_s28   ;;  %p6269_p8 = scmp.ne.s32.totalorder (!%p548_p13), %s6257_s27, 0 }
  0x66   : > { %551 = sbr.rel (%p548_p13) target bundleno = 1895 (0x767), region = 84  ;;  %s3275_s12 = sshll.u32 (!%p548_p13), %s553_s16, 8 }
  0x67   : > { %s554_s23 = scalar_lea.sflag (!%p548_p13), [#allocation3], %s553_s16  ;;  %s4644_s14 = scalar_lea.vmem (!%p548_p13), [#allocation2], %s3275_s12 }
  0x6d   : > { %4272 = dma.done.wait (%p6269_p8), %s554_s23, 4096  }
  0x6e   : > { %4274 = vsyncadd (%p6269_p8), %s554_s23, 4294963200  ;;  %s562_s8 = sand.u32 1, %s4301_s25   ;;  %p6270_p12 = scmp.ne.s32.totalorder %s6261_s9, 0 }
  0x6f   : > { %s3276_s10 = sshll.u32 %s562_s8, 9  ;;  %s563_s18 = scalar_lea.sflag [#allocation6], %s562_s8 }
  0x70   : > { %s4651_s15 = scalar_lea.vmem [#allocation5], %s3276_s10 }
  0x71   : > { %4276 = dma.done.wait (%p6270_p12), %s563_s18, 8192  }
  0x72   : > { %4278 = vsyncadd (%p6270_p12), %s563_s18, 4294959104  ;;  %vm657_vm0 = vcmask 261120   ;;  %v4658_v0 = vld [vmem:[%s4644_s14] sm:$0xff]  ;;  %v4661_v1 = vld [vmem:[%s4644_s14 + $0x10] sm:$0xff]  ;;  %vm4350_vm1 = vmmov 0   ;;  %vm1303_vm2 = vcmask 64512  }
  0x73   : > { %v4664_v2 = vld [vmem:[%s4644_s14 + $0x8] sm:$0xff]  ;;  %v658_v3 = vsel %vm657_vm0, %v4658_v0, 0.0  ;;  %v664_v4 = vsel %vm657_vm0, %v4661_v1, 0.0  ;;  %v4671_v5 = vld [vmem:[%s4644_s14 + $0x18] sm:$0xff]  ;;  %v4678_v8 = vld [vmem:[%s4644_s14 + $0x20] sm:$0xff]  ;;  %s6271_s24 = sld [smem:[#allocation26_spill]] }
  0x74   : > { %659 = vadd.xlane.f32.xlu0 %v658_v3  ;;  %665 = vadd.xlane.f32.xlu1 %v664_v4  ;;  %v661_v6 = vsel %vm657_vm0, %v4664_v2, 0.0  ;;  %v667_v7 = vsel %vm657_vm0, %v4671_v5, 0.0  ;;  %v4681_v9 = vld [vmem:[%s4644_s14 + $0x28] sm:$0xff]  ;;  %v670_v10 = vsel %vm657_vm0, %v4678_v8, 0.0  ;;  %v4688_v12 = vld [vmem:[%s4644_s14 + $0x30] sm:$0xff]  ;;  %v4691_v13 = vld [vmem:[%s4644_s14 + $0x38] sm:$0xff] }
  0x75   : > { %v673_v11 = vsel %vm657_vm0, %v4681_v9, 0.0  ;;  %v4694_v14 = vld [vmem:[%s4644_s14 + $0x40] sm:$0xff]  ;;  %v4697_v15 = vld [vmem:[%s4644_s14 + $0x48] sm:$0xff]  ;;  %v676_v16 = vsel %vm657_vm0, %v4688_v12, 0.0  ;;  %v679_v17 = vsel %vm657_vm0, %v4691_v13, 0.0  ;;  %v4704_v18 = vld [vmem:[%s4644_s14 + $0x50] sm:$0xff] }
  0x76   : > { %v4707_v19 = vld [vmem:[%s4644_s14 + $0x58] sm:$0xff]  ;;  %v682_v20 = vsel %vm657_vm0, %v4694_v14, 0.0  ;;  %v685_v21 = vsel %vm657_vm0, %v4697_v15, 0.0  ;;  %v4714_v22 = vld [vmem:[%s4644_s14 + $0x60] sm:$0xff]  ;;  %v4717_v23 = vld [vmem:[%s4644_s14 + $0x68] sm:$0xff]  ;;  %v688_v24 = vsel %vm657_vm0, %v4704_v18, 0.0 }
  0x77   : > { %v691_v25 = vsel %vm657_vm0, %v4707_v19, 0.0  ;;  %v4724_v26 = vld [vmem:[%s4644_s14 + $0x70] sm:$0xff]  ;;  %v4727_v27 = vld [vmem:[%s4644_s14 + $0x78] sm:$0xff]  ;;  %v694_v28 = vsel %vm657_vm0, %v4714_v22, 0.0  ;;  %v697_v29 = vsel %vm657_vm0, %v4717_v23, 0.0  ;;  %v4734_v30 = vld [vmem:[%s4644_s14 + $0x80] sm:$0xff] }
  0x78   : > { %662 = vadd.xlane.f32.xlu0 %v661_v6  ;;  %668 = vadd.xlane.f32.xlu1 %v667_v7  ;;  %v4737_v31 = vld [vmem:[%s4644_s14 + $0x88] sm:$0xff]  ;;  %v4740_v32 = vld [vmem:[%s4644_s14 + $0x90] sm:$0xff]  ;;  %v4743_v33 = vld [vmem:[%s4644_s14 + $0x98] sm:$0xff]  ;;  %v700_v34 = vsel %vm657_vm0, %v4724_v26, 0.0  ;;  %v703_v35 = vsel %vm657_vm0, %v4727_v27, 0.0  ;;  %v706_v36 = vsel %vm657_vm0, %v4734_v30, 0.0 }
  0x79   : > { %v709_v37 = vsel %vm657_vm0, %v4737_v31, 0.0  ;;  %v712_v38 = vsel %vm657_vm0, %v4740_v32, 0.0  ;;  %v715_v39 = vsel %vm657_vm0, %v4743_v33, 0.0  ;;  %v4758_v40 = vld [vmem:[%s4644_s14 + $0xa0] sm:$0xff]  ;;  %v4761_v41 = vld [vmem:[%s4644_s14 + $0xa8] sm:$0xff]  ;;  %v4768_v44 = vld [vmem:[%s4644_s14 + $0xb0] sm:$0xff] }
  0x7a   : > { %v718_v42 = vsel %vm657_vm0, %v4758_v40, 0.0  ;;  %v721_v43 = vsel %vm657_vm0, %v4761_v41, 0.0  ;;  %v4771_v45 = vld [vmem:[%s4644_s14 + $0xb8] sm:$0xff]  ;;  %v724_v46 = vsel %vm657_vm0, %v4768_v44, 0.0  ;;  %v4778_v48 = vld [vmem:[%s4644_s14 + $0xc0] sm:$0xff]  ;;  %v4781_v49 = vld [vmem:[%s4644_s14 + $0xc8] sm:$0xff] }
  0x7b   : > { %v727_v47 = vsel %vm657_vm0, %v4771_v45, 0.0  ;;  %v730_v50 = vsel %vm657_vm0, %v4778_v48, 0.0  ;;  %v733_v51 = vsel %vm657_vm0, %v4781_v49, 0.0  ;;  %v4788_v52 = vld [vmem:[%s4644_s14 + $0xd0] sm:$0xff]  ;;  %v4791_v53 = vld [vmem:[%s4644_s14 + $0xd8] sm:$0xff]  ;;  %v4798_v56 = vld [vmem:[%s4644_s14 + $0xe0] sm:$0xff] }
  0x7c   : > { %671 = vadd.xlane.f32.xlu0 %v670_v10  ;;  %674 = vadd.xlane.f32.xlu1 %v673_v11  ;;  %v736_v54 = vsel %vm657_vm0, %v4788_v52, 0.0  ;;  %v739_v55 = vsel %vm657_vm0, %v4791_v53, 0.0  ;;  %v4801_v57 = vld [vmem:[%s4644_s14 + $0xe8] sm:$0xff]  ;;  %v742_v58 = vsel %vm657_vm0, %v4798_v56, 0.0  ;;  %v4808_v60 = vld [vmem:[%s4644_s14 + $0xf0] sm:$0xff]  ;;  %v4811_v61 = vld [vmem:[%s4644_s14 + $0xf8] sm:$0xff] }
  0x7d   : > { %v745_v59 = vsel %vm657_vm0, %v4801_v57, 0.0  ;;  %v748_v62 = vsel %vm657_vm0, %v4808_v60, 0.0  ;;  %v751_v63 = vsel %vm657_vm0, %v4811_v61, 0.0  ;;  %s6272_s0 = sld [smem:[#allocation16_spill]]  ;;  %s6274_s16 = sld [smem:[#allocation27_spill]]  ;;  %vm2979_vm3 = vcmask 523264  }
  0x7e   : > { %s6273_s6 = sld [smem:[#allocation28_spill]]  ;;  %s6275_s10 = sld [smem:[#allocation31_spill]] }
  0x7f   : > { %s6278_s29 = sld [smem:[#allocation29_spill]]  ;;  %s6280_s20 = sld [smem:[#allocation32_spill]] }
  0x80   : > { %677 = vadd.xlane.f32.xlu0 %v676_v16  ;;  %680 = vadd.xlane.f32.xlu1 %v679_v17  ;;  %p6284_p0 = scmp.ne.s32.totalorder %s6264_s13, 0 }
  0x83   : > { %s3283_s12 = sshll.u32 %s6272_s0, 7  ;;  %s3423_s8 = sshll.u32 %s6272_s0, 4 }
  0x84   : > { %683 = vadd.xlane.f32.xlu0 %v682_v20  ;;  %686 = vadd.xlane.f32.xlu1 %v685_v21  ;;  %s5480_s23 = scalar_lea.vmem %s4644_s14, %s3283_s12 [#allocation2]  ;;  %s6279_s12 = sld [smem:[#allocation30_spill]] }
  0x85   : > { %s6282_s14 = sld [smem:[#allocation17_spill]] }
  0x88   : > { %689 = vadd.xlane.f32.xlu0 %v688_v24  ;;  %692 = vadd.xlane.f32.xlu1 %v691_v25 }
  0x8b   : > { %s3424_s18 = sshll.u32 %s6282_s14, 5 }
  0x8c   : > { %695 = vadd.xlane.f32.xlu0 %v694_v28  ;;  %698 = vadd.xlane.f32.xlu1 %v697_v29  ;;  %s3146_s9 = sadd.s32 %s3424_s18, %s3423_s8 }
  0x8d   : > { %s3425_s27 = sshll.u32 %s3146_s9, 7 }
  0x90   : > { %701 = vadd.xlane.f32.xlu0 %v700_v34  ;;  %704 = vadd.xlane.f32.xlu1 %v703_v35 }
  0x94   : > { %707 = vadd.xlane.f32.xlu0 %v706_v36  ;;  %710 = vadd.xlane.f32.xlu1 %v709_v37 }
  0x98   : > { %713 = vadd.xlane.f32.xlu0 %v712_v38  ;;  %716 = vadd.xlane.f32.xlu1 %v715_v39 }
  0x9c   : > { %719 = vadd.xlane.f32.xlu0 %v718_v42  ;;  %722 = vadd.xlane.f32.xlu1 %v721_v43 }
  0xa0   : > { %725 = vadd.xlane.f32.xlu0 %v724_v46  ;;  %728 = vadd.xlane.f32.xlu1 %v727_v47 }
  0xa4   : > { %731 = vadd.xlane.f32.xlu0 %v730_v50  ;;  %734 = vadd.xlane.f32.xlu1 %v733_v51 }
  0xa8   : > { %737 = vadd.xlane.f32.xlu0 %v736_v54  ;;  %740 = vadd.xlane.f32.xlu1 %v739_v55 }
  0xac   : > { %743 = vadd.xlane.f32.xlu0 %v742_v58  ;;  %746 = vadd.xlane.f32.xlu1 %v745_v59 }
  0xb0   : > { %749 = vadd.xlane.f32.xlu0 %v748_v62  ;;  %752 = vadd.xlane.f32.xlu1 %v751_v63 }
 0x101   : > { %v660_v3 = vpop.xlane.xlu0 %659  ;;  %v666_v4 = vpop.xlane.xlu1 %665 }
 0x102   : > { %v755_v6 = vmul.f32 0.03125, %v660_v3  ;;  %v757_v7 = vmul.f32 0.03125, %v666_v4 }
 0x104   : > { %v4818_v10 = vsub.f32 %v4658_v0, %v755_v6  ;;  %v4821_v11 = vsub.f32 %v4661_v1, %v757_v7 }
 0x105   : > { %v663_v16 = vpop.xlane.xlu0 %662  ;;  %v669_v17 = vpop.xlane.xlu1 %668 }
 0x106   : > { %v756_v20 = vmul.f32 0.03125, %v663_v16  ;;  %v758_v21 = vmul.f32 0.03125, %v669_v17  ;;  %v819_v24 = vmul.f32 %v4818_v10, %v4818_v10  ;;  %v821_v25 = vmul.f32 %v4821_v11, %v4821_v11 }
 0x108   : > { %v4828_v28 = vsub.f32 %v4664_v2, %v756_v20  ;;  %v4831_v29 = vsub.f32 %v4671_v5, %v758_v21  ;;  %v851_v0 = vsel %vm657_vm0, %v819_v24, 0.0  ;;  %v857_v35 = vsel %vm657_vm0, %v821_v25, 0.0 }
 0x109   : > { %852 = vadd.xlane.f32.xlu0 %v851_v0  ;;  %v672_v1 = vpop.xlane.xlu0 %671  ;;  %v675_v34 = vpop.xlane.xlu1 %674 }
 0x10a   : > { %v759_v36 = vmul.f32 0.03125, %v672_v1  ;;  %v760_v37 = vmul.f32 0.03125, %v675_v34  ;;  %v820_v38 = vmul.f32 %v4828_v28, %v4828_v28  ;;  %v822_v39 = vmul.f32 %v4831_v29, %v4831_v29 }
 0x10c   : > { %v4840_v2 = vsub.f32 %v4678_v8, %v759_v36  ;;  %v4843_v5 = vsub.f32 %v4681_v9, %v760_v37  ;;  %v854_v42 = vsel %vm657_vm0, %v820_v38, 0.0  ;;  %v860_v47 = vsel %vm657_vm0, %v822_v39, 0.0 }
 0x10d   : > { %858 = vadd.xlane.f32.xlu0 %v857_v35  ;;  %855 = vadd.xlane.f32.xlu1 %v854_v42  ;;  %v678_v43 = vpop.xlane.xlu0 %677  ;;  %v681_v46 = vpop.xlane.xlu1 %680 }
 0x10e   : > { %v761_v50 = vmul.f32 0.03125, %v678_v43  ;;  %v762_v51 = vmul.f32 0.03125, %v681_v46  ;;  %v823_v54 = vmul.f32 %v4840_v2, %v4840_v2  ;;  %v824_v8 = vmul.f32 %v4843_v5, %v4843_v5 }
 0x110   : > { %v4852_v55 = vsub.f32 %v4688_v12, %v761_v50  ;;  %v4855_v9 = vsub.f32 %v4691_v13, %v762_v51  ;;  %v863_v58 = vsel %vm657_vm0, %v823_v54, 0.0  ;;  %v866_v63 = vsel %vm657_vm0, %v824_v8, 0.0 }
 0x111   : > { %861 = vadd.xlane.f32.xlu1 %v860_v47  ;;  %864 = vadd.xlane.f32.xlu0 %v863_v58  ;;  %v684_v59 = vpop.xlane.xlu0 %683  ;;  %v687_v62 = vpop.xlane.xlu1 %686 }
 0x112   : > { %v763_v3 = vmul.f32 0.03125, %v684_v59  ;;  %v764_v4 = vmul.f32 0.03125, %v687_v62  ;;  %v825_v6 = vmul.f32 %v4852_v55, %v4852_v55  ;;  %v826_v12 = vmul.f32 %v4855_v9, %v4855_v9 }
 0x114   : > { %v4864_v7 = vsub.f32 %v4694_v14, %v763_v3  ;;  %v4867_v13 = vsub.f32 %v4697_v15, %v764_v4  ;;  %v869_v16 = vsel %vm657_vm0, %v825_v6, 0.0  ;;  %v872_v21 = vsel %vm657_vm0, %v826_v12, 0.0 }
 0x115   : > { %867 = vadd.xlane.f32.xlu1 %v866_v63  ;;  %870 = vadd.xlane.f32.xlu0 %v869_v16  ;;  %v690_v17 = vpop.xlane.xlu0 %689  ;;  %v693_v20 = vpop.xlane.xlu1 %692 }
 0x116   : > { %v765_v24 = vmul.f32 0.03125, %v690_v17  ;;  %v766_v25 = vmul.f32 0.03125, %v693_v20  ;;  %v827_v0 = vmul.f32 %v4864_v7, %v4864_v7  ;;  %v828_v14 = vmul.f32 %v4867_v13, %v4867_v13 }
 0x118   : > { %v4876_v1 = vsub.f32 %v4704_v18, %v765_v24  ;;  %v4879_v15 = vsub.f32 %v4707_v19, %v766_v25  ;;  %v875_v34 = vsel %vm657_vm0, %v827_v0, 0.0  ;;  %v878_v37 = vsel %vm657_vm0, %v828_v14, 0.0 }
 0x119   : > { %873 = vadd.xlane.f32.xlu1 %v872_v21  ;;  %876 = vadd.xlane.f32.xlu0 %v875_v34  ;;  %v696_v35 = vpop.xlane.xlu0 %695  ;;  %v699_v36 = vpop.xlane.xlu1 %698 }
 0x11a   : > { %v767_v38 = vmul.f32 0.03125, %v696_v35  ;;  %v768_v39 = vmul.f32 0.03125, %v699_v36  ;;  %v829_v42 = vmul.f32 %v4876_v1, %v4876_v1  ;;  %v830_v18 = vmul.f32 %v4879_v15, %v4879_v15 }
 0x11c   : > { %v4888_v43 = vsub.f32 %v4714_v22, %v767_v38  ;;  %v4891_v19 = vsub.f32 %v4717_v23, %v768_v39  ;;  %v881_v46 = vsel %vm657_vm0, %v829_v42, 0.0  ;;  %v884_v51 = vsel %vm657_vm0, %v830_v18, 0.0 }
 0x11d   : > { %879 = vadd.xlane.f32.xlu1 %v878_v37  ;;  %882 = vadd.xlane.f32.xlu0 %v881_v46  ;;  %v702_v47 = vpop.xlane.xlu0 %701  ;;  %v705_v50 = vpop.xlane.xlu1 %704 }
 0x11e   : > { %v769_v54 = vmul.f32 0.03125, %v702_v47  ;;  %v770_v8 = vmul.f32 0.03125, %v705_v50  ;;  %v831_v58 = vmul.f32 %v4888_v43, %v4888_v43  ;;  %v832_v22 = vmul.f32 %v4891_v19, %v4891_v19 }
 0x120   : > { %v4900_v59 = vsub.f32 %v4724_v26, %v769_v54  ;;  %v4903_v23 = vsub.f32 %v4727_v27, %v770_v8  ;;  %v887_v62 = vsel %vm657_vm0, %v831_v58, 0.0  ;;  %v890_v4 = vsel %vm657_vm0, %v832_v22, 0.0 }
 0x121   : > { %885 = vadd.xlane.f32.xlu1 %v884_v51  ;;  %888 = vadd.xlane.f32.xlu0 %v887_v62  ;;  %v708_v63 = vpop.xlane.xlu0 %707  ;;  %v711_v3 = vpop.xlane.xlu1 %710 }
 0x122   : > { %v771_v6 = vmul.f32 0.03125, %v708_v63  ;;  %v772_v12 = vmul.f32 0.03125, %v711_v3  ;;  %v833_v16 = vmul.f32 %v4900_v59, %v4900_v59  ;;  %v834_v26 = vmul.f32 %v4903_v23, %v4903_v23 }
 0x124   : > { %v4912_v17 = vsub.f32 %v4734_v30, %v771_v6  ;;  %v4915_v27 = vsub.f32 %v4737_v31, %v772_v12  ;;  %v893_v20 = vsel %vm657_vm0, %v833_v16, 0.0  ;;  %v896_v25 = vsel %vm657_vm0, %v834_v26, 0.0 }
 0x125   : > { %891 = vadd.xlane.f32.xlu1 %v890_v4  ;;  %894 = vadd.xlane.f32.xlu0 %v893_v20  ;;  %v714_v21 = vpop.xlane.xlu0 %713  ;;  %v717_v24 = vpop.xlane.xlu1 %716 }
 0x126   : > { %v773_v0 = vmul.f32 0.03125, %v714_v21  ;;  %v774_v14 = vmul.f32 0.03125, %v717_v24  ;;  %v835_v34 = vmul.f32 %v4912_v17, %v4912_v17  ;;  %v836_v30 = vmul.f32 %v4915_v27, %v4915_v27 }
 0x128   : > { %v4924_v35 = vsub.f32 %v4740_v32, %v773_v0  ;;  %v4927_v31 = vsub.f32 %v4743_v33, %v774_v14  ;;  %v899_v36 = vsel %vm657_vm0, %v835_v34, 0.0  ;;  %v902_v39 = vsel %vm657_vm0, %v836_v30, 0.0 }
 0x129   : > { %897 = vadd.xlane.f32.xlu1 %v896_v25  ;;  %900 = vadd.xlane.f32.xlu0 %v899_v36  ;;  %v720_v37 = vpop.xlane.xlu0 %719  ;;  %v723_v38 = vpop.xlane.xlu1 %722 }
 0x12a   : > { %v775_v42 = vmul.f32 0.03125, %v720_v37  ;;  %v776_v18 = vmul.f32 0.03125, %v723_v38  ;;  %v837_v46 = vmul.f32 %v4924_v35, %v4924_v35  ;;  %v838_v32 = vmul.f32 %v4927_v31, %v4927_v31 }
 0x12c   : > { %v4936_v47 = vsub.f32 %v4758_v40, %v775_v42  ;;  %v4939_v33 = vsub.f32 %v4761_v41, %v776_v18  ;;  %v905_v50 = vsel %vm657_vm0, %v837_v46, 0.0  ;;  %v908_v8 = vsel %vm657_vm0, %v838_v32, 0.0 }
 0x12d   : > { %903 = vadd.xlane.f32.xlu1 %v902_v39  ;;  %906 = vadd.xlane.f32.xlu0 %v905_v50  ;;  %v726_v51 = vpop.xlane.xlu0 %725  ;;  %v729_v54 = vpop.xlane.xlu1 %728 }
 0x12e   : > { %v777_v58 = vmul.f32 0.03125, %v726_v51  ;;  %v778_v22 = vmul.f32 0.03125, %v729_v54  ;;  %v839_v62 = vmul.f32 %v4936_v47, %v4936_v47  ;;  %v840_v40 = vmul.f32 %v4939_v33, %v4939_v33 }
 0x130   : > { %v4948_v63 = vsub.f32 %v4768_v44, %v777_v58  ;;  %v4951_v41 = vsub.f32 %v4771_v45, %v778_v22  ;;  %v911_v3 = vsel %vm657_vm0, %v839_v62, 0.0  ;;  %v914_v12 = vsel %vm657_vm0, %v840_v40, 0.0 }
 0x131   : > { %909 = vadd.xlane.f32.xlu1 %v908_v8  ;;  %912 = vadd.xlane.f32.xlu0 %v911_v3  ;;  %v732_v4 = vpop.xlane.xlu0 %731  ;;  %v735_v6 = vpop.xlane.xlu1 %734 }
 0x132   : > { %v779_v16 = vmul.f32 0.03125, %v732_v4  ;;  %v780_v26 = vmul.f32 0.03125, %v735_v6  ;;  %v841_v20 = vmul.f32 %v4948_v63, %v4948_v63  ;;  %v842_v44 = vmul.f32 %v4951_v41, %v4951_v41 }
 0x134   : > { %v4960_v21 = vsub.f32 %v4778_v48, %v779_v16  ;;  %v4963_v45 = vsub.f32 %v4781_v49, %v780_v26  ;;  %v917_v24 = vsel %vm657_vm0, %v841_v20, 0.0  ;;  %v920_v14 = vsel %vm657_vm0, %v842_v44, 0.0  ;;  %v1223_v44 = vld [vmem:[%s6207_s3 + $0x8] sm:$0xff] }
 0x135   : > { %915 = vadd.xlane.f32.xlu1 %v914_v12  ;;  %918 = vadd.xlane.f32.xlu0 %v917_v24  ;;  %v738_v25 = vpop.xlane.xlu0 %737  ;;  %v741_v0 = vpop.xlane.xlu1 %740 }
 0x136   : > { %v781_v34 = vmul.f32 0.03125, %v738_v25  ;;  %v782_v30 = vmul.f32 0.03125, %v741_v0  ;;  %v843_v36 = vmul.f32 %v4960_v21, %v4960_v21  ;;  %v844_v48 = vmul.f32 %v4963_v45, %v4963_v45  ;;  %v1224_v0 = vld [vmem:[%s6207_s3 + $0x10] sm:$0xff] }
 0x137   : > { %v4348_v25 = vmov 0.0|0.0  }
 0x138   : > { %v4972_v37 = vsub.f32 %v4788_v52, %v781_v34  ;;  %v4975_v49 = vsub.f32 %v4791_v53, %v782_v30  ;;  %v923_v38 = vsel %vm657_vm0, %v843_v36, 0.0  ;;  %v926_v18 = vsel %vm657_vm0, %v844_v48, 0.0  ;;  %3776 = vmatprep.subr.bf16.mxu0 %v4348_v25  ;;  %v1301_v36 = vld [vmem:[%s6209_s5] sm:$0xff] }
 0x139   : > { %921 = vadd.xlane.f32.xlu1 %v920_v14  ;;  %924 = vadd.xlane.f32.xlu0 %v923_v38  ;;  %v744_v39 = vpop.xlane.xlu0 %743  ;;  %v747_v42 = vpop.xlane.xlu1 %746  ;;  %v1225_v14 = vld [vmem:[%s6207_s3 + $0x18] sm:$0xff]  ;;  %v4349_v30 = vmov 0.0  }
 0x13a   : > { %v783_v46 = vmul.f32 0.03125, %v744_v39  ;;  %v784_v32 = vmul.f32 0.03125, %v747_v42  ;;  %v845_v50 = vmul.f32 %v4972_v37, %v4972_v37  ;;  %v846_v52 = vmul.f32 %v4975_v49, %v4975_v49  ;;  %3727 = vmatprep.subr.mxu1 %v4349_v30  ;;  %3724 = vmatprep.mubr.msk.f32.mxu0 %vm4350_vm1, %v4349_v30 }
 0x13b   : > { %v3780_v34 = vpack.c.bf16 %v1225_v14, %v1224_v0  ;;  %3728 = vmatpush3.msra.mxu1 %v1301_v36  ;;  %3729 = vmatprep.mubr.msk.f32.mxu1 %vm4350_vm1, %v4349_v30 }
 0x13c   : > { %v4984_v51 = vsub.f32 %v4798_v56, %v783_v46  ;;  %v4987_v53 = vsub.f32 %v4801_v57, %v784_v32  ;;  %v929_v54 = vsel %vm657_vm0, %v845_v50, 0.0  ;;  %v932_v22 = vsel %vm657_vm0, %v846_v52, 0.0 }
 0x13d   : > { %927 = vadd.xlane.f32.xlu1 %v926_v18  ;;  %930 = vadd.xlane.f32.xlu0 %v929_v54  ;;  %v750_v8 = vpop.xlane.xlu0 %749  ;;  %v753_v58 = vpop.xlane.xlu1 %752 }
 0x13e   : > { %v785_v62 = vmul.f32 0.03125, %v750_v8  ;;  %v786_v40 = vmul.f32 0.03125, %v753_v58  ;;  %v847_v3 = vmul.f32 %v4984_v51, %v4984_v51  ;;  %v848_v56 = vmul.f32 %v4987_v53, %v4987_v53 }
 0x140   : > { %v4996_v4 = vsub.f32 %v4808_v60, %v785_v62  ;;  %v4999_v57 = vsub.f32 %v4811_v61, %v786_v40  ;;  %v935_v6 = vsel %vm657_vm0, %v847_v3, 0.0  ;;  %v938_v12 = vsel %vm657_vm0, %v848_v56, 0.0  ;;  %v1222_v61 = vld [vmem:[%s6207_s3] sm:$0xff] }
 0x141   : > { %933 = vadd.xlane.f32.xlu1 %v932_v22  ;;  %936 = vadd.xlane.f32.xlu0 %v935_v6  ;;  %v3777_v24 = vpack.c.bf16 %v1223_v44, %v1222_v61 }
 0x142   : > { %v849_v16 = vmul.f32 %v4996_v4, %v4996_v4  ;;  %v850_v26 = vmul.f32 %v4999_v57, %v4999_v57 }
 0x143   : > { %3778 = vmatpush3.bf16.msra.mxu0 %v3777_v24 }
 0x144   : > { %v941_v20 = vsel %vm657_vm0, %v849_v16, 0.0  ;;  %v944_v60 = vsel %vm657_vm0, %v850_v26, 0.0  ;;  %3779 = vmatprep.subr.bf16.mxu0 %v4348_v25  ;;  %v5027_v26 = vld [vmem:[%s6205_s1] ss:$0 sm:$0xff] }
 0x145   : > { %939 = vadd.xlane.f32.xlu1 %v938_v12  ;;  %942 = vadd.xlane.f32.xlu0 %v941_v20  ;;  %v5033_v25 = vld [vmem:[%s6206_s2] ss:$0 sm:$0xff] }
 0x147   : > { %3781 = vmatpush3.bf16.msra.mxu0 %v3780_v34 }
 0x149   : > { %945 = vadd.xlane.f32.xlu1 %v944_v60 }
 0x196   : > { %v853_v48 = vpop.xlane.xlu0 %852 }
 0x197   : > { %v947_v38 = vmul.f32 0.03125, %v853_v48 }
 0x199   : > { %v979_v39 = vadd.f32 1e-05, %v947_v38 }
 0x19a   : > { %v856_v42 = vpop.xlane.xlu1 %855  ;;  %v859_v18 = vpop.xlane.xlu0 %858 }
 0x19b   : > { %4027 = vrsqrt.f32 %v979_v39  ;;  %v948_v46 = vmul.f32 0.03125, %v856_v42  ;;  %v949_v32 = vmul.f32 0.03125, %v859_v18 }
 0x19d   : > { %v980_v50 = vadd.f32 1e-05, %v948_v46  ;;  %v981_v52 = vadd.f32 1e-05, %v949_v32 }
 0x19e   : > { %v862_v54 = vpop.xlane.xlu1 %861  ;;  %v865_v8 = vpop.xlane.xlu0 %864 }
 0x19f   : > { %4029 = vrsqrt.f32 %v980_v50  ;;  %v950_v58 = vmul.f32 0.03125, %v862_v54  ;;  %v951_v22 = vmul.f32 0.03125, %v865_v8 }
 0x1a0   : > { %4031 = vrsqrt.f32 %v981_v52 }
 0x1a1   : > { %v982_v62 = vadd.f32 1e-05, %v950_v58  ;;  %v983_v40 = vadd.f32 1e-05, %v951_v22 }
 0x1a2   : > { %v868_v3 = vpop.xlane.xlu1 %867  ;;  %v871_v56 = vpop.xlane.xlu0 %870 }
 0x1a3   : > { %4033 = vrsqrt.f32 %v982_v62  ;;  %v952_v6 = vmul.f32 0.03125, %v868_v3  ;;  %v953_v12 = vmul.f32 0.03125, %v871_v56 }
 0x1a4   : > { %4035 = vrsqrt.f32 %v983_v40 }
 0x1a5   : > { %v4028_v16 = vpop.eup %4027  ;;  %v984_v20 = vadd.f32 1e-05, %v952_v6  ;;  %v985_v60 = vadd.f32 1e-05, %v953_v12 }
 0x1a6   : > { %v1043_v61 = vmul.f32 %v4028_v16, %v4818_v10  ;;  %v874_v44 = vpop.xlane.xlu1 %873  ;;  %v877_v24 = vpop.xlane.xlu0 %876 }
 0x1a7   : > { %4037 = vrsqrt.f32 %v984_v20  ;;  %v954_v0 = vmul.f32 0.03125, %v874_v44  ;;  %v955_v14 = vmul.f32 0.03125, %v877_v24 }
 0x1a8   : > { %v1081_v34 = vmul.f32 %v5027_v26, %v1043_v61  ;;  %4039 = vrsqrt.f32 %v985_v60 }
 0x1a9   : > { %v4030_v30 = vpop.eup %4029  ;;  %v986_v36 = vadd.f32 1e-05, %v954_v0  ;;  %v987_v48 = vadd.f32 1e-05, %v955_v14 }
 0x1aa   : > { %v4032_v38 = vpop.eup %4031  ;;  %v1119_v39 = vadd.f32 %v5033_v25, %v1081_v34  ;;  %v1044_v10 = vmul.f32 %v4030_v30, %v4828_v28  ;;  %v880_v42 = vpop.xlane.xlu1 %879 }
 0x1ab   : > { %v883_v18 = vpop.xlane.xlu0 %882  ;;  %v1045_v46 = vmul.f32 %v4032_v38, %v4821_v11  ;;  %4041 = vrsqrt.f32 %v986_v36  ;;  %v956_v32 = vmul.f32 0.03125, %v880_v42 }
 0x1ac   : > { %v957_v50 = vmul.f32 0.03125, %v883_v18  ;;  %v1082_v52 = vmul.f32 %v5027_v26, %v1044_v10  ;;  %4043 = vrsqrt.f32 %v987_v48  ;;  %v1151_v40 = vsel %vm657_vm0, %v1119_v39, 0.0 }
 0x1ad   : > { %v4034_v54 = vpop.eup %4033  ;;  %v1083_v8 = vmul.f32 %v5027_v26, %v1045_v46  ;;  %v988_v58 = vadd.f32 1e-05, %v956_v32 }
 0x1ae   : > { %v989_v22 = vadd.f32 1e-05, %v957_v50  ;;  %v4036_v62 = vpop.eup %4035  ;;  %v1120_v28 = vadd.f32 %v5033_v25, %v1082_v52  ;;  %v1046_v3 = vmul.f32 %v4034_v54, %v4831_v29  ;;  %v886_v56 = vpop.xlane.xlu1 %885 }
 0x1af   : > { %v889_v11 = vpop.xlane.xlu0 %888  ;;  %v1121_v6 = vadd.f32 %v5033_v25, %v1083_v8  ;;  %v1047_v12 = vmul.f32 %v4036_v62, %v4840_v2  ;;  %4045 = vrsqrt.f32 %v988_v58  ;;  %v958_v16 = vmul.f32 0.03125, %v886_v56 }
 0x1b0   : > { %v1152_v20 = vsel %vm657_vm0, %v1120_v28, 0.0  ;;  %v1084_v60 = vmul.f32 %v5027_v26, %v1046_v3  ;;  %4047 = vrsqrt.f32 %v989_v22  ;;  %v959_v61 = vmul.f32 0.03125, %v889_v11 }
 0x1b1   : > { %v4038_v44 = vpop.eup %4037  ;;  %v1153_v24 = vadd.f32 %v1152_v20, %v1151_v40  ;;  %v1154_v0 = vsel %vm657_vm0, %v1121_v6, 0.0  ;;  %v1085_v29 = vmul.f32 %v5027_v26, %v1047_v12  ;;  %v990_v14 = vadd.f32 1e-05, %v958_v16 }
 0x1b2   : > { %v4040_v34 = vpop.eup %4039  ;;  %v1122_v30 = vadd.f32 %v5033_v25, %v1084_v60  ;;  %v1048_v2 = vmul.f32 %v4038_v44, %v4843_v5  ;;  %v991_v36 = vadd.f32 1e-05, %v959_v61  ;;  %v892_v48 = vpop.xlane.xlu1 %891  ;;  %v5052_v10 = vpack.c.bf16 %v1120_v28, %v1119_v39 }
 0x1b3   : > { %v895_v38 = vpop.xlane.xlu0 %894  ;;  %v1155_v42 = vadd.f32 %v1154_v0, %v1153_v24  ;;  %v5055_v18 = vadd.f32 %v5033_v25, %v1085_v29  ;;  %v1049_v46 = vmul.f32 %v4040_v34, %v4852_v55  ;;  %4049 = vrsqrt.f32 %v990_v14 }
 0x1b4   : > { %v1156_v32 = vsel %vm657_vm0, %v1122_v30, 0.0  ;;  %v1086_v50 = vmul.f32 %v5027_v26, %v1048_v2  ;;  %4051 = vrsqrt.f32 %v991_v36  ;;  %v960_v52 = vmul.f32 0.03125, %v892_v48 }
 0x1b5   : > { %v4042_v54 = vpop.eup %4041  ;;  %v1157_v5 = vadd.f32 %v1156_v32, %v1155_v42  ;;  %v1158_v8 = vsel %vm657_vm0, %v5055_v18, 0.0  ;;  %v1087_v39 = vmul.f32 %v5027_v26, %v1049_v46  ;;  %v961_v58 = vmul.f32 0.03125, %v895_v38 }
 0x1b6   : > { %v4044_v22 = vpop.eup %4043  ;;  %v5064_v62 = vadd.f32 %v5033_v25, %v1086_v50  ;;  %v1050_v55 = vmul.f32 %v4042_v54, %v4855_v9  ;;  %v992_v40 = vadd.f32 1e-05, %v960_v52  ;;  %v898_v28 = vpop.xlane.xlu1 %897  ;;  %v5067_v56 = vpack.c.bf16 %v1122_v30, %v1121_v6 }
 0x1b7   : > { %v901_v3 = vpop.xlane.xlu0 %900  ;;  %v1159_v11 = vadd.f32 %v1158_v8, %v1157_v5  ;;  %v5070_v12 = vadd.f32 %v5033_v25, %v1087_v39  ;;  %v1051_v16 = vmul.f32 %v4044_v22, %v4864_v7  ;;  %v993_v20 = vadd.f32 1e-05, %v961_v58 }
 0x1b8   : > { %v1160_v60 = vsel %vm657_vm0, %v5064_v62, 0.0  ;;  %v1088_v61 = vmul.f32 %v5027_v26, %v1050_v55  ;;  %4053 = vrsqrt.f32 %v992_v40  ;;  %v962_v44 = vmul.f32 0.03125, %v898_v28 }
 0x1b9   : > { %v4046_v9 = vpop.eup %4045  ;;  %v1161_v24 = vadd.f32 %v1160_v60, %v1159_v11  ;;  %v1162_v6 = vsel %vm657_vm0, %v5070_v12, 0.0  ;;  %v1089_v0 = vmul.f32 %v5027_v26, %v1051_v16  ;;  %4055 = vrsqrt.f32 %v993_v20 }
 0x1ba   : > { %v4048_v29 = vpop.eup %4047  ;;  %v5080_v14 = vadd.f32 %v5033_v25, %v1088_v61  ;;  %v1052_v7 = vmul.f32 %v4046_v9, %v4867_v13  ;;  %v994_v34 = vadd.f32 1e-05, %v962_v44  ;;  %v963_v30 = vmul.f32 0.03125, %v901_v3  ;;  %v904_v2 = vpop.xlane.xlu1 %903 }
 0x1bb   : > { %v907_v36 = vpop.xlane.xlu0 %906  ;;  %v1163_v48 = vadd.f32 %v1162_v6, %v1161_v24  ;;  %v5084_v38 = vadd.f32 %v5033_v25, %v1089_v0  ;;  %v1053_v42 = vmul.f32 %v4048_v29, %v4876_v1  ;;  %v964_v46 = vmul.f32 0.03125, %v904_v2 }
 0x1bc   : > { %v1164_v32 = vsel %vm657_vm0, %v5080_v14, 0.0  ;;  %v1090_v50 = vmul.f32 %v5027_v26, %v1052_v7  ;;  %4057 = vrsqrt.f32 %v994_v34  ;;  %v995_v52 = vadd.f32 1e-05, %v963_v30 }
 0x1bd   : > { %v4050_v54 = vpop.eup %4049  ;;  %v1165_v13 = vadd.f32 %v1164_v32, %v1163_v48  ;;  %v1166_v5 = vsel %vm657_vm0, %v5084_v38, 0.0  ;;  %v1091_v8 = vmul.f32 %v5027_v26, %v1053_v42  ;;  %v996_v39 = vadd.f32 1e-05, %v964_v46 }
 0x1be   : > { %v4052_v58 = vpop.eup %4051  ;;  %v5094_v22 = vadd.f32 %v5033_v25, %v1090_v50  ;;  %v1054_v1 = vmul.f32 %v4050_v54, %v4879_v15  ;;  %4059 = vrsqrt.f32 %v995_v52  ;;  %v965_v55 = vmul.f32 0.03125, %v907_v36  ;;  %v910_v40 = vpop.xlane.xlu1 %909 }
 0x1bf   : > { %v913_v28 = vpop.xlane.xlu0 %912  ;;  %v1167_v3 = vadd.f32 %v1166_v5, %v1165_v13  ;;  %v5098_v11 = vadd.f32 %v5033_v25, %v1091_v8  ;;  %v1055_v16 = vmul.f32 %v4052_v58, %v4888_v43  ;;  %4061 = vrsqrt.f32 %v996_v39 }
 0x1c0   : > { %v1168_v20 = vsel %vm657_vm0, %v5094_v22, 0.0  ;;  %v1092_v60 = vmul.f32 %v5027_v26, %v1054_v1  ;;  %v997_v61 = vadd.f32 1e-05, %v965_v55  ;;  %v966_v44 = vmul.f32 0.03125, %v910_v40 }
 0x1c1   : > { %v1169_v9 = vadd.f32 %v1168_v20, %v1167_v3  ;;  %v1170_v15 = vsel %vm657_vm0, %v5098_v11, 0.0  ;;  %v1093_v24 = vmul.f32 %v5027_v26, %v1055_v16  ;;  %v967_v6 = vmul.f32 0.03125, %v913_v28 }
 0x1c2   : > { %v4054_v0 = vpop.eup %4053  ;;  %v5108_v29 = vadd.f32 %v5033_v25, %v1092_v60  ;;  %4063 = vrsqrt.f32 %v997_v61  ;;  %v998_v43 = vadd.f32 1e-05, %v966_v44  ;;  %v916_v7 = vpop.xlane.xlu1 %915  ;;  %v5112_v30 = vpack.c.bf16 %v5064_v62, %v5055_v18 }
 0x1c3   : > { %v919_v34 = vpop.xlane.xlu0 %918  ;;  %v4056_v2 = vpop.eup %4055  ;;  %v1171_v36 = vadd.f32 %v1170_v15, %v1169_v9  ;;  %v5115_v48 = vadd.f32 %v5033_v25, %v1093_v24  ;;  %v1056_v42 = vmul.f32 %v4054_v0, %v4891_v19  ;;  %v999_v46 = vadd.f32 1e-05, %v967_v6 }
 0x1c4   : > { %v1172_v32 = vsel %vm657_vm0, %v5108_v29, 0.0  ;;  %v1057_v50 = vmul.f32 %v4056_v2, %v4900_v59  ;;  %4065 = vrsqrt.f32 %v998_v43  ;;  %v968_v52 = vmul.f32 0.03125, %v916_v7 }
 0x1c5   : > { %v1173_v54 = vadd.f32 %v1172_v32, %v1171_v36  ;;  %v1174_v18 = vsel %vm657_vm0, %v5115_v48, 0.0  ;;  %v1094_v62 = vmul.f32 %v5027_v26, %v1056_v42  ;;  %4067 = vrsqrt.f32 %v999_v46 }
 0x1c6   : > { %v4058_v13 = vpop.eup %4057  ;;  %v1095_v5 = vmul.f32 %v5027_v26, %v1057_v50  ;;  %v1000_v8 = vadd.f32 1e-05, %v968_v52  ;;  %v969_v19 = vmul.f32 0.03125, %v919_v34  ;;  %v922_v39 = vpop.xlane.xlu1 %921  ;;  %v5127_v1 = vpack.c.bf16 %v5080_v14, %v5070_v12 }
 0x1c7   : > { %v925_v58 = vpop.xlane.xlu0 %924  ;;  %v1175_v59 = vadd.f32 %v1174_v18, %v1173_v54  ;;  %v5130_v55 = vadd.f32 %v5033_v25, %v1094_v62  ;;  %v1058_v40 = vmul.f32 %v4058_v13, %v4903_v23  ;;  %v970_v28 = vmul.f32 0.03125, %v922_v39 }
 0x1c8   : > { %v4060_v3 = vpop.eup %4059  ;;  %v5134_v16 = vadd.f32 %v5033_v25, %v1095_v5  ;;  %4069 = vrsqrt.f32 %v1000_v8  ;;  %v1001_v20 = vadd.f32 1e-05, %v969_v19  ;;  %v971_v60 = vmul.f32 0.03125, %v925_v58 }
 0x1c9   : > { %v4062_v61 = vpop.eup %4061  ;;  %v1176_v44 = vsel %vm657_vm0, %v5130_v55, 0.0  ;;  %v1096_v12 = vmul.f32 %v5027_v26, %v1058_v40  ;;  %v1059_v14 = vmul.f32 %v4060_v3, %v4912_v17  ;;  %v1002_v9 = vadd.f32 1e-05, %v970_v28 }
 0x1ca   : > { %v1060_v15 = vmul.f32 %v4062_v61, %v4915_v27  ;;  %4071 = vrsqrt.f32 %v1001_v20  ;;  %v1003_v23 = vadd.f32 1e-05, %v971_v60  ;;  %v928_v24 = vpop.xlane.xlu1 %927  ;;  %v1177_v0 = vadd.f32 %v1176_v44, %v1175_v59 }
 0x1cb   : > { %v931_v6 = vpop.xlane.xlu0 %930  ;;  %v5142_v43 = vadd.f32 %v5033_v25, %v1096_v12  ;;  %4073 = vrsqrt.f32 %v1002_v9  ;;  %v972_v7 = vmul.f32 0.03125, %v928_v24  ;;  %v1097_v36 = vmul.f32 %v5027_v26, %v1059_v14 }
 0x1cc   : > { %v973_v34 = vmul.f32 0.03125, %v931_v6  ;;  %v4064_v2 = vpop.eup %4063  ;;  %4075 = vrsqrt.f32 %v1003_v23  ;;  %v1098_v17 = vmul.f32 %v5027_v26, %v1060_v15  ;;  %v1178_v27 = vsel %vm657_vm0, %v5134_v16, 0.0 }
 0x1cd   : > { %v1061_v42 = vmul.f32 %v4064_v2, %v4924_v35  ;;  %v1004_v46 = vadd.f32 1e-05, %v972_v7  ;;  %v1179_v50 = vadd.f32 %v1178_v27, %v1177_v0  ;;  %v1135_v62 = vadd.f32 %v5033_v25, %v1097_v36 }
 0x1ce   : > { %v1005_v32 = vadd.f32 1e-05, %v973_v34  ;;  %v4066_v52 = vpop.eup %4065  ;;  %v934_v54 = vpop.xlane.xlu1 %933  ;;  %v1136_v13 = vadd.f32 %v5033_v25, %v1098_v17  ;;  %v1180_v5 = vsel %vm657_vm0, %v5142_v43, 0.0  ;;  %v5155_v8 = vpack.c.bf16 %v5094_v22, %v5084_v38 }
 0x1cf   : > { %v937_v18 = vpop.xlane.xlu0 %936  ;;  %v4068_v19 = vpop.eup %4067  ;;  %v1099_v35 = vmul.f32 %v5027_v26, %v1061_v42  ;;  %v1062_v39 = vmul.f32 %v4066_v52, %v4927_v31  ;;  %4077 = vrsqrt.f32 %v1004_v46  ;;  %v974_v58 = vmul.f32 0.03125, %v934_v54 }
 0x1d0   : > { %v1063_v59 = vmul.f32 %v4068_v19, %v4936_v47  ;;  %4079 = vrsqrt.f32 %v1005_v32  ;;  %v975_v40 = vmul.f32 0.03125, %v937_v18  ;;  %v1181_v28 = vadd.f32 %v1180_v5, %v1179_v50 }
 0x1d1   : > { %v5161_v3 = vadd.f32 %v5033_v25, %v1099_v35  ;;  %v1100_v20 = vmul.f32 %v5027_v26, %v1062_v39  ;;  %v1006_v60 = vadd.f32 1e-05, %v974_v58  ;;  %v1182_v38 = vsel %vm657_vm0, %v1135_v62, 0.0 }
 0x1d2   : > { %v4070_v22 = vpop.eup %4069  ;;  %v1101_v61 = vmul.f32 %v5027_v26, %v1063_v59  ;;  %v1007_v44 = vadd.f32 1e-05, %v975_v40  ;;  %v940_v31 = vpop.xlane.xlu1 %939  ;;  %v1183_v12 = vadd.f32 %v1182_v38, %v1181_v28  ;;  %v1184_v14 = vsel %vm657_vm0, %v1136_v13, 0.0 }
 0x1d3   : > { %v5168_v47 = vadd.f32 %v5033_v25, %v1100_v20  ;;  %v1064_v9 = vmul.f32 %v4070_v22, %v4939_v33  ;;  %4081 = vrsqrt.f32 %v1006_v60  ;;  %v976_v15 = vmul.f32 0.03125, %v940_v31  ;;  %v943_v17 = vpop.xlane.xlu0 %942 }
 0x1d4   : > { %v4072_v23 = vpop.eup %4071  ;;  %v5172_v24 = vadd.f32 %v5033_v25, %v1101_v61  ;;  %4083 = vrsqrt.f32 %v1007_v44  ;;  %v1185_v6 = vadd.f32 %v1184_v14, %v1183_v12  ;;  %v1186_v0 = vsel %vm657_vm0, %v5161_v3, 0.0 }
 0x1d5   : > { %v4074_v7 = vpop.eup %4073  ;;  %v1102_v34 = vmul.f32 %v5027_v26, %v1064_v9  ;;  %v1065_v2 = vmul.f32 %v4072_v23, %v4948_v63  ;;  %v1008_v36 = vadd.f32 1e-05, %v976_v15  ;;  %v1188_v33 = vsel %vm657_vm0, %v5168_v47, 0.0 }
 0x1d6   : > { %v4076_v27 = vpop.eup %4075  ;;  %v1066_v42 = vmul.f32 %v4074_v7, %v4951_v41  ;;  %v1187_v46 = vadd.f32 %v1186_v0, %v1185_v6  ;;  %v5181_v32 = vpack.c.bf16 %v1136_v13, %v1135_v62  ;;  %v946_v50 = vpop.xlane.xlu1 %945  ;;  %v977_v41 = vmul.f32 0.03125, %v943_v17 }
 0x1d7   : > { %v5184_v52 = vadd.f32 %v5033_v25, %v1102_v34  ;;  %v1103_v54 = vmul.f32 %v5027_v26, %v1065_v2  ;;  %v1067_v18 = vmul.f32 %v4076_v27, %v4960_v21  ;;  %4085 = vrsqrt.f32 %v1008_v36 }
 0x1d8   : > { %v1104_v63 = vmul.f32 %v5027_v26, %v1066_v42  ;;  %v1189_v5 = vadd.f32 %v1188_v33, %v1187_v46  ;;  %3438 = vmatprep.subr.bf16.mxu1 %v5181_v32  ;;  %3502 = vmatprep.subr.bf16.mxu0 %v5181_v32  ;;  %v978_v19 = vmul.f32 0.03125, %v946_v50  ;;  %v1190_v13 = vsel %vm657_vm0, %v5172_v24, 0.0 }
 0x1d9   : > { %v4078_v62 = vpop.eup %4077  ;;  %v1192_v35 = vsel %vm657_vm0, %v5184_v52, 0.0  ;;  %v5196_v39 = vadd.f32 %v5033_v25, %v1103_v54  ;;  %v1105_v21 = vmul.f32 %v5027_v26, %v1067_v18  ;;  %v1009_v20 = vadd.f32 1e-05, %v977_v41 }
 0x1da   : > { %v4080_v58 = vpop.eup %4079  ;;  %v5200_v59 = vadd.f32 %v5033_v25, %v1104_v63  ;;  %v1068_v40 = vmul.f32 %v4078_v62, %v4963_v45  ;;  %v1191_v28 = vadd.f32 %v1190_v13, %v1189_v5  ;;  %v1010_v38 = vadd.f32 1e-05, %v978_v19 }
 0x1db   : > { %v1069_v60 = vmul.f32 %v4080_v58, %v4972_v37  ;;  %v5205_v22 = vadd.f32 %v5033_v25, %v1105_v21  ;;  %4087 = vrsqrt.f32 %v1009_v20  ;;  %v1194_v12 = vsel %vm657_vm0, %v5196_v39, 0.0 }
 0x1dc   : > { %v1106_v61 = vmul.f32 %v5027_v26, %v1068_v40  ;;  %v1193_v44 = vadd.f32 %v1192_v35, %v1191_v28  ;;  %v1196_v14 = vsel %vm657_vm0, %v5200_v59, 0.0  ;;  %4089 = vrsqrt.f32 %v1010_v38 }
 0x1dd   : > { %v4082_v31 = vpop.eup %4081  ;;  %v1107_v45 = vmul.f32 %v5027_v26, %v1069_v60  ;;  %v5218_v0 = vpack.c.bf16 %v5108_v29, %v5098_v11  ;;  %v5222_v7 = vpack.c.bf16 %v5130_v55, %v5115_v48  ;;  %v1198_v34 = vsel %vm657_vm0, %v5205_v22, 0.0 }
 0x1de   : > { %v4084_v9 = vpop.eup %4083  ;;  %v1144_v37 = vadd.f32 %v5033_v25, %v1106_v61  ;;  %v1070_v15 = vmul.f32 %v4082_v31, %v4975_v49  ;;  %v1195_v23 = vadd.f32 %v1194_v12, %v1193_v44  ;;  %v5232_v11 = vpack.c.bf16 %v5142_v43, %v5134_v16 }
 0x1df   : > { %v1071_v6 = vmul.f32 %v4084_v9, %v4984_v51  ;;  %v1145_v17 = vadd.f32 %v5033_v25, %v1107_v45  ;;  %v3927_v45 = vld [vmem:[%s4651_s15 + $0x84] ss:$8 sps:$4 sm:$0xff]   ;;  %v5261_v9 = vpack.c.bf16 %v5184_v52, %v5172_v24 }
 0x1e0   : > { %v1108_v2 = vmul.f32 %v5027_v26, %v1070_v15  ;;  %v1197_v36 = vadd.f32 %v1196_v14, %v1195_v23  ;;  %v1200_v49 = vsel %vm657_vm0, %v1144_v37, 0.0  ;;  %v5267_v15 = vpack.c.bf16 %v5200_v59, %v5196_v39  ;;  %v3925_v39 = vld [vmem:[%s4651_s15 + $0x80] ss:$8 sps:$4 sm:$0xff]   ;;  %v3928_v59 = vld [vmem:[%s4651_s15 + $0x94] ss:$8 sps:$4 sm:$0xff]  }
 0x1e1   : > { %v4086_v33 = vpop.eup %4085  ;;  %v1109_v51 = vmul.f32 %v5027_v26, %v1071_v6  ;;  %v1202_v46 = vsel %vm657_vm0, %v1145_v17, 0.0  ;;  %v3933_v23 = vld [vmem:[%s4651_s15 + $0xa0] ss:$8 sps:$4 sm:$0xff]   ;;  %v3934_v6 = vld [vmem:[%s4651_s15 + $0xb4] ss:$8 sps:$4 sm:$0xff]  }
 0x1e2   : > { %v1146_v29 = vadd.f32 %v5033_v25, %v1108_v2  ;;  %v1072_v48 = vmul.f32 %v4086_v33, %v4987_v53  ;;  %v1199_v55 = vadd.f32 %v1198_v34, %v1197_v36  ;;  %v3936_v34 = vld [vmem:[%s4651_s15 + $0xb0] ss:$8 sps:$4 sm:$0xff]   ;;  %v3937_v2 = vld [vmem:[%s4651_s15 + $0xc4] ss:$8 sps:$4 sm:$0xff]   ;;  %v3939_v36 = vld [vmem:[%s4651_s15 + $0xc0] ss:$8 sps:$4 sm:$0xff]  }
 0x1e3   : > { %v1147_v54 = vadd.f32 %v5033_v25, %v1109_v51  ;;  %v3940_v33 = vld [vmem:[%s4651_s15 + $0xd4] ss:$8 sps:$4 sm:$0xff]   ;;  %v3945_v51 = vld [vmem:[%s4651_s15 + $0xe0] ss:$8 sps:$4 sm:$0xff]  }
 0x1e4   : > { %v1110_v27 = vmul.f32 %v5027_v26, %v1072_v48  ;;  %v1201_v42 = vadd.f32 %v1200_v49, %v1199_v55  ;;  %v1204_v50 = vsel %vm657_vm0, %v1146_v29, 0.0  ;;  %v3942_v49 = vld [vmem:[%s4651_s15 + $0xd0] ss:$8 sps:$4 sm:$0xff]   ;;  %v3951_v55 = vld [vmem:[%s4651_s15 + $0x184] ss:$8 sps:$4 sm:$0xff]  }
 0x1e5   : > { %v4088_v18 = vpop.eup %4087  ;;  %v1206_v19 = vsel %vm657_vm0, %v1147_v54, 0.0  ;;  %v3948_v48 = vld [vmem:[%s4651_s15 + $0xf0] ss:$8 sps:$4 sm:$0xff]  }
 0x1e6   : > { %v1148_v63 = vadd.f32 %v5033_v25, %v1110_v27  ;;  %v1203_v5 = vadd.f32 %v1202_v46, %v1201_v42  ;;  %v4090_v16 = vpop.eup %4089  ;;  %v1073_v43 = vmul.f32 %v4088_v18, %v4996_v4  ;;  %v3949_v27 = vld [vmem:[%s4651_s15 + $0x180] ss:$8 sps:$4 sm:$0xff]   ;;  %v3952_v42 = vld [vmem:[%s4651_s15 + $0x194] ss:$8 sps:$4 sm:$0xff]   ;;  %v3954_v46 = vld [vmem:[%s4651_s15 + $0x190] ss:$8 sps:$4 sm:$0xff]  }
 0x1e7   : > { %v1074_v41 = vmul.f32 %v4090_v16, %v4999_v57  ;;  %v3958_v18 = vld [vmem:[%s4651_s15 + $0x1b4] ss:$8 sps:$4 sm:$0xff]   ;;  %v3963_v16 = vld [vmem:[%s4651_s15 + $0x1c0] ss:$8 sps:$4 sm:$0xff]  }
 0x1e8   : > { %v1205_v53 = vadd.f32 %v1204_v50, %v1203_v5  ;;  %v1208_v62 = vsel %vm657_vm0, %v1148_v63, 0.0  ;;  %v1111_v13 = vmul.f32 %v5027_v26, %v1073_v43  ;;  %v5280_v24 = vpack.c.bf16 %v1148_v63, %v1147_v54  ;;  %v3955_v50 = vld [vmem:[%s4651_s15 + $0x1a4] ss:$8 sps:$4 sm:$0xff]   ;;  %v3957_v54 = vld [vmem:[%s4651_s15 + $0x1a0] ss:$8 sps:$4 sm:$0xff]  }
 0x1e9   : > { %v1112_v35 = vmul.f32 %v5027_v26, %v1074_v41  ;;  %v3960_v63 = vld [vmem:[%s4651_s15 + $0x1b0] ss:$8 sps:$4 sm:$0xff]   ;;  %v3961_v5 = vld [vmem:[%s4651_s15 + $0x1c4] ss:$8 sps:$4 sm:$0xff]   ;;  %v3964_v43 = vld [vmem:[%s4651_s15 + $0x1d4] ss:$8 sps:$4 sm:$0xff]  }
 0x1ea   : > { %v1207_v21 = vadd.f32 %v1206_v19, %v1205_v53  ;;  %v1149_v58 = vadd.f32 %v5033_v25, %v1111_v13  ;;  %v3966_v41 = vld [vmem:[%s4651_s15 + $0x1d0] ss:$8 sps:$4 sm:$0xff]   ;;  %v3967_v53 = vld [vmem:[%s4651_s15 + $0x1e4] ss:$8 sps:$4 sm:$0xff]   ;;  %v3969_v19 = vld [vmem:[%s4651_s15 + $0x1e0] ss:$8 sps:$4 sm:$0xff]  }
 0x1eb   : > { %v1150_v40 = vadd.f32 %v5033_v25, %v1112_v35  ;;  %v5255_v25 = vpack.c.bf16 %v5168_v47, %v5161_v3  ;;  %v5272_v3 = vpack.c.bf16 %v1144_v37, %v5205_v22  ;;  %v5276_v47 = vpack.c.bf16 %v1146_v29, %v1145_v17  ;;  %v3930_v22 = vld [vmem:[%s4651_s15 + $0x90] ss:$8 sps:$4 sm:$0xff]   ;;  %v3931_v37 = vld [vmem:[%s4651_s15 + $0xa4] ss:$8 sps:$4 sm:$0xff]   ;;  %v3946_v29 = vld [vmem:[%s4651_s15 + $0xf4] ss:$8 sps:$4 sm:$0xff]  }
 0x1ec   : > { %v1209_v28 = vadd.f32 %v1208_v62, %v1207_v21  ;;  %v1210_v4 = vsel %vm657_vm0, %v1149_v58, 0.0  ;;  %v3943_v17 = vld [vmem:[%s4651_s15 + $0xe4] ss:$8 sps:$4 sm:$0xff]   ;;  %v3970_v62 = vld [vmem:[%s4651_s15 + $0x1f4] ss:$8 sps:$4 sm:$0xff]  }
 0x1ed   : > { %v1212_v57 = vsel %vm657_vm0, %v1150_v40, 0.0  ;;  %v5284_v52 = vpack.c.bf16 %v1150_v40, %v1149_v58  ;;  %v3972_v13 = vld [vmem:[%s4651_s15 + $0x1f0] ss:$8 sps:$4 sm:$0xff]   ;;  %v1226_v35 = vld [vmem:[%s6208_s4] sm:$0x1] }
 0x1ee   : > { %v1211_v20 = vadd.f32 %v1210_v4, %v1209_v28  ;;  %v3975_v28 = vld [vmem:[%s4651_s15 + $0x4] ss:$8 sps:$4 sm:$0xff]  }
 0x1f0   : > { %v1213_v60 = vadd.f32 %v1212_v57, %v1211_v20  ;;  %v3973_v57 = vld [vmem:[%s4651_s15] ss:$8 sps:$4 sm:$0xff]  }
 0x1f2   : > { %v1214_v38 = vrot.slane %v1213_v60, 4 }
 0x1f4   : > { %v1215_v61 = vadd.f32 %v1214_v38, %v1213_v60  ;;  %v3976_v38 = vld [vmem:[%s4651_s15 + $0x14] ss:$8 sps:$4 sm:$0xff]  }
 0x1f6   : > { %v1216_v44 = vrot.slane %v1215_v61, 2 }
 0x1f8   : > { %v1217_v31 = vadd.f32 %v1216_v44, %v1215_v61 }
 0x1fa   : > { %v1218_v12 = vrot.slane %v1217_v31, 1 }
 0x1fc   : > { %v1219_v14 = vadd.f32 %v1218_v12, %v1217_v31 }
 0x1fe   : > { %v1221_v26 = vmul.f32 0.00390625, %v1219_v14 }
 0x200   : > { %3725 = vmatmul.mubr.msk.f32.vlgmr.msra.gmra.mrb[0].mxu0 %vm657_vm0, %v1221_v26 }
 0x201   : > { %3503 = vmatpush3.bf16.msra.mxu0 %v5052_v10  ;;  %1805 = vmatprep.mubr.bf16.mxu0 %v3927_v45  ;;  %v3978_v45 = vld [vmem:[%s4651_s15 + $0x10] ss:$8 sps:$4 sm:$0xff]  }
 0x202   : > { %3504 = vmatprep.subr.bf16.mxu0 %v5255_v25 }
 0x205   : > { %3505 = vmatpush3.bf16.msra.mxu0 %v5067_v56 }
 0x206   : > { %3506 = vmatprep.subr.bf16.mxu0 %v5261_v9 }
 0x209   : > { %3507 = vmatpush3.bf16.msra.mxu0 %v5112_v30 }
 0x20a   : > { %3508 = vmatprep.subr.bf16.mxu0 %v5267_v15 }
 0x20d   : > { %3509 = vmatpush3.bf16.msra.mxu0 %v5127_v1 }
 0x20e   : > { %3510 = vmatprep.subr.bf16.mxu0 %v5272_v3 }
 0x211   : > { %3511 = vmatpush3.bf16.msra.mxu0 %v5155_v8 }
 0x212   : > { %3512 = vmatprep.subr.bf16.mxu0 %v5276_v47 }
 0x215   : > { %3513 = vmatpush3.bf16.msra.mxu0 %v5218_v0 }
 0x216   : > { %3514 = vmatprep.subr.bf16.mxu0 %v5280_v24 }
 0x219   : > { %3515 = vmatpush3.bf16.msra.mxu0 %v5222_v7 }
 0x21a   : > { %3516 = vmatprep.subr.bf16.mxu0 %v5284_v52 }
 0x21d   : > { %3517 = vmatpush3.bf16.msra.mxu0 %v5232_v11 }
 0x21e   : > { %3630 = vmatprep.subr.bf16.mxu0 %v5181_v32 }
 0x220   : > { %1806 = vmatmul.mubr.bf16.vlgmr.msra.gmra.mrb[4].mxu0 %v3925_v39  ;;  %v3979_v39 = vld [vmem:[%s4651_s15 + $0x24] ss:$8 sps:$4 sm:$0xff]  }
 0x221   : > { %3631 = vmatpush3.bf16.msra.mxu0 %v5052_v10  ;;  %1813 = vmatprep.mubr.bf16.mxu0 %v3928_v59 }
 0x222   : > { %3632 = vmatprep.subr.bf16.mxu0 %v5255_v25 }
 0x225   : > { %3633 = vmatpush3.bf16.msra.mxu0 %v5067_v56 }
 0x226   : > { %3634 = vmatprep.subr.bf16.mxu0 %v5261_v9 }
 0x228   : > { %1814 = vmatmul.mubr.bf16.gmra.mrb[8].mxu0 %v3930_v22 }
 0x229   : > { %3635 = vmatpush3.bf16.msra.mxu0 %v5112_v30  ;;  %1821 = vmatprep.mubr.bf16.mxu0 %v3931_v37 }
 0x22a   : > { %3636 = vmatprep.subr.bf16.mxu0 %v5267_v15 }
 0x22d   : > { %3637 = vmatpush3.bf16.msra.mxu0 %v5127_v1 }
 0x22e   : > { %3638 = vmatprep.subr.bf16.mxu0 %v5272_v3 }
 0x230   : > { %1822 = vmatmul.mubr.bf16.gmra.mrb[12].mxu0 %v3933_v23 }
 0x231   : > { %3639 = vmatpush3.bf16.msra.mxu0 %v5155_v8  ;;  %1829 = vmatprep.mubr.bf16.mxu0 %v3934_v6 }
 0x232   : > { %3640 = vmatprep.subr.bf16.mxu0 %v5276_v47 }
 0x235   : > { %3641 = vmatpush3.bf16.msra.mxu0 %v5218_v0 }
 0x236   : > { %3642 = vmatprep.subr.bf16.mxu0 %v5280_v24 }
 0x238   : > { %1830 = vmatmul.mubr.bf16.gmra.mrb[16].mxu0 %v3936_v34 }
 0x239   : > { %3643 = vmatpush3.bf16.msra.mxu0 %v5222_v7  ;;  %1837 = vmatprep.mubr.bf16.mxu0 %v3937_v2 }
 0x23a   : > { %3644 = vmatprep.subr.bf16.mxu0 %v5284_v52 }
 0x23d   : > { %3645 = vmatpush3.bf16.msra.mxu0 %v5232_v11 }
 0x240   : > { %1838 = vmatmul.mubr.bf16.gmra.mrb[20].mxu0 %v3939_v36 }
 0x241   : > { %1845 = vmatprep.mubr.bf16.mxu0 %v3940_v33 }
 0x248   : > { %1846 = vmatmul.mubr.bf16.gmra.mrb[24].mxu0 %v3942_v49 }
 0x249   : > { %1853 = vmatprep.mubr.bf16.mxu0 %v3943_v17 }
 0x250   : > { %1854 = vmatmul.mubr.bf16.gmra.mrb[28].mxu0 %v3945_v51  ;;  %v3988_v51 = vld [vmem:[%s4651_s15 + $0x54] ss:$8 sps:$4 sm:$0xff]  }
 0x251   : > { %1861 = vmatprep.mubr.bf16.mxu0 %v3946_v29 }
 0x258   : > { %1862 = vmatmul.mubr.bf16.gmra.mrb[32].mxu0 %v3948_v48 }
 0x259   : > { %2265 = vmatprep.mubr.bf16.mxu0 %v3951_v55 }
 0x260   : > { %2266 = vmatmul.mubr.bf16.vlgmr.msra.gmra.mrb[36].mxu0 %v3949_v27  ;;  %v3990_v27 = vld [vmem:[%s4651_s15 + $0x50] ss:$8 sps:$4 sm:$0xff]  }
 0x261   : > { %2273 = vmatprep.mubr.bf16.mxu0 %v3952_v42 }
 0x268   : > { %2274 = vmatmul.mubr.bf16.gmra.mrb[40].mxu0 %v3954_v46 }
 0x269   : > { %2281 = vmatprep.mubr.bf16.mxu0 %v3955_v50 }
 0x270   : > { %2282 = vmatmul.mubr.bf16.gmra.mrb[44].mxu0 %v3957_v54 }
 0x271   : > { %2289 = vmatprep.mubr.bf16.mxu0 %v3958_v18 }
 0x278   : > { %2290 = vmatmul.mubr.bf16.gmra.mrb[48].mxu0 %v3960_v63  ;;  %v3993_v63 = vld [vmem:[%s4651_s15 + $0x60] ss:$8 sps:$4 sm:$0xff]  }
 0x279   : > { %2297 = vmatprep.mubr.bf16.mxu0 %v3961_v5 }
 0x280   : > { %2298 = vmatmul.mubr.bf16.gmra.mrb[52].mxu0 %v3963_v16  ;;  %v3994_v16 = vld [vmem:[%s4651_s15 + $0x74] ss:$8 sps:$4 sm:$0xff]  }
 0x281   : > { %2305 = vmatprep.mubr.bf16.mxu0 %v3964_v43 }
 0x288   : > { %2306 = vmatmul.mubr.bf16.gmra.mrb[56].mxu0 %v3966_v41 }
 0x289   : > { %2313 = vmatprep.mubr.bf16.mxu0 %v3967_v53 }
 0x290   : > { %2314 = vmatmul.mubr.bf16.gmra.mrb[60].mxu0 %v3969_v19 }
 0x291   : > { %2321 = vmatprep.mubr.bf16.mxu0 %v3970_v62 }
 0x298   : > { %2322 = vmatmul.mubr.bf16.gmra.mrb[64].mxu0 %v3972_v13  ;;  %v3996_v13 = vld [vmem:[%s4651_s15 + $0x70] ss:$8 sps:$4 sm:$0xff]  }
 0x2d3   : > { %v1296_v21 = vpop.f32.mrb[0].mxu0 }
 0x2d4   : > { %v1297_v58 = vadd.f32 %v1296_v21, %v1226_v35  ;;  %v3726_v40 = vpop.f32.mrb[1].mxu0  ;;  %v3999_v21 = vld [vmem:[%s4651_s15 + $0x104] ss:$8 sps:$4 sm:$0xff]  }
 0x2d6   : > { %v1300_v4 = vmax.f32 %v1297_v58, 0.0 }
 0x2d8   : > { %3730 = vmatmul.mubr.msk.f32.vlgmr.msra.gmra.mrb[0].mxu1 %vm1303_vm2, %v1300_v4  ;;  %v4000_v4 = vld [vmem:[%s4651_s15 + $0x114] ss:$8 sps:$4 sm:$0xff]  }
 0x2d9   : > { %3439 = vmatpush3.bf16.msra.mxu1 %v5052_v10  ;;  %1575 = vmatprep.mubr.bf16.mxu1 %v3975_v28  ;;  %v3997_v28 = vld [vmem:[%s4651_s15 + $0x100] ss:$8 sps:$4 sm:$0xff]  }
 0x2da   : > { %3440 = vmatprep.subr.bf16.mxu1 %v5255_v25 }
 0x2dd   : > { %3441 = vmatpush3.bf16.msra.mxu1 %v5067_v56 }
 0x2de   : > { %3442 = vmatprep.subr.bf16.mxu1 %v5261_v9 }
 0x2e1   : > { %3443 = vmatpush3.bf16.msra.mxu1 %v5112_v30 }
 0x2e2   : > { %3444 = vmatprep.subr.bf16.mxu1 %v5267_v15 }
 0x2e5   : > { %3445 = vmatpush3.bf16.msra.mxu1 %v5127_v1 }
 0x2e6   : > { %3446 = vmatprep.subr.bf16.mxu1 %v5272_v3 }
 0x2e9   : > { %3447 = vmatpush3.bf16.msra.mxu1 %v5155_v8 }
 0x2ea   : > { %3448 = vmatprep.subr.bf16.mxu1 %v5276_v47 }
 0x2ed   : > { %3449 = vmatpush3.bf16.msra.mxu1 %v5218_v0 }
 0x2ee   : > { %3450 = vmatprep.subr.bf16.mxu1 %v5280_v24 }
 0x2f1   : > { %3451 = vmatpush3.bf16.msra.mxu1 %v5222_v7 }
 0x2f2   : > { %3452 = vmatprep.subr.bf16.mxu1 %v5284_v52 }
 0x2f3   : > { %v3518_v20 = vpop.f32.mrb[4].mxu0 }
 0x2f4   : > { %v3519_v60 = vpop.f32.mrb[5].mxu0 }
 0x2f5   : > { %3453 = vmatpush3.bf16.msra.mxu1 %v5232_v11  ;;  %v5357_v61 = vadd.f32 %v3519_v60, %v3518_v20  ;;  %v3521_v44 = vpop.f32.mrb[6].mxu0  ;;  %v4002_v20 = vld [vmem:[%s4651_s15 + $0x110] ss:$8 sps:$4 sm:$0xff]  }
 0x2f6   : > { %3566 = vmatprep.subr.bf16.mxu1 %v5181_v32  ;;  %v3522_v31 = vpop.f32.mrb[7].mxu0 }
 0x2f7   : > { %v5360_v12 = vadd.f32 %v3522_v31, %v3521_v44  ;;  %v4006_v31 = vld [vmem:[%s4651_s15 + $0x134] ss:$8 sps:$4 sm:$0xff]  }
 0x2f8   : > { %1576 = vmatmul.mubr.bf16.vlgmr.msra.gmra.mrb[4].mxu1 %v3973_v57  ;;  %v4003_v57 = vld [vmem:[%s4651_s15 + $0x124] ss:$8 sps:$4 sm:$0xff]  }
 0x2f9   : > { %3567 = vmatpush3.bf16.msra.mxu1 %v5052_v10  ;;  %1583 = vmatprep.mubr.bf16.mxu1 %v3976_v38  ;;  %v4005_v38 = vld [vmem:[%s4651_s15 + $0x120] ss:$8 sps:$4 sm:$0xff]  }
 0x2fa   : > { %3568 = vmatprep.subr.bf16.mxu1 %v5255_v25  ;;  %v3981_v25 = vld [vmem:[%s4651_s15 + $0x20] ss:$8 sps:$4 sm:$0xff]  }
 0x2fb   : > { %v3524_v14 = vpop.f32.mrb[8].mxu0 }
 0x2fc   : > { %v3525_v26 = vpop.f32.mrb[9].mxu0 }
 0x2fd   : > { %3569 = vmatpush3.bf16.msra.mxu1 %v5067_v56  ;;  %v5367_v59 = vadd.f32 %v3525_v26, %v3524_v14  ;;  %v3527_v32 = vpop.f32.mrb[10].mxu0  ;;  %v3982_v56 = vld [vmem:[%s4651_s15 + $0x34] ss:$8 sps:$4 sm:$0xff]  }
 0x2fe   : > { %3570 = vmatprep.subr.bf16.mxu1 %v5261_v9  ;;  %v3528_v22 = vpop.f32.mrb[11].mxu0 }
 0x2ff   : > { %v5370_v37 = vadd.f32 %v3528_v22, %v3527_v32 }
 0x300   : > { %1584 = vmatmul.mubr.bf16.gmra.mrb[8].mxu1 %v3978_v45 }
 0x301   : > { %3571 = vmatpush3.bf16.msra.mxu1 %v5112_v30  ;;  %1591 = vmatprep.mubr.bf16.mxu1 %v3979_v39 }
 0x302   : > { %3572 = vmatprep.subr.bf16.mxu1 %v5267_v15  ;;  %v3984_v15 = vld [vmem:[%s4651_s15 + $0x30] ss:$8 sps:$4 sm:$0xff]  }
 0x303   : > { %v3530_v10 = vpop.f32.mrb[12].mxu0 }
 0x304   : > { %v3531_v23 = vpop.f32.mrb[13].mxu0 }
 0x305   : > { %3573 = vmatpush3.bf16.msra.mxu1 %v5127_v1  ;;  %v5377_v6 = vadd.f32 %v3531_v23, %v3530_v10  ;;  %v3533_v9 = vpop.f32.mrb[14].mxu0  ;;  %v3985_v1 = vld [vmem:[%s4651_s15 + $0x44] ss:$8 sps:$4 sm:$0xff]  }
 0x306   : > { %3574 = vmatprep.subr.bf16.mxu1 %v5272_v3  ;;  %v3534_v34 = vpop.f32.mrb[15].mxu0 }
 0x307   : > { %v5380_v2 = vadd.f32 %v3534_v34, %v3533_v9  ;;  %v4009_v9 = vld [vmem:[%s4651_s15 + $0x144] ss:$8 sps:$4 sm:$0xff]  }
 0x308   : > { %1592 = vmatmul.mubr.bf16.gmra.mrb[12].mxu1 %v3981_v25  ;;  %v4008_v25 = vld [vmem:[%s4651_s15 + $0x130] ss:$8 sps:$4 sm:$0xff]  }
 0x309   : > { %3575 = vmatpush3.bf16.msra.mxu1 %v5155_v8  ;;  %1599 = vmatprep.mubr.bf16.mxu1 %v3982_v56 }
 0x30a   : > { %3576 = vmatprep.subr.bf16.mxu1 %v5276_v47  ;;  %v3987_v47 = vld [vmem:[%s4651_s15 + $0x40] ss:$8 sps:$4 sm:$0xff]  }
 0x30b   : > { %v3536_v30 = vpop.f32.mrb[16].mxu0 }
 0x30c   : > { %v3537_v36 = vpop.f32.mrb[17].mxu0 }
 0x30d   : > { %3577 = vmatpush3.bf16.msra.mxu1 %v5218_v0  ;;  %v5387_v33 = vadd.f32 %v3537_v36, %v3536_v30  ;;  %v3539_v3 = vpop.f32.mrb[18].mxu0 }
 0x30e   : > { %3578 = vmatprep.subr.bf16.mxu1 %v5280_v24  ;;  %v3540_v49 = vpop.f32.mrb[19].mxu0 }
 0x30f   : > { %v5390_v17 = vadd.f32 %v3540_v49, %v3539_v3 }
 0x310   : > { %1600 = vmatmul.mubr.bf16.gmra.mrb[16].mxu1 %v3984_v15 }
 0x311   : > { %3579 = vmatpush3.bf16.msra.mxu1 %v5222_v7  ;;  %1607 = vmatprep.mubr.bf16.mxu1 %v3985_v1 }
 0x312   : > { %3580 = vmatprep.subr.bf16.mxu1 %v5284_v52  ;;  %v3991_v52 = vld [vmem:[%s4651_s15 + $0x64] ss:$8 sps:$4 sm:$0xff]  }
 0x313   : > { %v3542_v8 = vpop.f32.mrb[20].mxu0 }
 0x314   : > { %v3543_v0 = vpop.f32.mrb[21].mxu0 }
 0x315   : > { %3581 = vmatpush3.bf16.msra.mxu1 %v5232_v11  ;;  %v5397_v29 = vadd.f32 %v3543_v0, %v3542_v8  ;;  %v3545_v24 = vpop.f32.mrb[22].mxu0 }
 0x316   : > { %v3546_v48 = vpop.f32.mrb[23].mxu0 }
 0x317   : > { %v5399_v55 = vadd.f32 %v3546_v48, %v3545_v24 }
 0x318   : > { %1608 = vmatmul.mubr.bf16.gmra.mrb[20].mxu1 %v3987_v47 }
 0x319   : > { %1615 = vmatprep.mubr.bf16.mxu1 %v3988_v51 }
 0x31b   : > { %v3548_v7 = vpop.f32.mrb[24].mxu0 }
 0x31c   : > { %v3549_v42 = vpop.f32.mrb[25].mxu0 }
 0x31d   : > { %v5403_v46 = vadd.f32 %v3549_v42, %v3548_v7  ;;  %v3551_v50 = vpop.f32.mrb[26].mxu0 }
 0x31e   : > { %v3552_v11 = vpop.f32.mrb[27].mxu0 }
 0x31f   : > { %v5405_v54 = vadd.f32 %v3552_v11, %v3551_v50  ;;  %v4012_v50 = vld [vmem:[%s4651_s15 + $0x154] ss:$8 sps:$4 sm:$0xff]  }
 0x320   : > { %1616 = vmatmul.mubr.bf16.gmra.mrb[24].mxu1 %v3990_v27  ;;  %v4011_v27 = vld [vmem:[%s4651_s15 + $0x140] ss:$8 sps:$4 sm:$0xff]  }
 0x321   : > { %1623 = vmatprep.mubr.bf16.mxu1 %v3991_v52 }
 0x323   : > { %v3554_v18 = vpop.f32.mrb[28].mxu0 }
 0x324   : > { %v3555_v5 = vpop.f32.mrb[29].mxu0 }
 0x325   : > { %v5409_v43 = vadd.f32 %v3555_v5, %v3554_v18  ;;  %v3557_v41 = vpop.f32.mrb[30].mxu0 }
 0x326   : > { %v3558_v53 = vpop.f32.mrb[31].mxu0 }
 0x327   : > { %v5411_v19 = vadd.f32 %v3558_v53, %v3557_v41  ;;  %v4014_v53 = vld [vmem:[%s4651_s15 + $0x150] ss:$8 sps:$4 sm:$0xff]  }
 0x328   : > { %1624 = vmatmul.mubr.bf16.gmra.mrb[28].mxu1 %v3993_v63 }
 0x329   : > { %1631 = vmatprep.mubr.bf16.mxu1 %v3994_v16 }
 0x32b   : > { %v3560_v62 = vpop.f32.mrb[32].mxu0 }
 0x32c   : > { %v3561_v35 = vpop.f32.mrb[33].mxu0 }
 0x32d   : > { %v5415_v58 = vadd.f32 %v3561_v35, %v3560_v62  ;;  %v3563_v40 = vpop.f32.mrb[34].mxu0 }
 0x32e   : > { %v3564_v60 = vpop.f32.mrb[35].mxu0 }
 0x32f   : > { %v5424_v23 = vadd.f32 %v3564_v60, %v3563_v40  ;;  %v4018_v60 = vld [vmem:[%s4651_s15 + $0x174] ss:$8 sps:$4 sm:$0xff]  }
 0x330   : > { %1632 = vmatmul.mubr.bf16.gmra.mrb[32].mxu1 %v3996_v13  ;;  %v4015_v13 = vld [vmem:[%s4651_s15 + $0x164] ss:$8 sps:$4 sm:$0xff]  }
 0x331   : > { %2035 = vmatprep.mubr.bf16.mxu1 %v3999_v21 }
 0x333   : > { %v3646_v44 = vpop.f32.mrb[36].mxu0 }
 0x334   : > { %v3647_v14 = vpop.f32.mrb[37].mxu0 }
 0x335   : > { %v3649_v45 = vpop.f32.mrb[38].mxu0  ;;  %v5427_v30 = vadd.f32 %v3647_v14, %v3646_v44 }
 0x336   : > { %v3650_v26 = vpop.f32.mrb[39].mxu0 }
 0x337   : > { %v5429_v15 = vadd.f32 %v3650_v26, %v3649_v45  ;;  %v4020_v26 = vld [vmem:[%s4651_s15 + $0x170] ss:$8 sps:$4 sm:$0xff]  }
 0x338   : > { %2036 = vmatmul.mubr.bf16.vlgmr.msra.gmra.mrb[36].mxu1 %v3997_v28 }
 0x339   : > { %2043 = vmatprep.mubr.bf16.mxu1 %v4000_v4 }
 0x33b   : > { %v3652_v39 = vpop.f32.mrb[40].mxu0 }
 0x33c   : > { %v3653_v32 = vpop.f32.mrb[41].mxu0 }
 0x33d   : > { %v3655_v22 = vpop.f32.mrb[42].mxu0  ;;  %v5431_v36 = vadd.f32 %v3653_v32, %v3652_v39 }
 0x33e   : > { %v3656_v10 = vpop.f32.mrb[43].mxu0 }
 0x33f   : > { %v5433_v1 = vadd.f32 %v3656_v10, %v3655_v22 }
 0x340   : > { %2044 = vmatmul.mubr.bf16.gmra.mrb[40].mxu1 %v4002_v20  ;;  %v4017_v20 = vld [vmem:[%s4651_s15 + $0x160] ss:$8 sps:$4 sm:$0xff]  }
 0x341   : > { %2051 = vmatprep.mubr.bf16.mxu1 %v4003_v57 }
 0x343   : > { %v3658_v56 = vpop.f32.mrb[44].mxu0 }
 0x344   : > { %v3659_v34 = vpop.f32.mrb[45].mxu0 }
 0x345   : > { %v3661_v3 = vpop.f32.mrb[46].mxu0  ;;  %v5435_v49 = vadd.f32 %v3659_v34, %v3658_v56  ;;  %v1302_v56 = vld [vmem:[%s6271_s24] sm:$0x1]  ;;  %s6276_s24 = sld [smem:[#allocation33_spill]] }
 0x346   : > { %v3662_v8 = vpop.f32.mrb[47].mxu0 }
 0x347   : > { %v5437_v47 = vadd.f32 %v3662_v8, %v3661_v3 }
 0x348   : > { %2052 = vmatmul.mubr.bf16.gmra.mrb[44].mxu1 %v4005_v38 }
 0x349   : > { %2059 = vmatprep.mubr.bf16.mxu1 %v4006_v31 }
 0x34b   : > { %v3664_v0 = vpop.f32.mrb[48].mxu0  ;;  %s6277_s15 = smov %s6276_s24 }
 0x34c   : > { %v3665_v51 = vpop.f32.mrb[49].mxu0 }
 0x34d   : > { %v5439_v24 = vadd.f32 %v3665_v51, %v3664_v0  ;;  %v3667_v48 = vpop.f32.mrb[50].mxu0 }
 0x34e   : > { %v3668_v7 = vpop.f32.mrb[51].mxu0 }
 0x34f   : > { %v5442_v42 = vadd.f32 %v3668_v7, %v3667_v48  ;;  %v1418_v48 = vlaneseq }
 0x350   : > { %2060 = vmatmul.mubr.bf16.gmra.mrb[48].mxu1 %v4008_v25 }
 0x351   : > { %2067 = vmatprep.mubr.bf16.mxu1 %v4009_v9  ;;  %v5461_v7 = vshrl.u32 %v1418_v48, 7  ;;  %v1404_v48 = vld [vmem:[%s5480_s23 + $0x18] sm:$0xff] }
 0x353   : > { %v3670_v52 = vpop.f32.mrb[52].mxu0 }
 0x354   : > { %v3671_v11 = vpop.f32.mrb[53].mxu0 }
 0x355   : > { %v5445_v18 = vadd.f32 %v3671_v11, %v3670_v52  ;;  %v3673_v63 = vpop.f32.mrb[54].mxu0  ;;  %v1423_v52 = vld [vmem:[%s6273_s6] sm:$0x1]  ;;  %s617_s6 = sand.u32 1, %s4289_s22  }
 0x356   : > { %v3674_v5 = vpop.f32.mrb[55].mxu0  ;;  %v1417_v11 = vld [vmem:[%s6274_s16] sm:$0xf]  ;;  %s6128_s30 = scalar_lea.sflag [#allocation4], %s617_s6 }
 0x357   : > { %v5447_v16 = vadd.f32 %v3674_v5, %v3673_v63  ;;  %v1872_v5 = vsub.s32 1, %v5461_v7 }
 0x358   : > { %2068 = vmatmul.mubr.bf16.gmra.mrb[52].mxu1 %v4011_v27  ;;  %v1420_v27 = vsub.s32 0, %v5461_v7 }
 0x359   : > { %2075 = vmatprep.mubr.bf16.mxu1 %v4012_v50 }
 0x35b   : > { %v3676_v41 = vpop.f32.mrb[56].mxu0 }
 0x35c   : > { %v3677_v62 = vpop.f32.mrb[57].mxu0 }
 0x35d   : > { %v5451_v35 = vadd.f32 %v3677_v62, %v3676_v41  ;;  %v3679_v21 = vpop.f32.mrb[58].mxu0  ;;  %v2332_v41 = vsub.s32 3, %v5461_v7 }
 0x35e   : > { %v3680_v40 = vpop.f32.mrb[59].mxu0 }
 0x35f   : > { %v5453_v28 = vadd.f32 %v3680_v40, %v3679_v21 }
 0x360   : > { %2076 = vmatmul.mubr.bf16.gmra.mrb[56].mxu1 %v4014_v53 }
 0x361   : > { %2083 = vmatprep.mubr.bf16.mxu1 %v4015_v13 }
 0x363   : > { %v3682_v4 = vpop.f32.mrb[60].mxu0 }
 0x364   : > { %v3683_v57 = vpop.f32.mrb[61].mxu0 }
 0x365   : > { %v3684_v38 = vadd.f32 %v3683_v57, %v3682_v4  ;;  %v3685_v44 = vpop.f32.mrb[62].mxu0 }
 0x366   : > { %v3686_v31 = vpop.f32.mrb[63].mxu0 }
 0x367   : > { %v3687_v14 = vadd.f32 %v3686_v31, %v3685_v44 }
 0x368   : > { %2084 = vmatmul.mubr.bf16.gmra.mrb[60].mxu1 %v4017_v20 }
 0x369   : > { %2091 = vmatprep.mubr.bf16.mxu1 %v4018_v60 }
 0x36b   : > { %v3688_v45 = vpop.f32.mrb[64].mxu0 }
 0x36c   : > { %v3689_v39 = vpop.f32.mrb[65].mxu0 }
 0x36d   : > { %v3690_v32 = vadd.f32 %v3689_v39, %v3688_v45  ;;  %v3691_v22 = vpop.f32.mrb[66].mxu0 }
 0x36e   : > { %v3692_v10 = vpop.f32.mrb[67].mxu0 }
 0x36f   : > { %v3693_v25 = vadd.f32 %v3692_v10, %v3691_v22 }
 0x370   : > { %2092 = vmatmul.mubr.bf16.gmra.mrb[64].mxu1 %v4020_v26 }
 0x3ab   : > { %v1373_v9 = vpop.f32.mrb[0].mxu1 }
 0x3ac   : > { %v1374_v34 = vadd.f32 %v1373_v9, %v1302_v56  ;;  %v3731_v3 = vpop.f32.mrb[1].mxu1 }
 0x3ae   : > { %v3282_v8 = vmul.f32 -1.442695, %v1374_v34 }
 0x3b0   : > { %4091 = vpow2.f32 %v3282_v8 }
 0x3ba   : > { %v4092_v0 = vpop.eup %4091 }
 0x3bb   : > { %v1380_v51 = vadd.f32 1.0, %v4092_v0 }
 0x3bd   : > { %4093 = vrcp.f32 %v1380_v51 }
 0x3c7   : > { %v4094_v50 = vpop.eup %4093 }
 0x3c8   : > { %v1421_v63 = vrot.slane %v4094_v50, %v1420_v27  ;;  %v1424_v53 = vmul.f32 %v4094_v50, %v1423_v52 }
 0x3ca   : > { %v5473_v62 = vmul.f32 %v1421_v63, %v1417_v11  ;;  %v5482_v20 = vrot.slane %v1424_v53, %v1420_v27 }
 0x3cb   : > { %v3454_v13 = vpop.f32.mrb[4].mxu1 }
 0x3cc   : > { %v5476_v21 = vrot.slane %v5473_v62, %v1872_v5  ;;  %v2333_v40 = vrot.slane %v5473_v62, %v2332_v41  ;;  %v3455_v4 = vpop.f32.mrb[5].mxu1  ;;  %v5485_v57 = vrot.slane %v5473_v62, %v1420_v27  ;;  %v1434_v63 = vadd.f32 %v5482_v20, %v1404_v48 }
 0x3cd   : > { %v3456_v60 = vadd.f32 %v3455_v4, %v3454_v13  ;;  %v3457_v44 = vpop.f32.mrb[6].mxu1 }
 0x3ce   : > { %v5489_v31 = vmul.f32 %v5424_v23, %v5476_v21  ;;  %v5492_v45 = vmul.f32 %v5427_v30, %v2333_v40  ;;  %v5495_v26 = vmul.f32 %v5429_v15, %v2333_v40  ;;  %v5498_v39 = vmul.f32 %v5431_v36, %v2333_v40  ;;  %v3458_v22 = vpop.f32.mrb[7].mxu1  ;;  %v1401_v15 = vld [vmem:[%s5480_s23] sm:$0xff] }
 0x3cf   : > { %v5501_v10 = vmul.f32 %v5433_v1, %v2333_v40  ;;  %v5504_v56 = vmul.f32 %v5435_v49, %v2333_v40  ;;  %v5507_v23 = vmul.f32 %v5437_v47, %v2333_v40  ;;  %v5510_v30 = vmul.f32 %v5439_v24, %v2333_v40 }
 0x3d0   : > { %v5514_v9 = vmul.f32 %v5442_v42, %v2333_v40  ;;  %v5517_v36 = vmul.f32 %v5445_v18, %v2333_v40  ;;  %v5520_v1 = vmul.f32 %v5447_v16, %v2333_v40  ;;  %v5523_v49 = vmul.f32 %v5451_v35, %v2333_v40  ;;  %v1402_v42 = vld [vmem:[%s5480_s23 + $0x8] sm:$0xff]  ;;  %v1403_v35 = vld [vmem:[%s5480_s23 + $0x10] sm:$0xff] }
 0x3d1   : > { %v5526_v47 = vmul.f32 %v5453_v28, %v2333_v40  ;;  %v5528_v24 = vmul.f32 %v3684_v38, %v2333_v40  ;;  %v5530_v34 = vmul.f32 %v3687_v14, %v2333_v40  ;;  %v5532_v3 = vmul.f32 %v3690_v32, %v2333_v40 }
 0x3d2   : > { %v1431_v8 = vadd.f32 %v5482_v20, %v1401_v15  ;;  %v1644_v18 = vmul.f32 %v3456_v60, %v5485_v57  ;;  %v5537_v0 = vmul.f32 %v3693_v25, %v2333_v40  ;;  %v3459_v16 = vadd.f32 %v3458_v22, %v3457_v44 }
 0x3d3   : > { %v3460_v51 = vpop.f32.mrb[8].mxu1  ;;  %v1432_v28 = vadd.f32 %v5482_v20, %v1402_v42  ;;  %v1433_v11 = vadd.f32 %v5482_v20, %v1403_v35  ;;  %v1874_v53 = vmul.f32 %v5357_v61, %v5476_v21  ;;  %v1875_v13 = vmul.f32 %v5360_v12, %v5476_v21 }
 0x3d4   : > { %v1660_v27 = vadd.f32 %v1644_v18, %v1431_v8  ;;  %v1645_v38 = vmul.f32 %v3459_v16, %v5485_v57  ;;  %v3461_v14 = vpop.f32.mrb[9].mxu1  ;;  %v1876_v40 = vmul.f32 %v5367_v59, %v5476_v21  ;;  %v1877_v4 = vmul.f32 %v5370_v37, %v5476_v21 }
 0x3d5   : > { %v3462_v52 = vadd.f32 %v3461_v14, %v3460_v51  ;;  %v3463_v32 = vpop.f32.mrb[10].mxu1  ;;  %v1878_v60 = vmul.f32 %v5377_v6, %v5476_v21  ;;  %v1879_v44 = vmul.f32 %v5380_v2, %v5476_v21  ;;  %v1880_v12 = vmul.f32 %v5387_v33, %v5476_v21 }
 0x3d6   : > { %v1661_v50 = vadd.f32 %v1645_v38, %v1432_v28  ;;  %v3464_v5 = vpop.f32.mrb[11].mxu1  ;;  %v5559_v61 = vadd.f32 %v1874_v53, %v1660_v27  ;;  %v1881_v59 = vmul.f32 %v5390_v17, %v5476_v21  ;;  %v1882_v37 = vmul.f32 %v5397_v29, %v5476_v21  ;;  %v1405_v17 = vld [vmem:[%s5480_s23 + $0x20] sm:$0xff]  ;;  %v1408_v53 = vld [vmem:[%s5480_s23 + $0x38] sm:$0xff] }
 0x3d7   : > { %v1646_v25 = vmul.f32 %v3462_v52, %v5485_v57  ;;  %v3465_v41 = vadd.f32 %v3464_v5, %v3463_v32  ;;  %v1883_v6 = vmul.f32 %v5399_v55, %v5476_v21  ;;  %v5575_v16 = vmul.f32 %v5403_v46, %v5476_v21 }
 0x3d8   : > { %v5561_v42 = vadd.f32 %v1875_v13, %v1661_v50  ;;  %v5579_v33 = vmul.f32 %v5405_v54, %v5476_v21  ;;  %v5584_v29 = vmul.f32 %v5409_v43, %v5476_v21  ;;  %v5588_v55 = vmul.f32 %v5411_v19, %v5476_v21  ;;  %v1406_v54 = vld [vmem:[%s5480_s23 + $0x28] sm:$0xff] }
 0x3d9   : > { %v1662_v22 = vadd.f32 %v1646_v25, %v1433_v11  ;;  %v1647_v15 = vmul.f32 %v3465_v41, %v5485_v57  ;;  %v5592_v35 = vmul.f32 %v5415_v58, %v5476_v21  ;;  %v1435_v38 = vadd.f32 %v5482_v20, %v1405_v17  ;;  %v1407_v11 = vld [vmem:[%s5480_s23 + $0x30] sm:$0xff] }
 0x3da   : > { %v1436_v19 = vadd.f32 %v5482_v20, %v1406_v54 }
 0x3db   : > { %v1663_v2 = vadd.f32 %v1647_v15, %v1434_v63  ;;  %v3466_v8 = vpop.f32.mrb[12].mxu1  ;;  %v5571_v18 = vadd.f32 %v1876_v40, %v1662_v22  ;;  %v1437_v40 = vadd.f32 %v5482_v20, %v1407_v11 }
 0x3dc   : > { %v3467_v51 = vpop.f32.mrb[13].mxu1 }
 0x3dd   : > { %v3468_v46 = vadd.f32 %v3467_v51, %v3466_v8  ;;  %v3469_v48 = vpop.f32.mrb[14].mxu1  ;;  %v5594_v27 = vadd.f32 %v1877_v4, %v1663_v2  ;;  %v1438_v2 = vadd.f32 %v5482_v20, %v1408_v53 }
 0x3de   : > { %v3470_v28 = vpop.f32.mrb[15].mxu1 }
 0x3df   : > { %v1648_v43 = vmul.f32 %v3468_v46, %v5485_v57  ;;  %v3471_v14 = vadd.f32 %v3470_v28, %v3469_v48  ;;  %v1409_v46 = vld [vmem:[%s5480_s23 + $0x40] sm:$0xff] }
 0x3e1   : > { %v1664_v52 = vadd.f32 %v1648_v43, %v1435_v38  ;;  %v1649_v32 = vmul.f32 %v3471_v14, %v5485_v57  ;;  %v1410_v38 = vld [vmem:[%s5480_s23 + $0x48] sm:$0xff]  ;;  %v1439_v14 = vadd.f32 %v5482_v20, %v1409_v46 }
 0x3e3   : > { %v1665_v50 = vadd.f32 %v1649_v32, %v1436_v19  ;;  %v3472_v58 = vpop.f32.mrb[16].mxu1  ;;  %v5601_v21 = vadd.f32 %v1878_v60, %v1664_v52 }
 0x3e4   : > { %v3473_v63 = vpop.f32.mrb[17].mxu1 }
 0x3e5   : > { %v3474_v5 = vadd.f32 %v3473_v63, %v3472_v58  ;;  %v3475_v25 = vpop.f32.mrb[18].mxu1  ;;  %v5604_v41 = vadd.f32 %v1879_v44, %v1665_v50  ;;  %v1440_v50 = vadd.f32 %v5482_v20, %v1410_v38 }
 0x3e6   : > { %v3476_v13 = vpop.f32.mrb[19].mxu1 }
 0x3e7   : > { %v1650_v4 = vmul.f32 %v3474_v5, %v5485_v57  ;;  %v3477_v22 = vadd.f32 %v3476_v13, %v3475_v25  ;;  %v1411_v5 = vld [vmem:[%s5480_s23 + $0x50] sm:$0xff] }
 0x3e9   : > { %v1666_v15 = vadd.f32 %v1650_v4, %v1437_v40  ;;  %v1651_v60 = vmul.f32 %v3477_v22, %v5485_v57  ;;  %v1412_v40 = vld [vmem:[%s5480_s23 + $0x58] sm:$0xff]  ;;  %v1441_v22 = vadd.f32 %v5482_v20, %v1411_v5 }
 0x3eb   : > { %v1667_v8 = vadd.f32 %v1651_v60, %v1438_v2  ;;  %v3478_v17 = vpop.f32.mrb[20].mxu1  ;;  %v5611_v51 = vadd.f32 %v1880_v12, %v1666_v15 }
 0x3ec   : > { %v3479_v44 = vpop.f32.mrb[21].mxu1 }
 0x3ed   : > { %v3480_v48 = vadd.f32 %v3479_v44, %v3478_v17  ;;  %v3481_v54 = vpop.f32.mrb[22].mxu1  ;;  %v5614_v28 = vadd.f32 %v1881_v59, %v1667_v8  ;;  %v1442_v8 = vadd.f32 %v5482_v20, %v1412_v40 }
 0x3ee   : > { %v3482_v43 = vpop.f32.mrb[23].mxu1 }
 0x3ef   : > { %v1652_v52 = vmul.f32 %v3480_v48, %v5485_v57  ;;  %v3483_v19 = vadd.f32 %v3482_v43, %v3481_v54 }
 0x3f1   : > { %v1668_v32 = vadd.f32 %v1652_v52, %v1439_v14  ;;  %v1653_v12 = vmul.f32 %v3483_v19, %v5485_v57  ;;  %v1414_v14 = vld [vmem:[%s5480_s23 + $0x68] sm:$0xff] }
 0x3f3   : > { %v1669_v58 = vadd.f32 %v1653_v12, %v1440_v50  ;;  %v3484_v11 = vpop.f32.mrb[24].mxu1  ;;  %v5621_v63 = vadd.f32 %v1882_v37, %v1668_v32 }
 0x3f4   : > { %v3485_v59 = vpop.f32.mrb[25].mxu1 }
 0x3f5   : > { %v3486_v25 = vadd.f32 %v3485_v59, %v3484_v11  ;;  %v3487_v53 = vpop.f32.mrb[26].mxu1  ;;  %v5624_v13 = vadd.f32 %v1883_v6, %v1669_v58  ;;  %v1413_v6 = vld [vmem:[%s5480_s23 + $0x60] sm:$0xff] }
 0x3f6   : > { %v3488_v4 = vpop.f32.mrb[27].mxu1  ;;  %v1443_v19 = vadd.f32 %v5482_v20, %v1413_v6 }
 0x3f7   : > { %v1654_v15 = vmul.f32 %v3486_v25, %v5485_v57  ;;  %v3489_v2 = vadd.f32 %v3488_v4, %v3487_v53 }
 0x3f9   : > { %v1670_v60 = vadd.f32 %v1654_v15, %v1441_v22  ;;  %v1655_v37 = vmul.f32 %v3489_v2, %v5485_v57  ;;  %v1416_v22 = vld [vmem:[%s5480_s23 + $0x78] sm:$0xff] }
 0x3fb   : > { %v1671_v17 = vadd.f32 %v1655_v37, %v1442_v8  ;;  %v3490_v46 = vpop.f32.mrb[28].mxu1  ;;  %v5632_v44 = vadd.f32 %v5575_v16, %v1670_v60  ;;  %v1444_v16 = vadd.f32 %v5482_v20, %v1414_v14  ;;  %v2102_v37 = vsub.s32 2, %v5461_v7 }
 0x3fc   : > { %v3491_v48 = vpop.f32.mrb[29].mxu1 }
 0x3fd   : > { %v3492_v54 = vadd.f32 %v3491_v48, %v3490_v46  ;;  %v3493_v38 = vpop.f32.mrb[30].mxu1  ;;  %v5636_v43 = vadd.f32 %v5579_v33, %v1671_v17  ;;  %v1415_v33 = vld [vmem:[%s5480_s23 + $0x70] sm:$0xff] }
 0x3fe   : > { %v3494_v52 = vpop.f32.mrb[31].mxu1  ;;  %v1445_v2 = vadd.f32 %v5482_v20, %v1415_v33 }
 0x3ff   : > { %v1656_v32 = vmul.f32 %v3492_v54, %v5485_v57  ;;  %v3495_v50 = vadd.f32 %v3494_v52, %v3493_v38  ;;  %v5660_v38 = vrot.slane %v5473_v62, %v2102_v37 }
 0x401   : > { %v1672_v12 = vadd.f32 %v1656_v32, %v1443_v19  ;;  %v1657_v58 = vmul.f32 %v3495_v50, %v5485_v57 }
 0x403   : > { %v1673_v11 = vadd.f32 %v1657_v58, %v1444_v16  ;;  %v3496_v5 = vpop.f32.mrb[32].mxu1  ;;  %v5644_v59 = vadd.f32 %v5584_v29, %v1672_v12  ;;  %v1446_v29 = vadd.f32 %v5482_v20, %v1416_v22 }
 0x404   : > { %v3497_v25 = vpop.f32.mrb[33].mxu1 }
 0x405   : > { %v3498_v53 = vadd.f32 %v3497_v25, %v3496_v5  ;;  %v3499_v40 = vpop.f32.mrb[34].mxu1  ;;  %v5648_v4 = vadd.f32 %v5588_v55, %v1673_v11 }
 0x406   : > { %v3500_v15 = vpop.f32.mrb[35].mxu1 }
 0x407   : > { %v1658_v60 = vmul.f32 %v3498_v53, %v5485_v57  ;;  %v3501_v8 = vadd.f32 %v3500_v15, %v3499_v40 }
 0x409   : > { %v1674_v17 = vadd.f32 %v1658_v60, %v1445_v2  ;;  %v1659_v46 = vmul.f32 %v3501_v8, %v5485_v57 }
 0x40b   : > { %v1675_v6 = vadd.f32 %v1659_v46, %v1446_v29  ;;  %v3582_v48 = vpop.f32.mrb[36].mxu1  ;;  %v5657_v54 = vadd.f32 %v5592_v35, %v1674_v17 }
 0x40c   : > { %v3583_v55 = vpop.f32.mrb[37].mxu1 }
 0x40d   : > { %v3584_v14 = vadd.f32 %v3583_v55, %v3582_v48  ;;  %v3585_v52 = vpop.f32.mrb[38].mxu1  ;;  %v5663_v19 = vadd.f32 %v5489_v31, %v1675_v6 }
 0x40e   : > { %v3586_v7 = vpop.f32.mrb[39].mxu1 }
 0x40f   : > { %v2104_v32 = vmul.f32 %v3584_v14, %v5660_v38  ;;  %v3587_v20 = vadd.f32 %v3586_v7, %v3585_v52 }
 0x411   : > { %v2120_v57 = vadd.f32 %v2104_v32, %v5559_v61  ;;  %v2105_v50 = vmul.f32 %v3587_v20, %v5660_v38 }
 0x413   : > { %v2121_v35 = vadd.f32 %v2105_v50, %v5561_v42  ;;  %v3588_v12 = vpop.f32.mrb[40].mxu1  ;;  %v5670_v16 = vadd.f32 %v5492_v45, %v2120_v57 }
 0x414   : > { %v3589_v62 = vpop.f32.mrb[41].mxu1 }
 0x415   : > { %v3590_v58 = vadd.f32 %v3589_v62, %v3588_v12  ;;  %v3591_v11 = vpop.f32.mrb[42].mxu1  ;;  %v2368_v31 = vsel %vm657_vm0, %v5670_v16, 0.0  ;;  %v5675_v5 = vadd.f32 %v5495_v26, %v2121_v35 }
 0x416   : > { %v3592_v33 = vpop.f32.mrb[43].mxu1  ;;  %2369 = vadd.xlane.f32.xlu0 %v2368_v31 }
 0x417   : > { %v2106_v61 = vmul.f32 %v3590_v58, %v5660_v38  ;;  %v3593_v25 = vadd.f32 %v3592_v33, %v3591_v11  ;;  %v2371_v42 = vsel %vm657_vm0, %v5675_v5, 0.0 }
 0x418   : > { %2372 = vadd.xlane.f32.xlu1 %v2371_v42 }
 0x419   : > { %v2122_v45 = vadd.f32 %v2106_v61, %v5571_v18  ;;  %v2107_v53 = vmul.f32 %v3593_v25, %v5660_v38 }
 0x41b   : > { %v2123_v40 = vadd.f32 %v2107_v53, %v5594_v27  ;;  %v3594_v22 = vpop.f32.mrb[44].mxu1  ;;  %v5684_v15 = vadd.f32 %v5498_v39, %v2122_v45 }
 0x41c   : > { %v3595_v26 = vpop.f32.mrb[45].mxu1 }
 0x41d   : > { %v3596_v2 = vadd.f32 %v3595_v26, %v3594_v22  ;;  %v3597_v60 = vpop.f32.mrb[46].mxu1  ;;  %v2374_v8 = vsel %vm657_vm0, %v5684_v15, 0.0  ;;  %v5689_v37 = vadd.f32 %v5501_v10, %v2123_v40 }
 0x41e   : > { %v3598_v17 = vpop.f32.mrb[47].mxu1  ;;  %2375 = vadd.xlane.f32.xlu0 %v2374_v8 }
 0x41f   : > { %v2108_v18 = vmul.f32 %v3596_v2, %v5660_v38  ;;  %v3599_v29 = vadd.f32 %v3598_v17, %v3597_v60  ;;  %v2377_v27 = vsel %vm657_vm0, %v5689_v37, 0.0 }
 0x420   : > { %2378 = vadd.xlane.f32.xlu1 %v2377_v27 }
 0x421   : > { %v2124_v39 = vadd.f32 %v2108_v18, %v5601_v21  ;;  %v2109_v46 = vmul.f32 %v3599_v29, %v5660_v38 }
 0x423   : > { %v2125_v6 = vadd.f32 %v2109_v46, %v5604_v41  ;;  %v3600_v48 = vpop.f32.mrb[48].mxu1  ;;  %v5698_v55 = vadd.f32 %v5504_v56, %v2124_v39 }
 0x424   : > { %v3601_v10 = vpop.f32.mrb[49].mxu1 }
 0x425   : > { %v3602_v14 = vadd.f32 %v3601_v10, %v3600_v48  ;;  %v3603_v52 = vpop.f32.mrb[50].mxu1  ;;  %v2380_v7 = vsel %vm657_vm0, %v5698_v55, 0.0  ;;  %v5703_v32 = vadd.f32 %v5507_v23, %v2125_v6 }
 0x426   : > { %v3604_v20 = vpop.f32.mrb[51].mxu1  ;;  %2381 = vadd.xlane.f32.xlu0 %v2380_v7 }
 0x427   : > { %v2110_v21 = vmul.f32 %v3602_v14, %v5660_v38  ;;  %v3605_v57 = vadd.f32 %v3604_v20, %v3603_v52  ;;  %v2383_v41 = vsel %vm657_vm0, %v5703_v32, 0.0 }
 0x428   : > { %2384 = vadd.xlane.f32.xlu1 %v2383_v41 }
 0x429   : > { %v2126_v56 = vadd.f32 %v2110_v21, %v5611_v51  ;;  %v2111_v50 = vmul.f32 %v3605_v57, %v5660_v38 }
 0x42b   : > { %v2127_v35 = vadd.f32 %v2111_v50, %v5614_v28  ;;  %v3606_v12 = vpop.f32.mrb[52].mxu1  ;;  %v5712_v62 = vadd.f32 %v5510_v30, %v2126_v56 }
 0x42c   : > { %v3607_v23 = vpop.f32.mrb[53].mxu1 }
 0x42d   : > { %v3608_v58 = vadd.f32 %v3607_v23, %v3606_v12  ;;  %v3609_v11 = vpop.f32.mrb[54].mxu1  ;;  %v2386_v31 = vsel %vm657_vm0, %v5712_v62, 0.0  ;;  %v5717_v33 = vadd.f32 %v5514_v9, %v2127_v35 }
 0x42e   : > { %v3610_v61 = vpop.f32.mrb[55].mxu1  ;;  %2387 = vadd.xlane.f32.xlu0 %v2386_v31 }
 0x42f   : > { %v2112_v51 = vmul.f32 %v3608_v58, %v5660_v38  ;;  %v3611_v25 = vadd.f32 %v3610_v61, %v3609_v11  ;;  %v2389_v28 = vsel %vm657_vm0, %v5717_v33, 0.0 }
 0x430   : > { %2390 = vadd.xlane.f32.xlu1 %v2389_v28 }
 0x431   : > { %v2128_v30 = vadd.f32 %v2112_v51, %v5621_v63  ;;  %v2113_v42 = vmul.f32 %v3611_v25, %v5660_v38 }
 0x433   : > { %v2129_v45 = vadd.f32 %v2113_v42, %v5624_v13  ;;  %v3612_v53 = vpop.f32.mrb[56].mxu1  ;;  %v5726_v40 = vadd.f32 %v5517_v36, %v2128_v30 }
 0x434   : > { %v3613_v9 = vpop.f32.mrb[57].mxu1 }
 0x435   : > { %v3614_v22 = vadd.f32 %v3613_v9, %v3612_v53  ;;  %v3615_v26 = vpop.f32.mrb[58].mxu1  ;;  %v2392_v2 = vsel %vm657_vm0, %v5726_v40, 0.0  ;;  %v5731_v60 = vadd.f32 %v5520_v1, %v2129_v45 }
 0x436   : > { %v3616_v8 = vpop.f32.mrb[59].mxu1  ;;  %2393 = vadd.xlane.f32.xlu0 %v2392_v2 }
 0x437   : > { %v2114_v63 = vmul.f32 %v3614_v22, %v5660_v38  ;;  %v3617_v17 = vadd.f32 %v3616_v8, %v3615_v26  ;;  %v2395_v13 = vsel %vm657_vm0, %v5731_v60, 0.0 }
 0x438   : > { %2396 = vadd.xlane.f32.xlu1 %v2395_v13 }
 0x439   : > { %v2130_v36 = vadd.f32 %v2114_v63, %v5632_v44  ;;  %v2115_v18 = vmul.f32 %v3617_v17, %v5660_v38 }
 0x43b   : > { %v2131_v29 = vadd.f32 %v2115_v18, %v5636_v43  ;;  %v3618_v27 = vpop.f32.mrb[60].mxu1  ;;  %v5740_v39 = vadd.f32 %v5523_v49, %v2130_v36 }
 0x43c   : > { %v3619_v1 = vpop.f32.mrb[61].mxu1 }
 0x43d   : > { %v3620_v46 = vadd.f32 %v3619_v1, %v3618_v27  ;;  %v3621_v6 = vpop.f32.mrb[62].mxu1  ;;  %v2398_v48 = vsel %vm657_vm0, %v5740_v39, 0.0  ;;  %v5745_v10 = vadd.f32 %v5526_v47, %v2131_v29 }
 0x43e   : > { %v3622_v14 = vpop.f32.mrb[63].mxu1  ;;  %2399 = vadd.xlane.f32.xlu0 %v2398_v48 }
 0x43f   : > { %v2116_v44 = vmul.f32 %v3620_v46, %v5660_v38  ;;  %v3623_v52 = vadd.f32 %v3622_v14, %v3621_v6  ;;  %v2401_v43 = vsel %vm657_vm0, %v5745_v10, 0.0 }
 0x440   : > { %2402 = vadd.xlane.f32.xlu1 %v2401_v43 }
 0x441   : > { %v2132_v49 = vadd.f32 %v2116_v44, %v5644_v59  ;;  %v2117_v7 = vmul.f32 %v3623_v52, %v5660_v38 }
 0x443   : > { %v2133_v20 = vadd.f32 %v2117_v7, %v5648_v4  ;;  %v3624_v21 = vpop.f32.mrb[64].mxu1  ;;  %v5754_v57 = vadd.f32 %v5528_v24, %v2132_v49 }
 0x444   : > { %v3625_v47 = vpop.f32.mrb[65].mxu1 }
 0x445   : > { %v3626_v41 = vadd.f32 %v3625_v47, %v3624_v21  ;;  %v3627_v56 = vpop.f32.mrb[66].mxu1  ;;  %v2404_v50 = vsel %vm657_vm0, %v5754_v57, 0.0  ;;  %v5759_v35 = vadd.f32 %v5530_v34, %v2133_v20 }
 0x446   : > { %v3628_v12 = vpop.f32.mrb[67].mxu1  ;;  %2405 = vadd.xlane.f32.xlu0 %v2404_v50 }
 0x447   : > { %v2118_v59 = vmul.f32 %v3626_v41, %v5660_v38  ;;  %v3629_v23 = vadd.f32 %v3628_v12, %v3627_v56  ;;  %v2407_v4 = vsel %vm657_vm0, %v5759_v35, 0.0 }
 0x448   : > { %2408 = vadd.xlane.f32.xlu1 %v2407_v4 }
 0x449   : > { %v2134_v24 = vadd.f32 %v2118_v59, %v5657_v54  ;;  %v2119_v58 = vmul.f32 %v3629_v23, %v5660_v38  ;;  %v4021_v54 = vld [vmem:[%s6275_s10] sm:$0xff]  }
 0x44a   : > { %3732 = vmatprep.subr.bf16.mxu1 %v4021_v54 }
 0x44b   : > { %v2135_v11 = vadd.f32 %v2119_v58, %v5663_v19  ;;  %v5768_v31 = vadd.f32 %v5532_v3, %v2134_v24  ;;  %3733 = vmatpush3.bf16.msra.mxu1 %v4021_v54 }
 0x44d   : > { %v2410_v34 = vsel %vm657_vm0, %v5768_v31, 0.0  ;;  %v5773_v61 = vadd.f32 %v5537_v0, %v2135_v11 }
 0x44e   : > { %2411 = vadd.xlane.f32.xlu0 %v2410_v34 }
 0x44f   : > { %v2413_v51 = vsel %vm657_vm0, %v5773_v61, 0.0 }
 0x450   : > { %2414 = vadd.xlane.f32.xlu1 %v2413_v51 }
 0x4a3   : > { %v2370_v38 = vpop.xlane.xlu0 %2369 }
 0x4a4   : > { %v2416_v3 = vmul.f32 0.03125, %v2370_v38 }
 0x4a5   : > { %v2373_v19 = vpop.xlane.xlu1 %2372 }
 0x4a6   : > { %v5781_v25 = vsub.f32 %v5670_v16, %v2416_v3  ;;  %v2417_v28 = vmul.f32 0.03125, %v2373_v19 }
 0x4a8   : > { %v5784_v0 = vsub.f32 %v5675_v5, %v2417_v28  ;;  %v2448_v30 = vmul.f32 %v5781_v25, %v5781_v25 }
 0x4aa   : > { %v2464_v42 = vsel %vm657_vm0, %v2448_v30, 0.0  ;;  %v2449_v45 = vmul.f32 %v5784_v0, %v5784_v0 }
 0x4ab   : > { %2465 = vadd.xlane.f32.xlu0 %v2464_v42  ;;  %v2376_v53 = vpop.xlane.xlu0 %2375 }
 0x4ac   : > { %v2418_v9 = vmul.f32 0.03125, %v2376_v53  ;;  %v2467_v22 = vsel %vm657_vm0, %v2449_v45, 0.0 }
 0x4ad   : > { %2468 = vadd.xlane.f32.xlu1 %v2467_v22  ;;  %v2379_v26 = vpop.xlane.xlu1 %2378 }
 0x4ae   : > { %v5793_v2 = vsub.f32 %v5684_v15, %v2418_v9  ;;  %v2419_v8 = vmul.f32 0.03125, %v2379_v26 }
 0x4b0   : > { %v5796_v63 = vsub.f32 %v5689_v37, %v2419_v8  ;;  %v2450_v17 = vmul.f32 %v5793_v2, %v5793_v2 }
 0x4b2   : > { %v2470_v13 = vsel %vm657_vm0, %v2450_v17, 0.0  ;;  %v2451_v36 = vmul.f32 %v5796_v63, %v5796_v63 }
 0x4b3   : > { %2471 = vadd.xlane.f32.xlu0 %v2470_v13  ;;  %v2382_v18 = vpop.xlane.xlu0 %2381 }
 0x4b4   : > { %v2420_v29 = vmul.f32 0.03125, %v2382_v18  ;;  %v2473_v27 = vsel %vm657_vm0, %v2451_v36, 0.0 }
 0x4b5   : > { %2474 = vadd.xlane.f32.xlu1 %v2473_v27  ;;  %v2385_v1 = vpop.xlane.xlu1 %2384 }
 0x4b6   : > { %v5805_v46 = vsub.f32 %v5698_v55, %v2420_v29  ;;  %v2421_v6 = vmul.f32 0.03125, %v2385_v1 }
 0x4b8   : > { %v5808_v48 = vsub.f32 %v5703_v32, %v2421_v6  ;;  %v2452_v14 = vmul.f32 %v5805_v46, %v5805_v46 }
 0x4ba   : > { %v2476_v44 = vsel %vm657_vm0, %v2452_v14, 0.0  ;;  %v2453_v52 = vmul.f32 %v5808_v48, %v5808_v48 }
 0x4bb   : > { %2477 = vadd.xlane.f32.xlu0 %v2476_v44  ;;  %v2388_v43 = vpop.xlane.xlu0 %2387 }
 0x4bc   : > { %v2422_v49 = vmul.f32 0.03125, %v2388_v43  ;;  %v2479_v7 = vsel %vm657_vm0, %v2453_v52, 0.0 }
 0x4bd   : > { %2480 = vadd.xlane.f32.xlu1 %v2479_v7  ;;  %v2391_v20 = vpop.xlane.xlu1 %2390 }
 0x4be   : > { %v5817_v21 = vsub.f32 %v5712_v62, %v2422_v49  ;;  %v2423_v47 = vmul.f32 0.03125, %v2391_v20 }
 0x4c0   : > { %v5820_v41 = vsub.f32 %v5717_v33, %v2423_v47  ;;  %v2454_v56 = vmul.f32 %v5817_v21, %v5817_v21 }
 0x4c2   : > { %v2482_v50 = vsel %vm657_vm0, %v2454_v56, 0.0  ;;  %v2455_v12 = vmul.f32 %v5820_v41, %v5820_v41 }
 0x4c3   : > { %2483 = vadd.xlane.f32.xlu0 %v2482_v50  ;;  %v2394_v59 = vpop.xlane.xlu0 %2393  ;;  %v4022_v50 = vld [vmem:[%s6275_s10 + $0x8] sm:$0xff]  }
 0x4c4   : > { %v2424_v23 = vmul.f32 0.03125, %v2394_v59  ;;  %v2485_v4 = vsel %vm657_vm0, %v2455_v12, 0.0  ;;  %3734 = vmatprep.subr.bf16.mxu1 %v4022_v50 }
 0x4c5   : > { %2486 = vadd.xlane.f32.xlu1 %v2485_v4  ;;  %v2397_v24 = vpop.xlane.xlu1 %2396  ;;  %3735 = vmatpush3.bf16.msra.mxu1 %v4022_v50  ;;  %v4023_v4 = vld [vmem:[%s6276_s24] sm:$0xff]  }
 0x4c6   : > { %v5829_v58 = vsub.f32 %v5726_v40, %v2424_v23  ;;  %v2425_v11 = vmul.f32 0.03125, %v2397_v24  ;;  %3752 = vmatprep.subr.bf16.mxu0 %v4023_v4 }
 0x4c7   : > { %3753 = vmatpush3.bf16.msra.mxu0 %v4023_v4 }
 0x4c8   : > { %v5832_v34 = vsub.f32 %v5731_v60, %v2425_v11  ;;  %v2456_v51 = vmul.f32 %v5829_v58, %v5829_v58 }
 0x4ca   : > { %v2488_v54 = vsel %vm657_vm0, %v2456_v51, 0.0  ;;  %v2457_v38 = vmul.f32 %v5832_v34, %v5832_v34 }
 0x4cb   : > { %2489 = vadd.xlane.f32.xlu0 %v2488_v54  ;;  %v2400_v3 = vpop.xlane.xlu0 %2399 }
 0x4cc   : > { %v2426_v19 = vmul.f32 0.03125, %v2400_v3  ;;  %v2491_v28 = vsel %vm657_vm0, %v2457_v38, 0.0 }
 0x4cd   : > { %2492 = vadd.xlane.f32.xlu1 %v2491_v28  ;;  %v2403_v30 = vpop.xlane.xlu1 %2402 }
 0x4ce   : > { %v5841_v42 = vsub.f32 %v5740_v39, %v2426_v19  ;;  %v2427_v45 = vmul.f32 0.03125, %v2403_v30 }
 0x4d0   : > { %v5844_v53 = vsub.f32 %v5745_v10, %v2427_v45  ;;  %v2458_v9 = vmul.f32 %v5841_v42, %v5841_v42 }
 0x4d2   : > { %v2494_v22 = vsel %vm657_vm0, %v2458_v9, 0.0  ;;  %v2459_v26 = vmul.f32 %v5844_v53, %v5844_v53 }
 0x4d3   : > { %2495 = vadd.xlane.f32.xlu0 %v2494_v22  ;;  %v2406_v8 = vpop.xlane.xlu0 %2405 }
 0x4d4   : > { %v2428_v17 = vmul.f32 0.03125, %v2406_v8  ;;  %v2497_v13 = vsel %vm657_vm0, %v2459_v26, 0.0  ;;  %v5885_v8 = vld [vmem:[%s6278_s29] ss:$0 sm:$0xff]  ;;  %s3277_s29 = sshll.u32 %s617_s6, 7 }
 0x4d5   : > { %2498 = vadd.xlane.f32.xlu1 %v2497_v13  ;;  %v2409_v36 = vpop.xlane.xlu1 %2408  ;;  %s6058_s23 = scalar_lea.vmem [#allocation7], %s3277_s29 }
 0x4d6   : > { %v5853_v18 = vsub.f32 %v5754_v57, %v2428_v17  ;;  %v2429_v29 = vmul.f32 0.03125, %v2409_v36  ;;  %s3149_s11 = sshll.u32 %s6058_s23, 4  ;;  %s6118_s11 = int_to_ptr.vmem [resolvable:$true] %s3149_s11 }
 0x4d7   : > { %s4187_s16 = scalar_lea.vmem %s6118_s11, 2048 }
 0x4d8   : > { %v5856_v27 = vsub.f32 %v5759_v35, %v2429_v29  ;;  %v2460_v1 = vmul.f32 %v5853_v18, %v5853_v18  ;;  %p4188_p9 = scmp.ne.s32.totalorder %s6118_s11, %s4187_s16 }
 0x4da   : > { %v2500_v6 = vsel %vm657_vm0, %v2460_v1, 0.0  ;;  %v2461_v14 = vmul.f32 %v5856_v27, %v5856_v27  ;;  %p4189_p5 = pnand %p4188_p9, %p6284_p0 }
 0x4db   : > { %2501 = vadd.xlane.f32.xlu0 %v2500_v6  ;;  %v2412_v44 = vpop.xlane.xlu0 %2411 }
 0x4dc   : > { %v2430_v52 = vmul.f32 0.03125, %v2412_v44  ;;  %v2503_v43 = vsel %vm657_vm0, %v2461_v14, 0.0  ;;  %v5893_v44 = vld [vmem:[%s6279_s12] ss:$0 sm:$0xff]  ;;  %s6281_s12 = sld [smem:[#allocation34_spill]]  ;;  %p4190_p2 = pneg %p4189_p5 }
 0x4dd   : > { %2504 = vadd.xlane.f32.xlu1 %v2503_v43  ;;  %v2415_v49 = vpop.xlane.xlu1 %2414 }
 0x4de   : > { %v5865_v7 = vsub.f32 %v5768_v31, %v2430_v52  ;;  %v2431_v20 = vmul.f32 0.03125, %v2415_v49 }
 0x4e0   : > { %v5868_v47 = vsub.f32 %v5773_v61, %v2431_v20  ;;  %v2462_v56 = vmul.f32 %v5865_v7, %v5865_v7 }
 0x4e2   : > { %v2506_v12 = vsel %vm657_vm0, %v2462_v56, 0.0  ;;  %v2463_v59 = vmul.f32 %v5868_v47, %v5868_v47 }
 0x4e3   : > { %2507 = vadd.xlane.f32.xlu0 %v2506_v12 }
 0x4e4   : > { %v2509_v23 = vsel %vm657_vm0, %v2463_v59, 0.0 }
 0x4e5   : > { %2510 = vadd.xlane.f32.xlu1 %v2509_v23 }
 0x538   : > { %v2466_v24 = vpop.xlane.xlu0 %2465 }
 0x539   : > { %v2512_v11 = vmul.f32 0.03125, %v2466_v24 }
 0x53a   : > { %v2469_v51 = vpop.xlane.xlu1 %2468 }
 0x53b   : > { %v2528_v54 = vadd.f32 1e-05, %v2512_v11  ;;  %v2513_v38 = vmul.f32 0.03125, %v2469_v51 }
 0x53d   : > { %4095 = vrsqrt.f32 %v2528_v54  ;;  %v2529_v3 = vadd.f32 1e-05, %v2513_v38 }
 0x53f   : > { %4097 = vrsqrt.f32 %v2529_v3 }
 0x540   : > { %v2472_v19 = vpop.xlane.xlu0 %2471 }
 0x541   : > { %v2514_v28 = vmul.f32 0.03125, %v2472_v19 }
 0x542   : > { %v2475_v30 = vpop.xlane.xlu1 %2474 }
 0x543   : > { %v2530_v45 = vadd.f32 1e-05, %v2514_v28  ;;  %v2515_v9 = vmul.f32 0.03125, %v2475_v30 }
 0x545   : > { %4099 = vrsqrt.f32 %v2530_v45  ;;  %v2531_v22 = vadd.f32 1e-05, %v2515_v9 }
 0x547   : > { %v4096_v26 = vpop.eup %4095  ;;  %4101 = vrsqrt.f32 %v2531_v22 }
 0x548   : > { %v2560_v17 = vmul.f32 %v4096_v26, %v5781_v25  ;;  %v2478_v13 = vpop.xlane.xlu0 %2477 }
 0x549   : > { %v4098_v36 = vpop.eup %4097  ;;  %v2516_v29 = vmul.f32 0.03125, %v2478_v13 }
 0x54a   : > { %v2561_v1 = vmul.f32 %v4098_v36, %v5784_v0  ;;  %v2481_v6 = vpop.xlane.xlu1 %2480  ;;  %v2582_v14 = vmul.f32 %v5885_v8, %v2560_v17 }
 0x54b   : > { %v2532_v52 = vadd.f32 1e-05, %v2516_v29  ;;  %v2517_v43 = vmul.f32 0.03125, %v2481_v6 }
 0x54c   : > { %v2583_v49 = vmul.f32 %v5885_v8, %v2561_v1  ;;  %v2604_v25 = vadd.f32 %v5893_v44, %v2582_v14 }
 0x54d   : > { %4103 = vrsqrt.f32 %v2532_v52  ;;  %v2533_v20 = vadd.f32 1e-05, %v2517_v43 }
 0x54e   : > { %v2605_v56 = vadd.f32 %v5893_v44, %v2583_v49 }
 0x54f   : > { %v4100_v50 = vpop.eup %4099  ;;  %4105 = vrsqrt.f32 %v2533_v20 }
 0x550   : > { %v2562_v0 = vmul.f32 %v4100_v50, %v5793_v2  ;;  %v2484_v12 = vpop.xlane.xlu0 %2483  ;;  %v2620_v59 = vpack.c.bf16 %v2605_v56, %v2604_v25 }
 0x551   : > { %v4102_v23 = vpop.eup %4101  ;;  %v2518_v4 = vmul.f32 0.03125, %v2484_v12 }
 0x552   : > { %v2584_v24 = vmul.f32 %v5885_v8, %v2562_v0  ;;  %v2563_v11 = vmul.f32 %v4102_v23, %v5796_v63  ;;  %v2487_v51 = vpop.xlane.xlu1 %2486  ;;  %3736 = vmatprep.mubr.msk.bf16.mxu1 %vm657_vm0, %v2620_v59 }
 0x553   : > { %v2534_v54 = vadd.f32 1e-05, %v2518_v4  ;;  %v2519_v38 = vmul.f32 0.03125, %v2487_v51 }
 0x554   : > { %v2585_v3 = vmul.f32 %v5885_v8, %v2563_v11  ;;  %v2606_v28 = vadd.f32 %v5893_v44, %v2584_v24 }
 0x555   : > { %4107 = vrsqrt.f32 %v2534_v54  ;;  %v2535_v19 = vadd.f32 1e-05, %v2519_v38 }
 0x556   : > { %v2607_v2 = vadd.f32 %v5893_v44, %v2585_v3 }
 0x557   : > { %v4104_v30 = vpop.eup %4103  ;;  %4109 = vrsqrt.f32 %v2535_v19 }
 0x558   : > { %v2564_v45 = vmul.f32 %v4104_v30, %v5805_v46  ;;  %v2490_v9 = vpop.xlane.xlu0 %2489  ;;  %v2621_v22 = vpack.c.bf16 %v2607_v2, %v2606_v28 }
 0x559   : > { %v4106_v63 = vpop.eup %4105  ;;  %v2520_v26 = vmul.f32 0.03125, %v2490_v9 }
 0x55a   : > { %v2565_v17 = vmul.f32 %v4106_v63, %v5808_v48  ;;  %v2493_v13 = vpop.xlane.xlu1 %2492  ;;  %3737 = vmatmul.mubr.msk.bf16.vlgmr.msra.gmra.mrb[68].mxu1 %vm657_vm0, %v2621_v22  ;;  %v2586_v36 = vmul.f32 %v5885_v8, %v2564_v45 }
 0x55b   : > { %v2536_v29 = vadd.f32 1e-05, %v2520_v26  ;;  %v2521_v1 = vmul.f32 0.03125, %v2493_v13 }
 0x55c   : > { %v2587_v6 = vmul.f32 %v5885_v8, %v2565_v17  ;;  %v2608_v52 = vadd.f32 %v5893_v44, %v2586_v36 }
 0x55d   : > { %4111 = vrsqrt.f32 %v2536_v29  ;;  %v2537_v14 = vadd.f32 1e-05, %v2521_v1 }
 0x55e   : > { %v2609_v46 = vadd.f32 %v5893_v44, %v2587_v6 }
 0x55f   : > { %v4108_v43 = vpop.eup %4107  ;;  %4113 = vrsqrt.f32 %v2537_v14 }
 0x560   : > { %v2566_v49 = vmul.f32 %v4108_v43, %v5817_v21  ;;  %v2496_v48 = vpop.xlane.xlu0 %2495  ;;  %v2622_v20 = vpack.c.bf16 %v2609_v46, %v2608_v52 }
 0x561   : > { %v4110_v25 = vpop.eup %4109  ;;  %v2522_v56 = vmul.f32 0.03125, %v2496_v48 }
 0x562   : > { %v2567_v50 = vmul.f32 %v4110_v25, %v5820_v41  ;;  %v2499_v0 = vpop.xlane.xlu1 %2498  ;;  %3740 = vmatprep.mubr.msk.bf16.mxu1 %vm657_vm0, %v2622_v20  ;;  %v2588_v12 = vmul.f32 %v5885_v8, %v2566_v49 }
 0x563   : > { %v2538_v59 = vadd.f32 1e-05, %v2522_v56  ;;  %v2523_v23 = vmul.f32 0.03125, %v2499_v0 }
 0x564   : > { %v2589_v4 = vmul.f32 %v5885_v8, %v2567_v50  ;;  %v2610_v11 = vadd.f32 %v5893_v44, %v2588_v12 }
 0x565   : > { %4115 = vrsqrt.f32 %v2538_v59  ;;  %v2539_v24 = vadd.f32 1e-05, %v2523_v23 }
 0x566   : > { %v2611_v21 = vadd.f32 %v5893_v44, %v2589_v4 }
 0x567   : > { %v4112_v51 = vpop.eup %4111  ;;  %4117 = vrsqrt.f32 %v2539_v24 }
 0x568   : > { %v2568_v54 = vmul.f32 %v4112_v51, %v5829_v58  ;;  %v2502_v41 = vpop.xlane.xlu0 %2501  ;;  %v2623_v38 = vpack.c.bf16 %v2611_v21, %v2610_v11 }
 0x569   : > { %v4114_v3 = vpop.eup %4113  ;;  %v2524_v19 = vmul.f32 0.03125, %v2502_v41 }
 0x56a   : > { %v2569_v28 = vmul.f32 %v4114_v3, %v5832_v34  ;;  %v2505_v2 = vpop.xlane.xlu1 %2504  ;;  %3741 = vmatmul.mubr.msk.bf16.gmra.mrb[72].mxu1 %vm657_vm0, %v2623_v38  ;;  %v2590_v30 = vmul.f32 %v5885_v8, %v2568_v54 }
 0x56b   : > { %v2540_v45 = vadd.f32 1e-05, %v2524_v19  ;;  %v2525_v9 = vmul.f32 0.03125, %v2505_v2 }
 0x56c   : > { %v2591_v22 = vmul.f32 %v5885_v8, %v2569_v28  ;;  %v2612_v26 = vadd.f32 %v5893_v44, %v2590_v30 }
 0x56d   : > { %4119 = vrsqrt.f32 %v2540_v45  ;;  %v2541_v63 = vadd.f32 1e-05, %v2525_v9 }
 0x56e   : > { %v2613_v58 = vadd.f32 %v5893_v44, %v2591_v22 }
 0x56f   : > { %v4116_v17 = vpop.eup %4115  ;;  %4121 = vrsqrt.f32 %v2541_v63 }
 0x570   : > { %v2570_v13 = vmul.f32 %v4116_v17, %v5841_v42  ;;  %v2508_v34 = vpop.xlane.xlu0 %2507  ;;  %v2624_v36 = vpack.c.bf16 %v2613_v58, %v2612_v26 }
 0x571   : > { %v4118_v29 = vpop.eup %4117  ;;  %v2526_v1 = vmul.f32 0.03125, %v2508_v34 }
 0x572   : > { %v2571_v6 = vmul.f32 %v4118_v29, %v5844_v53  ;;  %v2511_v14 = vpop.xlane.xlu1 %2510  ;;  %3744 = vmatprep.mubr.msk.bf16.mxu1 %vm657_vm0, %v2624_v36  ;;  %v2592_v52 = vmul.f32 %v5885_v8, %v2570_v13 }
 0x573   : > { %v2542_v46 = vadd.f32 1e-05, %v2526_v1  ;;  %v2527_v43 = vmul.f32 0.03125, %v2511_v14 }
 0x574   : > { %v2593_v49 = vmul.f32 %v5885_v8, %v2571_v6  ;;  %v2614_v20 = vadd.f32 %v5893_v44, %v2592_v52 }
 0x575   : > { %4123 = vrsqrt.f32 %v2542_v46  ;;  %v2543_v48 = vadd.f32 1e-05, %v2527_v43 }
 0x576   : > { %v2615_v42 = vadd.f32 %v5893_v44, %v2593_v49 }
 0x577   : > { %v4120_v25 = vpop.eup %4119  ;;  %4125 = vrsqrt.f32 %v2543_v48 }
 0x578   : > { %v2572_v56 = vmul.f32 %v4120_v25, %v5853_v18  ;;  %v2625_v53 = vpack.c.bf16 %v2615_v42, %v2614_v20 }
 0x579   : > { %v4122_v50 = vpop.eup %4121 }
 0x57a   : > { %v2573_v0 = vmul.f32 %v4122_v50, %v5856_v27  ;;  %3745 = vmatmul.mubr.msk.bf16.gmra.mrb[76].mxu1 %vm657_vm0, %v2625_v53  ;;  %v2594_v12 = vmul.f32 %v5885_v8, %v2572_v56 }
 0x57c   : > { %v2595_v59 = vmul.f32 %v5885_v8, %v2573_v0  ;;  %v2616_v23 = vadd.f32 %v5893_v44, %v2594_v12 }
 0x57e   : > { %v2617_v4 = vadd.f32 %v5893_v44, %v2595_v59 }
 0x57f   : > { %v4124_v24 = vpop.eup %4123 }
 0x580   : > { %v2574_v11 = vmul.f32 %v4124_v24, %v5865_v7  ;;  %v2626_v21 = vpack.c.bf16 %v2617_v4, %v2616_v23  ;;  %v4024_v7 = vld [vmem:[%s6277_s15 + $0x8] sm:$0xff]  }
 0x581   : > { %v4126_v51 = vpop.eup %4125  ;;  %3754 = vmatprep.subr.bf16.mxu0 %v4024_v7 }
 0x582   : > { %v2575_v18 = vmul.f32 %v4126_v51, %v5868_v47  ;;  %3748 = vmatprep.mubr.msk.bf16.mxu1 %vm657_vm0, %v2626_v21  ;;  %v2596_v27 = vmul.f32 %v5885_v8, %v2574_v11  ;;  %v4025_v47 = vld [vmem:[%s6277_s15 + $0x10] sm:$0xff]   ;;  %3755 = vmatpush3.bf16.msra.mxu0 %v4024_v7 }
 0x583   : > { %3756 = vmatprep.subr.bf16.mxu0 %v4025_v47 }
 0x584   : > { %v2597_v54 = vmul.f32 %v5885_v8, %v2575_v18  ;;  %v2618_v41 = vadd.f32 %v5893_v44, %v2596_v27  ;;  %v4026_v8 = vld [vmem:[%s6277_s15 + $0x18] sm:$0xff]  }
 0x586   : > { %v2619_v38 = vadd.f32 %v5893_v44, %v2597_v54  ;;  %3757 = vmatpush3.bf16.msra.mxu0 %v4025_v47  ;;  %v5960_v44 = vld [vmem:[%s6280_s20] ss:$0 sm:$0xff]  ;;  %s6283_s20 = sld [smem:[#allocation35_spill]] }
 0x587   : > { %3758 = vmatprep.subr.bf16.mxu0 %v4026_v8 }
 0x588   : > { %v2627_v3 = vpack.c.bf16 %v2619_v38, %v2618_v41 }
 0x58a   : > { %3749 = vmatmul.mubr.msk.bf16.gmra.mrb[80].mxu1 %vm657_vm0, %v2627_v3  ;;  %3759 = vmatpush3.bf16.msra.mxu0 %v4026_v8 }
 0x58c   : > { %s6116_s29 = scalar_lea.hbm %s6283_s20, %s3425_s27 }
 0x62d   : > { %v3738_v19 = vpop.f32.mrb[68].mxu1 }
 0x62e   : > { %v2741_v28 = vadd.f32 %v3738_v19, %v5960_v44  ;;  %v2732_v2 = vpop.f32.mrb[69].mxu1 }
 0x62f   : > { %v2733_v30 = vadd.f32 %v5960_v44, %v2732_v2  ;;  %v3739_v45 = vpop.f32.mrb[70].mxu1 }
 0x630   : > { %v2813_v9 = vmul.f32 0.044715, %v2741_v28  ;;  %v2744_v22 = vadd.f32 %v3739_v45, %v5960_v44  ;;  %v2735_v63 = vpop.f32.mrb[71].mxu1  ;;  %v2797_v8 = vmul.f32 0.5, %v2741_v28 }
 0x631   : > { %v2811_v26 = vmul.f32 0.044715, %v2733_v30  ;;  %v2736_v58 = vadd.f32 %v5960_v44, %v2735_v63 }
 0x632   : > { %v2829_v17 = vmul.f32 %v2813_v9, %v2741_v28  ;;  %v2814_v13 = vmul.f32 0.044715, %v2744_v22 }
 0x633   : > { %v2827_v34 = vmul.f32 %v2811_v26, %v2733_v30  ;;  %v2812_v36 = vmul.f32 0.044715, %v2736_v58 }
 0x634   : > { %v2845_v29 = vmul.f32 %v2829_v17, %v2741_v28  ;;  %v2830_v1 = vmul.f32 %v2814_v13, %v2744_v22  ;;  %v2795_v17 = vmul.f32 0.5, %v2733_v30 }
 0x635   : > { %v2843_v6 = vmul.f32 %v2827_v34, %v2733_v30  ;;  %v2828_v14 = vmul.f32 %v2812_v36, %v2736_v58  ;;  %v2798_v36 = vmul.f32 0.5, %v2744_v22 }
 0x636   : > { %v2861_v52 = vadd.f32 %v2845_v29, %v2741_v28  ;;  %v2846_v46 = vmul.f32 %v2830_v1, %v2744_v22 }
 0x637   : > { %v2859_v43 = vadd.f32 %v2843_v6, %v2733_v30  ;;  %v2844_v49 = vmul.f32 %v2828_v14, %v2736_v58 }
 0x638   : > { %v2877_v48 = vmul.f32 0.7978846, %v2861_v52  ;;  %v2862_v20 = vadd.f32 %v2846_v46, %v2744_v22  ;;  %v2796_v52 = vmul.f32 0.5, %v2736_v58 }
 0x639   : > { %v2875_v42 = vmul.f32 0.7978846, %v2859_v43  ;;  %v2860_v25 = vadd.f32 %v2844_v49, %v2736_v58 }
 0x63a   : > { %4127 = vtanh.f32 %v2877_v48  ;;  %v2878_v56 = vmul.f32 0.7978846, %v2862_v20 }
 0x63b   : > { %4129 = vtanh.f32 %v2875_v42  ;;  %v2876_v53 = vmul.f32 0.7978846, %v2860_v25 }
 0x63c   : > { %4131 = vtanh.f32 %v2878_v56 }
 0x63d   : > { %4133 = vtanh.f32 %v2876_v53  ;;  %v3742_v50 = vpop.f32.mrb[72].mxu1 }
 0x63e   : > { %v5967_v0 = vadd.f32 %v3742_v50, %v5960_v44  ;;  %v2748_v12 = vpop.f32.mrb[73].mxu1 }
 0x63f   : > { %v5970_v59 = vadd.f32 %v5960_v44, %v2748_v12  ;;  %v3743_v23 = vpop.f32.mrb[74].mxu1 }
 0x640   : > { %v2817_v4 = vmul.f32 0.044715, %v5967_v0  ;;  %v5974_v24 = vadd.f32 %v3743_v23, %v5960_v44  ;;  %v2751_v11 = vpop.f32.mrb[75].mxu1 }
 0x641   : > { %v2815_v21 = vmul.f32 0.044715, %v5970_v59  ;;  %v5978_v51 = vadd.f32 %v5960_v44, %v2751_v11 }
 0x642   : > { %v2833_v18 = vmul.f32 %v2817_v4, %v5967_v0  ;;  %v2818_v27 = vmul.f32 0.044715, %v5974_v24 }
 0x643   : > { %v2831_v54 = vmul.f32 %v2815_v21, %v5970_v59  ;;  %v2816_v41 = vmul.f32 0.044715, %v5978_v51 }
 0x644   : > { %v4128_v38 = vpop.eup %4127  ;;  %v2849_v3 = vmul.f32 %v2833_v18, %v5967_v0  ;;  %v2834_v7 = vmul.f32 %v2818_v27, %v5974_v24 }
 0x645   : > { %v4130_v47 = vpop.eup %4129  ;;  %v2909_v19 = vadd.f32 1.0, %v4128_v38  ;;  %v2847_v2 = vmul.f32 %v2831_v54, %v5970_v59  ;;  %v2832_v45 = vmul.f32 %v2816_v41, %v5978_v51 }
 0x646   : > { %v4132_v9 = vpop.eup %4131  ;;  %v2865_v63 = vadd.f32 %v2849_v3, %v5967_v0  ;;  %v2850_v26 = vmul.f32 %v2834_v7, %v5974_v24  ;;  %v2907_v13 = vadd.f32 1.0, %v4130_v47 }
 0x647   : > { %v4134_v34 = vpop.eup %4133  ;;  %v2910_v29 = vadd.f32 1.0, %v4132_v9  ;;  %v2863_v1 = vadd.f32 %v2847_v2, %v5970_v59  ;;  %v2848_v6 = vmul.f32 %v2832_v45, %v5978_v51  ;;  %v2925_v43 = vmul.f32 %v2909_v19, %v2797_v8 }
 0x648   : > { %v2881_v28 = vmul.f32 0.7978846, %v2865_v63  ;;  %v2866_v14 = vadd.f32 %v2850_v26, %v5974_v24  ;;  %v2908_v46 = vadd.f32 1.0, %v4134_v34  ;;  %v2923_v42 = vmul.f32 %v2907_v13, %v2795_v17 }
 0x649   : > { %v2926_v49 = vmul.f32 %v2910_v29, %v2798_v36  ;;  %v2879_v48 = vmul.f32 0.7978846, %v2863_v1  ;;  %v2864_v20 = vadd.f32 %v2848_v6, %v5978_v51  ;;  %v2801_v63 = vmul.f32 0.5, %v5967_v0 }
 0x64a   : > { %4135 = vtanh.f32 %v2881_v28  ;;  %v2882_v30 = vmul.f32 0.7978846, %v2866_v14  ;;  %v2924_v25 = vmul.f32 %v2908_v46, %v2796_v52  ;;  %v2799_v36 = vmul.f32 0.5, %v5970_v59 }
 0x64b   : > { %v2940_v22 = vpack.c.bf16 %v2926_v49, %v2925_v43  ;;  %4137 = vtanh.f32 %v2879_v48  ;;  %v2880_v56 = vmul.f32 0.7978846, %v2864_v20  ;;  %v2802_v14 = vmul.f32 0.5, %v5974_v24 }
 0x64c   : > { %4139 = vtanh.f32 %v2882_v30  ;;  %v2939_v53 = vpack.c.bf16 %v2924_v25, %v2923_v42  ;;  %v2800_v43 = vmul.f32 0.5, %v5978_v51 }
 0x64d   : > { %4141 = vtanh.f32 %v2880_v56  ;;  %v3746_v50 = vpop.f32.mrb[76].mxu1 }
 0x64e   : > { %v5995_v58 = vadd.f32 %v3746_v50, %v5960_v44  ;;  %v2764_v12 = vpop.f32.mrb[77].mxu1  ;;  %3760 = vmatprep.mubr.msk.bf16.mxu0 %vm2979_vm3, %v2939_v53 }
 0x64f   : > { %v5999_v23 = vadd.f32 %v5960_v44, %v2764_v12  ;;  %v3747_v4 = vpop.f32.mrb[78].mxu1  ;;  %3761 = vmatmul.mubr.msk.bf16.vlgmr.msra.gmra.mrb[68].mxu0 %vm2979_vm3, %v2940_v22 }
 0x650   : > { %v2821_v11 = vmul.f32 0.044715, %v5995_v58  ;;  %v6004_v21 = vadd.f32 %v3747_v4, %v5960_v44  ;;  %v2767_v18 = vpop.f32.mrb[79].mxu1 }
 0x651   : > { %v2819_v27 = vmul.f32 0.044715, %v5999_v23  ;;  %v6008_v54 = vadd.f32 %v5960_v44, %v2767_v18 }
 0x652   : > { %v2837_v41 = vmul.f32 %v2821_v11, %v5995_v58  ;;  %v2822_v38 = vmul.f32 0.044715, %v6004_v21 }
 0x653   : > { %v2835_v3 = vmul.f32 %v2819_v27, %v5999_v23  ;;  %v2820_v7 = vmul.f32 0.044715, %v6008_v54 }
 0x654   : > { %v4136_v47 = vpop.eup %4135  ;;  %v2853_v8 = vmul.f32 %v2837_v41, %v5995_v58  ;;  %v2838_v19 = vmul.f32 %v2822_v38, %v6004_v21 }
 0x655   : > { %v4138_v2 = vpop.eup %4137  ;;  %v2851_v45 = vmul.f32 %v2835_v3, %v5999_v23  ;;  %v2836_v9 = vmul.f32 %v2820_v7, %v6008_v54  ;;  %v2913_v26 = vadd.f32 1.0, %v4136_v47 }
 0x656   : > { %v4140_v17 = vpop.eup %4139  ;;  %v2869_v13 = vadd.f32 %v2853_v8, %v5995_v58  ;;  %v2854_v34 = vmul.f32 %v2838_v19, %v6004_v21  ;;  %v2911_v29 = vadd.f32 1.0, %v4138_v2 }
 0x657   : > { %v4142_v1 = vpop.eup %4141  ;;  %v2867_v6 = vadd.f32 %v2851_v45, %v5999_v23  ;;  %v2852_v28 = vmul.f32 %v2836_v9, %v6008_v54  ;;  %v2914_v52 = vadd.f32 1.0, %v4140_v17  ;;  %v2929_v30 = vmul.f32 %v2913_v26, %v2801_v63 }
 0x658   : > { %v2885_v46 = vmul.f32 0.7978846, %v2869_v13  ;;  %v2870_v0 = vadd.f32 %v2854_v34, %v6004_v21  ;;  %v2912_v49 = vadd.f32 1.0, %v4142_v1  ;;  %v2927_v25 = vmul.f32 %v2911_v29, %v2799_v36 }
 0x659   : > { %v2883_v48 = vmul.f32 0.7978846, %v2867_v6  ;;  %v2868_v20 = vadd.f32 %v2852_v28, %v6008_v54  ;;  %v2930_v59 = vmul.f32 %v2914_v52, %v2802_v14  ;;  %v2805_v13 = vmul.f32 0.5, %v5995_v58 }
 0x65a   : > { %4143 = vtanh.f32 %v2885_v46  ;;  %v2886_v42 = vmul.f32 0.7978846, %v2870_v0  ;;  %v2928_v22 = vmul.f32 %v2912_v49, %v2800_v43  ;;  %v2803_v6 = vmul.f32 0.5, %v5999_v23 }
 0x65b   : > { %4145 = vtanh.f32 %v2883_v48  ;;  %v2884_v56 = vmul.f32 0.7978846, %v2868_v20  ;;  %v2942_v53 = vpack.c.bf16 %v2930_v59, %v2929_v30  ;;  %v2806_v46 = vmul.f32 0.5, %v6004_v21 }
 0x65c   : > { %4147 = vtanh.f32 %v2886_v42  ;;  %v2941_v24 = vpack.c.bf16 %v2928_v22, %v2927_v25  ;;  %v2804_v48 = vmul.f32 0.5, %v6008_v54 }
 0x65d   : > { %4149 = vtanh.f32 %v2884_v56  ;;  %v3750_v50 = vpop.f32.mrb[80].mxu1 }
 0x65e   : > { %v2789_v12 = vadd.f32 %v3750_v50, %v5960_v44  ;;  %v2780_v51 = vpop.f32.mrb[81].mxu1  ;;  %3764 = vmatprep.mubr.msk.bf16.mxu0 %vm2979_vm3, %v2941_v24 }
 0x65f   : > { %v2781_v4 = vadd.f32 %v5960_v44, %v2780_v51  ;;  %v3751_v11 = vpop.f32.mrb[82].mxu1  ;;  %3765 = vmatmul.mubr.msk.bf16.gmra.mrb[72].mxu0 %vm2979_vm3, %v2942_v53 }
 0x660   : > { %v2825_v18 = vmul.f32 0.044715, %v2789_v12  ;;  %v2792_v27 = vadd.f32 %v3751_v11, %v5960_v44  ;;  %v2783_v41 = vpop.f32.mrb[83].mxu1 }
 0x661   : > { %v2823_v38 = vmul.f32 0.044715, %v2781_v4  ;;  %v2784_v3 = vadd.f32 %v5960_v44, %v2783_v41  ;;  %v2809_v41 = vmul.f32 0.5, %v2789_v12 }
 0x662   : > { %v2841_v7 = vmul.f32 %v2825_v18, %v2789_v12  ;;  %v2826_v47 = vmul.f32 0.044715, %v2792_v27 }
 0x663   : > { %v2839_v8 = vmul.f32 %v2823_v38, %v2781_v4  ;;  %v2824_v19 = vmul.f32 0.044715, %v2784_v3  ;;  %v2810_v38 = vmul.f32 0.5, %v2792_v27 }
 0x664   : > { %v4144_v2 = vpop.eup %4143  ;;  %v2857_v45 = vmul.f32 %v2841_v7, %v2789_v12  ;;  %v2842_v9 = vmul.f32 %v2826_v47, %v2792_v27  ;;  %v2807_v47 = vmul.f32 0.5, %v2781_v4 }
 0x665   : > { %v4146_v63 = vpop.eup %4145  ;;  %v2855_v26 = vmul.f32 %v2839_v8, %v2781_v4  ;;  %v2840_v17 = vmul.f32 %v2824_v19, %v2784_v3  ;;  %v2917_v34 = vadd.f32 1.0, %v4144_v2  ;;  %v2808_v8 = vmul.f32 0.5, %v2784_v3 }
 0x666   : > { %v4148_v36 = vpop.eup %4147  ;;  %v2873_v29 = vadd.f32 %v2857_v45, %v2789_v12  ;;  %v2858_v1 = vmul.f32 %v2842_v9, %v2792_v27  ;;  %v2915_v28 = vadd.f32 1.0, %v4146_v63  ;;  %v6048_v12 = vld [vmem:[%s6281_s12] ss:$0 sm:$0xff]  ;;  %s4351_s12 = smov [#allocation7]  }
 0x667   : > { %v4150_v44 = vpop.eup %4149  ;;  %v2871_v14 = vadd.f32 %v2855_v26, %v2781_v4  ;;  %v2856_v52 = vmul.f32 %v2840_v17, %v2784_v3  ;;  %v2918_v0 = vadd.f32 1.0, %v4148_v36  ;;  %v2933_v59 = vmul.f32 %v2917_v34, %v2805_v13  ;;  %s4191_s14 = sshll.u32 %s4351_s12, 4  ;;  %s4192_s14 = int_to_ptr.vmem [resolvable:$false] %s4191_s14 }
 0x668   : > { %v2889_v43 = vmul.f32 0.7978846, %v2873_v29  ;;  %v2874_v49 = vadd.f32 %v2858_v1, %v2792_v27  ;;  %v2916_v20 = vadd.f32 1.0, %v4150_v44  ;;  %v2931_v22 = vmul.f32 %v2915_v28, %v2803_v6  ;;  %s4193_s8 = scalar_lea.vmem %s4192_s14, 4096  ;;  %p4194_p6 = scmp.lt.s32.totalorder %s6118_s11, %s4192_s14 }
 0x669   : > { %v2887_v30 = vmul.f32 0.7978846, %v2871_v14  ;;  %v2872_v58 = vadd.f32 %v2856_v52, %v2784_v3  ;;  %v2934_v42 = vmul.f32 %v2918_v0, %v2806_v46  ;;  %v2637_v4 = vadd.f32 %v6048_v12, %v5684_v15  ;;  %p4195_p10 = scmp.lt.s32.totalorder %s4193_s8, %s4187_s16 }
 0x66a   : > { %4151 = vtanh.f32 %v2889_v43  ;;  %v2890_v25 = vmul.f32 0.7978846, %v2874_v49  ;;  %v2932_v23 = vmul.f32 %v2916_v20, %v2804_v48  ;;  %v2635_v3 = vadd.f32 %v6048_v12, %v5670_v16 }
 0x66b   : > { %4153 = vtanh.f32 %v2887_v30  ;;  %v2888_v56 = vmul.f32 0.7978846, %v2872_v58  ;;  %v2944_v53 = vpack.c.bf16 %v2934_v42, %v2933_v59  ;;  %v2638_v36 = vadd.f32 %v6048_v12, %v5689_v37  ;;  %p4196_p11 = por %p4195_p10, %p4194_p6 }
 0x66c   : > { %4155 = vtanh.f32 %v2890_v25  ;;  %v2943_v24 = vpack.c.bf16 %v2932_v23, %v2931_v22  ;;  %v2636_v6 = vadd.f32 %v6048_v12, %v5675_v5  ;;  %v2641_v5 = vadd.f32 %v6048_v12, %v5712_v62 }
 0x66d   : > { %4157 = vtanh.f32 %v2888_v56  ;;  %v2639_v44 = vadd.f32 %v6048_v12, %v5698_v55  ;;  %v2642_v46 = vadd.f32 %v6048_v12, %v5717_v33  ;;  %v2640_v49 = vadd.f32 %v6048_v12, %v5703_v32  ;;  %p4197_p1 = pnand %p4196_p11, %p4190_p2 }
 0x66e   : > { %3768 = vmatprep.mubr.msk.bf16.mxu0 %vm2979_vm3, %v2943_v24  ;;  %v2645_v55 = vadd.f32 %v6048_v12, %v5740_v39  ;;  %v2643_v33 = vadd.f32 %v6048_v12, %v5726_v40  ;;  %v2646_v59 = vadd.f32 %v6048_v12, %v5745_v10  ;;  %v2644_v22 = vadd.f32 %v6048_v12, %v5731_v60 }
 0x66f   : > { %3769 = vmatmul.mubr.msk.bf16.gmra.mrb[76].mxu0 %vm2979_vm3, %v2944_v53  ;;  %v2649_v40 = vadd.f32 %v6048_v12, %v5768_v31  ;;  %v2647_v10 = vadd.f32 %v6048_v12, %v5754_v57  ;;  %v2648_v31 = vadd.f32 %v6048_v12, %v5759_v35 }
 0x674   : > { %v4152_v21 = vpop.eup %4151 }
 0x675   : > { %v4154_v54 = vpop.eup %4153  ;;  %v2921_v50 = vadd.f32 1.0, %v4152_v21  ;;  %v2650_v21 = vadd.f32 %v6048_v12, %v5773_v61 }
 0x676   : > { %v4156_v51 = vpop.eup %4155  ;;  %v2919_v11 = vadd.f32 1.0, %v4154_v54 }
 0x677   : > { %v4158_v18 = vpop.eup %4157  ;;  %v2922_v7 = vadd.f32 1.0, %v4156_v51  ;;  %v2937_v2 = vmul.f32 %v2921_v50, %v2809_v41 }
 0x678   : > { %v2920_v19 = vadd.f32 1.0, %v4158_v18  ;;  %v2935_v9 = vmul.f32 %v2919_v11, %v2807_v47 }
 0x679   : > { %v2938_v45 = vmul.f32 %v2922_v7, %v2810_v38 }
 0x67a   : > { %v2936_v63 = vmul.f32 %v2920_v19, %v2808_v8 }
 0x67b   : > { %v2946_v26 = vpack.c.bf16 %v2938_v45, %v2937_v2 }
 0x67c   : > { %v2945_v17 = vpack.c.bf16 %v2936_v63, %v2935_v9 }
 0x67e   : > { %3772 = vmatprep.mubr.msk.bf16.mxu0 %vm2979_vm3, %v2945_v17 }
 0x67f   : > { %3773 = vmatmul.mubr.msk.bf16.gmra.mrb[80].mxu0 %vm2979_vm3, %v2946_v26 }
 0x722   : > { %v3762_v27 = vpop.f32.mrb[68].mxu0 }
 0x723   : > { %v3103_v13 = vadd.f32 %v3762_v27, %v2637_v4  ;;  %v3038_v34 = vpop.f32.mrb[69].mxu0 }
 0x724   : > { %v3101_v29 = vadd.f32 %v3038_v34, %v2635_v3  ;;  %v3763_v1 = vpop.f32.mrb[70].mxu0 }
 0x725   : > { %3119 = vst.msk [vmem:[%s6058_s23 + $0x10] sm:$0xff] %vm657_vm0, %v3103_v13  ;;  %v3104_v16 = vadd.f32 %v3763_v1, %v2638_v36  ;;  %v3041_v15 = vpop.f32.mrb[71].mxu0 }
 0x726   : > { %3117 = vst.msk [vmem:[%s6058_s23] sm:$0xff] %vm657_vm0, %v3101_v29  ;;  %v3102_v37 = vadd.f32 %v3041_v15, %v2636_v6 }
 0x727   : > { %3120 = vst.msk [vmem:[%s6058_s23 + $0x18] sm:$0xff] %vm657_vm0, %v3104_v16 }
 0x728   : > { %3118 = vst.msk [vmem:[%s6058_s23 + $0x8] sm:$0xff] %vm657_vm0, %v3102_v37 }
 0x732   : > { %v3766_v28 = vpop.f32.mrb[72].mxu0 }
 0x733   : > { %v3107_v14 = vadd.f32 %v3766_v28, %v2641_v5  ;;  %v3054_v52 = vpop.f32.mrb[73].mxu0 }
 0x734   : > { %v3105_v0 = vadd.f32 %v3054_v52, %v2639_v44  ;;  %v3767_v43 = vpop.f32.mrb[74].mxu0 }
 0x735   : > { %3123 = vst.msk [vmem:[%s6058_s23 + $0x30] sm:$0xff] %vm657_vm0, %v3107_v14  ;;  %v3108_v48 = vadd.f32 %v3767_v43, %v2642_v46  ;;  %v3057_v20 = vpop.f32.mrb[75].mxu0 }
 0x736   : > { %3121 = vst.msk [vmem:[%s6058_s23 + $0x20] sm:$0xff] %vm657_vm0, %v3105_v0  ;;  %v3106_v62 = vadd.f32 %v3057_v20, %v2640_v49 }
 0x737   : > { %3124 = vst.msk [vmem:[%s6058_s23 + $0x38] sm:$0xff] %vm657_vm0, %v3108_v48 }
 0x738   : > { %3122 = vst.msk [vmem:[%s6058_s23 + $0x28] sm:$0xff] %vm657_vm0, %v3106_v62 }
 0x742   : > { %v3770_v32 = vpop.f32.mrb[76].mxu0 }
 0x743   : > { %v3111_v30 = vadd.f32 %v3770_v32, %v2645_v55  ;;  %v3070_v58 = vpop.f32.mrb[77].mxu0 }
 0x744   : > { %v3109_v42 = vadd.f32 %v3070_v58, %v2643_v33  ;;  %v3771_v25 = vpop.f32.mrb[78].mxu0 }
 0x745   : > { %3127 = vst.msk [vmem:[%s6058_s23 + $0x50] sm:$0xff] %vm657_vm0, %v3111_v30  ;;  %v3112_v39 = vadd.f32 %v3771_v25, %v2646_v59  ;;  %v3073_v23 = vpop.f32.mrb[79].mxu0 }
 0x746   : > { %3125 = vst.msk [vmem:[%s6058_s23 + $0x40] sm:$0xff] %vm657_vm0, %v3109_v42  ;;  %v3110_v56 = vadd.f32 %v3073_v23, %v2644_v22 }
 0x747   : > { %3128 = vst.msk [vmem:[%s6058_s23 + $0x58] sm:$0xff] %vm657_vm0, %v3112_v39 }
 0x748   : > { %3126 = vst.msk [vmem:[%s6058_s23 + $0x48] sm:$0xff] %vm657_vm0, %v3110_v56 }
 0x752   : > { %v3774_v60 = vpop.f32.mrb[80].mxu0 }
 0x753   : > { %v3115_v53 = vadd.f32 %v3774_v60, %v2649_v40  ;;  %v3086_v24 = vpop.f32.mrb[81].mxu0 }
 0x754   : > { %v3113_v54 = vadd.f32 %v3086_v24, %v2647_v10  ;;  %v3775_v50 = vpop.f32.mrb[82].mxu0 }
 0x755   : > { %3131 = vst.msk [vmem:[%s6058_s23 + $0x70] sm:$0xff] %vm657_vm0, %v3115_v53  ;;  %v3116_v51 = vadd.f32 %v3775_v50, %v2650_v21  ;;  %v3089_v57 = vpop.f32.mrb[83].mxu0 }
 0x756   : > { %3129 = vst.msk [vmem:[%s6058_s23 + $0x60] sm:$0xff] %vm657_vm0, %v3113_v54  ;;  %v3114_v61 = vadd.f32 %v3089_v57, %v2648_v31 }
 0x757   : > { %3132 = vst.msk [vmem:[%s6058_s23 + $0x78] sm:$0xff] %vm657_vm0, %v3116_v51 }
 0x758   : > { %3130 = vst.msk [vmem:[%s6058_s23 + $0x68] sm:$0xff] %vm657_vm0, %v3114_v61 }
 0x759   : > { %4200 = shalt.err (!%p4197_p1)
}
 0x75a   : > { %s4201_s6 = scalar_lea.hbm %s6116_s29, 2048  ;;  %s4205_s9 = scalar_lea.hbm %s6283_s20, 8192 }
 0x75b   : > { %p4202_p4 = scmp.ne.s32.totalorder %s6116_s29, %s4201_s6  ;;  %p4206_p13 = scmp.lt.u32.totalorder %s6116_s29, %s6283_s20 }
 0x75c   : > { %p4207_p8 = scmp.lt.u32.totalorder %s4205_s9, %s4201_s6  ;;  %p4209_p9 = scmp.lt.u32.totalorder %s4201_s6, %s6116_s29 }
 0x75d   : > { %p4203_p3 = pnand %p4202_p4, %p6284_p0 }
 0x75e   : > { %p4208_p12 = por %p4207_p8, %p4206_p13 }
 0x75f   : > { %p4204_p7 = pneg %p4203_p3 }
 0x760   : > { %p4210_p5 = por %p4209_p9, %p4208_p12 }
 0x762   : > { %p4211_p2 = pnand %p4210_p5, %p4204_p7 }
 0x764   : > { %4214 = shalt.err (!%p4211_p2)
}
 0x765   : > { %s4352_s24 = smov 128   ;;  %s4353_s16 = smov 8  }
 0x766   : > { %3793 = dma.vmem_to_hbm [thread:$0]  (%p6284_p0), %s6118_s11, 2048, %s6116_s29, %s6128_s30, %s4352_s24, %s4352_s24, %s4353_s16  }
 0x767 PF: > { %s6285_s12 = sld [smem:[#allocation24_spill]]  ;;  %p3799_p6 = scmp.ge.s32.totalorder %s4337_s19, 2 }
 0x768   : > { %s3164_s14 = sand.u32 1, %s4285_s21  }
 0x769   : > { %s3165_s8 = scalar_lea.sflag [#allocation4], %s3164_s14 }
 0x76d   : > { %p6286_p10 = scmp.ne.s32.totalorder %s6285_s12, 0 }
 0x76f   : > { %p3796_p11 = pnand %p3799_p6, %p6286_p10 }
 0x771   : > { %4280 = dma.done.wait (!%p3796_p11), %s3165_s8, 2048  }
 0x772   : > { %4282 = vsyncadd (!%p3796_p11), %s3165_s8, 4294965248  ;;  %s35_s19 = sadd.s32 1, %s4337_s19   ;;  %s6288_s13 = sld [smem:[#allocation14_spill]] }
 0x773   : > { %p6157_p1 = scmp.ge.s32.totalorder %s35_s19, 6   ;;  %s6289_s23 = sld [smem:[#allocation23_spill]] }
 0x774   : > { %s6290_s11 = sld [smem:[#allocation21_spill]]  ;;  %s6291_s29 = sld [smem:[#allocation15_spill]] }
 0x775   : > { %s6292_s30 = sld [smem:[#allocation22_spill]]  ;;  %s6293_s0 = sld [smem:[#allocation18_spill]] }
 0x776   : > { %s6294_s18 = sld [smem:[#allocation19_spill]]  ;;  %s6295_s9 = sld [smem:[#allocation20_spill]] }
 0x777   : > { %s6296_s21 = smov %s4289_s22  ;;  %s6298_s24 = smov %s4301_s25 }
 0x778   : > { %s6297_s22 = smov %s6288_s13  ;;  %s6299_s25 = smov %s4305_s26 }
 0x779   : > { %s6301_s27 = smov %s4313_s28  ;;  %34 = sbr.rel (!%p6157_p1) target bundleno = 24 (0x18), region = 151 }
 0x77a   : > { %s6300_s26 = smov %s6290_s11  ;;  %s6302_s28 = smov %s6291_s29 }
 0x77b   : > { %s6303_s29 = smov %s6292_s30  ;;  %s6304_s30 = smov %s4329_s17 }
 0x77c   : > { %s6305_s17 = smov %s6294_s18  ;;  %s6306_s18 = smov %s6295_s9 }
 0x780   :  { %3170 = vsyncpa [#allocation3], 1 }
 0x781   :  { %3172 = vsyncpa [#allocation3 + $0x1], 1 }
 0x782   :  { %3173 = vsyncpa [#allocation6], 1 }
 0x783   :  { %3175 = vsyncpa [#allocation6 + $0x1], 1 }
 0x784   :  { %3176 = vsyncpa [#allocation4], 1 }
 0x785   :  { %3178 = vsyncpa [#allocation4 + $0x1], 1 }

// kernel: repmlp_block_forward.1
= control target key start
LH: loop header
LB: loop body
LE: loop exit
PB: predicated region body
PF: predicated region fallthrough
CT: control target
= control target key end

     0   :  { %s6204_s0 = inlined_call_operand.hbm [shape: f32[2,256,32], index: 0, kind: input, shape index: {}]   ;;  %s6205_s1 = inlined_call_operand.vmem [shape: f32[1,32], index: 1, kind: input, shape index: {}]   ;;  %s6206_s2 = inlined_call_operand.vmem [shape: f32[1,32], index: 2, kind: input, shape index: {}]   ;;  %s6207_s3 = inlined_call_operand.vmem [shape: f32[32,8], index: 3, kind: input, shape index: {}]   ;;  %s6208_s4 = inlined_call_operand.vmem [shape: f32[1,8], index: 4, kind: input, shape index: {}]   ;;  %s6209_s5 = inlined_call_operand.vmem [shape: f32[8,32], index: 5, kind: input, shape index: {}]   ;;  %s6210_s6 = inlined_call_operand.vmem [shape: f32[1,32], index: 6, kind: input, shape index: {}]   ;;  %s6211_s7 = inlined_call_operand.hbm [shape: bf16[4,256,256], index: 7, kind: input, shape index: {}]   ;;  %s6212_s8 = inlined_call_operand.vmem [shape: f32[4,32], index: 8, kind: input, shape index: {}]   ;;  %s6213_s9 = inlined_call_operand.vmem [shape: f32[1,32], index: 9, kind: input, shape index: {}]   ;;  %s6214_s10 = inlined_call_operand.vmem [shape: f32[1,32], index: 10, kind: input, shape index: {}]   ;;  %s6215_s11 = inlined_call_operand.vmem [shape: f32[1,32], index: 11, kind: input, shape index: {}]   ;;  %s6216_s12 = inlined_call_operand.vmem [shape: bf16[32,64], index: 12, kind: input, shape index: {}]   ;;  %s6217_s13 = inlined_call_operand.vmem [shape: f32[1,64], index: 13, kind: input, shape index: {}]   ;;  %s6218_s14 = inlined_call_operand.vmem [shape: bf16[64,32], index: 14, kind: input, shape index: {}]   ;;  %s6219_s15 = inlined_call_operand.vmem [shape: f32[1,32], index: 15, kind: input, shape index: {}]   ;;  %s6220_s16 = inlined_call_operand.hbm [shape: f32[2,256,32], index: 16, kind: output, shape index: {}]  }
   0x1   :  { %6237 = sst [smem:[#allocation25_spill]] %s6204_s0 }
   0x2   :  { %6238 = sst [smem:[#allocation26_spill]] %s6210_s6 }
   0x3   :  { %6239 = sst [smem:[#allocation27_spill]] %s6212_s8 }
   0x4   :  { %6240 = sst [smem:[#allocation28_spill]] %s6213_s9 }
   0x5   :  { %6241 = sst [smem:[#allocation29_spill]] %s6214_s10 }
   0x6   :  { %6242 = sst [smem:[#allocation30_spill]] %s6215_s11 }
   0x7   :  { %6243 = sst [smem:[#allocation31_spill]] %s6216_s12 }
   0x8   :  { %6244 = sst [smem:[#allocation32_spill]] %s6217_s13 }
   0x9   :  { %6245 = sst [smem:[#allocation33_spill]] %s6218_s14 }
   0xa   :  { %6246 = sst [smem:[#allocation34_spill]] %s6219_s15 }
   0xb   :  { %6247 = sst [smem:[#allocation35_spill]] %s6220_s16 }
   0xc   :  { %21 = vsyncpa [#allocation3], 0 }
   0xd   :  { %23 = vsyncpa [#allocation3 + $0x1], 0 }
   0xe   :  { %24 = vsyncpa [#allocation6], 0 }
   0xf   :  { %26 = vsyncpa [#allocation6 + $0x1], 0 }
  0x10   :  { %27 = vsyncpa [#allocation4], 0 }
  0x11   :  { %29 = vsyncpa [#allocation4 + $0x1], 0  ;;  %s4439_s21 = smov 0   ;;  %s4441_s22 = smov 0  }
  0x12   :  { %s4443_s23 = smov 0   ;;  %s4445_s24 = smov 0  }
  0x13   :  { %s4447_s25 = smov 0   ;;  %s4449_s26 = smov 0  }
  0x14   :  { %s4451_s27 = smov 0   ;;  %s4453_s28 = smov 0  }
  0x15   :  { %s4455_s29 = smov 0   ;;  %s4457_s30 = smov 0  }
  0x16   :  { %s4459_s0 = smov 0   ;;  %s4461_s17 = smov 0  }
  0x17   :  { %s4463_s18 = smov 0   ;;  %s4465_s19 = smov 0  }
  0x18 LB: > { %6248 = sst [smem:[#allocation14_spill]] %s4293_s23  ;;  %s6224_s20 = sadd.s32 4294967295, %s4337_s19   ;;  %s4337_s19 = sphi %s4465_s19, %s35_s19   ;;  %s4333_s18 = sphi %s4463_s18, %s6306_s18   ;;  %s4329_s17 = sphi %s4461_s17, %s6305_s17   ;;  %s4325_s0 = sphi %s4459_s0, %s6293_s0   ;;  %s4321_s30 = sphi %s4457_s30, %s6304_s30   ;;  %s4317_s29 = sphi %s4455_s29, %s6303_s29   ;;  %s4313_s28 = sphi %s4453_s28, %s6302_s28   ;;  %s4309_s27 = sphi %s4451_s27, %s6301_s27   ;;  %s4305_s26 = sphi %s4449_s26, %s6300_s26   ;;  %s4301_s25 = sphi %s4447_s25, %s6299_s25   ;;  %s4297_s24 = sphi %s4445_s24, %s6298_s24   ;;  %s4293_s23 = sphi %s4443_s23, %s6289_s23   ;;  %s4289_s22 = sphi %s4441_s22, %s6297_s22   ;;  %s4285_s21 = sphi %s4439_s21, %s6296_s21  }
  0x19   : > { %6249 = sst [smem:[#allocation15_spill]] %s4317_s29  ;;  %s44_s15 = sadd.s32 1, %s4329_s17 }
  0x1a   : > { %6250 = sst [smem:[#allocation16_spill]] %s4321_s30  ;;  %p45_p0 = scmp.ge.s32.totalorder %s44_s15, 2 }
  0x1b   : > { %6251 = sst [smem:[#allocation17_spill]] %s4325_s0  ;;  %s47_s0 = sadd.s32 1, %s4333_s18 }
  0x1c   : > { %6252 = sst [smem:[#allocation18_spill]] %s4333_s18  ;;  %s54_s13 = sadd.s32 1, %s4317_s29 }
  0x1d   : > { %p61_p1 = scmp.ne.s32.totalorder %s4317_s29, %s4313_s28  ;;  %p62_p2 = scmp.eq.s32.totalorder %s4337_s19, 0 }
  0x1e   : > { %s6308_s15 = smov (%p45_p0, %s44_s15), 0  ;;  %s6310_s0 = smov (!%p45_p0, %s47_s0), %s4333_s18 }
  0x1f   : > { %6253 = sst [smem:[#allocation19_spill]] %s6308_s15  ;;  %p4520_p3 = por %p62_p2, %p61_p1 }
  0x20   : > { %p67_p4 = scmp.ne.s32.totalorder %s4313_s28, %s4309_s27  ;;  %p49_p5 = scmp.ge.s32.totalorder %s6310_s0, 2 }
  0x21   : > { %p4527_p6 = scmp.eq.s32.totalorder %s6224_s20, 0  ;;  %s203_s10 = ssub.s32 %s4329_s17, %s6308_s15 }
  0x22   : > { %s206_s14 = sadd.s32 1, %s4305_s26  ;;  %s6312_s0 = smov (%p49_p5, %s6310_s0), 0 }
  0x23   : > { %6256 = sst [smem:[#allocation20_spill]] %s6312_s0  ;;  %p4538_p7 = por %p4527_p6, %p67_p4 }
  0x24   : > { %p204_p8 = scmp.eq.s32.totalorder %s203_s10, 0  ;;  %s51_s20 = ssub.s32 %s4333_s18, %s6312_s0 }
  0x25   : > { %s6257_s27 = scalar_select %p4538_p7, 1, 0 }
  0x26   : > { %p213_p9 = scmp.ne.s32.totalorder %s4305_s26, %s4301_s25  ;;  %p52_p10 = scmp.eq.s32.totalorder %s51_s20, 0 }
  0x27   : > { %p219_p11 = scmp.ne.s32.totalorder %s4301_s25, %s4297_s24  ;;  %s399_s30 = sor.u32 %s203_s10, %s51_s20 }
  0x28   : > { %s4549_s15 = scalar_select %p204_p8, %s4305_s26, %s206_s14  }
  0x29   : > { %s4552_s12 = scalar_select %p52_p10, %s4317_s29, %s54_s13  }
  0x2a   : > { %6258 = sst [smem:[#allocation21_spill]] %s4549_s15  ;;  %p4556_p12 = por %p213_p9, %p62_p2 }
  0x2b   : > { %6259 = sst [smem:[#allocation22_spill]] %s4552_s12  ;;  %p4562_p13 = por %p219_p11, %p4527_p6 }
  0x2c   : > { %s402_s0 = sadd.s32 1, %s4293_s23  ;;  %p400_p0 = scmp.eq.s32.totalorder %s399_s30, 0 }
  0x2d   : > { %s6261_s9 = scalar_select %p4562_p13, 1, 0 }
  0x2e   : > { %p412_p1 = scmp.ne.s32.totalorder %s4293_s23, %s4289_s22  ;;  %s6262_s6 = sadd.s32 4294967295, %s4337_s19  }
  0x2f   : > { %p413_p4 = scmp.eq.s32.totalorder %s6262_s6, 3  ;;  %p418_p5 = scmp.ne.s32.totalorder %s4289_s22, %s4285_s21 }
  0x30   : > { %s4574_s14 = scalar_select %p400_p0, %s4293_s23, %s402_s0  }
  0x31   : > { %p4576_p8 = por %p413_p4, %p412_p1  ;;  %s6265_s24 = sadd.s32 4294967294, %s4337_s19  }
  0x32   : > { %6263 = sst [smem:[#allocation23_spill]] %s4574_s14  ;;  %p419_p2 = scmp.eq.s32.totalorder %s6265_s24, 3 }
  0x33   : > { %s6264_s13 = scalar_select %p4576_p8, 1, 0 }
  0x34   : > { %p4582_p9 = por %p419_p2, %p418_p5  ;;  %p3264_p6 = scmp.ge.s32.totalorder %s4337_s19, 4 }
  0x35   : > { %s481_s6 = sand.u32 (!%p3264_p6), 1, %s4317_s29   ;;  %s3428_s10 = sshll.u32 (!%p3264_p6), %s4333_s18, 12 }
  0x36   : > { %s6266_s11 = scalar_select %p4582_p9, 1, 0 }
  0x37   : > { %477 = sbr.rel (%p3264_p6) target bundleno = 98 (0x62), region = 72  ;;  %s3265_s30 = sshll.u32 (!%p3264_p6), %s481_s6, 8 }
  0x38   : > { %6267 = sst [smem:[#allocation24_spill]] %s6266_s11  ;;  %s6268_s12 = sld [smem:[#allocation25_spill]] (!%p3264_p6) }
  0x39   : > { %s485_s24 = scalar_lea.vmem (!%p3264_p6), [#allocation2], %s3265_s30  ;;  %s4596_s23 = scalar_lea.sflag (!%p3264_p6), [#allocation3], %s481_s6 }
  0x3a   : > { %s492_s14 = sshll.u32 (!%p3264_p6), %s485_s24, 4  ;;  %s4594_s14 = int_to_ptr.vmem [resolvable:$true] %s492_s14 }
  0x3e   : > { %s4592_s15 = scalar_lea.hbm %s6268_s12, %s3428_s10  ;;  %s4163_s10 = scalar_lea.hbm %s6268_s12, 8192 }
  0x3f   : > { %s4159_s11 = scalar_lea.hbm %s4592_s15, 4096  ;;  %p4164_p1 = scmp.lt.u32.totalorder %s4592_s15, %s6268_s12 }
  0x40   : > { %p4160_p10 = scmp.ne.s32.totalorder %s4592_s15, %s4159_s11  ;;  %p4165_p4 = scmp.lt.u32.totalorder %s4163_s10, %s4159_s11 }
  0x41   : > { %p4167_p2 = scmp.lt.u32.totalorder %s4159_s11, %s4592_s15 }
  0x42   : > { %p4161_p11 = pnand %p4160_p10, %p4520_p3  ;;  %p4166_p5 = por %p4165_p4, %p4164_p1 }
  0x44   : > { %p4162_p0 = pneg %p4161_p11  ;;  %p4168_p6 = por %p4167_p2, %p4166_p5 }
  0x46   : > { %p4169_p9 = pnand %p4168_p6, %p4162_p0 }
  0x48   : > { %4172 = shalt.err (!%p4169_p9)
}
  0x49   : > { %s4173_s6 = scalar_lea.vmem %s4594_s14, 4096  ;;  %s4339_s29 = smov [#allocation2]  }
  0x4a   : > { %p4174_p10 = scmp.ne.s32.totalorder %s4594_s14, %s4173_s6  ;;  %s4177_s18 = sshll.u32 %s4339_s29, 4  ;;  %s4178_s18 = int_to_ptr.vmem [resolvable:$false] %s4177_s18 }
  0x4b   : > { %s4179_s30 = scalar_lea.vmem %s4178_s18, 8192  ;;  %p4180_p13 = scmp.lt.s32.totalorder %s4594_s14, %s4178_s18 }
  0x4c   : > { %p4175_p11 = pnand %p4174_p10, %p4520_p3  ;;  %p4181_p7 = scmp.lt.s32.totalorder %s4179_s30, %s4173_s6 }
  0x4e   : > { %p4176_p8 = pneg %p4175_p11  ;;  %p4182_p1 = por %p4181_p7, %p4180_p13 }
  0x50   : > { %p4183_p4 = pnand %p4182_p1, %p4176_p8 }
  0x52   : > { %4186 = shalt.err (!%p4183_p4)
}
  0x53   : > { %s4340_s11 = smov 128   ;;  %s4341_s24 = smov 8  }
  0x54   : > { %3782 = dma.hbm_to_vmem [thread:$0]  (%p4520_p3), %s4592_s15, 4096, %s4594_s14, %s4596_s23, %s4340_s11, %s4340_s11, %s4341_s24  }
  0x55   : > { %s502_s10 = sand.u32 1, %s4305_s26   ;;  %s3430_s0 = sshll.u32 %s4329_s17, 11 }
  0x56   : > { %s3268_s20 = sshll.u32 %s502_s10, 9  ;;  %s513_s18 = scalar_lea.hbm %s6211_s7, %s3430_s0 }
  0x57   : > { %s3783_s30 = scalar_select %p4556_p12, [#allocation0], [#allocation10] }
  0x58   : > { %s506_s16 = scalar_lea.vmem [#allocation5], %s3268_s20  ;;  %s4342_s14 = smov 4096  }
  0x59   : > { %s526_s15 = sshll.u32 %s506_s16, 4  ;;  %s518_s23 = sld [smem:[%s3783_s30]]   ;;  %s527_s15 = int_to_ptr.vmem [resolvable:$true] %s526_s15 }
  0x5a   : > { %3784 = sst [smem:[#allocation9]] (%p4556_p12), %s4342_s14  ;;  %s4343_s11 = smov 2048  }
  0x5b   : > { %3785 = sst [smem:[#allocation9 + $0x1]] (%p4556_p12), %s4343_s11  ;;  %s4344_s24 = smov 16  }
  0x5c   : > { %3786 = sst [smem:[#allocation9 + $0x2]] (%p4556_p12), %s4344_s24  ;;  %s4345_s12 = smov 128  }
  0x5d   : > { %3787 = sst [smem:[#allocation9 + $0x3]] (%p4556_p12), %s4345_s12  ;;  %s4346_s20 = smov 8  }
  0x5e   : > { %3788 = sst [smem:[#allocation9 + $0x4]] (%p4556_p12), %s4345_s12  ;;  %s503_s29 = scalar_lea.sflag [#allocation6], %s502_s10 }
  0x5f   : > { %s3272_s0 = sshll.u32 %s518_s23, 26  ;;  %3789 = sst [smem:[#allocation9 + $0x5]] (%p4556_p12), %s4346_s20 }
  0x60   : > { %s3273_s6 = sadd.s32 134217728, %s3272_s0  ;;  %s4347_s30 = smov [#allocation8]  }
  0x61   : > { %3790 = dma.general (%p4556_p12), %s513_s18, 8192, %s527_s15, %s503_s29, %s4347_s30, [#allocation9], %s3273_s6, 0  }
  0x62 PF: > { %p3274_p3 = scmp.ge.s32.totalorder %s4337_s19, 1  ;;  %p547_p7 = scmp.lt.s32.totalorder %s4337_s19, 5 }
  0x64   : > { %p548_p13 = pnand %p3274_p3, %p547_p7 }
  0x65   : > { %s553_s16 = sand.u32 (!%p548_p13), 1, %s4313_s28   ;;  %p6269_p8 = scmp.ne.s32.totalorder (!%p548_p13), %s6257_s27, 0 }
  0x66   : > { %551 = sbr.rel (%p548_p13) target bundleno = 1895 (0x767), region = 84  ;;  %s3275_s12 = sshll.u32 (!%p548_p13), %s553_s16, 8 }
  0x67   : > { %s554_s23 = scalar_lea.sflag (!%p548_p13), [#allocation3], %s553_s16  ;;  %s4644_s14 = scalar_lea.vmem (!%p548_p13), [#allocation2], %s3275_s12 }
  0x6d   : > { %4272 = dma.done.wait (%p6269_p8), %s554_s23, 4096  }
  0x6e   : > { %4274 = vsyncadd (%p6269_p8), %s554_s23, 4294963200  ;;  %s562_s8 = sand.u32 1, %s4301_s25   ;;  %p6270_p12 = scmp.ne.s32.totalorder %s6261_s9, 0 }
  0x6f   : > { %s3276_s10 = sshll.u32 %s562_s8, 9  ;;  %s563_s18 = scalar_lea.sflag [#allocation6], %s562_s8 }
  0x70   : > { %s4651_s15 = scalar_lea.vmem [#allocation5], %s3276_s10 }
  0x71   : > { %4276 = dma.done.wait (%p6270_p12), %s563_s18, 8192  }
  0x72   : > { %4278 = vsyncadd (%p6270_p12), %s563_s18, 4294959104  ;;  %vm657_vm0 = vcmask 261120   ;;  %v4658_v0 = vld [vmem:[%s4644_s14] sm:$0xff]  ;;  %v4661_v1 = vld [vmem:[%s4644_s14 + $0x10] sm:$0xff]  ;;  %vm4350_vm1 = vmmov 0   ;;  %vm1303_vm2 = vcmask 64512  }
  0x73   : > { %v4664_v2 = vld [vmem:[%s4644_s14 + $0x8] sm:$0xff]  ;;  %v658_v3 = vsel %vm657_vm0, %v4658_v0, 0.0  ;;  %v664_v4 = vsel %vm657_vm0, %v4661_v1, 0.0  ;;  %v4671_v5 = vld [vmem:[%s4644_s14 + $0x18] sm:$0xff]  ;;  %v4678_v8 = vld [vmem:[%s4644_s14 + $0x20] sm:$0xff]  ;;  %s6271_s24 = sld [smem:[#allocation26_spill]] }
  0x74   : > { %659 = vadd.xlane.f32.xlu0 %v658_v3  ;;  %665 = vadd.xlane.f32.xlu1 %v664_v4  ;;  %v661_v6 = vsel %vm657_vm0, %v4664_v2, 0.0  ;;  %v667_v7 = vsel %vm657_vm0, %v4671_v5, 0.0  ;;  %v4681_v9 = vld [vmem:[%s4644_s14 + $0x28] sm:$0xff]  ;;  %v670_v10 = vsel %vm657_vm0, %v4678_v8, 0.0  ;;  %v4688_v12 = vld [vmem:[%s4644_s14 + $0x30] sm:$0xff]  ;;  %v4691_v13 = vld [vmem:[%s4644_s14 + $0x38] sm:$0xff] }
  0x75   : > { %v673_v11 = vsel %vm657_vm0, %v4681_v9, 0.0  ;;  %v4694_v14 = vld [vmem:[%s4644_s14 + $0x40] sm:$0xff]  ;;  %v4697_v15 = vld [vmem:[%s4644_s14 + $0x48] sm:$0xff]  ;;  %v676_v16 = vsel %vm657_vm0, %v4688_v12, 0.0  ;;  %v679_v17 = vsel %vm657_vm0, %v4691_v13, 0.0  ;;  %v4704_v18 = vld [vmem:[%s4644_s14 + $0x50] sm:$0xff] }
  0x76   : > { %v4707_v19 = vld [vmem:[%s4644_s14 + $0x58] sm:$0xff]  ;;  %v682_v20 = vsel %vm657_vm0, %v4694_v14, 0.0  ;;  %v685_v21 = vsel %vm657_vm0, %v4697_v15, 0.0  ;;  %v4714_v22 = vld [vmem:[%s4644_s14 + $0x60] sm:$0xff]  ;;  %v4717_v23 = vld [vmem:[%s4644_s14 + $0x68] sm:$0xff]  ;;  %v688_v24 = vsel %vm657_vm0, %v4704_v18, 0.0 }
  0x77   : > { %v691_v25 = vsel %vm657_vm0, %v4707_v19, 0.0  ;;  %v4724_v26 = vld [vmem:[%s4644_s14 + $0x70] sm:$0xff]  ;;  %v4727_v27 = vld [vmem:[%s4644_s14 + $0x78] sm:$0xff]  ;;  %v694_v28 = vsel %vm657_vm0, %v4714_v22, 0.0  ;;  %v697_v29 = vsel %vm657_vm0, %v4717_v23, 0.0  ;;  %v4734_v30 = vld [vmem:[%s4644_s14 + $0x80] sm:$0xff] }
  0x78   : > { %662 = vadd.xlane.f32.xlu0 %v661_v6  ;;  %668 = vadd.xlane.f32.xlu1 %v667_v7  ;;  %v4737_v31 = vld [vmem:[%s4644_s14 + $0x88] sm:$0xff]  ;;  %v4740_v32 = vld [vmem:[%s4644_s14 + $0x90] sm:$0xff]  ;;  %v4743_v33 = vld [vmem:[%s4644_s14 + $0x98] sm:$0xff]  ;;  %v700_v34 = vsel %vm657_vm0, %v4724_v26, 0.0  ;;  %v703_v35 = vsel %vm657_vm0, %v4727_v27, 0.0  ;;  %v706_v36 = vsel %vm657_vm0, %v4734_v30, 0.0 }
  0x79   : > { %v709_v37 = vsel %vm657_vm0, %v4737_v31, 0.0  ;;  %v712_v38 = vsel %vm657_vm0, %v4740_v32, 0.0  ;;  %v715_v39 = vsel %vm657_vm0, %v4743_v33, 0.0  ;;  %v4758_v40 = vld [vmem:[%s4644_s14 + $0xa0] sm:$0xff]  ;;  %v4761_v41 = vld [vmem:[%s4644_s14 + $0xa8] sm:$0xff]  ;;  %v4768_v44 = vld [vmem:[%s4644_s14 + $0xb0] sm:$0xff] }
  0x7a   : > { %v718_v42 = vsel %vm657_vm0, %v4758_v40, 0.0  ;;  %v721_v43 = vsel %vm657_vm0, %v4761_v41, 0.0  ;;  %v4771_v45 = vld [vmem:[%s4644_s14 + $0xb8] sm:$0xff]  ;;  %v724_v46 = vsel %vm657_vm0, %v4768_v44, 0.0  ;;  %v4778_v48 = vld [vmem:[%s4644_s14 + $0xc0] sm:$0xff]  ;;  %v4781_v49 = vld [vmem:[%s4644_s14 + $0xc8] sm:$0xff] }
  0x7b   : > { %v727_v47 = vsel %vm657_vm0, %v4771_v45, 0.0  ;;  %v730_v50 = vsel %vm657_vm0, %v4778_v48, 0.0  ;;  %v733_v51 = vsel %vm657_vm0, %v4781_v49, 0.0  ;;  %v4788_v52 = vld [vmem:[%s4644_s14 + $0xd0] sm:$0xff]  ;;  %v4791_v53 = vld [vmem:[%s4644_s14 + $0xd8] sm:$0xff]  ;;  %v4798_v56 = vld [vmem:[%s4644_s14 + $0xe0] sm:$0xff] }
  0x7c   : > { %671 = vadd.xlane.f32.xlu0 %v670_v10  ;;  %674 = vadd.xlane.f32.xlu1 %v673_v11  ;;  %v736_v54 = vsel %vm657_vm0, %v4788_v52, 0.0  ;;  %v739_v55 = vsel %vm657_vm0, %v4791_v53, 0.0  ;;  %v4801_v57 = vld [vmem:[%s4644_s14 + $0xe8] sm:$0xff]  ;;  %v742_v58 = vsel %vm657_vm0, %v4798_v56, 0.0  ;;  %v4808_v60 = vld [vmem:[%s4644_s14 + $0xf0] sm:$0xff]  ;;  %v4811_v61 = vld [vmem:[%s4644_s14 + $0xf8] sm:$0xff] }
  0x7d   : > { %v745_v59 = vsel %vm657_vm0, %v4801_v57, 0.0  ;;  %v748_v62 = vsel %vm657_vm0, %v4808_v60, 0.0  ;;  %v751_v63 = vsel %vm657_vm0, %v4811_v61, 0.0  ;;  %s6272_s0 = sld [smem:[#allocation16_spill]]  ;;  %s6274_s16 = sld [smem:[#allocation27_spill]]  ;;  %vm2979_vm3 = vcmask 523264  }
  0x7e   : > { %s6273_s6 = sld [smem:[#allocation28_spill]]  ;;  %s6275_s10 = sld [smem:[#allocation31_spill]] }
  0x7f   : > { %s6278_s29 = sld [smem:[#allocation29_spill]]  ;;  %s6280_s20 = sld [smem:[#allocation32_spill]] }
  0x80   : > { %677 = vadd.xlane.f32.xlu0 %v676_v16  ;;  %680 = vadd.xlane.f32.xlu1 %v679_v17  ;;  %p6284_p0 = scmp.ne.s32.totalorder %s6264_s13, 0 }
  0x83   : > { %s3283_s12 = sshll.u32 %s6272_s0, 7  ;;  %s3423_s8 = sshll.u32 %s6272_s0, 4 }
  0x84   : > { %683 = vadd.xlane.f32.xlu0 %v682_v20  ;;  %686 = vadd.xlane.f32.xlu1 %v685_v21  ;;  %s5480_s23 = scalar_lea.vmem %s4644_s14, %s3283_s12 [#allocation2]  ;;  %s6279_s12 = sld [smem:[#allocation30_spill]] }
  0x85   : > { %s6282_s14 = sld [smem:[#allocation17_spill]] }
  0x88   : > { %689 = vadd.xlane.f32.xlu0 %v688_v24  ;;  %692 = vadd.xlane.f32.xlu1 %v691_v25 }
  0x8b   : > { %s3424_s18 = sshll.u32 %s6282_s14, 5 }
  0x8c   : > { %695 = vadd.xlane.f32.xlu0 %v694_v28  ;;  %698 = vadd.xlane.f32.xlu1 %v697_v29  ;;  %s3146_s9 = sadd.s32 %s3424_s18, %s3423_s8 }
  0x8d   : > { %s3425_s27 = sshll.u32 %s3146_s9, 7 }
  0x90   : > { %701 = vadd.xlane.f32.xlu0 %v700_v34  ;;  %704 = vadd.xlane.f32.xlu1 %v703_v35 }
  0x94   : > { %707 = vadd.xlane.f32.xlu0 %v706_v36  ;;  %710 = vadd.xlane.f32.xlu1 %v709_v37 }
  0x98   : > { %713 = vadd.xlane.f32.xlu0 %v712_v38  ;;  %716 = vadd.xlane.f32.xlu1 %v715_v39 }
  0x9c   : > { %719 = vadd.xlane.f32.xlu0 %v718_v42  ;;  %722 = vadd.xlane.f32.xlu1 %v721_v43 }
  0xa0   : > { %725 = vadd.xlane.f32.xlu0 %v724_v46  ;;  %728 = vadd.xlane.f32.xlu1 %v727_v47 }
  0xa4   : > { %731 = vadd.xlane.f32.xlu0 %v730_v50  ;;  %734 = vadd.xlane.f32.xlu1 %v733_v51 }
  0xa8   : > { %737 = vadd.xlane.f32.xlu0 %v736_v54  ;;  %740 = vadd.xlane.f32.xlu1 %v739_v55 }
  0xac   : > { %743 = vadd.xlane.f32.xlu0 %v742_v58  ;;  %746 = vadd.xlane.f32.xlu1 %v745_v59 }
  0xb0   : > { %749 = vadd.xlane.f32.xlu0 %v748_v62  ;;  %752 = vadd.xlane.f32.xlu1 %v751_v63 }
 0x101   : > { %v660_v3 = vpop.xlane.xlu0 %659  ;;  %v666_v4 = vpop.xlane.xlu1 %665 }
 0x102   : > { %v755_v6 = vmul.f32 0.03125, %v660_v3  ;;  %v757_v7 = vmul.f32 0.03125, %v666_v4 }
 0x104   : > { %v4818_v10 = vsub.f32 %v4658_v0, %v755_v6  ;;  %v4821_v11 = vsub.f32 %v4661_v1, %v757_v7 }
 0x105   : > { %v663_v16 = vpop.xlane.xlu0 %662  ;;  %v669_v17 = vpop.xlane.xlu1 %668 }
 0x106   : > { %v756_v20 = vmul.f32 0.03125, %v663_v16  ;;  %v758_v21 = vmul.f32 0.03125, %v669_v17  ;;  %v819_v24 = vmul.f32 %v4818_v10, %v4818_v10  ;;  %v821_v25 = vmul.f32 %v4821_v11, %v4821_v11 }
 0x108   : > { %v4828_v28 = vsub.f32 %v4664_v2, %v756_v20  ;;  %v4831_v29 = vsub.f32 %v4671_v5, %v758_v21  ;;  %v851_v0 = vsel %vm657_vm0, %v819_v24, 0.0  ;;  %v857_v35 = vsel %vm657_vm0, %v821_v25, 0.0 }
 0x109   : > { %852 = vadd.xlane.f32.xlu0 %v851_v0  ;;  %v672_v1 = vpop.xlane.xlu0 %671  ;;  %v675_v34 = vpop.xlane.xlu1 %674 }
 0x10a   : > { %v759_v36 = vmul.f32 0.03125, %v672_v1  ;;  %v760_v37 = vmul.f32 0.03125, %v675_v34  ;;  %v820_v38 = vmul.f32 %v4828_v28, %v4828_v28  ;;  %v822_v39 = vmul.f32 %v4831_v29, %v4831_v29 }
 0x10c   : > { %v4840_v2 = vsub.f32 %v4678_v8, %v759_v36  ;;  %v4843_v5 = vsub.f32 %v4681_v9, %v760_v37  ;;  %v854_v42 = vsel %vm657_vm0, %v820_v38, 0.0  ;;  %v860_v47 = vsel %vm657_vm0, %v822_v39, 0.0 }
 0x10d   : > { %858 = vadd.xlane.f32.xlu0 %v857_v35  ;;  %855 = vadd.xlane.f32.xlu1 %v854_v42  ;;  %v678_v43 = vpop.xlane.xlu0 %677  ;;  %v681_v46 = vpop.xlane.xlu1 %680 }
 0x10e   : > { %v761_v50 = vmul.f32 0.03125, %v678_v43  ;;  %v762_v51 = vmul.f32 0.03125, %v681_v46  ;;  %v823_v54 = vmul.f32 %v4840_v2, %v4840_v2  ;;  %v824_v8 = vmul.f32 %v4843_v5, %v4843_v5 }
 0x110   : > { %v4852_v55 = vsub.f32 %v4688_v12, %v761_v50  ;;  %v4855_v9 = vsub.f32 %v4691_v13, %v762_v51  ;;  %v863_v58 = vsel %vm657_vm0, %v823_v54, 0.0  ;;  %v866_v63 = vsel %vm657_vm0, %v824_v8, 0.0 }
 0x111   : > { %861 = vadd.xlane.f32.xlu1 %v860_v47  ;;  %864 = vadd.xlane.f32.xlu0 %v863_v58  ;;  %v684_v59 = vpop.xlane.xlu0 %683  ;;  %v687_v62 = vpop.xlane.xlu1 %686 }
 0x112   : > { %v763_v3 = vmul.f32 0.03125, %v684_v59  ;;  %v764_v4 = vmul.f32 0.03125, %v687_v62  ;;  %v825_v6 = vmul.f32 %v4852_v55, %v4852_v55  ;;  %v826_v12 = vmul.f32 %v4855_v9, %v4855_v9 }
 0x114   : > { %v4864_v7 = vsub.f32 %v4694_v14, %v763_v3  ;;  %v4867_v13 = vsub.f32 %v4697_v15, %v764_v4  ;;  %v869_v16 = vsel %vm657_vm0, %v825_v6, 0.0  ;;  %v872_v21 = vsel %vm657_vm0, %v826_v12, 0.0 }
 0x115   : > { %867 = vadd.xlane.f32.xlu1 %v866_v63  ;;  %870 = vadd.xlane.f32.xlu0 %v869_v16  ;;  %v690_v17 = vpop.xlane.xlu0 %689  ;;  %v693_v20 = vpop.xlane.xlu1 %692 }
 0x116   : > { %v765_v24 = vmul.f32 0.03125, %v690_v17  ;;  %v766_v25 = vmul.f32 0.03125, %v693_v20  ;;  %v827_v0 = vmul.f32 %v4864_v7, %v4864_v7  ;;  %v828_v14 = vmul.f32 %v4867_v13, %v4867_v13 }
 0x118   : > { %v4876_v1 = vsub.f32 %v4704_v18, %v765_v24  ;;  %v4879_v15 = vsub.f32 %v4707_v19, %v766_v25  ;;  %v875_v34 = vsel %vm657_vm0, %v827_v0, 0.0  ;;  %v878_v37 = vsel %vm657_vm0, %v828_v14, 0.0 }
 0x119   : > { %873 = vadd.xlane.f32.xlu1 %v872_v21  ;;  %876 = vadd.xlane.f32.xlu0 %v875_v34  ;;  %v696_v35 = vpop.xlane.xlu0 %695  ;;  %v699_v36 = vpop.xlane.xlu1 %698 }
 0x11a   : > { %v767_v38 = vmul.f32 0.03125, %v696_v35  ;;  %v768_v39 = vmul.f32 0.03125, %v699_v36  ;;  %v829_v42 = vmul.f32 %v4876_v1, %v4876_v1  ;;  %v830_v18 = vmul.f32 %v4879_v15, %v4879_v15 }
 0x11c   : > { %v4888_v43 = vsub.f32 %v4714_v22, %v767_v38  ;;  %v4891_v19 = vsub.f32 %v4717_v23, %v768_v39  ;;  %v881_v46 = vsel %vm657_vm0, %v829_v42, 0.0  ;;  %v884_v51 = vsel %vm657_vm0, %v830_v18, 0.0 }
 0x11d   : > { %879 = vadd.xlane.f32.xlu1 %v878_v37  ;;  %882 = vadd.xlane.f32.xlu0 %v881_v46  ;;  %v702_v47 = vpop.xlane.xlu0 %701  ;;  %v705_v50 = vpop.xlane.xlu1 %704 }
 0x11e   : > { %v769_v54 = vmul.f32 0.03125, %v702_v47  ;;  %v770_v8 = vmul.f32 0.03125, %v705_v50  ;;  %v831_v58 = vmul.f32 %v4888_v43, %v4888_v43  ;;  %v832_v22 = vmul.f32 %v4891_v19, %v4891_v19 }
 0x120   : > { %v4900_v59 = vsub.f32 %v4724_v26, %v769_v54  ;;  %v4903_v23 = vsub.f32 %v4727_v27, %v770_v8  ;;  %v887_v62 = vsel %vm657_vm0, %v831_v58, 0.0  ;;  %v890_v4 = vsel %vm657_vm0, %v832_v22, 0.0 }
 0x121   : > { %885 = vadd.xlane.f32.xlu1 %v884_v51  ;;  %888 = vadd.xlane.f32.xlu0 %v887_v62  ;;  %v708_v63 = vpop.xlane.xlu0 %707  ;;  %v711_v3 = vpop.xlane.xlu1 %710 }
 0x122   : > { %v771_v6 = vmul.f32 0.03125, %v708_v63  ;;  %v772_v12 = vmul.f32 0.03125, %v711_v3  ;;  %v833_v16 = vmul.f32 %v4900_v59, %v4900_v59  ;;  %v834_v26 = vmul.f32 %v4903_v23, %v4903_v23 }
 0x124   : > { %v4912_v17 = vsub.f32 %v4734_v30, %v771_v6  ;;  %v4915_v27 = vsub.f32 %v4737_v31, %v772_v12  ;;  %v893_v20 = vsel %vm657_vm0, %v833_v16, 0.0  ;;  %v896_v25 = vsel %vm657_vm0, %v834_v26, 0.0 }
 0x125   : > { %891 = vadd.xlane.f32.xlu1 %v890_v4  ;;  %894 = vadd.xlane.f32.xlu0 %v893_v20  ;;  %v714_v21 = vpop.xlane.xlu0 %713  ;;  %v717_v24 = vpop.xlane.xlu1 %716 }
 0x126   : > { %v773_v0 = vmul.f32 0.03125, %v714_v21  ;;  %v774_v14 = vmul.f32 0.03125, %v717_v24  ;;  %v835_v34 = vmul.f32 %v4912_v17, %v4912_v17  ;;  %v836_v30 = vmul.f32 %v4915_v27, %v4915_v27 }
 0x128   : > { %v4924_v35 = vsub.f32 %v4740_v32, %v773_v0  ;;  %v4927_v31 = vsub.f32 %v4743_v33, %v774_v14  ;;  %v899_v36 = vsel %vm657_vm0, %v835_v34, 0.0  ;;  %v902_v39 = vsel %vm657_vm0, %v836_v30, 0.0 }
 0x129   : > { %897 = vadd.xlane.f32.xlu1 %v896_v25  ;;  %900 = vadd.xlane.f32.xlu0 %v899_v36  ;;  %v720_v37 = vpop.xlane.xlu0 %719  ;;  %v723_v38 = vpop.xlane.xlu1 %722 }
 0x12a   : > { %v775_v42 = vmul.f32 0.03125, %v720_v37  ;;  %v776_v18 = vmul.f32 0.03125, %v723_v38  ;;  %v837_v46 = vmul.f32 %v4924_v35, %v4924_v35  ;;  %v838_v32 = vmul.f32 %v4927_v31, %v4927_v31 }
 0x12c   : > { %v4936_v47 = vsub.f32 %v4758_v40, %v775_v42  ;;  %v4939_v33 = vsub.f32 %v4761_v41, %v776_v18  ;;  %v905_v50 = vsel %vm657_vm0, %v837_v46, 0.0  ;;  %v908_v8 = vsel %vm657_vm0, %v838_v32, 0.0 }
 0x12d   : > { %903 = vadd.xlane.f32.xlu1 %v902_v39  ;;  %906 = vadd.xlane.f32.xlu0 %v905_v50  ;;  %v726_v51 = vpop.xlane.xlu0 %725  ;;  %v729_v54 = vpop.xlane.xlu1 %728 }
 0x12e   : > { %v777_v58 = vmul.f32 0.03125, %v726_v51  ;;  %v778_v22 = vmul.f32 0.03125, %v729_v54  ;;  %v839_v62 = vmul.f32 %v4936_v47, %v4936_v47  ;;  %v840_v40 = vmul.f32 %v4939_v33, %v4939_v33 }
 0x130   : > { %v4948_v63 = vsub.f32 %v4768_v44, %v777_v58  ;;  %v4951_v41 = vsub.f32 %v4771_v45, %v778_v22  ;;  %v911_v3 = vsel %vm657_vm0, %v839_v62, 0.0  ;;  %v914_v12 = vsel %vm657_vm0, %v840_v40, 0.0 }
 0x131   : > { %909 = vadd.xlane.f32.xlu1 %v908_v8  ;;  %912 = vadd.xlane.f32.xlu0 %v911_v3  ;;  %v732_v4 = vpop.xlane.xlu0 %731  ;;  %v735_v6 = vpop.xlane.xlu1 %734 }
 0x132   : > { %v779_v16 = vmul.f32 0.03125, %v732_v4  ;;  %v780_v26 = vmul.f32 0.03125, %v735_v6  ;;  %v841_v20 = vmul.f32 %v4948_v63, %v4948_v63  ;;  %v842_v44 = vmul.f32 %v4951_v41, %v4951_v41 }
 0x134   : > { %v4960_v21 = vsub.f32 %v4778_v48, %v779_v16  ;;  %v4963_v45 = vsub.f32 %v4781_v49, %v780_v26  ;;  %v917_v24 = vsel %vm657_vm0, %v841_v20, 0.0  ;;  %v920_v14 = vsel %vm657_vm0, %v842_v44, 0.0  ;;  %v1223_v44 = vld [vmem:[%s6207_s3 + $0x8] sm:$0xff] }
 0x135   : > { %915 = vadd.xlane.f32.xlu1 %v914_v12  ;;  %918 = vadd.xlane.f32.xlu0 %v917_v24  ;;  %v738_v25 = vpop.xlane.xlu0 %737  ;;  %v741_v0 = vpop.xlane.xlu1 %740 }
 0x136   : > { %v781_v34 = vmul.f32 0.03125, %v738_v25  ;;  %v782_v30 = vmul.f32 0.03125, %v741_v0  ;;  %v843_v36 = vmul.f32 %v4960_v21, %v4960_v21  ;;  %v844_v48 = vmul.f32 %v4963_v45, %v4963_v45  ;;  %v1224_v0 = vld [vmem:[%s6207_s3 + $0x10] sm:$0xff] }
 0x137   : > { %v4348_v25 = vmov 0.0|0.0  }
 0x138   : > { %v4972_v37 = vsub.f32 %v4788_v52, %v781_v34  ;;  %v4975_v49 = vsub.f32 %v4791_v53, %v782_v30  ;;  %v923_v38 = vsel %vm657_vm0, %v843_v36, 0.0  ;;  %v926_v18 = vsel %vm657_vm0, %v844_v48, 0.0  ;;  %3776 = vmatprep.subr.bf16.mxu0 %v4348_v25  ;;  %v1301_v36 = vld [vmem:[%s6209_s5] sm:$0xff] }
 0x139   : > { %921 = vadd.xlane.f32.xlu1 %v920_v14  ;;  %924 = vadd.xlane.f32.xlu0 %v923_v38  ;;  %v744_v39 = vpop.xlane.xlu0 %743  ;;  %v747_v42 = vpop.xlane.xlu1 %746  ;;  %v1225_v14 = vld [vmem:[%s6207_s3 + $0x18] sm:$0xff]  ;;  %v4349_v30 = vmov 0.0  }
 0x13a   : > { %v783_v46 = vmul.f32 0.03125, %v744_v39  ;;  %v784_v32 = vmul.f32 0.03125, %v747_v42  ;;  %v845_v50 = vmul.f32 %v4972_v37, %v4972_v37  ;;  %v846_v52 = vmul.f32 %v4975_v49, %v4975_v49  ;;  %3727 = vmatprep.subr.mxu1 %v4349_v30  ;;  %3724 = vmatprep.mubr.msk.f32.mxu0 %vm4350_vm1, %v4349_v30 }
 0x13b   : > { %v3780_v34 = vpack.c.bf16 %v1225_v14, %v1224_v0  ;;  %3728 = vmatpush3.msra.mxu1 %v1301_v36  ;;  %3729 = vmatprep.mubr.msk.f32.mxu1 %vm4350_vm1, %v4349_v30 }
 0x13c   : > { %v4984_v51 = vsub.f32 %v4798_v56, %v783_v46  ;;  %v4987_v53 = vsub.f32 %v4801_v57, %v784_v32  ;;  %v929_v54 = vsel %vm657_vm0, %v845_v50, 0.0  ;;  %v932_v22 = vsel %vm657_vm0, %v846_v52, 0.0 }
 0x13d   : > { %927 = vadd.xlane.f32.xlu1 %v926_v18  ;;  %930 = vadd.xlane.f32.xlu0 %v929_v54  ;;  %v750_v8 = vpop.xlane.xlu0 %749  ;;  %v753_v58 = vpop.xlane.xlu1 %752 }
 0x13e   : > { %v785_v62 = vmul.f32 0.03125, %v750_v8  ;;  %v786_v40 = vmul.f32 0.03125, %v753_v58  ;;  %v847_v3 = vmul.f32 %v4984_v51, %v4984_v51  ;;  %v848_v56 = vmul.f32 %v4987_v53, %v4987_v53 }
 0x140   : > { %v4996_v4 = vsub.f32 %v4808_v60, %v785_v62  ;;  %v4999_v57 = vsub.f32 %v4811_v61, %v786_v40  ;;  %v935_v6 = vsel %vm657_vm0, %v847_v3, 0.0  ;;  %v938_v12 = vsel %vm657_vm0, %v848_v56, 0.0  ;;  %v1222_v61 = vld [vmem:[%s6207_s3] sm:$0xff] }
 0x141   : > { %933 = vadd.xlane.f32.xlu1 %v932_v22  ;;  %936 = vadd.xlane.f32.xlu0 %v935_v6  ;;  %v3777_v24 = vpack.c.bf16 %v1223_v44, %v1222_v61 }
 0x142   : > { %v849_v16 = vmul.f32 %v4996_v4, %v4996_v4  ;;  %v850_v26 = vmul.f32 %v4999_v57, %v4999_v57 }
 0x143   : > { %3778 = vmatpush3.bf16.msra.mxu0 %v3777_v24 }
 0x144   : > { %v941_v20 = vsel %vm657_vm0, %v849_v16, 0.0  ;;  %v944_v60 = vsel %vm657_vm0, %v850_v26, 0.0  ;;  %3779 = vmatprep.subr.bf16.mxu0 %v4348_v25  ;;  %v5027_v26 = vld [vmem:[%s6205_s1] ss:$0 sm:$0xff] }
 0x145   : > { %939 = vadd.xlane.f32.xlu1 %v938_v12  ;;  %942 = vadd.xlane.f32.xlu0 %v941_v20  ;;  %v5033_v25 = vld [vmem:[%s6206_s2] ss:$0 sm:$0xff] }
 0x147   : > { %3781 = vmatpush3.bf16.msra.mxu0 %v3780_v34 }
 0x149   : > { %945 = vadd.xlane.f32.xlu1 %v944_v60 }
 0x196   : > { %v853_v48 = vpop.xlane.xlu0 %852 }
 0x197   : > { %v947_v38 = vmul.f32 0.03125, %v853_v48 }
 0x199   : > { %v979_v39 = vadd.f32 1e-05, %v947_v38 }
 0x19a   : > { %v856_v42 = vpop.xlane.xlu1 %855  ;;  %v859_v18 = vpop.xlane.xlu0 %858 }
 0x19b   : > { %4027 = vrsqrt.f32 %v979_v39  ;;  %v948_v46 = vmul.f32 0.03125, %v856_v42  ;;  %v949_v32 = vmul.f32 0.03125, %v859_v18 }
 0x19d   : > { %v980_v50 = vadd.f32 1e-05, %v948_v46  ;;  %v981_v52 = vadd.f32 1e-05, %v949_v32 }
 0x19e   : > { %v862_v54 = vpop.xlane.xlu1 %861  ;;  %v865_v8 = vpop.xlane.xlu0 %864 }
 0x19f   : > { %4029 = vrsqrt.f32 %v980_v50  ;;  %v950_v58 = vmul.f32 0.03125, %v862_v54  ;;  %v951_v22 = vmul.f32 0.03125, %v865_v8 }
 0x1a0   : > { %4031 = vrsqrt.f32 %v981_v52 }
 0x1a1   : > { %v982_v62 = vadd.f32 1e-05, %v950_v58  ;;  %v983_v40 = vadd.f32 1e-05, %v951_v22 }
 0x1a2   : > { %v868_v3 = vpop.xlane.xlu1 %867  ;;  %v871_v56 = vpop.xlane.xlu0 %870 }
 0x1a3   : > { %4033 = vrsqrt.f32 %v982_v62  ;;  %v952_v6 = vmul.f32 0.03125, %v868_v3  ;;  %v953_v12 = vmul.f32 0.03125, %v871_v56 }
 0x1a4   : > { %4035 = vrsqrt.f32 %v983_v40 }
 0x1a5   : > { %v4028_v16 = vpop.eup %4027  ;;  %v984_v20 = vadd.f32 1e-05, %v952_v6  ;;  %v985_v60 = vadd.f32 1e-05, %v953_v12 }
 0x1a6   : > { %v1043_v61 = vmul.f32 %v4028_v16, %v4818_v10  ;;  %v874_v44 = vpop.xlane.xlu1 %873  ;;  %v877_v24 = vpop.xlane.xlu0 %876 }
 0x1a7   : > { %4037 = vrsqrt.f32 %v984_v20  ;;  %v954_v0 = vmul.f32 0.03125, %v874_v44  ;;  %v955_v14 = vmul.f32 0.03125, %v877_v24 }
 0x1a8   : > { %v1081_v34 = vmul.f32 %v5027_v26, %v1043_v61  ;;  %4039 = vrsqrt.f32 %v985_v60 }
 0x1a9   : > { %v4030_v30 = vpop.eup %4029  ;;  %v986_v36 = vadd.f32 1e-05, %v954_v0  ;;  %v987_v48 = vadd.f32 1e-05, %v955_v14 }
 0x1aa   : > { %v4032_v38 = vpop.eup %4031  ;;  %v1119_v39 = vadd.f32 %v5033_v25, %v1081_v34  ;;  %v1044_v10 = vmul.f32 %v4030_v30, %v4828_v28  ;;  %v880_v42 = vpop.xlane.xlu1 %879 }
 0x1ab   : > { %v883_v18 = vpop.xlane.xlu0 %882  ;;  %v1045_v46 = vmul.f32 %v4032_v38, %v4821_v11  ;;  %4041 = vrsqrt.f32 %v986_v36  ;;  %v956_v32 = vmul.f32 0.03125, %v880_v42 }
 0x1ac   : > { %v957_v50 = vmul.f32 0.03125, %v883_v18  ;;  %v1082_v52 = vmul.f32 %v5027_v26, %v1044_v10  ;;  %4043 = vrsqrt.f32 %v987_v48  ;;  %v1151_v40 = vsel %vm657_vm0, %v1119_v39, 0.0 }
 0x1ad   : > { %v4034_v54 = vpop.eup %4033  ;;  %v1083_v8 = vmul.f32 %v5027_v26, %v1045_v46  ;;  %v988_v58 = vadd.f32 1e-05, %v956_v32 }
 0x1ae   : > { %v989_v22 = vadd.f32 1e-05, %v957_v50  ;;  %v4036_v62 = vpop.eup %4035  ;;  %v1120_v28 = vadd.f32 %v5033_v25, %v1082_v52  ;;  %v1046_v3 = vmul.f32 %v4034_v54, %v4831_v29  ;;  %v886_v56 = vpop.xlane.xlu1 %885 }
 0x1af   : > { %v889_v11 = vpop.xlane.xlu0 %888  ;;  %v1121_v6 = vadd.f32 %v5033_v25, %v1083_v8  ;;  %v1047_v12 = vmul.f32 %v4036_v62, %v4840_v2  ;;  %4045 = vrsqrt.f32 %v988_v58  ;;  %v958_v16 = vmul.f32 0.03125, %v886_v56 }
 0x1b0   : > { %v1152_v20 = vsel %vm657_vm0, %v1120_v28, 0.0  ;;  %v1084_v60 = vmul.f32 %v5027_v26, %v1046_v3  ;;  %4047 = vrsqrt.f32 %v989_v22  ;;  %v959_v61 = vmul.f32 0.03125, %v889_v11 }
 0x1b1   : > { %v4038_v44 = vpop.eup %4037  ;;  %v1153_v24 = vadd.f32 %v1152_v20, %v1151_v40  ;;  %v1154_v0 = vsel %vm657_vm0, %v1121_v6, 0.0  ;;  %v1085_v29 = vmul.f32 %v5027_v26, %v1047_v12  ;;  %v990_v14 = vadd.f32 1e-05, %v958_v16 }
 0x1b2   : > { %v4040_v34 = vpop.eup %4039  ;;  %v1122_v30 = vadd.f32 %v5033_v25, %v1084_v60  ;;  %v1048_v2 = vmul.f32 %v4038_v44, %v4843_v5  ;;  %v991_v36 = vadd.f32 1e-05, %v959_v61  ;;  %v892_v48 = vpop.xlane.xlu1 %891  ;;  %v5052_v10 = vpack.c.bf16 %v1120_v28, %v1119_v39 }
 0x1b3   : > { %v895_v38 = vpop.xlane.xlu0 %894  ;;  %v1155_v42 = vadd.f32 %v1154_v0, %v1153_v24  ;;  %v5055_v18 = vadd.f32 %v5033_v25, %v1085_v29  ;;  %v1049_v46 = vmul.f32 %v4040_v34, %v4852_v55  ;;  %4049 = vrsqrt.f32 %v990_v14 }
 0x1b4   : > { %v1156_v32 = vsel %vm657_vm0, %v1122_v30, 0.0  ;;  %v1086_v50 = vmul.f32 %v5027_v26, %v1048_v2  ;;  %4051 = vrsqrt.f32 %v991_v36  ;;  %v960_v52 = vmul.f32 0.03125, %v892_v48 }
 0x1b5   : > { %v4042_v54 = vpop.eup %4041  ;;  %v1157_v5 = vadd.f32 %v1156_v32, %v1155_v42  ;;  %v1158_v8 = vsel %vm657_vm0, %v5055_v18, 0.0  ;;  %v1087_v39 = vmul.f32 %v5027_v26, %v1049_v46  ;;  %v961_v58 = vmul.f32 0.03125, %v895_v38 }
 0x1b6   : > { %v4044_v22 = vpop.eup %4043  ;;  %v5064_v62 = vadd.f32 %v5033_v25, %v1086_v50  ;;  %v1050_v55 = vmul.f32 %v4042_v54, %v4855_v9  ;;  %v992_v40 = vadd.f32 1e-05, %v960_v52  ;;  %v898_v28 = vpop.xlane.xlu1 %897  ;;  %v5067_v56 = vpack.c.bf16 %v1122_v30, %v1121_v6 }
 0x1b7   : > { %v901_v3 = vpop.xlane.xlu0 %900  ;;  %v1159_v11 = vadd.f32 %v1158_v8, %v1157_v5  ;;  %v5070_v12 = vadd.f32 %v5033_v25, %v1087_v39  ;;  %v1051_v16 = vmul.f32 %v4044_v22, %v4864_v7  ;;  %v993_v20 = vadd.f32 1e-05, %v961_v58 }
 0x1b8   : > { %v1160_v60 = vsel %vm657_vm0, %v5064_v62, 0.0  ;;  %v1088_v61 = vmul.f32 %v5027_v26, %v1050_v55  ;;  %4053 = vrsqrt.f32 %v992_v40  ;;  %v962_v44 = vmul.f32 0.03125, %v898_v28 }
 0x1b9   : > { %v4046_v9 = vpop.eup %4045  ;;  %v1161_v24 = vadd.f32 %v1160_v60, %v1159_v11  ;;  %v1162_v6 = vsel %vm657_vm0, %v5070_v12, 0.0  ;;  %v1089_v0 = vmul.f32 %v5027_v26, %v1051_v16  ;;  %4055 = vrsqrt.f32 %v993_v20 }
 0x1ba   : > { %v4048_v29 = vpop.eup %4047  ;;  %v5080_v14 = vadd.f32 %v5033_v25, %v1088_v61  ;;  %v1052_v7 = vmul.f32 %v4046_v9, %v4867_v13  ;;  %v994_v34 = vadd.f32 1e-05, %v962_v44  ;;  %v963_v30 = vmul.f32 0.03125, %v901_v3  ;;  %v904_v2 = vpop.xlane.xlu1 %903 }
 0x1bb   : > { %v907_v36 = vpop.xlane.xlu0 %906  ;;  %v1163_v48 = vadd.f32 %v1162_v6, %v1161_v24  ;;  %v5084_v38 = vadd.f32 %v5033_v25, %v1089_v0  ;;  %v1053_v42 = vmul.f32 %v4048_v29, %v4876_v1  ;;  %v964_v46 = vmul.f32 0.03125, %v904_v2 }
 0x1bc   : > { %v1164_v32 = vsel %vm657_vm0, %v5080_v14, 0.0  ;;  %v1090_v50 = vmul.f32 %v5027_v26, %v1052_v7  ;;  %4057 = vrsqrt.f32 %v994_v34  ;;  %v995_v52 = vadd.f32 1e-05, %v963_v30 }
 0x1bd   : > { %v4050_v54 = vpop.eup %4049  ;;  %v1165_v13 = vadd.f32 %v1164_v32, %v1163_v48  ;;  %v1166_v5 = vsel %vm657_vm0, %v5084_v38, 0.0  ;;  %v1091_v8 = vmul.f32 %v5027_v26, %v1053_v42  ;;  %v996_v39 = vadd.f32 1e-05, %v964_v46 }
 0x1be   : > { %v4052_v58 = vpop.eup %4051  ;;  %v5094_v22 = vadd.f32 %v5033_v25, %v1090_v50  ;;  %v1054_v1 = vmul.f32 %v4050_v54, %v4879_v15  ;;  %4059 = vrsqrt.f32 %v995_v52  ;;  %v965_v55 = vmul.f32 0.03125, %v907_v36  ;;  %v910_v40 = vpop.xlane.xlu1 %909 }
 0x1bf   : > { %v913_v28 = vpop.xlane.xlu0 %912  ;;  %v1167_v3 = vadd.f32 %v1166_v5, %v1165_v13  ;;  %v5098_v11 = vadd.f32 %v5033_v25, %v1091_v8  ;;  %v1055_v16 = vmul.f32 %v4052_v58, %v4888_v43  ;;  %4061 = vrsqrt.f32 %v996_v39 }
 0x1c0   : > { %v1168_v20 = vsel %vm657_vm0, %v5094_v22, 0.0  ;;  %v1092_v60 = vmul.f32 %v5027_v26, %v1054_v1  ;;  %v997_v61 = vadd.f32 1e-05, %v965_v55  ;;  %v966_v44 = vmul.f32 0.03125, %v910_v40 }
 0x1c1   : > { %v1169_v9 = vadd.f32 %v1168_v20, %v1167_v3  ;;  %v1170_v15 = vsel %vm657_vm0, %v5098_v11, 0.0  ;;  %v1093_v24 = vmul.f32 %v5027_v26, %v1055_v16  ;;  %v967_v6 = vmul.f32 0.03125, %v913_v28 }
 0x1c2   : > { %v4054_v0 = vpop.eup %4053  ;;  %v5108_v29 = vadd.f32 %v5033_v25, %v1092_v60  ;;  %4063 = vrsqrt.f32 %v997_v61  ;;  %v998_v43 = vadd.f32 1e-05, %v966_v44  ;;  %v916_v7 = vpop.xlane.xlu1 %915  ;;  %v5112_v30 = vpack.c.bf16 %v5064_v62, %v5055_v18 }
 0x1c3   : > { %v919_v34 = vpop.xlane.xlu0 %918  ;;  %v4056_v2 = vpop.eup %4055  ;;  %v1171_v36 = vadd.f32 %v1170_v15, %v1169_v9  ;;  %v5115_v48 = vadd.f32 %v5033_v25, %v1093_v24  ;;  %v1056_v42 = vmul.f32 %v4054_v0, %v4891_v19  ;;  %v999_v46 = vadd.f32 1e-05, %v967_v6 }
 0x1c4   : > { %v1172_v32 = vsel %vm657_vm0, %v5108_v29, 0.0  ;;  %v1057_v50 = vmul.f32 %v4056_v2, %v4900_v59  ;;  %4065 = vrsqrt.f32 %v998_v43  ;;  %v968_v52 = vmul.f32 0.03125, %v916_v7 }
 0x1c5   : > { %v1173_v54 = vadd.f32 %v1172_v32, %v1171_v36  ;;  %v1174_v18 = vsel %vm657_vm0, %v5115_v48, 0.0  ;;  %v1094_v62 = vmul.f32 %v5027_v26, %v1056_v42  ;;  %4067 = vrsqrt.f32 %v999_v46 }
 0x1c6   : > { %v4058_v13 = vpop.eup %4057  ;;  %v1095_v5 = vmul.f32 %v5027_v26, %v1057_v50  ;;  %v1000_v8 = vadd.f32 1e-05, %v968_v52  ;;  %v969_v19 = vmul.f32 0.03125, %v919_v34  ;;  %v922_v39 = vpop.xlane.xlu1 %921  ;;  %v5127_v1 = vpack.c.bf16 %v5080_v14, %v5070_v12 }
 0x1c7   : > { %v925_v58 = vpop.xlane.xlu0 %924  ;;  %v1175_v59 = vadd.f32 %v1174_v18, %v1173_v54  ;;  %v5130_v55 = vadd.f32 %v5033_v25, %v1094_v62  ;;  %v1058_v40 = vmul.f32 %v4058_v13, %v4903_v23  ;;  %v970_v28 = vmul.f32 0.03125, %v922_v39 }
 0x1c8   : > { %v4060_v3 = vpop.eup %4059  ;;  %v5134_v16 = vadd.f32 %v5033_v25, %v1095_v5  ;;  %4069 = vrsqrt.f32 %v1000_v8  ;;  %v1001_v20 = vadd.f32 1e-05, %v969_v19  ;;  %v971_v60 = vmul.f32 0.03125, %v925_v58 }
 0x1c9   : > { %v4062_v61 = vpop.eup %4061  ;;  %v1176_v44 = vsel %vm657_vm0, %v5130_v55, 0.0  ;;  %v1096_v12 = vmul.f32 %v5027_v26, %v1058_v40  ;;  %v1059_v14 = vmul.f32 %v4060_v3, %v4912_v17  ;;  %v1002_v9 = vadd.f32 1e-05, %v970_v28 }
 0x1ca   : > { %v1060_v15 = vmul.f32 %v4062_v61, %v4915_v27  ;;  %4071 = vrsqrt.f32 %v1001_v20  ;;  %v1003_v23 = vadd.f32 1e-05, %v971_v60  ;;  %v928_v24 = vpop.xlane.xlu1 %927  ;;  %v1177_v0 = vadd.f32 %v1176_v44, %v1175_v59 }
 0x1cb   : > { %v931_v6 = vpop.xlane.xlu0 %930  ;;  %v5142_v43 = vadd.f32 %v5033_v25, %v1096_v12  ;;  %4073 = vrsqrt.f32 %v1002_v9  ;;  %v972_v7 = vmul.f32 0.03125, %v928_v24  ;;  %v1097_v36 = vmul.f32 %v5027_v26, %v1059_v14 }
 0x1cc   : > { %v973_v34 = vmul.f32 0.03125, %v931_v6  ;;  %v4064_v2 = vpop.eup %4063  ;;  %4075 = vrsqrt.f32 %v1003_v23  ;;  %v1098_v17 = vmul.f32 %v5027_v26, %v1060_v15  ;;  %v1178_v27 = vsel %vm657_vm0, %v5134_v16, 0.0 }
 0x1cd   : > { %v1061_v42 = vmul.f32 %v4064_v2, %v4924_v35  ;;  %v1004_v46 = vadd.f32 1e-05, %v972_v7  ;;  %v1179_v50 = vadd.f32 %v1178_v27, %v1177_v0  ;;  %v1135_v62 = vadd.f32 %v5033_v25, %v1097_v36 }
 0x1ce   : > { %v1005_v32 = vadd.f32 1e-05, %v973_v34  ;;  %v4066_v52 = vpop.eup %4065  ;;  %v934_v54 = vpop.xlane.xlu1 %933  ;;  %v1136_v13 = vadd.f32 %v5033_v25, %v1098_v17  ;;  %v1180_v5 = vsel %vm657_vm0, %v5142_v43, 0.0  ;;  %v5155_v8 = vpack.c.bf16 %v5094_v22, %v5084_v38 }
 0x1cf   : > { %v937_v18 = vpop.xlane.xlu0 %936  ;;  %v4068_v19 = vpop.eup %4067  ;;  %v1099_v35 = vmul.f32 %v5027_v26, %v1061_v42  ;;  %v1062_v39 = vmul.f32 %v4066_v52, %v4927_v31  ;;  %4077 = vrsqrt.f32 %v1004_v46  ;;  %v974_v58 = vmul.f32 0.03125, %v934_v54 }
 0x1d0   : > { %v1063_v59 = vmul.f32 %v4068_v19, %v4936_v47  ;;  %4079 = vrsqrt.f32 %v1005_v32  ;;  %v975_v40 = vmul.f32 0.03125, %v937_v18  ;;  %v1181_v28 = vadd.f32 %v1180_v5, %v1179_v50 }
 0x1d1   : > { %v5161_v3 = vadd.f32 %v5033_v25, %v1099_v35  ;;  %v1100_v20 = vmul.f32 %v5027_v26, %v1062_v39  ;;  %v1006_v60 = vadd.f32 1e-05, %v974_v58  ;;  %v1182_v38 = vsel %vm657_vm0, %v1135_v62, 0.0 }
 0x1d2   : > { %v4070_v22 = vpop.eup %4069  ;;  %v1101_v61 = vmul.f32 %v5027_v26, %v1063_v59  ;;  %v1007_v44 = vadd.f32 1e-05, %v975_v40  ;;  %v940_v31 = vpop.xlane.xlu1 %939  ;;  %v1183_v12 = vadd.f32 %v1182_v38, %v1181_v28  ;;  %v1184_v14 = vsel %vm657_vm0, %v1136_v13, 0.0 }
 0x1d3   : > { %v5168_v47 = vadd.f32 %v5033_v25, %v1100_v20  ;;  %v1064_v9 = vmul.f32 %v4070_v22, %v4939_v33  ;;  %4081 = vrsqrt.f32 %v1006_v60  ;;  %v976_v15 = vmul.f32 0.03125, %v940_v31  ;;  %v943_v17 = vpop.xlane.xlu0 %942 }
 0x1d4   : > { %v4072_v23 = vpop.eup %4071  ;;  %v5172_v24 = vadd.f32 %v5033_v25, %v1101_v61  ;;  %4083 = vrsqrt.f32 %v1007_v44  ;;  %v1185_v6 = vadd.f32 %v1184_v14, %v1183_v12  ;;  %v1186_v0 = vsel %vm657_vm0, %v5161_v3, 0.0 }
 0x1d5   : > { %v4074_v7 = vpop.eup %4073  ;;  %v1102_v34 = vmul.f32 %v5027_v26, %v1064_v9  ;;  %v1065_v2 = vmul.f32 %v4072_v23, %v4948_v63  ;;  %v1008_v36 = vadd.f32 1e-05, %v976_v15  ;;  %v1188_v33 = vsel %vm657_vm0, %v5168_v47, 0.0 }
 0x1d6   : > { %v4076_v27 = vpop.eup %4075  ;;  %v1066_v42 = vmul.f32 %v4074_v7, %v4951_v41  ;;  %v1187_v46 = vadd.f32 %v1186_v0, %v1185_v6  ;;  %v5181_v32 = vpack.c.bf16 %v1136_v13, %v1135_v62  ;;  %v946_v50 = vpop.xlane.xlu1 %945  ;;  %v977_v41 = vmul.f32 0.03125, %v943_v17 }
 0x1d7   : > { %v5184_v52 = vadd.f32 %v5033_v25, %v1102_v34  ;;  %v1103_v54 = vmul.f32 %v5027_v26, %v1065_v2  ;;  %v1067_v18 = vmul.f32 %v4076_v27, %v4960_v21  ;;  %4085 = vrsqrt.f32 %v1008_v36 }
 0x1d8   : > { %v1104_v63 = vmul.f32 %v5027_v26, %v1066_v42  ;;  %v1189_v5 = vadd.f32 %v1188_v33, %v1187_v46  ;;  %3438 = vmatprep.subr.bf16.mxu1 %v5181_v32  ;;  %3502 = vmatprep.subr.bf16.mxu0 %v5181_v32  ;;  %v978_v19 = vmul.f32 0.03125, %v946_v50  ;;  %v1190_v13 = vsel %vm657_vm0, %v5172_v24, 0.0 }
 0x1d9   : > { %v4078_v62 = vpop.eup %4077  ;;  %v1192_v35 = vsel %vm657_vm0, %v5184_v52, 0.0  ;;  %v5196_v39 = vadd.f32 %v5033_v25, %v1103_v54  ;;  %v1105_v21 = vmul.f32 %v5027_v26, %v1067_v18  ;;  %v1009_v20 = vadd.f32 1e-05, %v977_v41 }
 0x1da   : > { %v4080_v58 = vpop.eup %4079  ;;  %v5200_v59 = vadd.f32 %v5033_v25, %v1104_v63  ;;  %v1068_v40 = vmul.f32 %v4078_v62, %v4963_v45  ;;  %v1191_v28 = vadd.f32 %v1190_v13, %v1189_v5  ;;  %v1010_v38 = vadd.f32 1e-05, %v978_v19 }
 0x1db   : > { %v1069_v60 = vmul.f32 %v4080_v58, %v4972_v37  ;;  %v5205_v22 = vadd.f32 %v5033_v25, %v1105_v21  ;;  %4087 = vrsqrt.f32 %v1009_v20  ;;  %v1194_v12 = vsel %vm657_vm0, %v5196_v39, 0.0 }
 0x1dc   : > { %v1106_v61 = vmul.f32 %v5027_v26, %v1068_v40  ;;  %v1193_v44 = vadd.f32 %v1192_v35, %v1191_v28  ;;  %v1196_v14 = vsel %vm657_vm0, %v5200_v59, 0.0  ;;  %4089 = vrsqrt.f32 %v1010_v38 }
 0x1dd   : > { %v4082_v31 = vpop.eup %4081  ;;  %v1107_v45 = vmul.f32 %v5027_v26, %v1069_v60  ;;  %v5218_v0 = vpack.c.bf16 %v5108_v29, %v5098_v11  ;;  %v5222_v7 = vpack.c.bf16 %v5130_v55, %v5115_v48  ;;  %v1198_v34 = vsel %vm657_vm0, %v5205_v22, 0.0 }
 0x1de   : > { %v4084_v9 = vpop.eup %4083  ;;  %v1144_v37 = vadd.f32 %v5033_v25, %v1106_v61  ;;  %v1070_v15 = vmul.f32 %v4082_v31, %v4975_v49  ;;  %v1195_v23 = vadd.f32 %v1194_v12, %v1193_v44  ;;  %v5232_v11 = vpack.c.bf16 %v5142_v43, %v5134_v16 }
 0x1df   : > { %v1071_v6 = vmul.f32 %v4084_v9, %v4984_v51  ;;  %v1145_v17 = vadd.f32 %v5033_v25, %v1107_v45  ;;  %v3927_v45 = vld [vmem:[%s4651_s15 + $0x84] ss:$8 sps:$4 sm:$0xff]   ;;  %v5261_v9 = vpack.c.bf16 %v5184_v52, %v5172_v24 }
 0x1e0   : > { %v1108_v2 = vmul.f32 %v5027_v26, %v1070_v15  ;;  %v1197_v36 = vadd.f32 %v1196_v14, %v1195_v23  ;;  %v1200_v49 = vsel %vm657_vm0, %v1144_v37, 0.0  ;;  %v5267_v15 = vpack.c.bf16 %v5200_v59, %v5196_v39  ;;  %v3925_v39 = vld [vmem:[%s4651_s15 + $0x80] ss:$8 sps:$4 sm:$0xff]   ;;  %v3928_v59 = vld [vmem:[%s4651_s15 + $0x94] ss:$8 sps:$4 sm:$0xff]  }
 0x1e1   : > { %v4086_v33 = vpop.eup %4085  ;;  %v1109_v51 = vmul.f32 %v5027_v26, %v1071_v6  ;;  %v1202_v46 = vsel %vm657_vm0, %v1145_v17, 0.0  ;;  %v3933_v23 = vld [vmem:[%s4651_s15 + $0xa0] ss:$8 sps:$4 sm:$0xff]   ;;  %v3934_v6 = vld [vmem:[%s4651_s15 + $0xb4] ss:$8 sps:$4 sm:$0xff]  }
 0x1e2   : > { %v1146_v29 = vadd.f32 %v5033_v25, %v1108_v2  ;;  %v1072_v48 = vmul.f32 %v4086_v33, %v4987_v53  ;;  %v1199_v55 = vadd.f32 %v1198_v34, %v1197_v36  ;;  %v3936_v34 = vld [vmem:[%s4651_s15 + $0xb0] ss:$8 sps:$4 sm:$0xff]   ;;  %v3937_v2 = vld [vmem:[%s4651_s15 + $0xc4] ss:$8 sps:$4 sm:$0xff]   ;;  %v3939_v36 = vld [vmem:[%s4651_s15 + $0xc0] ss:$8 sps:$4 sm:$0xff]  }
 0x1e3   : > { %v1147_v54 = vadd.f32 %v5033_v25, %v1109_v51  ;;  %v3940_v33 = vld [vmem:[%s4651_s15 + $0xd4] ss:$8 sps:$4 sm:$0xff]   ;;  %v3945_v51 = vld [vmem:[%s4651_s15 + $0xe0] ss:$8 sps:$4 sm:$0xff]  }
 0x1e4   : > { %v1110_v27 = vmul.f32 %v5027_v26, %v1072_v48  ;;  %v1201_v42 = vadd.f32 %v1200_v49, %v1199_v55  ;;  %v1204_v50 = vsel %vm657_vm0, %v1146_v29, 0.0  ;;  %v3942_v49 = vld [vmem:[%s4651_s15 + $0xd0] ss:$8 sps:$4 sm:$0xff]   ;;  %v3951_v55 = vld [vmem:[%s4651_s15 + $0x184] ss:$8 sps:$4 sm:$0xff]  }
 0x1e5   : > { %v4088_v18 = vpop.eup %4087  ;;  %v1206_v19 = vsel %vm657_vm0, %v1147_v54, 0.0  ;;  %v3948_v48 = vld [vmem:[%s4651_s15 + $0xf0] ss:$8 sps:$4 sm:$0xff]  }
 0x1e6   : > { %v1148_v63 = vadd.f32 %v5033_v25, %v1110_v27  ;;  %v1203_v5 = vadd.f32 %v1202_v46, %v1201_v42  ;;  %v4090_v16 = vpop.eup %4089  ;;  %v1073_v43 = vmul.f32 %v4088_v18, %v4996_v4  ;;  %v3949_v27 = vld [vmem:[%s4651_s15 + $0x180] ss:$8 sps:$4 sm:$0xff]   ;;  %v3952_v42 = vld [vmem:[%s4651_s15 + $0x194] ss:$8 sps:$4 sm:$0xff]   ;;  %v3954_v46 = vld [vmem:[%s4651_s15 + $0x190] ss:$8 sps:$4 sm:$0xff]  }
 0x1e7   : > { %v1074_v41 = vmul.f32 %v4090_v16, %v4999_v57  ;;  %v3958_v18 = vld [vmem:[%s4651_s15 + $0x1b4] ss:$8 sps:$4 sm:$0xff]   ;;  %v3963_v16 = vld [vmem:[%s4651_s15 + $0x1c0] ss:$8 sps:$4 sm:$0xff]  }
 0x1e8   : > { %v1205_v53 = vadd.f32 %v1204_v50, %v1203_v5  ;;  %v1208_v62 = vsel %vm657_vm0, %v1148_v63, 0.0  ;;  %v1111_v13 = vmul.f32 %v5027_v26, %v1073_v43  ;;  %v5280_v24 = vpack.c.bf16 %v1148_v63, %v1147_v54  ;;  %v3955_v50 = vld [vmem:[%s4651_s15 + $0x1a4] ss:$8 sps:$4 sm:$0xff]   ;;  %v3957_v54 = vld [vmem:[%s4651_s15 + $0x1a0] ss:$8 sps:$4 sm:$0xff]  }
 0x1e9   : > { %v1112_v35 = vmul.f32 %v5027_v26, %v1074_v41  ;;  %v3960_v63 = vld [vmem:[%s4651_s15 + $0x1b0] ss:$8 sps:$4 sm:$0xff]   ;;  %v3961_v5 = vld [vmem:[%s4651_s15 + $0x1c4] ss:$8 sps:$4 sm:$0xff]   ;;  %v3964_v43 = vld [vmem:[%s4651_s15 + $0x1d4] ss:$8 sps:$4 sm:$0xff]  }
 0x1ea   : > { %v1207_v21 = vadd.f32 %v1206_v19, %v1205_v53  ;;  %v1149_v58 = vadd.f32 %v5033_v25, %v1111_v13  ;;  %v3966_v41 = vld [vmem:[%s4651_s15 + $0x1d0] ss:$8 sps:$4 sm:$0xff]   ;;  %v3967_v53 = vld [vmem:[%s4651_s15 + $0x1e4] ss:$8 sps:$4 sm:$0xff]   ;;  %v3969_v19 = vld [vmem:[%s4651_s15 + $0x1e0] ss:$8 sps:$4 sm:$0xff]  }
 0x1eb   : > { %v1150_v40 = vadd.f32 %v5033_v25, %v1112_v35  ;;  %v5255_v25 = vpack.c.bf16 %v5168_v47, %v5161_v3  ;;  %v5272_v3 = vpack.c.bf16 %v1144_v37, %v5205_v22  ;;  %v5276_v47 = vpack.c.bf16 %v1146_v29, %v1145_v17  ;;  %v3930_v22 = vld [vmem:[%s4651_s15 + $0x90] ss:$8 sps:$4 sm:$0xff]   ;;  %v3931_v37 = vld [vmem:[%s4651_s15 + $0xa4] ss:$8 sps:$4 sm:$0xff]   ;;  %v3946_v29 = vld [vmem:[%s4651_s15 + $0xf4] ss:$8 sps:$4 sm:$0xff]  }
 0x1ec   : > { %v1209_v28 = vadd.f32 %v1208_v62, %v1207_v21  ;;  %v1210_v4 = vsel %vm657_vm0, %v1149_v58, 0.0  ;;  %v3943_v17 = vld [vmem:[%s4651_s15 + $0xe4] ss:$8 sps:$4 sm:$0xff]   ;;  %v3970_v62 = vld [vmem:[%s4651_s15 + $0x1f4] ss:$8 sps:$4 sm:$0xff]  }
 0x1ed   : > { %v1212_v57 = vsel %vm657_vm0, %v1150_v40, 0.0  ;;  %v5284_v52 = vpack.c.bf16 %v1150_v40, %v1149_v58  ;;  %v3972_v13 = vld [vmem:[%s4651_s15 + $0x1f0] ss:$8 sps:$4 sm:$0xff]   ;;  %v1226_v35 = vld [vmem:[%s6208_s4] sm:$0x1] }
 0x1ee   : > { %v1211_v20 = vadd.f32 %v1210_v4, %v1209_v28  ;;  %v3975_v28 = vld [vmem:[%s4651_s15 + $0x4] ss:$8 sps:$4 sm:$0xff]  }
 0x1f0   : > { %v1213_v60 = vadd.f32 %v1212_v57, %v1211_v20  ;;  %v3973_v57 = vld [vmem:[%s4651_s15] ss:$8 sps:$4 sm:$0xff]  }
 0x1f2   : > { %v1214_v38 = vrot.slane %v1213_v60, 4 }
 0x1f4   : > { %v1215_v61 = vadd.f32 %v1214_v38, %v1213_v60  ;;  %v3976_v38 = vld [vmem:[%s4651_s15 + $0x14] ss:$8 sps:$4 sm:$0xff]  }
 0x1f6   : > { %v1216_v44 = vrot.slane %v1215_v61, 2 }
 0x1f8   : > { %v1217_v31 = vadd.f32 %v1216_v44, %v1215_v61 }
 0x1fa   : > { %v1218_v12 = vrot.slane %v1217_v31, 1 }
 0x1fc   : > { %v1219_v14 = vadd.f32 %v1218_v12, %v1217_v31 }
 0x1fe   : > { %v1221_v26 = vmul.f32 0.00390625, %v1219_v14 }
 0x200   : > { %3725 = vmatmul.mubr.msk.f32.vlgmr.msra.gmra.mrb[0].mxu0 %vm657_vm0, %v1221_v26 }
 0x201   : > { %3503 = vmatpush3.bf16.msra.mxu0 %v5052_v10  ;;  %1805 = vmatprep.mubr.bf16.mxu0 %v3927_v45  ;;  %v3978_v45 = vld [vmem:[%s4651_s15 + $0x10] ss:$8 sps:$4 sm:$0xff]  }
 0x202   : > { %3504 = vmatprep.subr.bf16.mxu0 %v5255_v25 }
 0x205   : > { %3505 = vmatpush3.bf16.msra.mxu0 %v5067_v56 }
 0x206   : > { %3506 = vmatprep.subr.bf16.mxu0 %v5261_v9 }
 0x209   : > { %3507 = vmatpush3.bf16.msra.mxu0 %v5112_v30 }
 0x20a   : > { %3508 = vmatprep.subr.bf16.mxu0 %v5267_v15 }
 0x20d   : > { %3509 = vmatpush3.bf16.msra.mxu0 %v5127_v1 }
 0x20e   : > { %3510 = vmatprep.subr.bf16.mxu0 %v5272_v3 }
 0x211   : > { %3511 = vmatpush3.bf16.msra.mxu0 %v5155_v8 }
 0x212   : > { %3512 = vmatprep.subr.bf16.mxu0 %v5276_v47 }
 0x215   : > { %3513 = vmatpush3.bf16.msra.mxu0 %v5218_v0 }
 0x216   : > { %3514 = vmatprep.subr.bf16.mxu0 %v5280_v24 }
 0x219   : > { %3515 = vmatpush3.bf16.msra.mxu0 %v5222_v7 }
 0x21a   : > { %3516 = vmatprep.subr.bf16.mxu0 %v5284_v52 }
 0x21d   : > { %3517 = vmatpush3.bf16.msra.mxu0 %v5232_v11 }
 0x21e   : > { %3630 = vmatprep.subr.bf16.mxu0 %v5181_v32 }
 0x220   : > { %1806 = vmatmul.mubr.bf16.vlgmr.msra.gmra.mrb[4].mxu0 %v3925_v39  ;;  %v3979_v39 = vld [vmem:[%s4651_s15 + $0x24] ss:$8 sps:$4 sm:$0xff]  }
 0x221   : > { %3631 = vmatpush3.bf16.msra.mxu0 %v5052_v10  ;;  %1813 = vmatprep.mubr.bf16.mxu0 %v3928_v59 }
 0x222   : > { %3632 = vmatprep.subr.bf16.mxu0 %v5255_v25 }
 0x225   : > { %3633 = vmatpush3.bf16.msra.mxu0 %v5067_v56 }
 0x226   : > { %3634 = vmatprep.subr.bf16.mxu0 %v5261_v9 }
 0x228   : > { %1814 = vmatmul.mubr.bf16.gmra.mrb[8].mxu0 %v3930_v22 }
 0x229   : > { %3635 = vmatpush3.bf16.msra.mxu0 %v5112_v30  ;;  %1821 = vmatprep.mubr.bf16.mxu0 %v3931_v37 }
 0x22a   : > { %3636 = vmatprep.subr.bf16.mxu0 %v5267_v15 }
 0x22d   : > { %3637 = vmatpush3.bf16.msra.mxu0 %v5127_v1 }
 0x22e   : > { %3638 = vmatprep.subr.bf16.mxu0 %v5272_v3 }
 0x230   : > { %1822 = vmatmul.mubr.bf16.gmra.mrb[12].mxu0 %v3933_v23 }
 0x231   : > { %3639 = vmatpush3.bf16.msra.mxu0 %v5155_v8  ;;  %1829 = vmatprep.mubr.bf16.mxu0 %v3934_v6 }
 0x232   : > { %3640 = vmatprep.subr.bf16.mxu0 %v5276_v47 }
 0x235   : > { %3641 = vmatpush3.bf16.msra.mxu0 %v5218_v0 }
 0x236   : > { %3642 = vmatprep.subr.bf16.mxu0 %v5280_v24 }
 0x238   : > { %1830 = vmatmul.mubr.bf16.gmra.mrb[16].mxu0 %v3936_v34 }
 0x239   : > { %3643 = vmatpush3.bf16.msra.mxu0 %v5222_v7  ;;  %1837 = vmatprep.mubr.bf16.mxu0 %v3937_v2 }
 0x23a   : > { %3644 = vmatprep.subr.bf16.mxu0 %v5284_v52 }
 0x23d   : > { %3645 = vmatpush3.bf16.msra.mxu0 %v5232_v11 }
 0x240   : > { %1838 = vmatmul.mubr.bf16.gmra.mrb[20].mxu0 %v3939_v36 }
 0x241   : > { %1845 = vmatprep.mubr.bf16.mxu0 %v3940_v33 }
 0x248   : > { %1846 = vmatmul.mubr.bf16.gmra.mrb[24].mxu0 %v3942_v49 }
 0x249   : > { %1853 = vmatprep.mubr.bf16.mxu0 %v3943_v17 }
 0x250   : > { %1854 = vmatmul.mubr.bf16.gmra.mrb[28].mxu0 %v3945_v51  ;;  %v3988_v51 = vld [vmem:[%s4651_s15 + $0x54] ss:$8 sps:$4 sm:$0xff]  }
 0x251   : > { %1861 = vmatprep.mubr.bf16.mxu0 %v3946_v29 }
 0x258   : > { %1862 = vmatmul.mubr.bf16.gmra.mrb[32].mxu0 %v3948_v48 }
 0x259   : > { %2265 = vmatprep.mubr.bf16.mxu0 %v3951_v55 }
 0x260   : > { %2266 = vmatmul.mubr.bf16.vlgmr.msra.gmra.mrb[36].mxu0 %v3949_v27  ;;  %v3990_v27 = vld [vmem:[%s4651_s15 + $0x50] ss:$8 sps:$4 sm:$0xff]  }
 0x261   : > { %2273 = vmatprep.mubr.bf16.mxu0 %v3952_v42 }
 0x268   : > { %2274 = vmatmul.mubr.bf16.gmra.mrb[40].mxu0 %v3954_v46 }
 0x269   : > { %2281 = vmatprep.mubr.bf16.mxu0 %v3955_v50 }
 0x270   : > { %2282 = vmatmul.mubr.bf16.gmra.mrb[44].mxu0 %v3957_v54 }
 0x271   : > { %2289 = vmatprep.mubr.bf16.mxu0 %v3958_v18 }
 0x278   : > { %2290 = vmatmul.mubr.bf16.gmra.mrb[48].mxu0 %v3960_v63  ;;  %v3993_v63 = vld [vmem:[%s4651_s15 + $0x60] ss:$8 sps:$4 sm:$0xff]  }
 0x279   : > { %2297 = vmatprep.mubr.bf16.mxu0 %v3961_v5 }
 0x280   : > { %2298 = vmatmul.mubr.bf16.gmra.mrb[52].mxu0 %v3963_v16  ;;  %v3994_v16 = vld [vmem:[%s4651_s15 + $0x74] ss:$8 sps:$4 sm:$0xff]  }
 0x281   : > { %2305 = vmatprep.mubr.bf16.mxu0 %v3964_v43 }
 0x288   : > { %2306 = vmatmul.mubr.bf16.gmra.mrb[56].mxu0 %v3966_v41 }
 0x289   : > { %2313 = vmatprep.mubr.bf16.mxu0 %v3967_v53 }
 0x290   : > { %2314 = vmatmul.mubr.bf16.gmra.mrb[60].mxu0 %v3969_v19 }
 0x291   : > { %2321 = vmatprep.mubr.bf16.mxu0 %v3970_v62 }
 0x298   : > { %2322 = vmatmul.mubr.bf16.gmra.mrb[64].mxu0 %v3972_v13  ;;  %v3996_v13 = vld [vmem:[%s4651_s15 + $0x70] ss:$8 sps:$4 sm:$0xff]  }
 0x2d3   : > { %v1296_v21 = vpop.f32.mrb[0].mxu0 }
 0x2d4   : > { %v1297_v58 = vadd.f32 %v1296_v21, %v1226_v35  ;;  %v3726_v40 = vpop.f32.mrb[1].mxu0  ;;  %v3999_v21 = vld [vmem:[%s4651_s15 + $0x104] ss:$8 sps:$4 sm:$0xff]  }
 0x2d6   : > { %v1300_v4 = vmax.f32 %v1297_v58, 0.0 }
 0x2d8   : > { %3730 = vmatmul.mubr.msk.f32.vlgmr.msra.gmra.mrb[0].mxu1 %vm1303_vm2, %v1300_v4  ;;  %v4000_v4 = vld [vmem:[%s4651_s15 + $0x114] ss:$8 sps:$4 sm:$0xff]  }
 0x2d9   : > { %3439 = vmatpush3.bf16.msra.mxu1 %v5052_v10  ;;  %1575 = vmatprep.mubr.bf16.mxu1 %v3975_v28  ;;  %v3997_v28 = vld [vmem:[%s4651_s15 + $0x100] ss:$8 sps:$4 sm:$0xff]  }
 0x2da   : > { %3440 = vmatprep.subr.bf16.mxu1 %v5255_v25 }
 0x2dd   : > { %3441 = vmatpush3.bf16.msra.mxu1 %v5067_v56 }
 0x2de   : > { %3442 = vmatprep.subr.bf16.mxu1 %v5261_v9 }
 0x2e1   : > { %3443 = vmatpush3.bf16.msra.mxu1 %v5112_v30 }
 0x2e2   : > { %3444 = vmatprep.subr.bf16.mxu1 %v5267_v15 }
 0x2e5   : > { %3445 = vmatpush3.bf16.msra.mxu1 %v5127_v1 }
 0x2e6   : > { %3446 = vmatprep.subr.bf16.mxu1 %v5272_v3 }
 0x2e9   : > { %3447 = vmatpush3.bf16.msra.mxu1 %v5155_v8 }
 0x2ea   : > { %3448 = vmatprep.subr.bf16.mxu1 %v5276_v47 }
 0x2ed   : > { %3449 = vmatpush3.bf16.msra.mxu1 %v5218_v0 }
 0x2ee   : > { %3450 = vmatprep.subr.bf16.mxu1 %v5280_v24 }
 0x2f1   : > { %3451 = vmatpush3.bf16.msra.mxu1 %v5222_v7 }
 0x2f2   : > { %3452 = vmatprep.subr.bf16.mxu1 %v5284_v52 }
 0x2f3   : > { %v3518_v20 = vpop.f32.mrb[4].mxu0 }
 0x2f4   : > { %v3519_v60 = vpop.f32.mrb[5].mxu0 }
 0x2f5   : > { %3453 = vmatpush3.bf16.msra.mxu1 %v5232_v11  ;;  %v5357_v61 = vadd.f32 %v3519_v60, %v3518_v20  ;;  %v3521_v44 = vpop.f32.mrb[6].mxu0  ;;  %v4002_v20 = vld [vmem:[%s4651_s15 + $0x110] ss:$8 sps:$4 sm:$0xff]  }
 0x2f6   : > { %3566 = vmatprep.subr.bf16.mxu1 %v5181_v32  ;;  %v3522_v31 = vpop.f32.mrb[7].mxu0 }
 0x2f7   : > { %v5360_v12 = vadd.f32 %v3522_v31, %v3521_v44  ;;  %v4006_v31 = vld [vmem:[%s4651_s15 + $0x134] ss:$8 sps:$4 sm:$0xff]  }
 0x2f8   : > { %1576 = vmatmul.mubr.bf16.vlgmr.msra.gmra.mrb[4].mxu1 %v3973_v57  ;;  %v4003_v57 = vld [vmem:[%s4651_s15 + $0x124] ss:$8 sps:$4 sm:$0xff]  }
 0x2f9   : > { %3567 = vmatpush3.bf16.msra.mxu1 %v5052_v10  ;;  %1583 = vmatprep.mubr.bf16.mxu1 %v3976_v38  ;;  %v4005_v38 = vld [vmem:[%s4651_s15 + $0x120] ss:$8 sps:$4 sm:$0xff]  }
 0x2fa   : > { %3568 = vmatprep.subr.bf16.mxu1 %v5255_v25  ;;  %v3981_v25 = vld [vmem:[%s4651_s15 + $0x20] ss:$8 sps:$4 sm:$0xff]  }
 0x2fb   : > { %v3524_v14 = vpop.f32.mrb[8].mxu0 }
 0x2fc   : > { %v3525_v26 = vpop.f32.mrb[9].mxu0 }
 0x2fd   : > { %3569 = vmatpush3.bf16.msra.mxu1 %v5067_v56  ;;  %v5367_v59 = vadd.f32 %v3525_v26, %v3524_v14  ;;  %v3527_v32 = vpop.f32.mrb[10].mxu0  ;;  %v3982_v56 = vld [vmem:[%s4651_s15 + $0x34] ss:$8 sps:$4 sm:$0xff]  }
 0x2fe   : > { %3570 = vmatprep.subr.bf16.mxu1 %v5261_v9  ;;  %v3528_v22 = vpop.f32.mrb[11].mxu0 }
 0x2ff   : > { %v5370_v37 = vadd.f32 %v3528_v22, %v3527_v32 }
 0x300   : > { %1584 = vmatmul.mubr.bf16.gmra.mrb[8].mxu1 %v3978_v45 }
 0x301   : > { %3571 = vmatpush3.bf16.msra.mxu1 %v5112_v30  ;;  %1591 = vmatprep.mubr.bf16.mxu1 %v3979_v39 }
 0x302   : > { %3572 = vmatprep.subr.bf16.mxu1 %v5267_v15  ;;  %v3984_v15 = vld [vmem:[%s4651_s15 + $0x30] ss:$8 sps:$4 sm:$0xff]  }
 0x303   : > { %v3530_v10 = vpop.f32.mrb[12].mxu0 }
 0x304   : > { %v3531_v23 = vpop.f32.mrb[13].mxu0 }
 0x305   : > { %3573 = vmatpush3.bf16.msra.mxu1 %v5127_v1  ;;  %v5377_v6 = vadd.f32 %v3531_v23, %v3530_v10  ;;  %v3533_v9 = vpop.f32.mrb[14].mxu0  ;;  %v3985_v1 = vld [vmem:[%s4651_s15 + $0x44] ss:$8 sps:$4 sm:$0xff]  }
 0x306   : > { %3574 = vmatprep.subr.bf16.mxu1 %v5272_v3  ;;  %v3534_v34 = vpop.f32.mrb[15].mxu0 }
 0x307   : > { %v5380_v2 = vadd.f32 %v3534_v34, %v3533_v9  ;;  %v4009_v9 = vld [vmem:[%s4651_s15 + $0x144] ss:$8 sps:$4 sm:$0xff]  }
 0x308   : > { %1592 = vmatmul.mubr.bf16.gmra.mrb[12].mxu1 %v3981_v25  ;;  %v4008_v25 = vld [vmem:[%s4651_s15 + $0x130] ss:$8 sps:$4 sm:$0xff]  }
 0x309   : > { %3575 = vmatpush3.bf16.msra.mxu1 %v5155_v8  ;;  %1599 = vmatprep.mubr.bf16.mxu1 %v3982_v56 }
 0x30a   : > { %3576 = vmatprep.subr.bf16.mxu1 %v5276_v47  ;;  %v3987_v47 = vld [vmem:[%s4651_s15 + $0x40] ss:$8 sps:$4 sm:$0xff]  }
 0x30b   : > { %v3536_v30 = vpop.f32.mrb[16].mxu0 }
 0x30c   : > { %v3537_v36 = vpop.f32.mrb[17].mxu0 }
 0x30d   : > { %3577 = vmatpush3.bf16.msra.mxu1 %v5218_v0  ;;  %v5387_v33 = vadd.f32 %v3537_v36, %v3536_v30  ;;  %v3539_v3 = vpop.f32.mrb[18].mxu0 }
 0x30e   : > { %3578 = vmatprep.subr.bf16.mxu1 %v5280_v24  ;;  %v3540_v49 = vpop.f32.mrb[19].mxu0 }
 0x30f   : > { %v5390_v17 = vadd.f32 %v3540_v49, %v3539_v3 }
 0x310   : > { %1600 = vmatmul.mubr.bf16.gmra.mrb[16].mxu1 %v3984_v15 }
 0x311   : > { %3579 = vmatpush3.bf16.msra.mxu1 %v5222_v7  ;;  %1607 = vmatprep.mubr.bf16.mxu1 %v3985_v1 }
 0x312   : > { %3580 = vmatprep.subr.bf16.mxu1 %v5284_v52  ;;  %v3991_v52 = vld [vmem:[%s4651_s15 + $0x64] ss:$8 sps:$4 sm:$0xff]  }
 0x313   : > { %v3542_v8 = vpop.f32.mrb[20].mxu0 }
 0x314   : > { %v3543_v0 = vpop.f32.mrb[21].mxu0 }
 0x315   : > { %3581 = vmatpush3.bf16.msra.mxu1 %v5232_v11  ;;  %v5397_v29 = vadd.f32 %v3543_v0, %v3542_v8  ;;  %v3545_v24 = vpop.f32.mrb[22].mxu0 }
 0x316   : > { %v3546_v48 = vpop.f32.mrb[23].mxu0 }
 0x317   : > { %v5399_v55 = vadd.f32 %v3546_v48, %v3545_v24 }
 0x318   : > { %1608 = vmatmul.mubr.bf16.gmra.mrb[20].mxu1 %v3987_v47 }
 0x319   : > { %1615 = vmatprep.mubr.bf16.mxu1 %v3988_v51 }
 0x31b   : > { %v3548_v7 = vpop.f32.mrb[24].mxu0 }
 0x31c   : > { %v3549_v42 = vpop.f32.mrb[25].mxu0 }
 0x31d   : > { %v5403_v46 = vadd.f32 %v3549_v42, %v3548_v7  ;;  %v3551_v50 = vpop.f32.mrb[26].mxu0 }
 0x31e   : > { %v3552_v11 = vpop.f32.mrb[27].mxu0 }
 0x31f   : > { %v5405_v54 = vadd.f32 %v3552_v11, %v3551_v50  ;;  %v4012_v50 = vld [vmem:[%s4651_s15 + $0x154] ss:$8 sps:$4 sm:$0xff]  }
 0x320   : > { %1616 = vmatmul.mubr.bf16.gmra.mrb[24].mxu1 %v3990_v27  ;;  %v4011_v27 = vld [vmem:[%s4651_s15 + $0x140] ss:$8 sps:$4 sm:$0xff]  }
 0x321   : > { %1623 = vmatprep.mubr.bf16.mxu1 %v3991_v52 }
 0x323   : > { %v3554_v18 = vpop.f32.mrb[28].mxu0 }
 0x324   : > { %v3555_v5 = vpop.f32.mrb[29].mxu0 }
 0x325   : > { %v5409_v43 = vadd.f32 %v3555_v5, %v3554_v18  ;;  %v3557_v41 = vpop.f32.mrb[30].mxu0 }
 0x326   : > { %v3558_v53 = vpop.f32.mrb[31].mxu0 }
 0x327   : > { %v5411_v19 = vadd.f32 %v3558_v53, %v3557_v41  ;;  %v4014_v53 = vld [vmem:[%s4651_s15 + $0x150] ss:$8 sps:$4 sm:$0xff]  }
 0x328   : > { %1624 = vmatmul.mubr.bf16.gmra.mrb[28].mxu1 %v3993_v63 }
 0x329   : > { %1631 = vmatprep.mubr.bf16.mxu1 %v3994_v16 }
 0x32b   : > { %v3560_v62 = vpop.f32.mrb[32].mxu0 }
 0x32c   : > { %v3561_v35 = vpop.f32.mrb[33].mxu0 }
 0x32d   : > { %v5415_v58 = vadd.f32 %v3561_v35, %v3560_v62  ;;  %v3563_v40 = vpop.f32.mrb[34].mxu0 }
 0x32e   : > { %v3564_v60 = vpop.f32.mrb[35].mxu0 }
 0x32f   : > { %v5424_v23 = vadd.f32 %v3564_v60, %v3563_v40  ;;  %v4018_v60 = vld [vmem:[%s4651_s15 + $0x174] ss:$8 sps:$4 sm:$0xff]  }
 0x330   : > { %1632 = vmatmul.mubr.bf16.gmra.mrb[32].mxu1 %v3996_v13  ;;  %v4015_v13 = vld [vmem:[%s4651_s15 + $0x164] ss:$8 sps:$4 sm:$0xff]  }
 0x331   : > { %2035 = vmatprep.mubr.bf16.mxu1 %v3999_v21 }
 0x333   : > { %v3646_v44 = vpop.f32.mrb[36].mxu0 }
 0x334   : > { %v3647_v14 = vpop.f32.mrb[37].mxu0 }
 0x335   : > { %v3649_v45 = vpop.f32.mrb[38].mxu0  ;;  %v5427_v30 = vadd.f32 %v3647_v14, %v3646_v44 }
 0x336   : > { %v3650_v26 = vpop.f32.mrb[39].mxu0 }
 0x337   : > { %v5429_v15 = vadd.f32 %v3650_v26, %v3649_v45  ;;  %v4020_v26 = vld [vmem:[%s4651_s15 + $0x170] ss:$8 sps:$4 sm:$0xff]  }
 0x338   : > { %2036 = vmatmul.mubr.bf16.vlgmr.msra.gmra.mrb[36].mxu1 %v3997_v28 }
 0x339   : > { %2043 = vmatprep.mubr.bf16.mxu1 %v4000_v4 }
 0x33b   : > { %v3652_v39 = vpop.f32.mrb[40].mxu0 }
 0x33c   : > { %v3653_v32 = vpop.f32.mrb[41].mxu0 }
 0x33d   : > { %v3655_v22 = vpop.f32.mrb[42].mxu0  ;;  %v5431_v36 = vadd.f32 %v3653_v32, %v3652_v39 }
 0x33e   : > { %v3656_v10 = vpop.f32.mrb[43].mxu0 }
 0x33f   : > { %v5433_v1 = vadd.f32 %v3656_v10, %v3655_v22 }
 0x340   : > { %2044 = vmatmul.mubr.bf16.gmra.mrb[40].mxu1 %v4002_v20  ;;  %v4017_v20 = vld [vmem:[%s4651_s15 + $0x160] ss:$8 sps:$4 sm:$0xff]  }
 0x341   : > { %2051 = vmatprep.mubr.bf16.mxu1 %v4003_v57 }
 0x343   : > { %v3658_v56 = vpop.f32.mrb[44].mxu0 }
 0x344   : > { %v3659_v34 = vpop.f32.mrb[45].mxu0 }
 0x345   : > { %v3661_v3 = vpop.f32.mrb[46].mxu0  ;;  %v5435_v49 = vadd.f32 %v3659_v34, %v3658_v56  ;;  %v1302_v56 = vld [vmem:[%s6271_s24] sm:$0x1]  ;;  %s6276_s24 = sld [smem:[#allocation33_spill]] }
 0x346   : > { %v3662_v8 = vpop.f32.mrb[47].mxu0 }
 0x347   : > { %v5437_v47 = vadd.f32 %v3662_v8, %v3661_v3 }
 0x348   : > { %2052 = vmatmul.mubr.bf16.gmra.mrb[44].mxu1 %v4005_v38 }
 0x349   : > { %2059 = vmatprep.mubr.bf16.mxu1 %v4006_v31 }
 0x34b   : > { %v3664_v0 = vpop.f32.mrb[48].mxu0  ;;  %s6277_s15 = smov %s6276_s24 }
 0x34c   : > { %v3665_v51 = vpop.f32.mrb[49].mxu0 }
 0x34d   : > { %v5439_v24 = vadd.f32 %v3665_v51, %v3664_v0  ;;  %v3667_v48 = vpop.f32.mrb[50].mxu0 }
 0x34e   : > { %v3668_v7 = vpop.f32.mrb[51].mxu0 }
 0x34f   : > { %v5442_v42 = vadd.f32 %v3668_v7, %v3667_v48  ;;  %v1418_v48 = vlaneseq }
 0x350   : > { %2060 = vmatmul.mubr.bf16.gmra.mrb[48].mxu1 %v4008_v25 }
 0x351   : > { %2067 = vmatprep.mubr.bf16.mxu1 %v4009_v9  ;;  %v5461_v7 = vshrl.u32 %v1418_v48, 7  ;;  %v1404_v48 = vld [vmem:[%s5480_s23 + $0x18] sm:$0xff] }
 0x353   : > { %v3670_v52 = vpop.f32.mrb[52].mxu0 }
 0x354   : > { %v3671_v11 = vpop.f32.mrb[53].mxu0 }
 0x355   : > { %v5445_v18 = vadd.f32 %v3671_v11, %v3670_v52  ;;  %v3673_v63 = vpop.f32.mrb[54].mxu0  ;;  %v1423_v52 = vld [vmem:[%s6273_s6] sm:$0x1]  ;;  %s617_s6 = sand.u32 1, %s4289_s22  }
 0x356   : > { %v3674_v5 = vpop.f32.mrb[55].mxu0  ;;  %v1417_v11 = vld [vmem:[%s6274_s16] sm:$0xf]  ;;  %s6128_s30 = scalar_lea.sflag [#allocation4], %s617_s6 }
 0x357   : > { %v5447_v16 = vadd.f32 %v3674_v5, %v3673_v63  ;;  %v1872_v5 = vsub.s32 1, %v5461_v7 }
 0x358   : > { %2068 = vmatmul.mubr.bf16.gmra.mrb[52].mxu1 %v4011_v27  ;;  %v1420_v27 = vsub.s32 0, %v5461_v7 }
 0x359   : > { %2075 = vmatprep.mubr.bf16.mxu1 %v4012_v50 }
 0x35b   : > { %v3676_v41 = vpop.f32.mrb[56].mxu0 }
 0x35c   : > { %v3677_v62 = vpop.f32.mrb[57].mxu0 }
 0x35d   : > { %v5451_v35 = vadd.f32 %v3677_v62, %v3676_v41  ;;  %v3679_v21 = vpop.f32.mrb[58].mxu0  ;;  %v2332_v41 = vsub.s32 3, %v5461_v7 }
 0x35e   : > { %v3680_v40 = vpop.f32.mrb[59].mxu0 }
 0x35f   : > { %v5453_v28 = vadd.f32 %v3680_v40, %v3679_v21 }
 0x360   : > { %2076 = vmatmul.mubr.bf16.gmra.mrb[56].mxu1 %v4014_v53 }
 0x361   : > { %2083 = vmatprep.mubr.bf16.mxu1 %v4015_v13 }
 0x363   : > { %v3682_v4 = vpop.f32.mrb[60].mxu0 }
 0x364   : > { %v3683_v57 = vpop.f32.mrb[61].mxu0 }
 0x365   : > { %v3684_v38 = vadd.f32 %v3683_v57, %v3682_v4  ;;  %v3685_v44 = vpop.f32.mrb[62].mxu0 }
 0x366   : > { %v3686_v31 = vpop.f32.mrb[63].mxu0 }
 0x367   : > { %v3687_v14 = vadd.f32 %v3686_v31, %v3685_v44 }
 0x368   : > { %2084 = vmatmul.mubr.bf16.gmra.mrb[60].mxu1 %v4017_v20 }
 0x369   : > { %2091 = vmatprep.mubr.bf16.mxu1 %v4018_v60 }
 0x36b   : > { %v3688_v45 = vpop.f32.mrb[64].mxu0 }
 0x36c   : > { %v3689_v39 = vpop.f32.mrb[65].mxu0 }
 0x36d   : > { %v3690_v32 = vadd.f32 %v3689_v39, %v3688_v45  ;;  %v3691_v22 = vpop.f32.mrb[66].mxu0 }
 0x36e   : > { %v3692_v10 = vpop.f32.mrb[67].mxu0 }
 0x36f   : > { %v3693_v25 = vadd.f32 %v3692_v10, %v3691_v22 }
 0x370   : > { %2092 = vmatmul.mubr.bf16.gmra.mrb[64].mxu1 %v4020_v26 }
 0x3ab   : > { %v1373_v9 = vpop.f32.mrb[0].mxu1 }
 0x3ac   : > { %v1374_v34 = vadd.f32 %v1373_v9, %v1302_v56  ;;  %v3731_v3 = vpop.f32.mrb[1].mxu1 }
 0x3ae   : > { %v3282_v8 = vmul.f32 -1.442695, %v1374_v34 }
 0x3b0   : > { %4091 = vpow2.f32 %v3282_v8 }
 0x3ba   : > { %v4092_v0 = vpop.eup %4091 }
 0x3bb   : > { %v1380_v51 = vadd.f32 1.0, %v4092_v0 }
 0x3bd   : > { %4093 = vrcp.f32 %v1380_v51 }
 0x3c7   : > { %v4094_v50 = vpop.eup %4093 }
 0x3c8   : > { %v1421_v63 = vrot.slane %v4094_v50, %v1420_v27  ;;  %v1424_v53 = vmul.f32 %v4094_v50, %v1423_v52 }
 0x3ca   : > { %v5473_v62 = vmul.f32 %v1421_v63, %v1417_v11  ;;  %v5482_v20 = vrot.slane %v1424_v53, %v1420_v27 }
 0x3cb   : > { %v3454_v13 = vpop.f32.mrb[4].mxu1 }
 0x3cc   : > { %v5476_v21 = vrot.slane %v5473_v62, %v1872_v5  ;;  %v2333_v40 = vrot.slane %v5473_v62, %v2332_v41  ;;  %v3455_v4 = vpop.f32.mrb[5].mxu1  ;;  %v5485_v57 = vrot.slane %v5473_v62, %v1420_v27  ;;  %v1434_v63 = vadd.f32 %v5482_v20, %v1404_v48 }
 0x3cd   : > { %v3456_v60 = vadd.f32 %v3455_v4, %v3454_v13  ;;  %v3457_v44 = vpop.f32.mrb[6].mxu1 }
 0x3ce   : > { %v5489_v31 = vmul.f32 %v5424_v23, %v5476_v21  ;;  %v5492_v45 = vmul.f32 %v5427_v30, %v2333_v40  ;;  %v5495_v26 = vmul.f32 %v5429_v15, %v2333_v40  ;;  %v5498_v39 = vmul.f32 %v5431_v36, %v2333_v40  ;;  %v3458_v22 = vpop.f32.mrb[7].mxu1  ;;  %v1401_v15 = vld [vmem:[%s5480_s23] sm:$0xff] }
 0x3cf   : > { %v5501_v10 = vmul.f32 %v5433_v1, %v2333_v40  ;;  %v5504_v56 = vmul.f32 %v5435_v49, %v2333_v40  ;;  %v5507_v23 = vmul.f32 %v5437_v47, %v2333_v40  ;;  %v5510_v30 = vmul.f32 %v5439_v24, %v2333_v40 }
 0x3d0   : > { %v5514_v9 = vmul.f32 %v5442_v42, %v2333_v40  ;;  %v5517_v36 = vmul.f32 %v5445_v18, %v2333_v40  ;;  %v5520_v1 = vmul.f32 %v5447_v16, %v2333_v40  ;;  %v5523_v49 = vmul.f32 %v5451_v35, %v2333_v40  ;;  %v1402_v42 = vld [vmem:[%s5480_s23 + $0x8] sm:$0xff]  ;;  %v1403_v35 = vld [vmem:[%s5480_s23 + $0x10] sm:$0xff] }
 0x3d1   : > { %v5526_v47 = vmul.f32 %v5453_v28, %v2333_v40  ;;  %v5528_v24 = vmul.f32 %v3684_v38, %v2333_v40  ;;  %v5530_v34 = vmul.f32 %v3687_v14, %v2333_v40  ;;  %v5532_v3 = vmul.f32 %v3690_v32, %v2333_v40 }
 0x3d2   : > { %v1431_v8 = vadd.f32 %v5482_v20, %v1401_v15  ;;  %v1644_v18 = vmul.f32 %v3456_v60, %v5485_v57  ;;  %v5537_v0 = vmul.f32 %v3693_v25, %v2333_v40  ;;  %v3459_v16 = vadd.f32 %v3458_v22, %v3457_v44 }
 0x3d3   : > { %v3460_v51 = vpop.f32.mrb[8].mxu1  ;;  %v1432_v28 = vadd.f32 %v5482_v20, %v1402_v42  ;;  %v1433_v11 = vadd.f32 %v5482_v20, %v1403_v35  ;;  %v1874_v53 = vmul.f32 %v5357_v61, %v5476_v21  ;;  %v1875_v13 = vmul.f32 %v5360_v12, %v5476_v21 }
 0x3d4   : > { %v1660_v27 = vadd.f32 %v1644_v18, %v1431_v8  ;;  %v1645_v38 = vmul.f32 %v3459_v16, %v5485_v57  ;;  %v3461_v14 = vpop.f32.mrb[9].mxu1  ;;  %v1876_v40 = vmul.f32 %v5367_v59, %v5476_v21  ;;  %v1877_v4 = vmul.f32 %v5370_v37, %v5476_v21 }
 0x3d5   : > { %v3462_v52 = vadd.f32 %v3461_v14, %v3460_v51  ;;  %v3463_v32 = vpop.f32.mrb[10].mxu1  ;;  %v1878_v60 = vmul.f32 %v5377_v6, %v5476_v21  ;;  %v1879_v44 = vmul.f32 %v5380_v2, %v5476_v21  ;;  %v1880_v12 = vmul.f32 %v5387_v33, %v5476_v21 }
 0x3d6   : > { %v1661_v50 = vadd.f32 %v1645_v38, %v1432_v28  ;;  %v3464_v5 = vpop.f32.mrb[11].mxu1  ;;  %v5559_v61 = vadd.f32 %v1874_v53, %v1660_v27  ;;  %v1881_v59 = vmul.f32 %v5390_v17, %v5476_v21  ;;  %v1882_v37 = vmul.f32 %v5397_v29, %v5476_v21  ;;  %v1405_v17 = vld [vmem:[%s5480_s23 + $0x20] sm:$0xff]  ;;  %v1408_v53 = vld [vmem:[%s5480_s23 + $0x38] sm:$0xff] }
 0x3d7   : > { %v1646_v25 = vmul.f32 %v3462_v52, %v5485_v57  ;;  %v3465_v41 = vadd.f32 %v3464_v5, %v3463_v32  ;;  %v1883_v6 = vmul.f32 %v5399_v55, %v5476_v21  ;;  %v5575_v16 = vmul.f32 %v5403_v46, %v5476_v21 }
 0x3d8   : > { %v5561_v42 = vadd.f32 %v1875_v13, %v1661_v50  ;;  %v5579_v33 = vmul.f32 %v5405_v54, %v5476_v21  ;;  %v5584_v29 = vmul.f32 %v5409_v43, %v5476_v21  ;;  %v5588_v55 = vmul.f32 %v5411_v19, %v5476_v21  ;;  %v1406_v54 = vld [vmem:[%s5480_s23 + $0x28] sm:$0xff] }
 0x3d9   : > { %v1662_v22 = vadd.f32 %v1646_v25, %v1433_v11  ;;  %v1647_v15 = vmul.f32 %v3465_v41, %v5485_v57  ;;  %v5592_v35 = vmul.f32 %v5415_v58, %v5476_v21  ;;  %v1435_v38 = vadd.f32 %v5482_v20, %v1405_v17  ;;  %v1407_v11 = vld [vmem:[%s5480_s23 + $0x30] sm:$0xff] }
 0x3da   : > { %v1436_v19 = vadd.f32 %v5482_v20, %v1406_v54 }
 0x3db   : > { %v1663_v2 = vadd.f32 %v1647_v15, %v1434_v63  ;;  %v3466_v8 = vpop.f32.mrb[12].mxu1  ;;  %v5571_v18 = vadd.f32 %v1876_v40, %v1662_v22  ;;  %v1437_v40 = vadd.f32 %v5482_v20, %v1407_v11 }
 0x3dc   : > { %v3467_v51 = vpop.f32.mrb[13].mxu1 }
 0x3dd   : > { %v3468_v46 = vadd.f32 %v3467_v51, %v3466_v8  ;;  %v3469_v48 = vpop.f32.mrb[14].mxu1  ;;  %v5594_v27 = vadd.f32 %v1877_v4, %v1663_v2  ;;  %v1438_v2 = vadd.f32 %v5482_v20, %v1408_v53 }
 0x3de   : > { %v3470_v28 = vpop.f32.mrb[15].mxu1 }
 0x3df   : > { %v1648_v43 = vmul.f32 %v3468_v46, %v5485_v57  ;;  %v3471_v14 = vadd.f32 %v3470_v28, %v3469_v48  ;;  %v1409_v46 = vld [vmem:[%s5480_s23 + $0x40] sm:$0xff] }
 0x3e1   : > { %v1664_v52 = vadd.f32 %v1648_v43, %v1435_v38  ;;  %v1649_v32 = vmul.f32 %v3471_v14, %v5485_v57  ;;  %v1410_v38 = vld [vmem:[%s5480_s23 + $0x48] sm:$0xff]  ;;  %v1439_v14 = vadd.f32 %v5482_v20, %v1409_v46 }
 0x3e3   : > { %v1665_v50 = vadd.f32 %v1649_v32, %v1436_v19  ;;  %v3472_v58 = vpop.f32.mrb[16].mxu1  ;;  %v5601_v21 = vadd.f32 %v1878_v60, %v1664_v52 }
 0x3e4   : > { %v3473_v63 = vpop.f32.mrb[17].mxu1 }
 0x3e5   : > { %v3474_v5 = vadd.f32 %v3473_v63, %v3472_v58  ;;  %v3475_v25 = vpop.f32.mrb[18].mxu1  ;;  %v5604_v41 = vadd.f32 %v1879_v44, %v1665_v50  ;;  %v1440_v50 = vadd.f32 %v5482_v20, %v1410_v38 }
 0x3e6   : > { %v3476_v13 = vpop.f32.mrb[19].mxu1 }
 0x3e7   : > { %v1650_v4 = vmul.f32 %v3474_v5, %v5485_v57  ;;  %v3477_v22 = vadd.f32 %v3476_v13, %v3475_v25  ;;  %v1411_v5 = vld [vmem:[%s5480_s23 + $0x50] sm:$0xff] }
 0x3e9   : > { %v1666_v15 = vadd.f32 %v1650_v4, %v1437_v40  ;;  %v1651_v60 = vmul.f32 %v3477_v22, %v5485_v57  ;;  %v1412_v40 = vld [vmem:[%s5480_s23 + $0x58] sm:$0xff]  ;;  %v1441_v22 = vadd.f32 %v5482_v20, %v1411_v5 }
 0x3eb   : > { %v1667_v8 = vadd.f32 %v1651_v60, %v1438_v2  ;;  %v3478_v17 = vpop.f32.mrb[20].mxu1  ;;  %v5611_v51 = vadd.f32 %v1880_v12, %v1666_v15 }
 0x3ec   : > { %v3479_v44 = vpop.f32.mrb[21].mxu1 }
 0x3ed   : > { %v3480_v48 = vadd.f32 %v3479_v44, %v3478_v17  ;;  %v3481_v54 = vpop.f32.mrb[22].mxu1  ;;  %v5614_v28 = vadd.f32 %v1881_v59, %v1667_v8  ;;  %v1442_v8 = vadd.f32 %v5482_v20, %v1412_v40 }
 0x3ee   : > { %v3482_v43 = vpop.f32.mrb[23].mxu1 }
 0x3ef   : > { %v1652_v52 = vmul.f32 %v3480_v48, %v5485_v57  ;;  %v3483_v19 = vadd.f32 %v3482_v43, %v3481_v54 }
 0x3f1   : > { %v1668_v32 = vadd.f32 %v1652_v52, %v1439_v14  ;;  %v1653_v12 = vmul.f32 %v3483_v19, %v5485_v57  ;;  %v1414_v14 = vld [vmem:[%s5480_s23 + $0x68] sm:$0xff] }
 0x3f3   : > { %v1669_v58 = vadd.f32 %v1653_v12, %v1440_v50  ;;  %v3484_v11 = vpop.f32.mrb[24].mxu1  ;;  %v5621_v63 = vadd.f32 %v1882_v37, %v1668_v32 }
 0x3f4   : > { %v3485_v59 = vpop.f32.mrb[25].mxu1 }
 0x3f5   : > { %v3486_v25 = vadd.f32 %v3485_v59, %v3484_v11  ;;  %v3487_v53 = vpop.f32.mrb[26].mxu1  ;;  %v5624_v13 = vadd.f32 %v1883_v6, %v1669_v58  ;;  %v1413_v6 = vld [vmem:[%s5480_s23 + $0x60] sm:$0xff] }
 0x3f6   : > { %v3488_v4 = vpop.f32.mrb[27].mxu1  ;;  %v1443_v19 = vadd.f32 %v5482_v20, %v1413_v6 }
 0x3f7   : > { %v1654_v15 = vmul.f32 %v3486_v25, %v5485_v57  ;;  %v3489_v2 = vadd.f32 %v3488_v4, %v3487_v53 }
 0x3f9   : > { %v1670_v60 = vadd.f32 %v1654_v15, %v1441_v22  ;;  %v1655_v37 = vmul.f32 %v3489_v2, %v5485_v57  ;;  %v1416_v22 = vld [vmem:[%s5480_s23 + $0x78] sm:$0xff] }
 0x3fb   : > { %v1671_v17 = vadd.f32 %v1655_v37, %v1442_v8  ;;  %v3490_v46 = vpop.f32.mrb[28].mxu1  ;;  %v5632_v44 = vadd.f32 %v5575_v16, %v1670_v60  ;;  %v1444_v16 = vadd.f32 %v5482_v20, %v1414_v14  ;;  %v2102_v37 = vsub.s32 2, %v5461_v7 }
 0x3fc   : > { %v3491_v48 = vpop.f32.mrb[29].mxu1 }
 0x3fd   : > { %v3492_v54 = vadd.f32 %v3491_v48, %v3490_v46  ;;  %v3493_v38 = vpop.f32.mrb[30].mxu1  ;;  %v5636_v43 = vadd.f32 %v5579_v33, %v1671_v17  ;;  %v1415_v33 = vld [vmem:[%s5480_s23 + $0x70] sm:$0xff] }
 0x3fe   : > { %v3494_v52 = vpop.f32.mrb[31].mxu1  ;;  %v1445_v2 = vadd.f32 %v5482_v20, %v1415_v33 }
 0x3ff   : > { %v1656_v32 = vmul.f32 %v3492_v54, %v5485_v57  ;;  %v3495_v50 = vadd.f32 %v3494_v52, %v3493_v38  ;;  %v5660_v38 = vrot.slane %v5473_v62, %v2102_v37 }
 0x401   : > { %v1672_v12 = vadd.f32 %v1656_v32, %v1443_v19  ;;  %v1657_v58 = vmul.f32 %v3495_v50, %v5485_v57 }
 0x403   : > { %v1673_v11 = vadd.f32 %v1657_v58, %v1444_v16  ;;  %v3496_v5 = vpop.f32.mrb[32].mxu1  ;;  %v5644_v59 = vadd.f32 %v5584_v29, %v1672_v12  ;;  %v1446_v29 = vadd.f32 %v5482_v20, %v1416_v22 }
 0x404   : > { %v3497_v25 = vpop.f32.mrb[33].mxu1 }
 0x405   : > { %v3498_v53 = vadd.f32 %v3497_v25, %v3496_v5  ;;  %v3499_v40 = vpop.f32.mrb[34].mxu1  ;;  %v5648_v4 = vadd.f32 %v5588_v55, %v1673_v11 }
 0x406   : > { %v3500_v15 = vpop.f32.mrb[35].mxu1 }
 0x407   : > { %v1658_v60 = vmul.f32 %v3498_v53, %v5485_v57  ;;  %v3501_v8 = vadd.f32 %v3500_v15, %v3499_v40 }
 0x409   : > { %v1674_v17 = vadd.f32 %v1658_v60, %v1445_v2  ;;  %v1659_v46 = vmul.f32 %v3501_v8, %v5485_v57 }
 0x40b   : > { %v1675_v6 = vadd.f32 %v1659_v46, %v1446_v29  ;;  %v3582_v48 = vpop.f32.mrb[36].mxu1  ;;  %v5657_v54 = vadd.f32 %v5592_v35, %v1674_v17 }
 0x40c   : > { %v3583_v55 = vpop.f32.mrb[37].mxu1 }
 0x40d   : > { %v3584_v14 = vadd.f32 %v3583_v55, %v3582_v48  ;;  %v3585_v52 = vpop.f32.mrb[38].mxu1  ;;  %v5663_v19 = vadd.f32 %v5489_v31, %v1675_v6 }
 0x40e   : > { %v3586_v7 = vpop.f32.mrb[39].mxu1 }
 0x40f   : > { %v2104_v32 = vmul.f32 %v3584_v14, %v5660_v38  ;;  %v3587_v20 = vadd.f32 %v3586_v7, %v3585_v52 }
 0x411   : > { %v2120_v57 = vadd.f32 %v2104_v32, %v5559_v61  ;;  %v2105_v50 = vmul.f32 %v3587_v20, %v5660_v38 }
 0x413   : > { %v2121_v35 = vadd.f32 %v2105_v50, %v5561_v42  ;;  %v3588_v12 = vpop.f32.mrb[40].mxu1  ;;  %v5670_v16 = vadd.f32 %v5492_v45, %v2120_v57 }
 0x414   : > { %v3589_v62 = vpop.f32.mrb[41].mxu1 }
 0x415   : > { %v3590_v58 = vadd.f32 %v3589_v62, %v3588_v12  ;;  %v3591_v11 = vpop.f32.mrb[42].mxu1  ;;  %v2368_v31 = vsel %vm657_vm0, %v5670_v16, 0.0  ;;  %v5675_v5 = vadd.f32 %v5495_v26, %v2121_v35 }
 0x416   : > { %v3592_v33 = vpop.f32.mrb[43].mxu1  ;;  %2369 = vadd.xlane.f32.xlu0 %v2368_v31 }
 0x417   : > { %v2106_v61 = vmul.f32 %v3590_v58, %v5660_v38  ;;  %v3593_v25 = vadd.f32 %v3592_v33, %v3591_v11  ;;  %v2371_v42 = vsel %vm657_vm0, %v5675_v5, 0.0 }
 0x418   : > { %2372 = vadd.xlane.f32.xlu1 %v2371_v42 }
 0x419   : > { %v2122_v45 = vadd.f32 %v2106_v61, %v5571_v18  ;;  %v2107_v53 = vmul.f32 %v3593_v25, %v5660_v38 }
 0x41b   : > { %v2123_v40 = vadd.f32 %v2107_v53, %v5594_v27  ;;  %v3594_v22 = vpop.f32.mrb[44].mxu1  ;;  %v5684_v15 = vadd.f32 %v5498_v39, %v2122_v45 }
 0x41c   : > { %v3595_v26 = vpop.f32.mrb[45].mxu1 }
 0x41d   : > { %v3596_v2 = vadd.f32 %v3595_v26, %v3594_v22  ;;  %v3597_v60 = vpop.f32.mrb[46].mxu1  ;;  %v2374_v8 = vsel %vm657_vm0, %v5684_v15, 0.0  ;;  %v5689_v37 = vadd.f32 %v5501_v10, %v2123_v40 }
 0x41e   : > { %v3598_v17 = vpop.f32.mrb[47].mxu1  ;;  %2375 = vadd.xlane.f32.xlu0 %v2374_v8 }
 0x41f   : > { %v2108_v18 = vmul.f32 %v3596_v2, %v5660_v38  ;;  %v3599_v29 = vadd.f32 %v3598_v17, %v3597_v60  ;;  %v2377_v27 = vsel %vm657_vm0, %v5689_v37, 0.0 }
 0x420   : > { %2378 = vadd.xlane.f32.xlu1 %v2377_v27 }
 0x421   : > { %v2124_v39 = vadd.f32 %v2108_v18, %v5601_v21  ;;  %v2109_v46 = vmul.f32 %v3599_v29, %v5660_v38 }
 0x423   : > { %v2125_v6 = vadd.f32 %v2109_v46, %v5604_v41  ;;  %v3600_v48 = vpop.f32.mrb[48].mxu1  ;;  %v5698_v55 = vadd.f32 %v5504_v56, %v2124_v39 }
 0x424   : > { %v3601_v10 = vpop.f32.mrb[49].mxu1 }
 0x425   : > { %v3602_v14 = vadd.f32 %v3601_v10, %v3600_v48  ;;  %v3603_v52 = vpop.f32.mrb[50].mxu1  ;;  %v2380_v7 = vsel %vm657_vm0, %v5698_v55, 0.0  ;;  %v5703_v32 = vadd.f32 %v5507_v23, %v2125_v6 }
 0x426   : > { %v3604_v20 = vpop.f32.mrb[51].mxu1  ;;  %2381 = vadd.xlane.f32.xlu0 %v2380_v7 }
 0x427   : > { %v2110_v21 = vmul.f32 %v3602_v14, %v5660_v38  ;;  %v3605_v57 = vadd.f32 %v3604_v20, %v3603_v52  ;;  %v2383_v41 = vsel %vm657_vm0, %v5703_v32, 0.0 }
 0x428   : > { %2384 = vadd.xlane.f32.xlu1 %v2383_v41 }
 0x429   : > { %v2126_v56 = vadd.f32 %v2110_v21, %v5611_v51  ;;  %v2111_v50 = vmul.f32 %v3605_v57, %v5660_v38 }
 0x42b   : > { %v2127_v35 = vadd.f32 %v2111_v50, %v5614_v28  ;;  %v3606_v12 = vpop.f32.mrb[52].mxu1  ;;  %v5712_v62 = vadd.f32 %v5510_v30, %v2126_v56 }
 0x42c   : > { %v3607_v23 = vpop.f32.mrb[53].mxu1 }
 0x42d   : > { %v3608_v58 = vadd.f32 %v3607_v23, %v3606_v12  ;;  %v3609_v11 = vpop.f32.mrb[54].mxu1  ;;  %v2386_v31 = vsel %vm657_vm0, %v5712_v62, 0.0  ;;  %v5717_v33 = vadd.f32 %v5514_v9, %v2127_v35 }
 0x42e   : > { %v3610_v61 = vpop.f32.mrb[55].mxu1  ;;  %2387 = vadd.xlane.f32.xlu0 %v2386_v31 }
 0x42f   : > { %v2112_v51 = vmul.f32 %v3608_v58, %v5660_v38  ;;  %v3611_v25 = vadd.f32 %v3610_v61, %v3609_v11  ;;  %v2389_v28 = vsel %vm657_vm0, %v5717_v33, 0.0 }
 0x430   : > { %2390 = vadd.xlane.f32.xlu1 %v2389_v28 }
 0x431   : > { %v2128_v30 = vadd.f32 %v2112_v51, %v5621_v63  ;;  %v2113_v42 = vmul.f32 %v3611_v25, %v5660_v38 }
 0x433   : > { %v2129_v45 = vadd.f32 %v2113_v42, %v5624_v13  ;;  %v3612_v53 = vpop.f32.mrb[56].mxu1  ;;  %v5726_v40 = vadd.f32 %v5517_v36, %v2128_v30 }
 0x434   : > { %v3613_v9 = vpop.f32.mrb[57].mxu1 }
 0x435   : > { %v3614_v22 = vadd.f32 %v3613_v9, %v3612_v53  ;;  %v3615_v26 = vpop.f32.mrb[58].mxu1  ;;  %v2392_v2 = vsel %vm657_vm0, %v5726_v40, 0.0  ;;  %v5731_v60 = vadd.f32 %v5520_v1, %v2129_v45 }
 0x436   : > { %v3616_v8 = vpop.f32.mrb[59].mxu1  ;;  %2393 = vadd.xlane.f32.xlu0 %v2392_v2 }
 0x437   : > { %v2114_v63 = vmul.f32 %v3614_v22, %v5660_v38  ;;  %v3617_v17 = vadd.f32 %v3616_v8, %v3615_v26  ;;  %v2395_v13 = vsel %vm657_vm0, %v5731_v60, 0.0 }
 0x438   : > { %2396 = vadd.xlane.f32.xlu1 %v2395_v13 }
 0x439   : > { %v2130_v36 = vadd.f32 %v2114_v63, %v5632_v44  ;;  %v2115_v18 = vmul.f32 %v3617_v17, %v5660_v38 }
 0x43b   : > { %v2131_v29 = vadd.f32 %v2115_v18, %v5636_v43  ;;  %v3618_v27 = vpop.f32.mrb[60].mxu1  ;;  %v5740_v39 = vadd.f32 %v5523_v49, %v2130_v36 }
 0x43c   : > { %v3619_v1 = vpop.f32.mrb[61].mxu1 }
 0x43d   : > { %v3620_v46 = vadd.f32 %v3619_v1, %v3618_v27  ;;  %v3621_v6 = vpop.f32.mrb[62].mxu1  ;;  %v2398_v48 = vsel %vm657_vm0, %v5740_v39, 0.0  ;;  %v5745_v10 = vadd.f32 %v5526_v47, %v2131_v29 }
 0x43e   : > { %v3622_v14 = vpop.f32.mrb[63].mxu1  ;;  %2399 = vadd.xlane.f32.xlu0 %v2398_v48 }
 0x43f   : > { %v2116_v44 = vmul.f32 %v3620_v46, %v5660_v38  ;;  %v3623_v52 = vadd.f32 %v3622_v14, %v3621_v6  ;;  %v2401_v43 = vsel %vm657_vm0, %v5745_v10, 0.0 }
 0x440   : > { %2402 = vadd.xlane.f32.xlu1 %v2401_v43 }
 0x441   : > { %v2132_v49 = vadd.f32 %v2116_v44, %v5644_v59  ;;  %v2117_v7 = vmul.f32 %v3623_v52, %v5660_v38 }
 0x443   : > { %v2133_v20 = vadd.f32 %v2117_v7, %v5648_v4  ;;  %v3624_v21 = vpop.f32.mrb[64].mxu1  ;;  %v5754_v57 = vadd.f32 %v5528_v24, %v2132_v49 }
 0x444   : > { %v3625_v47 = vpop.f32.mrb[65].mxu1 }
 0x445   : > { %v3626_v41 = vadd.f32 %v3625_v47, %v3624_v21  ;;  %v3627_v56 = vpop.f32.mrb[66].mxu1  ;;  %v2404_v50 = vsel %vm657_vm0, %v5754_v57, 0.0  ;;  %v5759_v35 = vadd.f32 %v5530_v34, %v2133_v20 }
 0x446   : > { %v3628_v12 = vpop.f32.mrb[67].mxu1  ;;  %2405 = vadd.xlane.f32.xlu0 %v2404_v50 }
 0x447   : > { %v2118_v59 = vmul.f32 %v3626_v41, %v5660_v38  ;;  %v3629_v23 = vadd.f32 %v3628_v12, %v3627_v56  ;;  %v2407_v4 = vsel %vm657_vm0, %v5759_v35, 0.0 }
 0x448   : > { %2408 = vadd.xlane.f32.xlu1 %v2407_v4 }
 0x449   : > { %v2134_v24 = vadd.f32 %v2118_v59, %v5657_v54  ;;  %v2119_v58 = vmul.f32 %v3629_v23, %v5660_v38  ;;  %v4021_v54 = vld [vmem:[%s6275_s10] sm:$0xff]  }
 0x44a   : > { %3732 = vmatprep.subr.bf16.mxu1 %v4021_v54 }
 0x44b   : > { %v2135_v11 = vadd.f32 %v2119_v58, %v5663_v19  ;;  %v5768_v31 = vadd.f32 %v5532_v3, %v2134_v24  ;;  %3733 = vmatpush3.bf16.msra.mxu1 %v4021_v54 }
 0x44d   : > { %v2410_v34 = vsel %vm657_vm0, %v5768_v31, 0.0  ;;  %v5773_v61 = vadd.f32 %v5537_v0, %v2135_v11 }
 0x44e   : > { %2411 = vadd.xlane.f32.xlu0 %v2410_v34 }
 0x44f   : > { %v2413_v51 = vsel %vm657_vm0, %v5773_v61, 0.0 }
 0x450   : > { %2414 = vadd.xlane.f32.xlu1 %v2413_v51 }
 0x4a3   : > { %v2370_v38 = vpop.xlane.xlu0 %2369 }
 0x4a4   : > { %v2416_v3 = vmul.f32 0.03125, %v2370_v38 }
 0x4a5   : > { %v2373_v19 = vpop.xlane.xlu1 %2372 }
 0x4a6   : > { %v5781_v25 = vsub.f32 %v5670_v16, %v2416_v3  ;;  %v2417_v28 = vmul.f32 0.03125, %v2373_v19 }
 0x4a8   : > { %v5784_v0 = vsub.f32 %v5675_v5, %v2417_v28  ;;  %v2448_v30 = vmul.f32 %v5781_v25, %v5781_v25 }
 0x4aa   : > { %v2464_v42 = vsel %vm657_vm0, %v2448_v30, 0.0  ;;  %v2449_v45 = vmul.f32 %v5784_v0, %v5784_v0 }
 0x4ab   : > { %2465 = vadd.xlane.f32.xlu0 %v2464_v42  ;;  %v2376_v53 = vpop.xlane.xlu0 %2375 }
 0x4ac   : > { %v2418_v9 = vmul.f32 0.03125, %v2376_v53  ;;  %v2467_v22 = vsel %vm657_vm0, %v2449_v45, 0.0 }
 0x4ad   : > { %2468 = vadd.xlane.f32.xlu1 %v2467_v22  ;;  %v2379_v26 = vpop.xlane.xlu1 %2378 }
 0x4ae   : > { %v5793_v2 = vsub.f32 %v5684_v15, %v2418_v9  ;;  %v2419_v8 = vmul.f32 0.03125, %v2379_v26 }
 0x4b0   : > { %v5796_v63 = vsub.f32 %v5689_v37, %v2419_v8  ;;  %v2450_v17 = vmul.f32 %v5793_v2, %v5793_v2 }
 0x4b2   : > { %v2470_v13 = vsel %vm657_vm0, %v2450_v17, 0.0  ;;  %v2451_v36 = vmul.f32 %v5796_v63, %v5796_v63 }
 0x4b3   : > { %2471 = vadd.xlane.f32.xlu0 %v2470_v13  ;;  %v2382_v18 = vpop.xlane.xlu0 %2381 }
 0x4b4   : > { %v2420_v29 = vmul.f32 0.03125, %v2382_v18  ;;  %v2473_v27 = vsel %vm657_vm0, %v2451_v36, 0.0 }
 0x4b5   : > { %2474 = vadd.xlane.f32.xlu1 %v2473_v27  ;;  %v2385_v1 = vpop.xlane.xlu1 %2384 }
 0x4b6   : > { %v5805_v46 = vsub.f32 %v5698_v55, %v2420_v29  ;;  %v2421_v6 = vmul.f32 0.03125, %v2385_v1 }
 0x4b8   : > { %v5808_v48 = vsub.f32 %v5703_v32, %v2421_v6  ;;  %v2452_v14 = vmul.f32 %v5805_v46, %v5805_v46 }
 0x4ba   : > { %v2476_v44 = vsel %vm657_vm0, %v2452_v14, 0.0  ;;  %v2453_v52 = vmul.f32 %v5808_v48, %v5808_v48 }
 0x4bb   : > { %2477 = vadd.xlane.f32.xlu0 %v2476_v44  ;;  %v2388_v43 = vpop.xlane.xlu0 %2387 }
 0x4bc   : > { %v2422_v49 = vmul.f32 0.03125, %v2388_v43  ;;  %v2479_v7 = vsel %vm657_vm0, %v2453_v52, 0.0 }
 0x4bd   : > { %2480 = vadd.xlane.f32.xlu1 %v2479_v7  ;;  %v2391_v20 = vpop.xlane.xlu1 %2390 }
 0x4be   : > { %v5817_v21 = vsub.f32 %v5712_v62, %v2422_v49  ;;  %v2423_v47 = vmul.f32 0.03125, %v2391_v20 }
 0x4c0   : > { %v5820_v41 = vsub.f32 %v5717_v33, %v2423_v47  ;;  %v2454_v56 = vmul.f32 %v5817_v21, %v5817_v21 }
 0x4c2   : > { %v2482_v50 = vsel %vm657_vm0, %v2454_v56, 0.0  ;;  %v2455_v12 = vmul.f32 %v5820_v41, %v5820_v41 }
 0x4c3   : > { %2483 = vadd.xlane.f32.xlu0 %v2482_v50  ;;  %v2394_v59 = vpop.xlane.xlu0 %2393  ;;  %v4022_v50 = vld [vmem:[%s6275_s10 + $0x8] sm:$0xff]  }
 0x4c4   : > { %v2424_v23 = vmul.f32 0.03125, %v2394_v59  ;;  %v2485_v4 = vsel %vm657_vm0, %v2455_v12, 0.0  ;;  %3734 = vmatprep.subr.bf16.mxu1 %v4022_v50 }
 0x4c5   : > { %2486 = vadd.xlane.f32.xlu1 %v2485_v4  ;;  %v2397_v24 = vpop.xlane.xlu1 %2396  ;;  %3735 = vmatpush3.bf16.msra.mxu1 %v4022_v50  ;;  %v4023_v4 = vld [vmem:[%s6276_s24] sm:$0xff]  }
 0x4c6   : > { %v5829_v58 = vsub.f32 %v5726_v40, %v2424_v23  ;;  %v2425_v11 = vmul.f32 0.03125, %v2397_v24  ;;  %3752 = vmatprep.subr.bf16.mxu0 %v4023_v4 }
 0x4c7   : > { %3753 = vmatpush3.bf16.msra.mxu0 %v4023_v4 }
 0x4c8   : > { %v5832_v34 = vsub.f32 %v5731_v60, %v2425_v11  ;;  %v2456_v51 = vmul.f32 %v5829_v58, %v5829_v58 }
 0x4ca   : > { %v2488_v54 = vsel %vm657_vm0, %v2456_v51, 0.0  ;;  %v2457_v38 = vmul.f32 %v5832_v34, %v5832_v34 }
 0x4cb   : > { %2489 = vadd.xlane.f32.xlu0 %v2488_v54  ;;  %v2400_v3 = vpop.xlane.xlu0 %2399 }
 0x4cc   : > { %v2426_v19 = vmul.f32 0.03125, %v2400_v3  ;;  %v2491_v28 = vsel %vm657_vm0, %v2457_v38, 0.0 }
 0x4cd   : > { %2492 = vadd.xlane.f32.xlu1 %v2491_v28  ;;  %v2403_v30 = vpop.xlane.xlu1 %2402 }
 0x4ce   : > { %v5841_v42 = vsub.f32 %v5740_v39, %v2426_v19  ;;  %v2427_v45 = vmul.f32 0.03125, %v2403_v30 }
 0x4d0   : > { %v5844_v53 = vsub.f32 %v5745_v10, %v2427_v45  ;;  %v2458_v9 = vmul.f32 %v5841_v42, %v5841_v42 }
 0x4d2   : > { %v2494_v22 = vsel %vm657_vm0, %v2458_v9, 0.0  ;;  %v2459_v26 = vmul.f32 %v5844_v53, %v5844_v53 }
 0x4d3   : > { %2495 = vadd.xlane.f32.xlu0 %v2494_v22  ;;  %v2406_v8 = vpop.xlane.xlu0 %2405 }
 0x4d4   : > { %v2428_v17 = vmul.f32 0.03125, %v2406_v8  ;;  %v2497_v13 = vsel %vm657_vm0, %v2459_v26, 0.0  ;;  %v5885_v8 = vld [vmem:[%s6278_s29] ss:$0 sm:$0xff]  ;;  %s3277_s29 = sshll.u32 %s617_s6, 7 }
 0x4d5   : > { %2498 = vadd.xlane.f32.xlu1 %v2497_v13  ;;  %v2409_v36 = vpop.xlane.xlu1 %2408  ;;  %s6058_s23 = scalar_lea.vmem [#allocation7], %s3277_s29 }
 0x4d6   : > { %v5853_v18 = vsub.f32 %v5754_v57, %v2428_v17  ;;  %v2429_v29 = vmul.f32 0.03125, %v2409_v36  ;;  %s3149_s11 = sshll.u32 %s6058_s23, 4  ;;  %s6118_s11 = int_to_ptr.vmem [resolvable:$true] %s3149_s11 }
 0x4d7   : > { %s4187_s16 = scalar_lea.vmem %s6118_s11, 2048 }
 0x4d8   : > { %v5856_v27 = vsub.f32 %v5759_v35, %v2429_v29  ;;  %v2460_v1 = vmul.f32 %v5853_v18, %v5853_v18  ;;  %p4188_p9 = scmp.ne.s32.totalorder %s6118_s11, %s4187_s16 }
 0x4da   : > { %v2500_v6 = vsel %vm657_vm0, %v2460_v1, 0.0  ;;  %v2461_v14 = vmul.f32 %v5856_v27, %v5856_v27  ;;  %p4189_p5 = pnand %p4188_p9, %p6284_p0 }
 0x4db   : > { %2501 = vadd.xlane.f32.xlu0 %v2500_v6  ;;  %v2412_v44 = vpop.xlane.xlu0 %2411 }
 0x4dc   : > { %v2430_v52 = vmul.f32 0.03125, %v2412_v44  ;;  %v2503_v43 = vsel %vm657_vm0, %v2461_v14, 0.0  ;;  %v5893_v44 = vld [vmem:[%s6279_s12] ss:$0 sm:$0xff]  ;;  %s6281_s12 = sld [smem:[#allocation34_spill]]  ;;  %p4190_p2 = pneg %p4189_p5 }
 0x4dd   : > { %2504 = vadd.xlane.f32.xlu1 %v2503_v43  ;;  %v2415_v49 = vpop.xlane.xlu1 %2414 }
 0x4de   : > { %v5865_v7 = vsub.f32 %v5768_v31, %v2430_v52  ;;  %v2431_v20 = vmul.f32 0.03125, %v2415_v49 }
 0x4e0   : > { %v5868_v47 = vsub.f32 %v5773_v61, %v2431_v20  ;;  %v2462_v56 = vmul.f32 %v5865_v7, %v5865_v7 }
 0x4e2   : > { %v2506_v12 = vsel %vm657_vm0, %v2462_v56, 0.0  ;;  %v2463_v59 = vmul.f32 %v5868_v47, %v5868_v47 }
 0x4e3   : > { %2507 = vadd.xlane.f32.xlu0 %v2506_v12 }
 0x4e4   : > { %v2509_v23 = vsel %vm657_vm0, %v2463_v59, 0.0 }
 0x4e5   : > { %2510 = vadd.xlane.f32.xlu1 %v2509_v23 }
 0x538   : > { %v2466_v24 = vpop.xlane.xlu0 %2465 }
 0x539   : > { %v2512_v11 = vmul.f32 0.03125, %v2466_v24 }
 0x53a   : > { %v2469_v51 = vpop.xlane.xlu1 %2468 }
 0x53b   : > { %v2528_v54 = vadd.f32 1e-05, %v2512_v11  ;;  %v2513_v38 = vmul.f32 0.03125, %v2469_v51 }
 0x53d   : > { %4095 = vrsqrt.f32 %v2528_v54  ;;  %v2529_v3 = vadd.f32 1e-05, %v2513_v38 }
 0x53f   : > { %4097 = vrsqrt.f32 %v2529_v3 }
 0x540   : > { %v2472_v19 = vpop.xlane.xlu0 %2471 }
 0x541   : > { %v2514_v28 = vmul.f32 0.03125, %v2472_v19 }
 0x542   : > { %v2475_v30 = vpop.xlane.xlu1 %2474 }
 0x543   : > { %v2530_v45 = vadd.f32 1e-05, %v2514_v28  ;;  %v2515_v9 = vmul.f32 0.03125, %v2475_v30 }
 0x545   : > { %4099 = vrsqrt.f32 %v2530_v45  ;;  %v2531_v22 = vadd.f32 1e-05, %v2515_v9 }
 0x547   : > { %v4096_v26 = vpop.eup %4095  ;;  %4101 = vrsqrt.f32 %v2531_v22 }
 0x548   : > { %v2560_v17 = vmul.f32 %v4096_v26, %v5781_v25  ;;  %v2478_v13 = vpop.xlane.xlu0 %2477 }
 0x549   : > { %v4098_v36 = vpop.eup %4097  ;;  %v2516_v29 = vmul.f32 0.03125, %v2478_v13 }
 0x54a   : > { %v2561_v1 = vmul.f32 %v4098_v36, %v5784_v0  ;;  %v2481_v6 = vpop.xlane.xlu1 %2480  ;;  %v2582_v14 = vmul.f32 %v5885_v8, %v2560_v17 }
 0x54b   : > { %v2532_v52 = vadd.f32 1e-05, %v2516_v29  ;;  %v2517_v43 = vmul.f32 0.03125, %v2481_v6 }
 0x54c   : > { %v2583_v49 = vmul.f32 %v5885_v8, %v2561_v1  ;;  %v2604_v25 = vadd.f32 %v5893_v44, %v2582_v14 }
 0x54d   : > { %4103 = vrsqrt.f32 %v2532_v52  ;;  %v2533_v20 = vadd.f32 1e-05, %v2517_v43 }
 0x54e   : > { %v2605_v56 = vadd.f32 %v5893_v44, %v2583_v49 }
 0x54f   : > { %v4100_v50 = vpop.eup %4099  ;;  %4105 = vrsqrt.f32 %v2533_v20 }
 0x550   : > { %v2562_v0 = vmul.f32 %v4100_v50, %v5793_v2  ;;  %v2484_v12 = vpop.xlane.xlu0 %2483  ;;  %v2620_v59 = vpack.c.bf16 %v2605_v56, %v2604_v25 }
 0x551   : > { %v4102_v23 = vpop.eup %4101  ;;  %v2518_v4 = vmul.f32 0.03125, %v2484_v12 }
 0x552   : > { %v2584_v24 = vmul.f32 %v5885_v8, %v2562_v0  ;;  %v2563_v11 = vmul.f32 %v4102_v23, %v5796_v63  ;;  %v2487_v51 = vpop.xlane.xlu1 %2486  ;;  %3736 = vmatprep.mubr.msk.bf16.mxu1 %vm657_vm0, %v2620_v59 }
 0x553   : > { %v2534_v54 = vadd.f32 1e-05, %v2518_v4  ;;  %v2519_v38 = vmul.f32 0.03125, %v2487_v51 }
 0x554   : > { %v2585_v3 = vmul.f32 %v5885_v8, %v2563_v11  ;;  %v2606_v28 = vadd.f32 %v5893_v44, %v2584_v24 }
 0x555   : > { %4107 = vrsqrt.f32 %v2534_v54  ;;  %v2535_v19 = vadd.f32 1e-05, %v2519_v38 }
 0x556   : > { %v2607_v2 = vadd.f32 %v5893_v44, %v2585_v3 }
 0x557   : > { %v4104_v30 = vpop.eup %4103  ;;  %4109 = vrsqrt.f32 %v2535_v19 }
 0x558   : > { %v2564_v45 = vmul.f32 %v4104_v30, %v5805_v46  ;;  %v2490_v9 = vpop.xlane.xlu0 %2489  ;;  %v2621_v22 = vpack.c.bf16 %v2607_v2, %v2606_v28 }
 0x559   : > { %v4106_v63 = vpop.eup %4105  ;;  %v2520_v26 = vmul.f32 0.03125, %v2490_v9 }
 0x55a   : > { %v2565_v17 = vmul.f32 %v4106_v63, %v5808_v48  ;;  %v2493_v13 = vpop.xlane.xlu1 %2492  ;;  %3737 = vmatmul.mubr.msk.bf16.vlgmr.msra.gmra.mrb[68].mxu1 %vm657_vm0, %v2621_v22  ;;  %v2586_v36 = vmul.f32 %v5885_v8, %v2564_v45 }
 0x55b   : > { %v2536_v29 = vadd.f32 1e-05, %v2520_v26  ;;  %v2521_v1 = vmul.f32 0.03125, %v2493_v13 }
 0x55c   : > { %v2587_v6 = vmul.f32 %v5885_v8, %v2565_v17  ;;  %v2608_v52 = vadd.f32 %v5893_v44, %v2586_v36 }
 0x55d   : > { %4111 = vrsqrt.f32 %v2536_v29  ;;  %v2537_v14 = vadd.f32 1e-05, %v2521_v1 }
 0x55e   : > { %v2609_v46 = vadd.f32 %v5893_v44, %v2587_v6 }
 0x55f   : > { %v4108_v43 = vpop.eup %4107  ;;  %4113 = vrsqrt.f32 %v2537_v14 }
 0x560   : > { %v2566_v49 = vmul.f32 %v4108_v43, %v5817_v21  ;;  %v2496_v48 = vpop.xlane.xlu0 %2495  ;;  %v2622_v20 = vpack.c.bf16 %v2609_v46, %v2608_v52 }
 0x561   : > { %v4110_v25 = vpop.eup %4109  ;;  %v2522_v56 = vmul.f32 0.03125, %v2496_v48 }
 0x562   : > { %v2567_v50 = vmul.f32 %v4110_v25, %v5820_v41  ;;  %v2499_v0 = vpop.xlane.xlu1 %2498  ;;  %3740 = vmatprep.mubr.msk.bf16.mxu1 %vm657_vm0, %v2622_v20  ;;  %v2588_v12 = vmul.f32 %v5885_v8, %v2566_v49 }
 0x563   : > { %v2538_v59 = vadd.f32 1e-05, %v2522_v56  ;;  %v2523_v23 = vmul.f32 0.03125, %v2499_v0 }
 0x564   : > { %v2589_v4 = vmul.f32 %v5885_v8, %v2567_v50  ;;  %v2610_v11 = vadd.f32 %v5893_v44, %v2588_v12 }
 0x565   : > { %4115 = vrsqrt.f32 %v2538_v59  ;;  %v2539_v24 = vadd.f32 1e-05, %v2523_v23 }
 0x566   : > { %v2611_v21 = vadd.f32 %v5893_v44, %v2589_v4 }
 0x567   : > { %v4112_v51 = vpop.eup %4111  ;;  %4117 = vrsqrt.f32 %v2539_v24 }
 0x568   : > { %v2568_v54 = vmul.f32 %v4112_v51, %v5829_v58  ;;  %v2502_v41 = vpop.xlane.xlu0 %2501  ;;  %v2623_v38 = vpack.c.bf16 %v2611_v21, %v2610_v11 }
 0x569   : > { %v4114_v3 = vpop.eup %4113  ;;  %v2524_v19 = vmul.f32 0.03125, %v2502_v41 }
 0x56a   : > { %v2569_v28 = vmul.f32 %v4114_v3, %v5832_v34  ;;  %v2505_v2 = vpop.xlane.xlu1 %2504  ;;  %3741 = vmatmul.mubr.msk.bf16.gmra.mrb[72].mxu1 %vm657_vm0, %v2623_v38  ;;  %v2590_v30 = vmul.f32 %v5885_v8, %v2568_v54 }
 0x56b   : > { %v2540_v45 = vadd.f32 1e-05, %v2524_v19  ;;  %v2525_v9 = vmul.f32 0.03125, %v2505_v2 }
 0x56c   : > { %v2591_v22 = vmul.f32 %v5885_v8, %v2569_v28  ;;  %v2612_v26 = vadd.f32 %v5893_v44, %v2590_v30 }
 0x56d   : > { %4119 = vrsqrt.f32 %v2540_v45  ;;  %v2541_v63 = vadd.f32 1e-05, %v2525_v9 }
 0x56e   : > { %v2613_v58 = vadd.f32 %v5893_v44, %v2591_v22 }
 0x56f   : > { %v4116_v17 = vpop.eup %4115  ;;  %4121 = vrsqrt.f32 %v2541_v63 }
 0x570   : > { %v2570_v13 = vmul.f32 %v4116_v17, %v5841_v42  ;;  %v2508_v34 = vpop.xlane.xlu0 %2507  ;;  %v2624_v36 = vpack.c.bf16 %v2613_v58, %v2612_v26 }
 0x571   : > { %v4118_v29 = vpop.eup %4117  ;;  %v2526_v1 = vmul.f32 0.03125, %v2508_v34 }
 0x572   : > { %v2571_v6 = vmul.f32 %v4118_v29, %v5844_v53  ;;  %v2511_v14 = vpop.xlane.xlu1 %2510  ;;  %3744 = vmatprep.mubr.msk.bf16.mxu1 %vm657_vm0, %v2624_v36  ;;  %v2592_v52 = vmul.f32 %v5885_v8, %v2570_v13 }
 0x573   : > { %v2542_v46 = vadd.f32 1e-05, %v2526_v1  ;;  %v2527_v43 = vmul.f32 0.03125, %v2511_v14 }
 0x574   : > { %v2593_v49 = vmul.f32 %v5885_v8, %v2571_v6  ;;  %v2614_v20 = vadd.f32 %v5893_v44, %v2592_v52 }
 0x575   : > { %4123 = vrsqrt.f32 %v2542_v46  ;;  %v2543_v48 = vadd.f32 1e-05, %v2527_v43 }
 0x576   : > { %v2615_v42 = vadd.f32 %v5893_v44, %v2593_v49 }
 0x577   : > { %v4120_v25 = vpop.eup %4119  ;;  %4125 = vrsqrt.f32 %v2543_v48 }
 0x578   : > { %v2572_v56 = vmul.f32 %v4120_v25, %v5853_v18  ;;  %v2625_v53 = vpack.c.bf16 %v2615_v42, %v2614_v20 }
 0x579   : > { %v4122_v50 = vpop.eup %4121 }
 0x57a   : > { %v2573_v0 = vmul.f32 %v4122_v50, %v5856_v27  ;;  %3745 = vmatmul.mubr.msk.bf16.gmra.mrb[76].mxu1 %vm657_vm0, %v2625_v53  ;;  %v2594_v12 = vmul.f32 %v5885_v8, %v2572_v56 }
 0x57c   : > { %v2595_v59 = vmul.f32 %v5885_v8, %v2573_v0  ;;  %v2616_v23 = vadd.f32 %v5893_v44, %v2594_v12 }
 0x57e   : > { %v2617_v4 = vadd.f32 %v5893_v44, %v2595_v59 }
 0x57f   : > { %v4124_v24 = vpop.eup %4123 }
 0x580   : > { %v2574_v11 = vmul.f32 %v4124_v24, %v5865_v7  ;;  %v2626_v21 = vpack.c.bf16 %v2617_v4, %v2616_v23  ;;  %v4024_v7 = vld [vmem:[%s6277_s15 + $0x8] sm:$0xff]  }
 0x581   : > { %v4126_v51 = vpop.eup %4125  ;;  %3754 = vmatprep.subr.bf16.mxu0 %v4024_v7 }
 0x582   : > { %v2575_v18 = vmul.f32 %v4126_v51, %v5868_v47  ;;  %3748 = vmatprep.mubr.msk.bf16.mxu1 %vm657_vm0, %v2626_v21  ;;  %v2596_v27 = vmul.f32 %v5885_v8, %v2574_v11  ;;  %v4025_v47 = vld [vmem:[%s6277_s15 + $0x10] sm:$0xff]   ;;  %3755 = vmatpush3.bf16.msra.mxu0 %v4024_v7 }
 0x583   : > { %3756 = vmatprep.subr.bf16.mxu0 %v4025_v47 }
 0x584   : > { %v2597_v54 = vmul.f32 %v5885_v8, %v2575_v18  ;;  %v2618_v41 = vadd.f32 %v5893_v44, %v2596_v27  ;;  %v4026_v8 = vld [vmem:[%s6277_s15 + $0x18] sm:$0xff]  }
 0x586   : > { %v2619_v38 = vadd.f32 %v5893_v44, %v2597_v54  ;;  %3757 = vmatpush3.bf16.msra.mxu0 %v4025_v47  ;;  %v5960_v44 = vld [vmem:[%s6280_s20] ss:$0 sm:$0xff]  ;;  %s6283_s20 = sld [smem:[#allocation35_spill]] }
 0x587   : > { %3758 = vmatprep.subr.bf16.mxu0 %v4026_v8 }
 0x588   : > { %v2627_v3 = vpack.c.bf16 %v2619_v38, %v2618_v41 }
 0x58a   : > { %3749 = vmatmul.mubr.msk.bf16.gmra.mrb[80].mxu1 %vm657_vm0, %v2627_v3  ;;  %3759 = vmatpush3.bf16.msra.mxu0 %v4026_v8 }
 0x58c   : > { %s6116_s29 = scalar_lea.hbm %s6283_s20, %s3425_s27 }
 0x62d   : > { %v3738_v19 = vpop.f32.mrb[68].mxu1 }
 0x62e   : > { %v2741_v28 = vadd.f32 %v3738_v19, %v5960_v44  ;;  %v2732_v2 = vpop.f32.mrb[69].mxu1 }
 0x62f   : > { %v2733_v30 = vadd.f32 %v5960_v44, %v2732_v2  ;;  %v3739_v45 = vpop.f32.mrb[70].mxu1 }
 0x630   : > { %v2813_v9 = vmul.f32 0.044715, %v2741_v28  ;;  %v2744_v22 = vadd.f32 %v3739_v45, %v5960_v44  ;;  %v2735_v63 = vpop.f32.mrb[71].mxu1  ;;  %v2797_v8 = vmul.f32 0.5, %v2741_v28 }
 0x631   : > { %v2811_v26 = vmul.f32 0.044715, %v2733_v30  ;;  %v2736_v58 = vadd.f32 %v5960_v44, %v2735_v63 }
 0x632   : > { %v2829_v17 = vmul.f32 %v2813_v9, %v2741_v28  ;;  %v2814_v13 = vmul.f32 0.044715, %v2744_v22 }
 0x633   : > { %v2827_v34 = vmul.f32 %v2811_v26, %v2733_v30  ;;  %v2812_v36 = vmul.f32 0.044715, %v2736_v58 }
 0x634   : > { %v2845_v29 = vmul.f32 %v2829_v17, %v2741_v28  ;;  %v2830_v1 = vmul.f32 %v2814_v13, %v2744_v22  ;;  %v2795_v17 = vmul.f32 0.5, %v2733_v30 }
 0x635   : > { %v2843_v6 = vmul.f32 %v2827_v34, %v2733_v30  ;;  %v2828_v14 = vmul.f32 %v2812_v36, %v2736_v58  ;;  %v2798_v36 = vmul.f32 0.5, %v2744_v22 }
 0x636   : > { %v2861_v52 = vadd.f32 %v2845_v29, %v2741_v28  ;;  %v2846_v46 = vmul.f32 %v2830_v1, %v2744_v22 }
 0x637   : > { %v2859_v43 = vadd.f32 %v2843_v6, %v2733_v30  ;;  %v2844_v49 = vmul.f32 %v2828_v14, %v2736_v58 }
 0x638   : > { %v2877_v48 = vmul.f32 0.7978846, %v2861_v52  ;;  %v2862_v20 = vadd.f32 %v2846_v46, %v2744_v22  ;;  %v2796_v52 = vmul.f32 0.5, %v2736_v58 }
 0x639   : > { %v2875_v42 = vmul.f32 0.7978846, %v2859_v43  ;;  %v2860_v25 = vadd.f32 %v2844_v49, %v2736_v58 }
 0x63a   : > { %4127 = vtanh.f32 %v2877_v48  ;;  %v2878_v56 = vmul.f32 0.7978846, %v2862_v20 }
 0x63b   : > { %4129 = vtanh.f32 %v2875_v42  ;;  %v2876_v53 = vmul.f32 0.7978846, %v2860_v25 }
 0x63c   : > { %4131 = vtanh.f32 %v2878_v56 }
 0x63d   : > { %4133 = vtanh.f32 %v2876_v53  ;;  %v3742_v50 = vpop.f32.mrb[72].mxu1 }
 0x63e   : > { %v5967_v0 = vadd.f32 %v3742_v50, %v5960_v44  ;;  %v2748_v12 = vpop.f32.mrb[73].mxu1 }
 0x63f   : > { %v5970_v59 = vadd.f32 %v5960_v44, %v2748_v12  ;;  %v3743_v23 = vpop.f32.mrb[74].mxu1 }
 0x640   : > { %v2817_v4 = vmul.f32 0.044715, %v5967_v0  ;;  %v5974_v24 = vadd.f32 %v3743_v23, %v5960_v44  ;;  %v2751_v11 = vpop.f32.mrb[75].mxu1 }
 0x641   : > { %v2815_v21 = vmul.f32 0.044715, %v5970_v59  ;;  %v5978_v51 = vadd.f32 %v5960_v44, %v2751_v11 }
 0x642   : > { %v2833_v18 = vmul.f32 %v2817_v4, %v5967_v0  ;;  %v2818_v27 = vmul.f32 0.044715, %v5974_v24 }
 0x643   : > { %v2831_v54 = vmul.f32 %v2815_v21, %v5970_v59  ;;  %v2816_v41 = vmul.f32 0.044715, %v5978_v51 }
 0x644   : > { %v4128_v38 = vpop.eup %4127  ;;  %v2849_v3 = vmul.f32 %v2833_v18, %v5967_v0  ;;  %v2834_v7 = vmul.f32 %v2818_v27, %v5974_v24 }
 0x645   : > { %v4130_v47 = vpop.eup %4129  ;;  %v2909_v19 = vadd.f32 1.0, %v4128_v38  ;;  %v2847_v2 = vmul.f32 %v2831_v54, %v5970_v59  ;;  %v2832_v45 = vmul.f32 %v2816_v41, %v5978_v51 }
 0x646   : > { %v4132_v9 = vpop.eup %4131  ;;  %v2865_v63 = vadd.f32 %v2849_v3, %v5967_v0  ;;  %v2850_v26 = vmul.f32 %v2834_v7, %v5974_v24  ;;  %v2907_v13 = vadd.f32 1.0, %v4130_v47 }
 0x647   : > { %v4134_v34 = vpop.eup %4133  ;;  %v2910_v29 = vadd.f32 1.0, %v4132_v9  ;;  %v2863_v1 = vadd.f32 %v2847_v2, %v5970_v59  ;;  %v2848_v6 = vmul.f32 %v2832_v45, %v5978_v51  ;;  %v2925_v43 = vmul.f32 %v2909_v19, %v2797_v8 }
 0x648   : > { %v2881_v28 = vmul.f32 0.7978846, %v2865_v63  ;;  %v2866_v14 = vadd.f32 %v2850_v26, %v5974_v24  ;;  %v2908_v46 = vadd.f32 1.0, %v4134_v34  ;;  %v2923_v42 = vmul.f32 %v2907_v13, %v2795_v17 }
 0x649   : > { %v2926_v49 = vmul.f32 %v2910_v29, %v2798_v36  ;;  %v2879_v48 = vmul.f32 0.7978846, %v2863_v1  ;;  %v2864_v20 = vadd.f32 %v2848_v6, %v5978_v51  ;;  %v2801_v63 = vmul.f32 0.5, %v5967_v0 }
 0x64a   : > { %4135 = vtanh.f32 %v2881_v28  ;;  %v2882_v30 = vmul.f32 0.7978846, %v2866_v14  ;;  %v2924_v25 = vmul.f32 %v2908_v46, %v2796_v52  ;;  %v2799_v36 = vmul.f32 0.5, %v5970_v59 }
 0x64b   : > { %v2940_v22 = vpack.c.bf16 %v2926_v49, %v2925_v43  ;;  %4137 = vtanh.f32 %v2879_v48  ;;  %v2880_v56 = vmul.f32 0.7978846, %v2864_v20  ;;  %v2802_v14 = vmul.f32 0.5, %v5974_v24 }
 0x64c   : > { %4139 = vtanh.f32 %v2882_v30  ;;  %v2939_v53 = vpack.c.bf16 %v2924_v25, %v2923_v42  ;;  %v2800_v43 = vmul.f32 0.5, %v5978_v51 }
 0x64d   : > { %4141 = vtanh.f32 %v2880_v56  ;;  %v3746_v50 = vpop.f32.mrb[76].mxu1 }
 0x64e   : > { %v5995_v58 = vadd.f32 %v3746_v50, %v5960_v44  ;;  %v2764_v12 = vpop.f32.mrb[77].mxu1  ;;  %3760 = vmatprep.mubr.msk.bf16.mxu0 %vm2979_vm3, %v2939_v53 }
 0x64f   : > { %v5999_v23 = vadd.f32 %v5960_v44, %v2764_v12  ;;  %v3747_v4 = vpop.f32.mrb[78].mxu1  ;;  %3761 = vmatmul.mubr.msk.bf16.vlgmr.msra.gmra.mrb[68].mxu0 %vm2979_vm3, %v2940_v22 }
 0x650   : > { %v2821_v11 = vmul.f32 0.044715, %v5995_v58  ;;  %v6004_v21 = vadd.f32 %v3747_v4, %v5960_v44  ;;  %v2767_v18 = vpop.f32.mrb[79].mxu1 }
 0x651   : > { %v2819_v27 = vmul.f32 0.044715, %v5999_v23  ;;  %v6008_v54 = vadd.f32 %v5960_v44, %v2767_v18 }
 0x652   : > { %v2837_v41 = vmul.f32 %v2821_v11, %v5995_v58  ;;  %v2822_v38 = vmul.f32 0.044715, %v6004_v21 }
 0x653   : > { %v2835_v3 = vmul.f32 %v2819_v27, %v5999_v23  ;;  %v2820_v7 = vmul.f32 0.044715, %v6008_v54 }
 0x654   : > { %v4136_v47 = vpop.eup %4135  ;;  %v2853_v8 = vmul.f32 %v2837_v41, %v5995_v58  ;;  %v2838_v19 = vmul.f32 %v2822_v38, %v6004_v21 }
 0x655   : > { %v4138_v2 = vpop.eup %4137  ;;  %v2851_v45 = vmul.f32 %v2835_v3, %v5999_v23  ;;  %v2836_v9 = vmul.f32 %v2820_v7, %v6008_v54  ;;  %v2913_v26 = vadd.f32 1.0, %v4136_v47 }
 0x656   : > { %v4140_v17 = vpop.eup %4139  ;;  %v2869_v13 = vadd.f32 %v2853_v8, %v5995_v58  ;;  %v2854_v34 = vmul.f32 %v2838_v19, %v6004_v21  ;;  %v2911_v29 = vadd.f32 1.0, %v4138_v2 }
 0x657   : > { %v4142_v1 = vpop.eup %4141  ;;  %v2867_v6 = vadd.f32 %v2851_v45, %v5999_v23  ;;  %v2852_v28 = vmul.f32 %v2836_v9, %v6008_v54  ;;  %v2914_v52 = vadd.f32 1.0, %v4140_v17  ;;  %v2929_v30 = vmul.f32 %v2913_v26, %v2801_v63 }
 0x658   : > { %v2885_v46 = vmul.f32 0.7978846, %v2869_v13  ;;  %v2870_v0 = vadd.f32 %v2854_v34, %v6004_v21  ;;  %v2912_v49 = vadd.f32 1.0, %v4142_v1  ;;  %v2927_v25 = vmul.f32 %v2911_v29, %v2799_v36 }
 0x659   : > { %v2883_v48 = vmul.f32 0.7978846, %v2867_v6  ;;  %v2868_v20 = vadd.f32 %v2852_v28, %v6008_v54  ;;  %v2930_v59 = vmul.f32 %v2914_v52, %v2802_v14  ;;  %v2805_v13 = vmul.f32 0.5, %v5995_v58 }
 0x65a   : > { %4143 = vtanh.f32 %v2885_v46  ;;  %v2886_v42 = vmul.f32 0.7978846, %v2870_v0  ;;  %v2928_v22 = vmul.f32 %v2912_v49, %v2800_v43  ;;  %v2803_v6 = vmul.f32 0.5, %v5999_v23 }
 0x65b   : > { %4145 = vtanh.f32 %v2883_v48  ;;  %v2884_v56 = vmul.f32 0.7978846, %v2868_v20  ;;  %v2942_v53 = vpack.c.bf16 %v2930_v59, %v2929_v30  ;;  %v2806_v46 = vmul.f32 0.5, %v6004_v21 }
 0x65c   : > { %4147 = vtanh.f32 %v2886_v42  ;;  %v2941_v24 = vpack.c.bf16 %v2928_v22, %v2927_v25  ;;  %v2804_v48 = vmul.f32 0.5, %v6008_v54 }
 0x65d   : > { %4149 = vtanh.f32 %v2884_v56  ;;  %v3750_v50 = vpop.f32.mrb[80].mxu1 }
 0x65e   : > { %v2789_v12 = vadd.f32 %v3750_v50, %v5960_v44  ;;  %v2780_v51 = vpop.f32.mrb[81].mxu1  ;;  %3764 = vmatprep.mubr.msk.bf16.mxu0 %vm2979_vm3, %v2941_v24 }
 0x65f   : > { %v2781_v4 = vadd.f32 %v5960_v44, %v2780_v51  ;;  %v3751_v11 = vpop.f32.mrb[82].mxu1  ;;  %3765 = vmatmul.mubr.msk.bf16.gmra.mrb[72].mxu0 %vm2979_vm3, %v2942_v53 }
 0x660   : > { %v2825_v18 = vmul.f32 0.044715, %v2789_v12  ;;  %v2792_v27 = vadd.f32 %v3751_v11, %v5960_v44  ;;  %v2783_v41 = vpop.f32.mrb[83].mxu1 }
 0x661   : > { %v2823_v38 = vmul.f32 0.044715, %v2781_v4  ;;  %v2784_v3 = vadd.f32 %v5960_v44, %v2783_v41  ;;  %v2809_v41 = vmul.f32 0.5, %v2789_v12 }
 0x662   : > { %v2841_v7 = vmul.f32 %v2825_v18, %v2789_v12  ;;  %v2826_v47 = vmul.f32 0.044715, %v2792_v27 }
 0x663   : > { %v2839_v8 = vmul.f32 %v2823_v38, %v2781_v4  ;;  %v2824_v19 = vmul.f32 0.044715, %v2784_v3  ;;  %v2810_v38 = vmul.f32 0.5, %v2792_v27 }
 0x664   : > { %v4144_v2 = vpop.eup %4143  ;;  %v2857_v45 = vmul.f32 %v2841_v7, %v2789_v12  ;;  %v2842_v9 = vmul.f32 %v2826_v47, %v2792_v27  ;;  %v2807_v47 = vmul.f32 0.5, %v2781_v4 }
 0x665   : > { %v4146_v63 = vpop.eup %4145  ;;  %v2855_v26 = vmul.f32 %v2839_v8, %v2781_v4  ;;  %v2840_v17 = vmul.f32 %v2824_v19, %v2784_v3  ;;  %v2917_v34 = vadd.f32 1.0, %v4144_v2  ;;  %v2808_v8 = vmul.f32 0.5, %v2784_v3 }
 0x666   : > { %v4148_v36 = vpop.eup %4147  ;;  %v2873_v29 = vadd.f32 %v2857_v45, %v2789_v12  ;;  %v2858_v1 = vmul.f32 %v2842_v9, %v2792_v27  ;;  %v2915_v28 = vadd.f32 1.0, %v4146_v63  ;;  %v6048_v12 = vld [vmem:[%s6281_s12] ss:$0 sm:$0xff]  ;;  %s4351_s12 = smov [#allocation7]  }
 0x667   : > { %v4150_v44 = vpop.eup %4149  ;;  %v2871_v14 = vadd.f32 %v2855_v26, %v2781_v4  ;;  %v2856_v52 = vmul.f32 %v2840_v17, %v2784_v3  ;;  %v2918_v0 = vadd.f32 1.0, %v4148_v36  ;;  %v2933_v59 = vmul.f32 %v2917_v34, %v2805_v13  ;;  %s4191_s14 = sshll.u32 %s4351_s12, 4  ;;  %s4192_s14 = int_to_ptr.vmem [resolvable:$false] %s4191_s14 }
 0x668   : > { %v2889_v43 = vmul.f32 0.7978846, %v2873_v29  ;;  %v2874_v49 = vadd.f32 %v2858_v1, %v2792_v27  ;;  %v2916_v20 = vadd.f32 1.0, %v4150_v44  ;;  %v2931_v22 = vmul.f32 %v2915_v28, %v2803_v6  ;;  %s4193_s8 = scalar_lea.vmem %s4192_s14, 4096  ;;  %p4194_p6 = scmp.lt.s32.totalorder %s6118_s11, %s4192_s14 }
 0x669   : > { %v2887_v30 = vmul.f32 0.7978846, %v2871_v14  ;;  %v2872_v58 = vadd.f32 %v2856_v52, %v2784_v3  ;;  %v2934_v42 = vmul.f32 %v2918_v0, %v2806_v46  ;;  %v2637_v4 = vadd.f32 %v6048_v12, %v5684_v15  ;;  %p4195_p10 = scmp.lt.s32.totalorder %s4193_s8, %s4187_s16 }
 0x66a   : > { %4151 = vtanh.f32 %v2889_v43  ;;  %v2890_v25 = vmul.f32 0.7978846, %v2874_v49  ;;  %v2932_v23 = vmul.f32 %v2916_v20, %v2804_v48  ;;  %v2635_v3 = vadd.f32 %v6048_v12, %v5670_v16 }
 0x66b   : > { %4153 = vtanh.f32 %v2887_v30  ;;  %v2888_v56 = vmul.f32 0.7978846, %v2872_v58  ;;  %v2944_v53 = vpack.c.bf16 %v2934_v42, %v2933_v59  ;;  %v2638_v36 = vadd.f32 %v6048_v12, %v5689_v37  ;;  %p4196_p11 = por %p4195_p10, %p4194_p6 }
 0x66c   : > { %4155 = vtanh.f32 %v2890_v25  ;;  %v2943_v24 = vpack.c.bf16 %v2932_v23, %v2931_v22  ;;  %v2636_v6 = vadd.f32 %v6048_v12, %v5675_v5  ;;  %v2641_v5 = vadd.f32 %v6048_v12, %v5712_v62 }
 0x66d   : > { %4157 = vtanh.f32 %v2888_v56  ;;  %v2639_v44 = vadd.f32 %v6048_v12, %v5698_v55  ;;  %v2642_v46 = vadd.f32 %v6048_v12, %v5717_v33  ;;  %v2640_v49 = vadd.f32 %v6048_v12, %v5703_v32  ;;  %p4197_p1 = pnand %p4196_p11, %p4190_p2 }
 0x66e   : > { %3768 = vmatprep.mubr.msk.bf16.mxu0 %vm2979_vm3, %v2943_v24  ;;  %v2645_v55 = vadd.f32 %v6048_v12, %v5740_v39  ;;  %v2643_v33 = vadd.f32 %v6048_v12, %v5726_v40  ;;  %v2646_v59 = vadd.f32 %v6048_v12, %v5745_v10  ;;  %v2644_v22 = vadd.f32 %v6048_v12, %v5731_v60 }
 0x66f   : > { %3769 = vmatmul.mubr.msk.bf16.gmra.mrb[76].mxu0 %vm2979_vm3, %v2944_v53  ;;  %v2649_v40 = vadd.f32 %v6048_v12, %v5768_v31  ;;  %v2647_v10 = vadd.f32 %v6048_v12, %v5754_v57  ;;  %v2648_v31 = vadd.f32 %v6048_v12, %v5759_v35 }
 0x674   : > { %v4152_v21 = vpop.eup %4151 }
 0x675   : > { %v4154_v54 = vpop.eup %4153  ;;  %v2921_v50 = vadd.f32 1.0, %v4152_v21  ;;  %v2650_v21 = vadd.f32 %v6048_v12, %v5773_v61 }
 0x676   : > { %v4156_v51 = vpop.eup %4155  ;;  %v2919_v11 = vadd.f32 1.0, %v4154_v54 }
 0x677   : > { %v4158_v18 = vpop.eup %4157  ;;  %v2922_v7 = vadd.f32 1.0, %v4156_v51  ;;  %v2937_v2 = vmul.f32 %v2921_v50, %v2809_v41 }
 0x678   : > { %v2920_v19 = vadd.f32 1.0, %v4158_v18  ;;  %v2935_v9 = vmul.f32 %v2919_v11, %v2807_v47 }
 0x679   : > { %v2938_v45 = vmul.f32 %v2922_v7, %v2810_v38 }
 0x67a   : > { %v2936_v63 = vmul.f32 %v2920_v19, %v2808_v8 }
 0x67b   : > { %v2946_v26 = vpack.c.bf16 %v2938_v45, %v2937_v2 }
 0x67c   : > { %v2945_v17 = vpack.c.bf16 %v2936_v63, %v2935_v9 }
 0x67e   : > { %3772 = vmatprep.mubr.msk.bf16.mxu0 %vm2979_vm3, %v2945_v17 }
 0x67f   : > { %3773 = vmatmul.mubr.msk.bf16.gmra.mrb[80].mxu0 %vm2979_vm3, %v2946_v26 }
 0x722   : > { %v3762_v27 = vpop.f32.mrb[68].mxu0 }
 0x723   : > { %v3103_v13 = vadd.f32 %v3762_v27, %v2637_v4  ;;  %v3038_v34 = vpop.f32.mrb[69].mxu0 }
 0x724   : > { %v3101_v29 = vadd.f32 %v3038_v34, %v2635_v3  ;;  %v3763_v1 = vpop.f32.mrb[70].mxu0 }
 0x725   : > { %3119 = vst.msk [vmem:[%s6058_s23 + $0x10] sm:$0xff] %vm657_vm0, %v3103_v13  ;;  %v3104_v16 = vadd.f32 %v3763_v1, %v2638_v36  ;;  %v3041_v15 = vpop.f32.mrb[71].mxu0 }
 0x726   : > { %3117 = vst.msk [vmem:[%s6058_s23] sm:$0xff] %vm657_vm0, %v3101_v29  ;;  %v3102_v37 = vadd.f32 %v3041_v15, %v2636_v6 }
 0x727   : > { %3120 = vst.msk [vmem:[%s6058_s23 + $0x18] sm:$0xff] %vm657_vm0, %v3104_v16 }
 0x728   : > { %3118 = vst.msk [vmem:[%s6058_s23 + $0x8] sm:$0xff] %vm657_vm0, %v3102_v37 }
 0x732   : > { %v3766_v28 = vpop.f32.mrb[72].mxu0 }
 0x733   : > { %v3107_v14 = vadd.f32 %v3766_v28, %v2641_v5  ;;  %v3054_v52 = vpop.f32.mrb[73].mxu0 }
 0x734   : > { %v3105_v0 = vadd.f32 %v3054_v52, %v2639_v44  ;;  %v3767_v43 = vpop.f32.mrb[74].mxu0 }
 0x735   : > { %3123 = vst.msk [vmem:[%s6058_s23 + $0x30] sm:$0xff] %vm657_vm0, %v3107_v14  ;;  %v3108_v48 = vadd.f32 %v3767_v43, %v2642_v46  ;;  %v3057_v20 = vpop.f32.mrb[75].mxu0 }
 0x736   : > { %3121 = vst.msk [vmem:[%s6058_s23 + $0x20] sm:$0xff] %vm657_vm0, %v3105_v0  ;;  %v3106_v62 = vadd.f32 %v3057_v20, %v2640_v49 }
 0x737   : > { %3124 = vst.msk [vmem:[%s6058_s23 + $0x38] sm:$0xff] %vm657_vm0, %v3108_v48 }
 0x738   : > { %3122 = vst.msk [vmem:[%s6058_s23 + $0x28] sm:$0xff] %vm657_vm0, %v3106_v62 }
 0x742   : > { %v3770_v32 = vpop.f32.mrb[76].mxu0 }
 0x743   : > { %v3111_v30 = vadd.f32 %v3770_v32, %v2645_v55  ;;  %v3070_v58 = vpop.f32.mrb[77].mxu0 }
 0x744   : > { %v3109_v42 = vadd.f32 %v3070_v58, %v2643_v33  ;;  %v3771_v25 = vpop.f32.mrb[78].mxu0 }
 0x745   : > { %3127 = vst.msk [vmem:[%s6058_s23 + $0x50] sm:$0xff] %vm657_vm0, %v3111_v30  ;;  %v3112_v39 = vadd.f32 %v3771_v25, %v2646_v59  ;;  %v3073_v23 = vpop.f32.mrb[79].mxu0 }
 0x746   : > { %3125 = vst.msk [vmem:[%s6058_s23 + $0x40] sm:$0xff] %vm657_vm0, %v3109_v42  ;;  %v3110_v56 = vadd.f32 %v3073_v23, %v2644_v22 }
 0x747   : > { %3128 = vst.msk [vmem:[%s6058_s23 + $0x58] sm:$0xff] %vm657_vm0, %v3112_v39 }
 0x748   : > { %3126 = vst.msk [vmem:[%s6058_s23 + $0x48] sm:$0xff] %vm657_vm0, %v3110_v56 }
 0x752   : > { %v3774_v60 = vpop.f32.mrb[80].mxu0 }
 0x753   : > { %v3115_v53 = vadd.f32 %v3774_v60, %v2649_v40  ;;  %v3086_v24 = vpop.f32.mrb[81].mxu0 }
 0x754   : > { %v3113_v54 = vadd.f32 %v3086_v24, %v2647_v10  ;;  %v3775_v50 = vpop.f32.mrb[82].mxu0 }
 0x755   : > { %3131 = vst.msk [vmem:[%s6058_s23 + $0x70] sm:$0xff] %vm657_vm0, %v3115_v53  ;;  %v3116_v51 = vadd.f32 %v3775_v50, %v2650_v21  ;;  %v3089_v57 = vpop.f32.mrb[83].mxu0 }
 0x756   : > { %3129 = vst.msk [vmem:[%s6058_s23 + $0x60] sm:$0xff] %vm657_vm0, %v3113_v54  ;;  %v3114_v61 = vadd.f32 %v3089_v57, %v2648_v31 }
 0x757   : > { %3132 = vst.msk [vmem:[%s6058_s23 + $0x78] sm:$0xff] %vm657_vm0, %v3116_v51 }
 0x758   : > { %3130 = vst.msk [vmem:[%s6058_s23 + $0x68] sm:$0xff] %vm657_vm0, %v3114_v61 }
 0x759   : > { %4200 = shalt.err (!%p4197_p1)
}
 0x75a   : > { %s4201_s6 = scalar_lea.hbm %s6116_s29, 2048  ;;  %s4205_s9 = scalar_lea.hbm %s6283_s20, 8192 }
 0x75b   : > { %p4202_p4 = scmp.ne.s32.totalorder %s6116_s29, %s4201_s6  ;;  %p4206_p13 = scmp.lt.u32.totalorder %s6116_s29, %s6283_s20 }
 0x75c   : > { %p4207_p8 = scmp.lt.u32.totalorder %s4205_s9, %s4201_s6  ;;  %p4209_p9 = scmp.lt.u32.totalorder %s4201_s6, %s6116_s29 }
 0x75d   : > { %p4203_p3 = pnand %p4202_p4, %p6284_p0 }
 0x75e   : > { %p4208_p12 = por %p4207_p8, %p4206_p13 }
 0x75f   : > { %p4204_p7 = pneg %p4203_p3 }
 0x760   : > { %p4210_p5 = por %p4209_p9, %p4208_p12 }
 0x762   : > { %p4211_p2 = pnand %p4210_p5, %p4204_p7 }
 0x764   : > { %4214 = shalt.err (!%p4211_p2)
}
 0x765   : > { %s4352_s24 = smov 128   ;;  %s4353_s16 = smov 8  }
 0x766   : > { %3793 = dma.vmem_to_hbm [thread:$0]  (%p6284_p0), %s6118_s11, 2048, %s6116_s29, %s6128_s30, %s4352_s24, %s4352_s24, %s4353_s16  }
 0x767 PF: > { %s6285_s12 = sld [smem:[#allocation24_spill]]  ;;  %p3799_p6 = scmp.ge.s32.totalorder %s4337_s19, 2 }
 0x768   : > { %s3164_s14 = sand.u32 1, %s4285_s21  }
 0x769   : > { %s3165_s8 = scalar_lea.sflag [#allocation4], %s3164_s14 }
 0x76d   : > { %p6286_p10 = scmp.ne.s32.totalorder %s6285_s12, 0 }
 0x76f   : > { %p3796_p11 = pnand %p3799_p6, %p6286_p10 }
 0x771   : > { %4280 = dma.done.wait (!%p3796_p11), %s3165_s8, 2048  }
 0x772   : > { %4282 = vsyncadd (!%p3796_p11), %s3165_s8, 4294965248  ;;  %s35_s19 = sadd.s32 1, %s4337_s19   ;;  %s6288_s13 = sld [smem:[#allocation14_spill]] }
 0x773   : > { %p6157_p1 = scmp.ge.s32.totalorder %s35_s19, 6   ;;  %s6289_s23 = sld [smem:[#allocation23_spill]] }
 0x774   : > { %s6290_s11 = sld [smem:[#allocation21_spill]]  ;;  %s6291_s29 = sld [smem:[#allocation15_spill]] }
 0x775   : > { %s6292_s30 = sld [smem:[#allocation22_spill]]  ;;  %s6293_s0 = sld [smem:[#allocation18_spill]] }
 0x776   : > { %s6294_s18 = sld [smem:[#allocation19_spill]]  ;;  %s6295_s9 = sld [smem:[#allocation20_spill]] }
 0x777   : > { %s6296_s21 = smov %s4289_s22  ;;  %s6298_s24 = smov %s4301_s25 }
 0x778   : > { %s6297_s22 = smov %s6288_s13  ;;  %s6299_s25 = smov %s4305_s26 }
 0x779   : > { %s6301_s27 = smov %s4313_s28  ;;  %34 = sbr.rel (!%p6157_p1) target bundleno = 24 (0x18), region = 151 }
 0x77a   : > { %s6300_s26 = smov %s6290_s11  ;;  %s6302_s28 = smov %s6291_s29 }
 0x77b   : > { %s6303_s29 = smov %s6292_s30  ;;  %s6304_s30 = smov %s4329_s17 }
 0x77c   : > { %s6305_s17 = smov %s6294_s18  ;;  %s6306_s18 = smov %s6295_s9 }
 0x780   :  { %3170 = vsyncpa [#allocation3], 1 }
 0x781   :  { %3172 = vsyncpa [#allocation3 + $0x1], 1 }
 0x782   :  { %3173 = vsyncpa [#allocation6], 1 }
 0x783   :  { %3175 = vsyncpa [#allocation6 + $0x1], 1 }
 0x784   :  { %3176 = vsyncpa [#allocation4], 1 }
 0x785   :  { %3178 = vsyncpa [#allocation4 + $0x1], 1 }

</bundles_post_ra>
